<compile_context>
chip_gen: v7x
topology: tpu7x:2x2x1
jax: 0.10.0
libtpu: 0.0.40
codegen_flags: <defaults>
</compile_context>

<pallas_src>
import jax
import jax.numpy as jnp
from jax.experimental import pallas as pl
from jax.experimental.pallas import tpu as pltpu

H = 32          # hidden == input_size == lstm_size == output_size
T = 8           # frames (sequence length)
B = 2           # real batch
BP = 8          # batch padded to one (8, .) sublane tile
NL = 3          # LSTM layers
G = 4 * H       # LSTM gate width (= 128 lanes)
TBP = T * BP    # fused (time-major, padded-batch-minor) row count

# Row offsets inside the bf16 LSTM weight slab (all multiples of 16 -> bf16
# sublane-tile aligned static slices).
_OFF_WIH0X = 0
_OFF_WIH0Y = 32
_OFF_WHH0 = 160
_OFF_WIH1 = 192
_OFF_WHH1 = 224
_OFF_WIH2 = 256
_OFF_WHH2 = 288
_LSTM_ROWS = 320

_HEAD1_ROWS = 200   # W1.T (192 rows) + b1 (1 row) + zero pad
_HEAD2_ROWS = 168   # W2.T (160 rows) + b2 (1 row) + zero pad


def _lstm_layer(gates_x, whh, seq_ref):
    """One LSTM layer over the whole fused (padded) batch, layer-major order.

    gates_x : [TBP, G] f32 value -- x @ Wih + (bih + bhh) for ALL frames,
              precomputed in one hoisted MXU matmul.
    whh     : [H, G] bf16 recurrent weight (kernel [in, out] layout).
    seq_ref : [TBP, H] f32 VMEM scratch receiving this layer's hidden sequence.

    h/c are loop-carried register values; the time loop is statically unrolled
    (T = 8).  With BP = 8, every per-step slice / store is a whole (8, .)
    sublane tile, so no masked/rotated sublane accesses appear in the loop.
    """
    h = jnp.zeros((BP, H), jnp.float32)
    c = jnp.zeros((BP, H), jnp.float32)
    for t in range(T):                                         # static unroll
        g = gates_x[t * BP:(t + 1) * BP, :] + jnp.dot(
            h.astype(jnp.bfloat16), whh,
            preferred_element_type=jnp.float32)                # [BP, G], bf16 MXU
        s = jax.nn.sigmoid(g)          # one full-128-lane EUP push (i, f, -, o)
        i_g = s[:, 0:H]
        f_g = s[:, H:2 * H]
        o_g = s[:, 3 * H:4 * H]
        g_g = jnp.tanh(g[:, 2 * H:3 * H])
        c = f_g * c + i_g * g_g
        h = o_g * jnp.tanh(c)
        seq_ref[t * BP:(t + 1) * BP, :] = h                    # aligned tile store


def _bilstm_kernel(x_ref, wbp_ref, lstmw_ref, bias_ref, head1_hbm, head2_hbm,
                   out_ref, seq_a, seq_b, h1_vmem, h2_vmem, dma_sem):
    # ---- Early-start DMA of the head weights (not needed until the very end);
    #      their HBM->VMEM copy hides under the bilinear build + recurrence.
    cp1 = pltpu.make_async_copy(head1_hbm, h1_vmem, dma_sem.at[0])
    cp2 = pltpu.make_async_copy(head2_hbm, h2_vmem, dma_sem.at[1])
    cp1.start()
    cp2.start()

    x = x_ref[...]                                             # [TBP, H] f32
    xb = x.astype(jnp.bfloat16)

    # ---- Bilinear(x, x), lane-aligned formulation:
    #      P[r, i*G+k] = sum_j x[r,j] * Wbil[k,i,j]   (one bf16 MXU matmul)
    #      y[r, k]     = sum_i x[r,i] * P[r, i*G+k] + bb[k]
    p = jnp.dot(xb, wbp_ref[...], preferred_element_type=jnp.float32)  # [TBP, H*G]
    terms = [x[:, i:i + 1] * p[:, i * G:(i + 1) * G] for i in range(H)]
    while len(terms) > 1:                          # pairwise tree-sum (short dep chain)
        nxt = [terms[j] + terms[j + 1] for j in range(0, len(terms) - 1, 2)]
        if len(terms) % 2:
            nxt.append(terms[-1])
        terms = nxt
    y = terms[0] + bias_ref[3:4, :]                            # [TBP, G] f32
    yb = y.astype(jnp.bfloat16)

    # ---- Layer 0: hoisted input-hidden gates for all frames (split matmuls,
    #      so the 160-lane "input_mix" concat never materializes).
    wih0x = lstmw_ref[_OFF_WIH0X:_OFF_WIH0X + H, :]
    wih0y = lstmw_ref[_OFF_WIH0Y:_OFF_WIH0Y + G, :]
    whh0 = lstmw_ref[_OFF_WHH0:_OFF_WHH0 + H, :]
    gx0 = (jnp.dot(xb, wih0x, preferred_element_type=jnp.float32)
           + jnp.dot(yb, wih0y, preferred_element_type=jnp.float32)
           + bias_ref[0:1, :])                                 # [TBP, G]
    _lstm_layer(gx0, whh0, seq_a)

    # ---- Layer 1 (input = layer-0 hidden sequence; ping-pong scratch buffers
    #      so the next layer's hoisted matmul never aliases its own output).
    wih1 = lstmw_ref[_OFF_WIH1:_OFF_WIH1 + H, :]
    whh1 = lstmw_ref[_OFF_WHH1:_OFF_WHH1 + H, :]
    gx1 = (jnp.dot(seq_a[...].astype(jnp.bfloat16), wih1,
                   preferred_element_type=jnp.float32) + bias_ref[1:2, :])
    _lstm_layer(gx1, whh1, seq_b)

    # ---- Layer 2
    wih2 = lstmw_ref[_OFF_WIH2:_OFF_WIH2 + H, :]
    whh2 = lstmw_ref[_OFF_WHH2:_OFF_WHH2 + H, :]
    gx2 = (jnp.dot(seq_b[...].astype(jnp.bfloat16), wih2,
                   preferred_element_type=jnp.float32) + bias_ref[2:3, :])
    _lstm_layer(gx2, whh2, seq_a)

    lstm_out = seq_a[...]                                      # [TBP, H] f32

    # ---- Head (the `Linear` wrapper layers), kept in f32 for accuracy.
    #      Wait for the early-started weight DMAs only now.
    cp1.wait()
    cp2.wait()
    w1x = h1_vmem[0:H, :]
    w1y = h1_vmem[H:5 * H, :]
    w1l = h1_vmem[5 * H:6 * H, :]
    b1 = h1_vmem[6 * H:6 * H + 1, :]
    w2 = h2_vmem[0:5 * H, :]
    b2 = h2_vmem[5 * H:5 * H + 1, :]
    o1 = (jnp.dot(x, w1x, preferred_element_type=jnp.float32)
          + jnp.dot(y, w1y, preferred_element_type=jnp.float32)
          + jnp.dot(lstm_out, w1l, preferred_element_type=jnp.float32)
          + b1)                                                # [TBP, 5H]
    out_ref[...] = jnp.dot(o1, w2, preferred_element_type=jnp.float32) + b2


def bilinear_lstm_forward(x, kernel_params):
    """x: [B, T, H] f32. kernel_params: packed slabs from to_kernel_params."""
    wbp, lstmw, biases, head1, head2 = kernel_params
    # time-major, padded-batch-minor flattening: rows of a frame are one tile.
    xf = jnp.transpose(x, (1, 0, 2))                           # [T, B, H]
    xf = jnp.pad(xf, ((0, 0), (0, BP - B), (0, 0)))            # [T, BP, H]
    xf = xf.reshape(TBP, H)

    def full_spec(a):
        return pl.BlockSpec(a.shape, lambda i: (0, 0))

    out = pl.pallas_call(
        _bilstm_kernel,
        out_shape=jax.ShapeDtypeStruct((TBP, H), jnp.float32),
        grid_spec=pltpu.PrefetchScalarGridSpec(
            num_scalar_prefetch=0,
            grid=(1,),
            in_specs=[
                full_spec(xf),
                full_spec(wbp),
                full_spec(lstmw),
                full_spec(biases),
                pl.BlockSpec(memory_space=pl.ANY),   # head1 slab: manual DMA
                pl.BlockSpec(memory_space=pl.ANY),   # head2 slab: manual DMA
            ],
            out_specs=pl.BlockSpec((TBP, H), lambda i: (0, 0)),
            scratch_shapes=[
                pltpu.VMEM((TBP, H), jnp.float32),             # seq buffer A
                pltpu.VMEM((TBP, H), jnp.float32),             # seq buffer B
                pltpu.VMEM((_HEAD1_ROWS, 5 * H), jnp.float32),  # head1 landing
                pltpu.VMEM((_HEAD2_ROWS, H), jnp.float32),      # head2 landing
                pltpu.SemaphoreType.DMA((2,)),
            ],
        ),
        compiler_params=pltpu.CompilerParams(
            dimension_semantics=("arbitrary",)),
    )(xf, wbp, lstmw, biases, head1, head2)

    # drop the padded batch rows, back to [B, T, H]
    return jnp.transpose(out.reshape(T, BP, H)[:, :B, :], (1, 0, 2))


def make_torch_layout_params(key):
    """Deterministic parameters in PyTorch layouts."""
    ks = jax.random.split(key, 24)
    s = 0.1
    ki = iter(range(24))
    Wbil = jax.random.normal(ks[next(ki)], (G, H, H), jnp.float32) * s  # [out,in1,in2]
    bbil = jax.random.normal(ks[next(ki)], (G,), jnp.float32) * s
    in_sizes = [5 * H, H, H]
    lstm = []
    for l in range(NL):
        Wih = jax.random.normal(ks[next(ki)], (G, in_sizes[l]), jnp.float32) * s
        Whh = jax.random.normal(ks[next(ki)], (G, H), jnp.float32) * s
        bih = jax.random.normal(ks[next(ki)], (G,), jnp.float32) * s
        bhh = jax.random.normal(ks[next(ki)], (G,), jnp.float32) * s
        lstm.append((Wih, Whh, bih, bhh))
    W1 = jax.random.normal(ks[next(ki)], (5 * H, 6 * H), jnp.float32) * s   # [out, in]
    B1 = jax.random.normal(ks[next(ki)], (5 * H,), jnp.float32) * s
    W2 = jax.random.normal(ks[next(ki)], (H, 5 * H), jnp.float32) * s
    B2 = jax.random.normal(ks[next(ki)], (H,), jnp.float32) * s
    return Wbil, bbil, lstm, W1, B1, W2, B2


def to_kernel_params(tp):
    """Permute / transpose / coalesce PyTorch-layout params into kernel slabs."""
    Wbil, bbil, lstm, W1, B1, W2, B2 = tp

    # Lane-aligned bilinear weight: wbp[j, i*G + k] = Wbil[k, i, j]  (bf16)
    wbp = jnp.transpose(Wbil, (2, 1, 0)).reshape(H, H * G).astype(jnp.bfloat16)

    # One bf16 slab for all LSTM matmul weights ([in, 4H] kernel layout each).
    (Wih0, Whh0, bih0, bhh0) = lstm[0]
    Wih0T = Wih0.T                                             # [5H, G]
    rows = [Wih0T[:H], Wih0T[H:], Whh0.T]
    bias_rows = [bih0 + bhh0]
    for l in (1, 2):
        Wih, Whh, bih, bhh = lstm[l]
        rows += [Wih.T, Whh.T]
        bias_rows.append(bih + bhh)
    lstmw = jnp.concatenate(rows, axis=0).astype(jnp.bfloat16)  # [320, G]
    assert lstmw.shape == (_LSTM_ROWS, G)

    # One small f32 slab for all biases (LSTM layer biases + bilinear bias).
    biases = jnp.zeros((8, G), jnp.float32)
    biases = biases.at[0].set(bias_rows[0]).at[1].set(bias_rows[1])
    biases = biases.at[2].set(bias_rows[2]).at[3].set(bbil)

    # Head slabs (f32): W1.T rows + b1 row, W2.T rows + b2 row, zero-padded to
    # a multiple of 8 rows.
    head1 = jnp.zeros((_HEAD1_ROWS, 5 * H), jnp.float32)
    head1 = head1.at[:6 * H].set(W1.T).at[6 * H].set(B1)
    head2 = jnp.zeros((_HEAD2_ROWS, H), jnp.float32)
    head2 = head2.at[:5 * H].set(W2.T).at[5 * H].set(B2)

    return wbp, lstmw, biases, head1, head2


def reference_forward(x, tp):
    """Pure-JAX f32 reference matching the PyTorch module semantics."""
    Wbil, bbil, lstm, W1, B1, W2, B2 = tp
    y = jnp.einsum('bti,kij,btj->btk', x, Wbil, x) + bbil
    mix = jnp.concatenate([x, y], axis=2)
    out = mix
    for (Wih, Whh, bih, bhh) in lstm:
        def step(carry, xt, Wih=Wih, Whh=Whh, bih=bih, bhh=bhh):
            h, c = carry
            z = xt @ Wih.T + h @ Whh.T + bih + bhh
            i, f, g, o = jnp.split(z, 4, axis=-1)
            c = jax.nn.sigmoid(f) * c + jax.nn.sigmoid(i) * jnp.tanh(g)
            h = jax.nn.sigmoid(o) * jnp.tanh(c)
            return (h, c), h
        h0 = jnp.zeros((x.shape[0], H), jnp.float32)
        c0 = jnp.zeros_like(h0)
        _, hs = jax.lax.scan(step, (h0, c0), jnp.swapaxes(out, 0, 1))
        out = jnp.swapaxes(hs, 0, 1)
    feat = jnp.concatenate([mix, out], axis=2)
    o1 = feat @ W1.T + B1
    return o1 @ W2.T + B2


if __name__ == "__main__":
    key = jax.random.PRNGKey(0)
    kx, kp = jax.random.split(key)
    x = jax.random.normal(kx, (B, T, H), jnp.float32)

    torch_params = make_torch_layout_params(kp)
    kernel_params = to_kernel_params(torch_params)

    out = jax.block_until_ready(bilinear_lstm_forward(x, kernel_params))
    assert out.shape == (B, T, H), out.shape

    ref = jax.block_until_ready(reference_forward(x, torch_params))
    err = float(jnp.max(jnp.abs(out - ref)))
    # bf16 MXU operands on the bilinear/LSTM path give ~1e-2 worst-case error
    # vs. the f32 reference (head kept f32); 5e-2 leaves margin without
    # masking genuine blow-ups.
    assert err < 5e-2, f"max abs error {err}"

    print("KERNEL_OK")
</pallas_src>

<mosaic_0001>
module attributes {stable_mosaic.version = 11 : i64} {
  func.func @_bilstm_kernel(%arg0: i32, %arg1: memref<64x32xf32, #tpu.memory_space<vmem>>, %arg2: memref<32x4096xbf16, #tpu.memory_space<vmem>>, %arg3: memref<320x128xbf16, #tpu.memory_space<vmem>>, %arg4: memref<8x128xf32, #tpu.memory_space<vmem>>, %arg5: memref<200x160xf32, #tpu.memory_space<any>>, %arg6: memref<168x32xf32, #tpu.memory_space<any>>, %arg7: memref<64x32xf32, #tpu.memory_space<vmem>>, %arg8: memref<64x32xf32, #tpu.memory_space<vmem>>, %arg9: memref<64x32xf32, #tpu.memory_space<vmem>>, %arg10: memref<200x160xf32, #tpu.memory_space<vmem>>, %arg11: memref<168x32xf32, #tpu.memory_space<vmem>>, %arg12: memref<2x!tpu.dma_semaphore, #tpu.memory_space<semaphore_mem>>) attributes {dimension_semantics = [#tpu.dimension_semantics<arbitrary>], iteration_bounds = array<i64: 1>, scalar_prefetch = 0 : i64, scratch_operands = 5 : i64, tpu.core_type = #tpu.core_type<tc>, window_params = [{pipeline_mode = #tpu.pipeline_mode<synchronous>, transform_indices = @transform_0, window_bounds = array<i64: 64, 32>}, {pipeline_mode = #tpu.pipeline_mode<synchronous>, transform_indices = @transform_1, window_bounds = array<i64: 32, 4096>}, {pipeline_mode = #tpu.pipeline_mode<synchronous>, transform_indices = @transform_2, window_bounds = array<i64: 320, 128>}, {pipeline_mode = #tpu.pipeline_mode<synchronous>, transform_indices = @transform_3, window_bounds = array<i64: 8, 128>}, {}, {}, {pipeline_mode = #tpu.pipeline_mode<synchronous>, transform_indices = @transform_6, window_bounds = array<i64: 64, 32>}]} {
    %c0_i32 = arith.constant 0 : i32
    %0 = tpu.memref_slice %arg12[%c0_i32] : memref<2x!tpu.dma_semaphore, #tpu.memory_space<semaphore_mem>> -> memref<1x!tpu.dma_semaphore, #tpu.memory_space<semaphore_mem>>
    %1 = tpu.memref_squeeze %0 : memref<1x!tpu.dma_semaphore, #tpu.memory_space<semaphore_mem>> -> memref<!tpu.dma_semaphore, #tpu.memory_space<semaphore_mem>>
    tpu.enqueue_dma source(%arg5 : memref<200x160xf32, #tpu.memory_space<any>>) target(%arg10 : memref<200x160xf32, #tpu.memory_space<vmem>>) target_semaphore(%1 : memref<!tpu.dma_semaphore, #tpu.memory_space<semaphore_mem>>)
    %c1_i32 = arith.constant 1 : i32
    %2 = tpu.memref_slice %arg12[%c1_i32] : memref<2x!tpu.dma_semaphore, #tpu.memory_space<semaphore_mem>> -> memref<1x!tpu.dma_semaphore, #tpu.memory_space<semaphore_mem>>
    %3 = tpu.memref_squeeze %2 : memref<1x!tpu.dma_semaphore, #tpu.memory_space<semaphore_mem>> -> memref<!tpu.dma_semaphore, #tpu.memory_space<semaphore_mem>>
    tpu.enqueue_dma source(%arg6 : memref<168x32xf32, #tpu.memory_space<any>>) target(%arg11 : memref<168x32xf32, #tpu.memory_space<vmem>>) target_semaphore(%3 : memref<!tpu.dma_semaphore, #tpu.memory_space<semaphore_mem>>)
    %c0 = arith.constant 0 : index
    %c0_0 = arith.constant 0 : index
    %4 = vector.load %arg1[%c0, %c0_0] : memref<64x32xf32, #tpu.memory_space<vmem>>, vector<64x32xf32>
    %5 = arith.truncf %4 : vector<64x32xf32> to vector<64x32xbf16>
    %c0_1 = arith.constant 0 : index
    %c0_2 = arith.constant 0 : index
    %6 = vector.load %arg2[%c0_1, %c0_2] : memref<32x4096xbf16, #tpu.memory_space<vmem>>, vector<32x4096xbf16>
    %cst = arith.constant dense<0.000000e+00> : vector<64x4096xf32>
    %7 = tpu.matmul %5, %6, %cst {dimension_numbers = #tpu.dot_dimension_numbers<[1], [0], [0], [1], [0, 0, 1, 1], [], []>} : vector<64x32xbf16>, vector<32x4096xbf16>, vector<64x4096xf32> -> vector<64x4096xf32>
    %8 = vector.extract_strided_slice %4 {offsets = [0, 0], sizes = [64, 1], strides = [1, 1]} : vector<64x32xf32> to vector<64x1xf32>
    %9 = vector.extract_strided_slice %7 {offsets = [0, 0], sizes = [64, 128], strides = [1, 1]} : vector<64x4096xf32> to vector<64x128xf32>
    %10 = vector.broadcast %8 : vector<64x1xf32> to vector<64x128xf32>
    %11 = arith.mulf %10, %9 : vector<64x128xf32>
    %12 = vector.extract_strided_slice %4 {offsets = [0, 1], sizes = [64, 1], strides = [1, 1]} : vector<64x32xf32> to vector<64x1xf32>
    %13 = vector.extract_strided_slice %7 {offsets = [0, 128], sizes = [64, 128], strides = [1, 1]} : vector<64x4096xf32> to vector<64x128xf32>
    %14 = vector.broadcast %12 : vector<64x1xf32> to vector<64x128xf32>
    %15 = arith.mulf %14, %13 : vector<64x128xf32>
    %16 = vector.extract_strided_slice %4 {offsets = [0, 2], sizes = [64, 1], strides = [1, 1]} : vector<64x32xf32> to vector<64x1xf32>
    %17 = vector.extract_strided_slice %7 {offsets = [0, 256], sizes = [64, 128], strides = [1, 1]} : vector<64x4096xf32> to vector<64x128xf32>
    %18 = vector.broadcast %16 : vector<64x1xf32> to vector<64x128xf32>
    %19 = arith.mulf %18, %17 : vector<64x128xf32>
    %20 = vector.extract_strided_slice %4 {offsets = [0, 3], sizes = [64, 1], strides = [1, 1]} : vector<64x32xf32> to vector<64x1xf32>
    %21 = vector.extract_strided_slice %7 {offsets = [0, 384], sizes = [64, 128], strides = [1, 1]} : vector<64x4096xf32> to vector<64x128xf32>
    %22 = vector.broadcast %20 : vector<64x1xf32> to vector<64x128xf32>
    %23 = arith.mulf %22, %21 : vector<64x128xf32>
    %24 = vector.extract_strided_slice %4 {offsets = [0, 4], sizes = [64, 1], strides = [1, 1]} : vector<64x32xf32> to vector<64x1xf32>
    %25 = vector.extract_strided_slice %7 {offsets = [0, 512], sizes = [64, 128], strides = [1, 1]} : vector<64x4096xf32> to vector<64x128xf32>
    %26 = vector.broadcast %24 : vector<64x1xf32> to vector<64x128xf32>
    %27 = arith.mulf %26, %25 : vector<64x128xf32>
    %28 = vector.extract_strided_slice %4 {offsets = [0, 5], sizes = [64, 1], strides = [1, 1]} : vector<64x32xf32> to vector<64x1xf32>
    %29 = vector.extract_strided_slice %7 {offsets = [0, 640], sizes = [64, 128], strides = [1, 1]} : vector<64x4096xf32> to vector<64x128xf32>
    %30 = vector.broadcast %28 : vector<64x1xf32> to vector<64x128xf32>
    %31 = arith.mulf %30, %29 : vector<64x128xf32>
    %32 = vector.extract_strided_slice %4 {offsets = [0, 6], sizes = [64, 1], strides = [1, 1]} : vector<64x32xf32> to vector<64x1xf32>
    %33 = vector.extract_strided_slice %7 {offsets = [0, 768], sizes = [64, 128], strides = [1, 1]} : vector<64x4096xf32> to vector<64x128xf32>
    %34 = vector.broadcast %32 : vector<64x1xf32> to vector<64x128xf32>
    %35 = arith.mulf %34, %33 : vector<64x128xf32>
    %36 = vector.extract_strided_slice %4 {offsets = [0, 7], sizes = [64, 1], strides = [1, 1]} : vector<64x32xf32> to vector<64x1xf32>
    %37 = vector.extract_strided_slice %7 {offsets = [0, 896], sizes = [64, 128], strides = [1, 1]} : vector<64x4096xf32> to vector<64x128xf32>
    %38 = vector.broadcast %36 : vector<64x1xf32> to vector<64x128xf32>
    %39 = arith.mulf %38, %37 : vector<64x128xf32>
    %40 = vector.extract_strided_slice %4 {offsets = [0, 8], sizes = [64, 1], strides = [1, 1]} : vector<64x32xf32> to vector<64x1xf32>
    %41 = vector.extract_strided_slice %7 {offsets = [0, 1024], sizes = [64, 128], strides = [1, 1]} : vector<64x4096xf32> to vector<64x128xf32>
    %42 = vector.broadcast %40 : vector<64x1xf32> to vector<64x128xf32>
    %43 = arith.mulf %42, %41 : vector<64x128xf32>
    %44 = vector.extract_strided_slice %4 {offsets = [0, 9], sizes = [64, 1], strides = [1, 1]} : vector<64x32xf32> to vector<64x1xf32>
    %45 = vector.extract_strided_slice %7 {offsets = [0, 1152], sizes = [64, 128], strides = [1, 1]} : vector<64x4096xf32> to vector<64x128xf32>
    %46 = vector.broadcast %44 : vector<64x1xf32> to vector<64x128xf32>
    %47 = arith.mulf %46, %45 : vector<64x128xf32>
    %48 = vector.extract_strided_slice %4 {offsets = [0, 10], sizes = [64, 1], strides = [1, 1]} : vector<64x32xf32> to vector<64x1xf32>
    %49 = vector.extract_strided_slice %7 {offsets = [0, 1280], sizes = [64, 128], strides = [1, 1]} : vector<64x4096xf32> to vector<64x128xf32>
    %50 = vector.broadcast %48 : vector<64x1xf32> to vector<64x128xf32>
    %51 = arith.mulf %50, %49 : vector<64x128xf32>
    %52 = vector.extract_strided_slice %4 {offsets = [0, 11], sizes = [64, 1], strides = [1, 1]} : vector<64x32xf32> to vector<64x1xf32>
    %53 = vector.extract_strided_slice %7 {offsets = [0, 1408], sizes = [64, 128], strides = [1, 1]} : vector<64x4096xf32> to vector<64x128xf32>
    %54 = vector.broadcast %52 : vector<64x1xf32> to vector<64x128xf32>
    %55 = arith.mulf %54, %53 : vector<64x128xf32>
    %56 = vector.extract_strided_slice %4 {offsets = [0, 12], sizes = [64, 1], strides = [1, 1]} : vector<64x32xf32> to vector<64x1xf32>
    %57 = vector.extract_strided_slice %7 {offsets = [0, 1536], sizes = [64, 128], strides = [1, 1]} : vector<64x4096xf32> to vector<64x128xf32>
    %58 = vector.broadcast %56 : vector<64x1xf32> to vector<64x128xf32>
    %59 = arith.mulf %58, %57 : vector<64x128xf32>
    %60 = vector.extract_strided_slice %4 {offsets = [0, 13], sizes = [64, 1], strides = [1, 1]} : vector<64x32xf32> to vector<64x1xf32>
    %61 = vector.extract_strided_slice %7 {offsets = [0, 1664], sizes = [64, 128], strides = [1, 1]} : vector<64x4096xf32> to vector<64x128xf32>
    %62 = vector.broadcast %60 : vector<64x1xf32> to vector<64x128xf32>
    %63 = arith.mulf %62, %61 : vector<64x128xf32>
    %64 = vector.extract_strided_slice %4 {offsets = [0, 14], sizes = [64, 1], strides = [1, 1]} : vector<64x32xf32> to vector<64x1xf32>
    %65 = vector.extract_strided_slice %7 {offsets = [0, 1792], sizes = [64, 128], strides = [1, 1]} : vector<64x4096xf32> to vector<64x128xf32>
    %66 = vector.broadcast %64 : vector<64x1xf32> to vector<64x128xf32>
    %67 = arith.mulf %66, %65 : vector<64x128xf32>
    %68 = vector.extract_strided_slice %4 {offsets = [0, 15], sizes = [64, 1], strides = [1, 1]} : vector<64x32xf32> to vector<64x1xf32>
    %69 = vector.extract_strided_slice %7 {offsets = [0, 1920], sizes = [64, 128], strides = [1, 1]} : vector<64x4096xf32> to vector<64x128xf32>
    %70 = vector.broadcast %68 : vector<64x1xf32> to vector<64x128xf32>
    %71 = arith.mulf %70, %69 : vector<64x128xf32>
    %72 = vector.extract_strided_slice %4 {offsets = [0, 16], sizes = [64, 1], strides = [1, 1]} : vector<64x32xf32> to vector<64x1xf32>
    %73 = vector.extract_strided_slice %7 {offsets = [0, 2048], sizes = [64, 128], strides = [1, 1]} : vector<64x4096xf32> to vector<64x128xf32>
    %74 = vector.broadcast %72 : vector<64x1xf32> to vector<64x128xf32>
    %75 = arith.mulf %74, %73 : vector<64x128xf32>
    %76 = vector.extract_strided_slice %4 {offsets = [0, 17], sizes = [64, 1], strides = [1, 1]} : vector<64x32xf32> to vector<64x1xf32>
    %77 = vector.extract_strided_slice %7 {offsets = [0, 2176], sizes = [64, 128], strides = [1, 1]} : vector<64x4096xf32> to vector<64x128xf32>
    %78 = vector.broadcast %76 : vector<64x1xf32> to vector<64x128xf32>
    %79 = arith.mulf %78, %77 : vector<64x128xf32>
    %80 = vector.extract_strided_slice %4 {offsets = [0, 18], sizes = [64, 1], strides = [1, 1]} : vector<64x32xf32> to vector<64x1xf32>
    %81 = vector.extract_strided_slice %7 {offsets = [0, 2304], sizes = [64, 128], strides = [1, 1]} : vector<64x4096xf32> to vector<64x128xf32>
    %82 = vector.broadcast %80 : vector<64x1xf32> to vector<64x128xf32>
    %83 = arith.mulf %82, %81 : vector<64x128xf32>
    %84 = vector.extract_strided_slice %4 {offsets = [0, 19], sizes = [64, 1], strides = [1, 1]} : vector<64x32xf32> to vector<64x1xf32>
    %85 = vector.extract_strided_slice %7 {offsets = [0, 2432], sizes = [64, 128], strides = [1, 1]} : vector<64x4096xf32> to vector<64x128xf32>
    %86 = vector.broadcast %84 : vector<64x1xf32> to vector<64x128xf32>
    %87 = arith.mulf %86, %85 : vector<64x128xf32>
    %88 = vector.extract_strided_slice %4 {offsets = [0, 20], sizes = [64, 1], strides = [1, 1]} : vector<64x32xf32> to vector<64x1xf32>
    %89 = vector.extract_strided_slice %7 {offsets = [0, 2560], sizes = [64, 128], strides = [1, 1]} : vector<64x4096xf32> to vector<64x128xf32>
    %90 = vector.broadcast %88 : vector<64x1xf32> to vector<64x128xf32>
    %91 = arith.mulf %90, %89 : vector<64x128xf32>
    %92 = vector.extract_strided_slice %4 {offsets = [0, 21], sizes = [64, 1], strides = [1, 1]} : vector<64x32xf32> to vector<64x1xf32>
    %93 = vector.extract_strided_slice %7 {offsets = [0, 2688], sizes = [64, 128], strides = [1, 1]} : vector<64x4096xf32> to vector<64x128xf32>
    %94 = vector.broadcast %92 : vector<64x1xf32> to vector<64x128xf32>
    %95 = arith.mulf %94, %93 : vector<64x128xf32>
    %96 = vector.extract_strided_slice %4 {offsets = [0, 22], sizes = [64, 1], strides = [1, 1]} : vector<64x32xf32> to vector<64x1xf32>
    %97 = vector.extract_strided_slice %7 {offsets = [0, 2816], sizes = [64, 128], strides = [1, 1]} : vector<64x4096xf32> to vector<64x128xf32>
    %98 = vector.broadcast %96 : vector<64x1xf32> to vector<64x128xf32>
    %99 = arith.mulf %98, %97 : vector<64x128xf32>
    %100 = vector.extract_strided_slice %4 {offsets = [0, 23], sizes = [64, 1], strides = [1, 1]} : vector<64x32xf32> to vector<64x1xf32>
    %101 = vector.extract_strided_slice %7 {offsets = [0, 2944], sizes = [64, 128], strides = [1, 1]} : vector<64x4096xf32> to vector<64x128xf32>
    %102 = vector.broadcast %100 : vector<64x1xf32> to vector<64x128xf32>
    %103 = arith.mulf %102, %101 : vector<64x128xf32>
    %104 = vector.extract_strided_slice %4 {offsets = [0, 24], sizes = [64, 1], strides = [1, 1]} : vector<64x32xf32> to vector<64x1xf32>
    %105 = vector.extract_strided_slice %7 {offsets = [0, 3072], sizes = [64, 128], strides = [1, 1]} : vector<64x4096xf32> to vector<64x128xf32>
    %106 = vector.broadcast %104 : vector<64x1xf32> to vector<64x128xf32>
    %107 = arith.mulf %106, %105 : vector<64x128xf32>
    %108 = vector.extract_strided_slice %4 {offsets = [0, 25], sizes = [64, 1], strides = [1, 1]} : vector<64x32xf32> to vector<64x1xf32>
    %109 = vector.extract_strided_slice %7 {offsets = [0, 3200], sizes = [64, 128], strides = [1, 1]} : vector<64x4096xf32> to vector<64x128xf32>
    %110 = vector.broadcast %108 : vector<64x1xf32> to vector<64x128xf32>
    %111 = arith.mulf %110, %109 : vector<64x128xf32>
    %112 = vector.extract_strided_slice %4 {offsets = [0, 26], sizes = [64, 1], strides = [1, 1]} : vector<64x32xf32> to vector<64x1xf32>
    %113 = vector.extract_strided_slice %7 {offsets = [0, 3328], sizes = [64, 128], strides = [1, 1]} : vector<64x4096xf32> to vector<64x128xf32>
    %114 = vector.broadcast %112 : vector<64x1xf32> to vector<64x128xf32>
    %115 = arith.mulf %114, %113 : vector<64x128xf32>
    %116 = vector.extract_strided_slice %4 {offsets = [0, 27], sizes = [64, 1], strides = [1, 1]} : vector<64x32xf32> to vector<64x1xf32>
    %117 = vector.extract_strided_slice %7 {offsets = [0, 3456], sizes = [64, 128], strides = [1, 1]} : vector<64x4096xf32> to vector<64x128xf32>
    %118 = vector.broadcast %116 : vector<64x1xf32> to vector<64x128xf32>
    %119 = arith.mulf %118, %117 : vector<64x128xf32>
    %120 = vector.extract_strided_slice %4 {offsets = [0, 28], sizes = [64, 1], strides = [1, 1]} : vector<64x32xf32> to vector<64x1xf32>
    %121 = vector.extract_strided_slice %7 {offsets = [0, 3584], sizes = [64, 128], strides = [1, 1]} : vector<64x4096xf32> to vector<64x128xf32>
    %122 = vector.broadcast %120 : vector<64x1xf32> to vector<64x128xf32>
    %123 = arith.mulf %122, %121 : vector<64x128xf32>
    %124 = vector.extract_strided_slice %4 {offsets = [0, 29], sizes = [64, 1], strides = [1, 1]} : vector<64x32xf32> to vector<64x1xf32>
    %125 = vector.extract_strided_slice %7 {offsets = [0, 3712], sizes = [64, 128], strides = [1, 1]} : vector<64x4096xf32> to vector<64x128xf32>
    %126 = vector.broadcast %124 : vector<64x1xf32> to vector<64x128xf32>
    %127 = arith.mulf %126, %125 : vector<64x128xf32>
    %128 = vector.extract_strided_slice %4 {offsets = [0, 30], sizes = [64, 1], strides = [1, 1]} : vector<64x32xf32> to vector<64x1xf32>
    %129 = vector.extract_strided_slice %7 {offsets = [0, 3840], sizes = [64, 128], strides = [1, 1]} : vector<64x4096xf32> to vector<64x128xf32>
    %130 = vector.broadcast %128 : vector<64x1xf32> to vector<64x128xf32>
    %131 = arith.mulf %130, %129 : vector<64x128xf32>
    %132 = vector.extract_strided_slice %4 {offsets = [0, 31], sizes = [64, 1], strides = [1, 1]} : vector<64x32xf32> to vector<64x1xf32>
    %133 = vector.extract_strided_slice %7 {offsets = [0, 3968], sizes = [64, 128], strides = [1, 1]} : vector<64x4096xf32> to vector<64x128xf32>
    %134 = vector.broadcast %132 : vector<64x1xf32> to vector<64x128xf32>
    %135 = arith.mulf %134, %133 : vector<64x128xf32>
    %136 = arith.addf %11, %15 : vector<64x128xf32>
    %137 = arith.addf %19, %23 : vector<64x128xf32>
    %138 = arith.addf %27, %31 : vector<64x128xf32>
    %139 = arith.addf %35, %39 : vector<64x128xf32>
    %140 = arith.addf %43, %47 : vector<64x128xf32>
    %141 = arith.addf %51, %55 : vector<64x128xf32>
    %142 = arith.addf %59, %63 : vector<64x128xf32>
    %143 = arith.addf %67, %71 : vector<64x128xf32>
    %144 = arith.addf %75, %79 : vector<64x128xf32>
    %145 = arith.addf %83, %87 : vector<64x128xf32>
    %146 = arith.addf %91, %95 : vector<64x128xf32>
    %147 = arith.addf %99, %103 : vector<64x128xf32>
    %148 = arith.addf %107, %111 : vector<64x128xf32>
    %149 = arith.addf %115, %119 : vector<64x128xf32>
    %150 = arith.addf %123, %127 : vector<64x128xf32>
    %151 = arith.addf %131, %135 : vector<64x128xf32>
    %152 = arith.addf %136, %137 : vector<64x128xf32>
    %153 = arith.addf %138, %139 : vector<64x128xf32>
    %154 = arith.addf %140, %141 : vector<64x128xf32>
    %155 = arith.addf %142, %143 : vector<64x128xf32>
    %156 = arith.addf %144, %145 : vector<64x128xf32>
    %157 = arith.addf %146, %147 : vector<64x128xf32>
    %158 = arith.addf %148, %149 : vector<64x128xf32>
    %159 = arith.addf %150, %151 : vector<64x128xf32>
    %160 = arith.addf %152, %153 : vector<64x128xf32>
    %161 = arith.addf %154, %155 : vector<64x128xf32>
    %162 = arith.addf %156, %157 : vector<64x128xf32>
    %163 = arith.addf %158, %159 : vector<64x128xf32>
    %164 = arith.addf %160, %161 : vector<64x128xf32>
    %165 = arith.addf %162, %163 : vector<64x128xf32>
    %166 = arith.addf %164, %165 : vector<64x128xf32>
    %c3 = arith.constant 3 : index
    %c0_3 = arith.constant 0 : index
    %167 = vector.load %arg4[%c3, %c0_3] : memref<8x128xf32, #tpu.memory_space<vmem>>, vector<1x128xf32>
    %168 = vector.broadcast %167 : vector<1x128xf32> to vector<64x128xf32>
    %169 = arith.addf %166, %168 : vector<64x128xf32>
    %170 = arith.truncf %169 : vector<64x128xf32> to vector<64x128xbf16>
    %c0_4 = arith.constant 0 : index
    %c0_5 = arith.constant 0 : index
    %171 = vector.load %arg3[%c0_4, %c0_5] : memref<320x128xbf16, #tpu.memory_space<vmem>>, vector<32x128xbf16>
    %c32 = arith.constant 32 : index
    %c0_6 = arith.constant 0 : index
    %172 = vector.load %arg3[%c32, %c0_6] : memref<320x128xbf16, #tpu.memory_space<vmem>>, vector<128x128xbf16>
    %c160 = arith.constant 160 : index
    %c0_7 = arith.constant 0 : index
    %173 = vector.load %arg3[%c160, %c0_7] : memref<320x128xbf16, #tpu.memory_space<vmem>>, vector<32x128xbf16>
    %cst_8 = arith.constant dense<0.000000e+00> : vector<64x128xf32>
    %174 = tpu.matmul %5, %171, %cst_8 {dimension_numbers = #tpu.dot_dimension_numbers<[1], [0], [0], [1], [0, 0, 1, 1], [], []>} : vector<64x32xbf16>, vector<32x128xbf16>, vector<64x128xf32> -> vector<64x128xf32>
    %cst_9 = arith.constant dense<0.000000e+00> : vector<64x128xf32>
    %175 = tpu.matmul %170, %172, %cst_9 {dimension_numbers = #tpu.dot_dimension_numbers<[1], [0], [0], [1], [0, 0, 1, 1], [], []>} : vector<64x128xbf16>, vector<128x128xbf16>, vector<64x128xf32> -> vector<64x128xf32>
    %176 = arith.addf %174, %175 : vector<64x128xf32>
    %c0_10 = arith.constant 0 : index
    %c0_11 = arith.constant 0 : index
    %177 = vector.load %arg4[%c0_10, %c0_11] : memref<8x128xf32, #tpu.memory_space<vmem>>, vector<1x128xf32>
    %178 = vector.broadcast %177 : vector<1x128xf32> to vector<64x128xf32>
    %179 = arith.addf %176, %178 : vector<64x128xf32>
    %cst_12 = arith.constant 0.000000e+00 : f32
    %180 = vector.broadcast %cst_12 : f32 to vector<8x32xf32>
    %cst_13 = arith.constant 0.000000e+00 : f32
    %181 = vector.broadcast %cst_13 : f32 to vector<8x32xf32>
    %182 = vector.extract_strided_slice %179 {offsets = [0, 0], sizes = [8, 128], strides = [1, 1]} : vector<64x128xf32> to vector<8x128xf32>
    %183 = arith.truncf %180 : vector<8x32xf32> to vector<8x32xbf16>
    %cst_14 = arith.constant dense<0.000000e+00> : vector<8x128xf32>
    %184 = tpu.matmul %183, %173, %cst_14 {dimension_numbers = #tpu.dot_dimension_numbers<[1], [0], [0], [1], [0, 0, 1, 1], [], []>} : vector<8x32xbf16>, vector<32x128xbf16>, vector<8x128xf32> -> vector<8x128xf32>
    %185 = arith.addf %182, %184 : vector<8x128xf32>
    %186 = arith.negf %185 : vector<8x128xf32>
    %187 = math.exp %186 : vector<8x128xf32>
    %cst_15 = arith.constant 1.000000e+00 : f32
    %188 = vector.broadcast %cst_15 : f32 to vector<8x128xf32>
    %189 = arith.addf %188, %187 : vector<8x128xf32>
    %190 = arith.divf %188, %189 : vector<8x128xf32>
    %191 = vector.extract_strided_slice %190 {offsets = [0, 0], sizes = [8, 32], strides = [1, 1]} : vector<8x128xf32> to vector<8x32xf32>
    %192 = vector.extract_strided_slice %190 {offsets = [0, 32], sizes = [8, 32], strides = [1, 1]} : vector<8x128xf32> to vector<8x32xf32>
    %193 = vector.extract_strided_slice %190 {offsets = [0, 96], sizes = [8, 32], strides = [1, 1]} : vector<8x128xf32> to vector<8x32xf32>
    %194 = vector.extract_strided_slice %185 {offsets = [0, 64], sizes = [8, 32], strides = [1, 1]} : vector<8x128xf32> to vector<8x32xf32>
    %195 = math.tanh %194 : vector<8x32xf32>
    %196 = arith.mulf %192, %181 : vector<8x32xf32>
    %197 = arith.mulf %191, %195 : vector<8x32xf32>
    %198 = arith.addf %196, %197 : vector<8x32xf32>
    %199 = math.tanh %198 : vector<8x32xf32>
    %200 = arith.mulf %193, %199 : vector<8x32xf32>
    %c0_16 = arith.constant 0 : index
    %c0_17 = arith.constant 0 : index
    %201 = vector.load %arg8[%c0_16, %c0_17] : memref<64x32xf32, #tpu.memory_space<vmem>>, vector<8x32xf32>
    tpu.vector_store %arg8[%c0_16, %c0_17], %200 {strides = array<i32>} : memref<64x32xf32, #tpu.memory_space<vmem>>, vector<8x32xf32>,
    %202 = vector.extract_strided_slice %179 {offsets = [8, 0], sizes = [8, 128], strides = [1, 1]} : vector<64x128xf32> to vector<8x128xf32>
    %203 = arith.truncf %200 : vector<8x32xf32> to vector<8x32xbf16>
    %cst_18 = arith.constant dense<0.000000e+00> : vector<8x128xf32>
    %204 = tpu.matmul %203, %173, %cst_18 {dimension_numbers = #tpu.dot_dimension_numbers<[1], [0], [0], [1], [0, 0, 1, 1], [], []>} : vector<8x32xbf16>, vector<32x128xbf16>, vector<8x128xf32> -> vector<8x128xf32>
    %205 = arith.addf %202, %204 : vector<8x128xf32>
    %206 = arith.negf %205 : vector<8x128xf32>
    %207 = math.exp %206 : vector<8x128xf32>
    %cst_19 = arith.constant 1.000000e+00 : f32
    %208 = vector.broadcast %cst_19 : f32 to vector<8x128xf32>
    %209 = arith.addf %208, %207 : vector<8x128xf32>
    %210 = arith.divf %208, %209 : vector<8x128xf32>
    %211 = vector.extract_strided_slice %210 {offsets = [0, 0], sizes = [8, 32], strides = [1, 1]} : vector<8x128xf32> to vector<8x32xf32>
    %212 = vector.extract_strided_slice %210 {offsets = [0, 32], sizes = [8, 32], strides = [1, 1]} : vector<8x128xf32> to vector<8x32xf32>
    %213 = vector.extract_strided_slice %210 {offsets = [0, 96], sizes = [8, 32], strides = [1, 1]} : vector<8x128xf32> to vector<8x32xf32>
    %214 = vector.extract_strided_slice %205 {offsets = [0, 64], sizes = [8, 32], strides = [1, 1]} : vector<8x128xf32> to vector<8x32xf32>
    %215 = math.tanh %214 : vector<8x32xf32>
    %216 = arith.mulf %212, %198 : vector<8x32xf32>
    %217 = arith.mulf %211, %215 : vector<8x32xf32>
    %218 = arith.addf %216, %217 : vector<8x32xf32>
    %219 = math.tanh %218 : vector<8x32xf32>
    %220 = arith.mulf %213, %219 : vector<8x32xf32>
    %c8 = arith.constant 8 : index
    %c0_20 = arith.constant 0 : index
    %221 = vector.load %arg8[%c8, %c0_20] : memref<64x32xf32, #tpu.memory_space<vmem>>, vector<8x32xf32>
    tpu.vector_store %arg8[%c8, %c0_20], %220 {strides = array<i32>} : memref<64x32xf32, #tpu.memory_space<vmem>>, vector<8x32xf32>,
    %222 = vector.extract_strided_slice %179 {offsets = [16, 0], sizes = [8, 128], strides = [1, 1]} : vector<64x128xf32> to vector<8x128xf32>
    %223 = arith.truncf %220 : vector<8x32xf32> to vector<8x32xbf16>
    %cst_21 = arith.constant dense<0.000000e+00> : vector<8x128xf32>
    %224 = tpu.matmul %223, %173, %cst_21 {dimension_numbers = #tpu.dot_dimension_numbers<[1], [0], [0], [1], [0, 0, 1, 1], [], []>} : vector<8x32xbf16>, vector<32x128xbf16>, vector<8x128xf32> -> vector<8x128xf32>
    %225 = arith.addf %222, %224 : vector<8x128xf32>
    %226 = arith.negf %225 : vector<8x128xf32>
    %227 = math.exp %226 : vector<8x128xf32>
    %cst_22 = arith.constant 1.000000e+00 : f32
    %228 = vector.broadcast %cst_22 : f32 to vector<8x128xf32>
    %229 = arith.addf %228, %227 : vector<8x128xf32>
    %230 = arith.divf %228, %229 : vector<8x128xf32>
    %231 = vector.extract_strided_slice %230 {offsets = [0, 0], sizes = [8, 32], strides = [1, 1]} : vector<8x128xf32> to vector<8x32xf32>
    %232 = vector.extract_strided_slice %230 {offsets = [0, 32], sizes = [8, 32], strides = [1, 1]} : vector<8x128xf32> to vector<8x32xf32>
    %233 = vector.extract_strided_slice %230 {offsets = [0, 96], sizes = [8, 32], strides = [1, 1]} : vector<8x128xf32> to vector<8x32xf32>
    %234 = vector.extract_strided_slice %225 {offsets = [0, 64], sizes = [8, 32], strides = [1, 1]} : vector<8x128xf32> to vector<8x32xf32>
    %235 = math.tanh %234 : vector<8x32xf32>
    %236 = arith.mulf %232, %218 : vector<8x32xf32>
    %237 = arith.mulf %231, %235 : vector<8x32xf32>
    %238 = arith.addf %236, %237 : vector<8x32xf32>
    %239 = math.tanh %238 : vector<8x32xf32>
    %240 = arith.mulf %233, %239 : vector<8x32xf32>
    %c16 = arith.constant 16 : index
    %c0_23 = arith.constant 0 : index
    %241 = vector.load %arg8[%c16, %c0_23] : memref<64x32xf32, #tpu.memory_space<vmem>>, vector<8x32xf32>
    tpu.vector_store %arg8[%c16, %c0_23], %240 {strides = array<i32>} : memref<64x32xf32, #tpu.memory_space<vmem>>, vector<8x32xf32>,
    %242 = vector.extract_strided_slice %179 {offsets = [24, 0], sizes = [8, 128], strides = [1, 1]} : vector<64x128xf32> to vector<8x128xf32>
    %243 = arith.truncf %240 : vector<8x32xf32> to vector<8x32xbf16>
    %cst_24 = arith.constant dense<0.000000e+00> : vector<8x128xf32>
    %244 = tpu.matmul %243, %173, %cst_24 {dimension_numbers = #tpu.dot_dimension_numbers<[1], [0], [0], [1], [0, 0, 1, 1], [], []>} : vector<8x32xbf16>, vector<32x128xbf16>, vector<8x128xf32> -> vector<8x128xf32>
    %245 = arith.addf %242, %244 : vector<8x128xf32>
    %246 = arith.negf %245 : vector<8x128xf32>
    %247 = math.exp %246 : vector<8x128xf32>
    %cst_25 = arith.constant 1.000000e+00 : f32
    %248 = vector.broadcast %cst_25 : f32 to vector<8x128xf32>
    %249 = arith.addf %248, %247 : vector<8x128xf32>
    %250 = arith.divf %248, %249 : vector<8x128xf32>
    %251 = vector.extract_strided_slice %250 {offsets = [0, 0], sizes = [8, 32], strides = [1, 1]} : vector<8x128xf32> to vector<8x32xf32>
    %252 = vector.extract_strided_slice %250 {offsets = [0, 32], sizes = [8, 32], strides = [1, 1]} : vector<8x128xf32> to vector<8x32xf32>
    %253 = vector.extract_strided_slice %250 {offsets = [0, 96], sizes = [8, 32], strides = [1, 1]} : vector<8x128xf32> to vector<8x32xf32>
    %254 = vector.extract_strided_slice %245 {offsets = [0, 64], sizes = [8, 32], strides = [1, 1]} : vector<8x128xf32> to vector<8x32xf32>
    %255 = math.tanh %254 : vector<8x32xf32>
    %256 = arith.mulf %252, %238 : vector<8x32xf32>
    %257 = arith.mulf %251, %255 : vector<8x32xf32>
    %258 = arith.addf %256, %257 : vector<8x32xf32>
    %259 = math.tanh %258 : vector<8x32xf32>
    %260 = arith.mulf %253, %259 : vector<8x32xf32>
    %c24 = arith.constant 24 : index
    %c0_26 = arith.constant 0 : index
    %261 = vector.load %arg8[%c24, %c0_26] : memref<64x32xf32, #tpu.memory_space<vmem>>, vector<8x32xf32>
    tpu.vector_store %arg8[%c24, %c0_26], %260 {strides = array<i32>} : memref<64x32xf32, #tpu.memory_space<vmem>>, vector<8x32xf32>,
    %262 = vector.extract_strided_slice %179 {offsets = [32, 0], sizes = [8, 128], strides = [1, 1]} : vector<64x128xf32> to vector<8x128xf32>
    %263 = arith.truncf %260 : vector<8x32xf32> to vector<8x32xbf16>
    %cst_27 = arith.constant dense<0.000000e+00> : vector<8x128xf32>
    %264 = tpu.matmul %263, %173, %cst_27 {dimension_numbers = #tpu.dot_dimension_numbers<[1], [0], [0], [1], [0, 0, 1, 1], [], []>} : vector<8x32xbf16>, vector<32x128xbf16>, vector<8x128xf32> -> vector<8x128xf32>
    %265 = arith.addf %262, %264 : vector<8x128xf32>
    %266 = arith.negf %265 : vector<8x128xf32>
    %267 = math.exp %266 : vector<8x128xf32>
    %cst_28 = arith.constant 1.000000e+00 : f32
    %268 = vector.broadcast %cst_28 : f32 to vector<8x128xf32>
    %269 = arith.addf %268, %267 : vector<8x128xf32>
    %270 = arith.divf %268, %269 : vector<8x128xf32>
    %271 = vector.extract_strided_slice %270 {offsets = [0, 0], sizes = [8, 32], strides = [1, 1]} : vector<8x128xf32> to vector<8x32xf32>
    %272 = vector.extract_strided_slice %270 {offsets = [0, 32], sizes = [8, 32], strides = [1, 1]} : vector<8x128xf32> to vector<8x32xf32>
    %273 = vector.extract_strided_slice %270 {offsets = [0, 96], sizes = [8, 32], strides = [1, 1]} : vector<8x128xf32> to vector<8x32xf32>
    %274 = vector.extract_strided_slice %265 {offsets = [0, 64], sizes = [8, 32], strides = [1, 1]} : vector<8x128xf32> to vector<8x32xf32>
    %275 = math.tanh %274 : vector<8x32xf32>
    %276 = arith.mulf %272, %258 : vector<8x32xf32>
    %277 = arith.mulf %271, %275 : vector<8x32xf32>
    %278 = arith.addf %276, %277 : vector<8x32xf32>
    %279 = math.tanh %278 : vector<8x32xf32>
    %280 = arith.mulf %273, %279 : vector<8x32xf32>
    %c32_29 = arith.constant 32 : index
    %c0_30 = arith.constant 0 : index
    %281 = vector.load %arg8[%c32_29, %c0_30] : memref<64x32xf32, #tpu.memory_space<vmem>>, vector<8x32xf32>
    tpu.vector_store %arg8[%c32_29, %c0_30], %280 {strides = array<i32>} : memref<64x32xf32, #tpu.memory_space<vmem>>, vector<8x32xf32>,
    %282 = vector.extract_strided_slice %179 {offsets = [40, 0], sizes = [8, 128], strides = [1, 1]} : vector<64x128xf32> to vector<8x128xf32>
    %283 = arith.truncf %280 : vector<8x32xf32> to vector<8x32xbf16>
    %cst_31 = arith.constant dense<0.000000e+00> : vector<8x128xf32>
    %284 = tpu.matmul %283, %173, %cst_31 {dimension_numbers = #tpu.dot_dimension_numbers<[1], [0], [0], [1], [0, 0, 1, 1], [], []>} : vector<8x32xbf16>, vector<32x128xbf16>, vector<8x128xf32> -> vector<8x128xf32>
    %285 = arith.addf %282, %284 : vector<8x128xf32>
    %286 = arith.negf %285 : vector<8x128xf32>
    %287 = math.exp %286 : vector<8x128xf32>
    %cst_32 = arith.constant 1.000000e+00 : f32
    %288 = vector.broadcast %cst_32 : f32 to vector<8x128xf32>
    %289 = arith.addf %288, %287 : vector<8x128xf32>
    %290 = arith.divf %288, %289 : vector<8x128xf32>
    %291 = vector.extract_strided_slice %290 {offsets = [0, 0], sizes = [8, 32], strides = [1, 1]} : vector<8x128xf32> to vector<8x32xf32>
    %292 = vector.extract_strided_slice %290 {offsets = [0, 32], sizes = [8, 32], strides = [1, 1]} : vector<8x128xf32> to vector<8x32xf32>
    %293 = vector.extract_strided_slice %290 {offsets = [0, 96], sizes = [8, 32], strides = [1, 1]} : vector<8x128xf32> to vector<8x32xf32>
    %294 = vector.extract_strided_slice %285 {offsets = [0, 64], sizes = [8, 32], strides = [1, 1]} : vector<8x128xf32> to vector<8x32xf32>
    %295 = math.tanh %294 : vector<8x32xf32>
    %296 = arith.mulf %292, %278 : vector<8x32xf32>
    %297 = arith.mulf %291, %295 : vector<8x32xf32>
    %298 = arith.addf %296, %297 : vector<8x32xf32>
    %299 = math.tanh %298 : vector<8x32xf32>
    %300 = arith.mulf %293, %299 : vector<8x32xf32>
    %c40 = arith.constant 40 : index
    %c0_33 = arith.constant 0 : index
    %301 = vector.load %arg8[%c40, %c0_33] : memref<64x32xf32, #tpu.memory_space<vmem>>, vector<8x32xf32>
    tpu.vector_store %arg8[%c40, %c0_33], %300 {strides = array<i32>} : memref<64x32xf32, #tpu.memory_space<vmem>>, vector<8x32xf32>,
    %302 = vector.extract_strided_slice %179 {offsets = [48, 0], sizes = [8, 128], strides = [1, 1]} : vector<64x128xf32> to vector<8x128xf32>
    %303 = arith.truncf %300 : vector<8x32xf32> to vector<8x32xbf16>
    %cst_34 = arith.constant dense<0.000000e+00> : vector<8x128xf32>
    %304 = tpu.matmul %303, %173, %cst_34 {dimension_numbers = #tpu.dot_dimension_numbers<[1], [0], [0], [1], [0, 0, 1, 1], [], []>} : vector<8x32xbf16>, vector<32x128xbf16>, vector<8x128xf32> -> vector<8x128xf32>
    %305 = arith.addf %302, %304 : vector<8x128xf32>
    %306 = arith.negf %305 : vector<8x128xf32>
    %307 = math.exp %306 : vector<8x128xf32>
    %cst_35 = arith.constant 1.000000e+00 : f32
    %308 = vector.broadcast %cst_35 : f32 to vector<8x128xf32>
    %309 = arith.addf %308, %307 : vector<8x128xf32>
    %310 = arith.divf %308, %309 : vector<8x128xf32>
    %311 = vector.extract_strided_slice %310 {offsets = [0, 0], sizes = [8, 32], strides = [1, 1]} : vector<8x128xf32> to vector<8x32xf32>
    %312 = vector.extract_strided_slice %310 {offsets = [0, 32], sizes = [8, 32], strides = [1, 1]} : vector<8x128xf32> to vector<8x32xf32>
    %313 = vector.extract_strided_slice %310 {offsets = [0, 96], sizes = [8, 32], strides = [1, 1]} : vector<8x128xf32> to vector<8x32xf32>
    %314 = vector.extract_strided_slice %305 {offsets = [0, 64], sizes = [8, 32], strides = [1, 1]} : vector<8x128xf32> to vector<8x32xf32>
    %315 = math.tanh %314 : vector<8x32xf32>
    %316 = arith.mulf %312, %298 : vector<8x32xf32>
    %317 = arith.mulf %311, %315 : vector<8x32xf32>
    %318 = arith.addf %316, %317 : vector<8x32xf32>
    %319 = math.tanh %318 : vector<8x32xf32>
    %320 = arith.mulf %313, %319 : vector<8x32xf32>
    %c48 = arith.constant 48 : index
    %c0_36 = arith.constant 0 : index
    %321 = vector.load %arg8[%c48, %c0_36] : memref<64x32xf32, #tpu.memory_space<vmem>>, vector<8x32xf32>
    tpu.vector_store %arg8[%c48, %c0_36], %320 {strides = array<i32>} : memref<64x32xf32, #tpu.memory_space<vmem>>, vector<8x32xf32>,
    %322 = vector.extract_strided_slice %179 {offsets = [56, 0], sizes = [8, 128], strides = [1, 1]} : vector<64x128xf32> to vector<8x128xf32>
    %323 = arith.truncf %320 : vector<8x32xf32> to vector<8x32xbf16>
    %cst_37 = arith.constant dense<0.000000e+00> : vector<8x128xf32>
    %324 = tpu.matmul %323, %173, %cst_37 {dimension_numbers = #tpu.dot_dimension_numbers<[1], [0], [0], [1], [0, 0, 1, 1], [], []>} : vector<8x32xbf16>, vector<32x128xbf16>, vector<8x128xf32> -> vector<8x128xf32>
    %325 = arith.addf %322, %324 : vector<8x128xf32>
    %326 = arith.negf %325 : vector<8x128xf32>
    %327 = math.exp %326 : vector<8x128xf32>
    %cst_38 = arith.constant 1.000000e+00 : f32
    %328 = vector.broadcast %cst_38 : f32 to vector<8x128xf32>
    %329 = arith.addf %328, %327 : vector<8x128xf32>
    %330 = arith.divf %328, %329 : vector<8x128xf32>
    %331 = vector.extract_strided_slice %330 {offsets = [0, 0], sizes = [8, 32], strides = [1, 1]} : vector<8x128xf32> to vector<8x32xf32>
    %332 = vector.extract_strided_slice %330 {offsets = [0, 32], sizes = [8, 32], strides = [1, 1]} : vector<8x128xf32> to vector<8x32xf32>
    %333 = vector.extract_strided_slice %330 {offsets = [0, 96], sizes = [8, 32], strides = [1, 1]} : vector<8x128xf32> to vector<8x32xf32>
    %334 = vector.extract_strided_slice %325 {offsets = [0, 64], sizes = [8, 32], strides = [1, 1]} : vector<8x128xf32> to vector<8x32xf32>
    %335 = math.tanh %334 : vector<8x32xf32>
    %336 = arith.mulf %332, %318 : vector<8x32xf32>
    %337 = arith.mulf %331, %335 : vector<8x32xf32>
    %338 = arith.addf %336, %337 : vector<8x32xf32>
    %339 = math.tanh %338 : vector<8x32xf32>
    %340 = arith.mulf %333, %339 : vector<8x32xf32>
    %c56 = arith.constant 56 : index
    %c0_39 = arith.constant 0 : index
    %341 = vector.load %arg8[%c56, %c0_39] : memref<64x32xf32, #tpu.memory_space<vmem>>, vector<8x32xf32>
    tpu.vector_store %arg8[%c56, %c0_39], %340 {strides = array<i32>} : memref<64x32xf32, #tpu.memory_space<vmem>>, vector<8x32xf32>,
    %c192 = arith.constant 192 : index
    %c0_40 = arith.constant 0 : index
    %342 = vector.load %arg3[%c192, %c0_40] : memref<320x128xbf16, #tpu.memory_space<vmem>>, vector<32x128xbf16>
    %c224 = arith.constant 224 : index
    %c0_41 = arith.constant 0 : index
    %343 = vector.load %arg3[%c224, %c0_41] : memref<320x128xbf16, #tpu.memory_space<vmem>>, vector<32x128xbf16>
    %c0_42 = arith.constant 0 : index
    %c0_43 = arith.constant 0 : index
    %344 = vector.load %arg8[%c0_42, %c0_43] : memref<64x32xf32, #tpu.memory_space<vmem>>, vector<64x32xf32>
    %345 = arith.truncf %344 : vector<64x32xf32> to vector<64x32xbf16>
    %cst_44 = arith.constant dense<0.000000e+00> : vector<64x128xf32>
    %346 = tpu.matmul %345, %342, %cst_44 {dimension_numbers = #tpu.dot_dimension_numbers<[1], [0], [0], [1], [0, 0, 1, 1], [], []>} : vector<64x32xbf16>, vector<32x128xbf16>, vector<64x128xf32> -> vector<64x128xf32>
    %c1 = arith.constant 1 : index
    %c0_45 = arith.constant 0 : index
    %347 = vector.load %arg4[%c1, %c0_45] : memref<8x128xf32, #tpu.memory_space<vmem>>, vector<1x128xf32>
    %348 = vector.broadcast %347 : vector<1x128xf32> to vector<64x128xf32>
    %349 = arith.addf %346, %348 : vector<64x128xf32>
    %cst_46 = arith.constant 0.000000e+00 : f32
    %350 = vector.broadcast %cst_46 : f32 to vector<8x32xf32>
    %cst_47 = arith.constant 0.000000e+00 : f32
    %351 = vector.broadcast %cst_47 : f32 to vector<8x32xf32>
    %352 = vector.extract_strided_slice %349 {offsets = [0, 0], sizes = [8, 128], strides = [1, 1]} : vector<64x128xf32> to vector<8x128xf32>
    %353 = arith.truncf %350 : vector<8x32xf32> to vector<8x32xbf16>
    %cst_48 = arith.constant dense<0.000000e+00> : vector<8x128xf32>
    %354 = tpu.matmul %353, %343, %cst_48 {dimension_numbers = #tpu.dot_dimension_numbers<[1], [0], [0], [1], [0, 0, 1, 1], [], []>} : vector<8x32xbf16>, vector<32x128xbf16>, vector<8x128xf32> -> vector<8x128xf32>
    %355 = arith.addf %352, %354 : vector<8x128xf32>
    %356 = arith.negf %355 : vector<8x128xf32>
    %357 = math.exp %356 : vector<8x128xf32>
    %cst_49 = arith.constant 1.000000e+00 : f32
    %358 = vector.broadcast %cst_49 : f32 to vector<8x128xf32>
    %359 = arith.addf %358, %357 : vector<8x128xf32>
    %360 = arith.divf %358, %359 : vector<8x128xf32>
    %361 = vector.extract_strided_slice %360 {offsets = [0, 0], sizes = [8, 32], strides = [1, 1]} : vector<8x128xf32> to vector<8x32xf32>
    %362 = vector.extract_strided_slice %360 {offsets = [0, 32], sizes = [8, 32], strides = [1, 1]} : vector<8x128xf32> to vector<8x32xf32>
    %363 = vector.extract_strided_slice %360 {offsets = [0, 96], sizes = [8, 32], strides = [1, 1]} : vector<8x128xf32> to vector<8x32xf32>
    %364 = vector.extract_strided_slice %355 {offsets = [0, 64], sizes = [8, 32], strides = [1, 1]} : vector<8x128xf32> to vector<8x32xf32>
    %365 = math.tanh %364 : vector<8x32xf32>
    %366 = arith.mulf %362, %351 : vector<8x32xf32>
    %367 = arith.mulf %361, %365 : vector<8x32xf32>
    %368 = arith.addf %366, %367 : vector<8x32xf32>
    %369 = math.tanh %368 : vector<8x32xf32>
    %370 = arith.mulf %363, %369 : vector<8x32xf32>
    %c0_50 = arith.constant 0 : index
    %c0_51 = arith.constant 0 : index
    %371 = vector.load %arg9[%c0_50, %c0_51] : memref<64x32xf32, #tpu.memory_space<vmem>>, vector<8x32xf32>
    tpu.vector_store %arg9[%c0_50, %c0_51], %370 {strides = array<i32>} : memref<64x32xf32, #tpu.memory_space<vmem>>, vector<8x32xf32>,
    %372 = vector.extract_strided_slice %349 {offsets = [8, 0], sizes = [8, 128], strides = [1, 1]} : vector<64x128xf32> to vector<8x128xf32>
    %373 = arith.truncf %370 : vector<8x32xf32> to vector<8x32xbf16>
    %cst_52 = arith.constant dense<0.000000e+00> : vector<8x128xf32>
    %374 = tpu.matmul %373, %343, %cst_52 {dimension_numbers = #tpu.dot_dimension_numbers<[1], [0], [0], [1], [0, 0, 1, 1], [], []>} : vector<8x32xbf16>, vector<32x128xbf16>, vector<8x128xf32> -> vector<8x128xf32>
    %375 = arith.addf %372, %374 : vector<8x128xf32>
    %376 = arith.negf %375 : vector<8x128xf32>
    %377 = math.exp %376 : vector<8x128xf32>
    %cst_53 = arith.constant 1.000000e+00 : f32
    %378 = vector.broadcast %cst_53 : f32 to vector<8x128xf32>
    %379 = arith.addf %378, %377 : vector<8x128xf32>
    %380 = arith.divf %378, %379 : vector<8x128xf32>
    %381 = vector.extract_strided_slice %380 {offsets = [0, 0], sizes = [8, 32], strides = [1, 1]} : vector<8x128xf32> to vector<8x32xf32>
    %382 = vector.extract_strided_slice %380 {offsets = [0, 32], sizes = [8, 32], strides = [1, 1]} : vector<8x128xf32> to vector<8x32xf32>
    %383 = vector.extract_strided_slice %380 {offsets = [0, 96], sizes = [8, 32], strides = [1, 1]} : vector<8x128xf32> to vector<8x32xf32>
    %384 = vector.extract_strided_slice %375 {offsets = [0, 64], sizes = [8, 32], strides = [1, 1]} : vector<8x128xf32> to vector<8x32xf32>
    %385 = math.tanh %384 : vector<8x32xf32>
    %386 = arith.mulf %382, %368 : vector<8x32xf32>
    %387 = arith.mulf %381, %385 : vector<8x32xf32>
    %388 = arith.addf %386, %387 : vector<8x32xf32>
    %389 = math.tanh %388 : vector<8x32xf32>
    %390 = arith.mulf %383, %389 : vector<8x32xf32>
    %c8_54 = arith.constant 8 : index
    %c0_55 = arith.constant 0 : index
    %391 = vector.load %arg9[%c8_54, %c0_55] : memref<64x32xf32, #tpu.memory_space<vmem>>, vector<8x32xf32>
    tpu.vector_store %arg9[%c8_54, %c0_55], %390 {strides = array<i32>} : memref<64x32xf32, #tpu.memory_space<vmem>>, vector<8x32xf32>,
    %392 = vector.extract_strided_slice %349 {offsets = [16, 0], sizes = [8, 128], strides = [1, 1]} : vector<64x128xf32> to vector<8x128xf32>
    %393 = arith.truncf %390 : vector<8x32xf32> to vector<8x32xbf16>
    %cst_56 = arith.constant dense<0.000000e+00> : vector<8x128xf32>
    %394 = tpu.matmul %393, %343, %cst_56 {dimension_numbers = #tpu.dot_dimension_numbers<[1], [0], [0], [1], [0, 0, 1, 1], [], []>} : vector<8x32xbf16>, vector<32x128xbf16>, vector<8x128xf32> -> vector<8x128xf32>
    %395 = arith.addf %392, %394 : vector<8x128xf32>
    %396 = arith.negf %395 : vector<8x128xf32>
    %397 = math.exp %396 : vector<8x128xf32>
    %cst_57 = arith.constant 1.000000e+00 : f32
    %398 = vector.broadcast %cst_57 : f32 to vector<8x128xf32>
    %399 = arith.addf %398, %397 : vector<8x128xf32>
    %400 = arith.divf %398, %399 : vector<8x128xf32>
    %401 = vector.extract_strided_slice %400 {offsets = [0, 0], sizes = [8, 32], strides = [1, 1]} : vector<8x128xf32> to vector<8x32xf32>
    %402 = vector.extract_strided_slice %400 {offsets = [0, 32], sizes = [8, 32], strides = [1, 1]} : vector<8x128xf32> to vector<8x32xf32>
    %403 = vector.extract_strided_slice %400 {offsets = [0, 96], sizes = [8, 32], strides = [1, 1]} : vector<8x128xf32> to vector<8x32xf32>
    %404 = vector.extract_strided_slice %395 {offsets = [0, 64], sizes = [8, 32], strides = [1, 1]} : vector<8x128xf32> to vector<8x32xf32>
    %405 = math.tanh %404 : vector<8x32xf32>
    %406 = arith.mulf %402, %388 : vector<8x32xf32>
    %407 = arith.mulf %401, %405 : vector<8x32xf32>
    %408 = arith.addf %406, %407 : vector<8x32xf32>
    %409 = math.tanh %408 : vector<8x32xf32>
    %410 = arith.mulf %403, %409 : vector<8x32xf32>
    %c16_58 = arith.constant 16 : index
    %c0_59 = arith.constant 0 : index
    %411 = vector.load %arg9[%c16_58, %c0_59] : memref<64x32xf32, #tpu.memory_space<vmem>>, vector<8x32xf32>
    tpu.vector_store %arg9[%c16_58, %c0_59], %410 {strides = array<i32>} : memref<64x32xf32, #tpu.memory_space<vmem>>, vector<8x32xf32>,
    %412 = vector.extract_strided_slice %349 {offsets = [24, 0], sizes = [8, 128], strides = [1, 1]} : vector<64x128xf32> to vector<8x128xf32>
    %413 = arith.truncf %410 : vector<8x32xf32> to vector<8x32xbf16>
    %cst_60 = arith.constant dense<0.000000e+00> : vector<8x128xf32>
    %414 = tpu.matmul %413, %343, %cst_60 {dimension_numbers = #tpu.dot_dimension_numbers<[1], [0], [0], [1], [0, 0, 1, 1], [], []>} : vector<8x32xbf16>, vector<32x128xbf16>, vector<8x128xf32> -> vector<8x128xf32>
    %415 = arith.addf %412, %414 : vector<8x128xf32>
    %416 = arith.negf %415 : vector<8x128xf32>
    %417 = math.exp %416 : vector<8x128xf32>
    %cst_61 = arith.constant 1.000000e+00 : f32
    %418 = vector.broadcast %cst_61 : f32 to vector<8x128xf32>
    %419 = arith.addf %418, %417 : vector<8x128xf32>
    %420 = arith.divf %418, %419 : vector<8x128xf32>
    %421 = vector.extract_strided_slice %420 {offsets = [0, 0], sizes = [8, 32], strides = [1, 1]} : vector<8x128xf32> to vector<8x32xf32>
    %422 = vector.extract_strided_slice %420 {offsets = [0, 32], sizes = [8, 32], strides = [1, 1]} : vector<8x128xf32> to vector<8x32xf32>
    %423 = vector.extract_strided_slice %420 {offsets = [0, 96], sizes = [8, 32], strides = [1, 1]} : vector<8x128xf32> to vector<8x32xf32>
    %424 = vector.extract_strided_slice %415 {offsets = [0, 64], sizes = [8, 32], strides = [1, 1]} : vector<8x128xf32> to vector<8x32xf32>
    %425 = math.tanh %424 : vector<8x32xf32>
    %426 = arith.mulf %422, %408 : vector<8x32xf32>
    %427 = arith.mulf %421, %425 : vector<8x32xf32>
    %428 = arith.addf %426, %427 : vector<8x32xf32>
    %429 = math.tanh %428 : vector<8x32xf32>
    %430 = arith.mulf %423, %429 : vector<8x32xf32>
    %c24_62 = arith.constant 24 : index
    %c0_63 = arith.constant 0 : index
    %431 = vector.load %arg9[%c24_62, %c0_63] : memref<64x32xf32, #tpu.memory_space<vmem>>, vector<8x32xf32>
    tpu.vector_store %arg9[%c24_62, %c0_63], %430 {strides = array<i32>} : memref<64x32xf32, #tpu.memory_space<vmem>>, vector<8x32xf32>,
    %432 = vector.extract_strided_slice %349 {offsets = [32, 0], sizes = [8, 128], strides = [1, 1]} : vector<64x128xf32> to vector<8x128xf32>
    %433 = arith.truncf %430 : vector<8x32xf32> to vector<8x32xbf16>
    %cst_64 = arith.constant dense<0.000000e+00> : vector<8x128xf32>
    %434 = tpu.matmul %433, %343, %cst_64 {dimension_numbers = #tpu.dot_dimension_numbers<[1], [0], [0], [1], [0, 0, 1, 1], [], []>} : vector<8x32xbf16>, vector<32x128xbf16>, vector<8x128xf32> -> vector<8x128xf32>
    %435 = arith.addf %432, %434 : vector<8x128xf32>
    %436 = arith.negf %435 : vector<8x128xf32>
    %437 = math.exp %436 : vector<8x128xf32>
    %cst_65 = arith.constant 1.000000e+00 : f32
    %438 = vector.broadcast %cst_65 : f32 to vector<8x128xf32>
    %439 = arith.addf %438, %437 : vector<8x128xf32>
    %440 = arith.divf %438, %439 : vector<8x128xf32>
    %441 = vector.extract_strided_slice %440 {offsets = [0, 0], sizes = [8, 32], strides = [1, 1]} : vector<8x128xf32> to vector<8x32xf32>
    %442 = vector.extract_strided_slice %440 {offsets = [0, 32], sizes = [8, 32], strides = [1, 1]} : vector<8x128xf32> to vector<8x32xf32>
    %443 = vector.extract_strided_slice %440 {offsets = [0, 96], sizes = [8, 32], strides = [1, 1]} : vector<8x128xf32> to vector<8x32xf32>
    %444 = vector.extract_strided_slice %435 {offsets = [0, 64], sizes = [8, 32], strides = [1, 1]} : vector<8x128xf32> to vector<8x32xf32>
    %445 = math.tanh %444 : vector<8x32xf32>
    %446 = arith.mulf %442, %428 : vector<8x32xf32>
    %447 = arith.mulf %441, %445 : vector<8x32xf32>
    %448 = arith.addf %446, %447 : vector<8x32xf32>
    %449 = math.tanh %448 : vector<8x32xf32>
    %450 = arith.mulf %443, %449 : vector<8x32xf32>
    %c32_66 = arith.constant 32 : index
    %c0_67 = arith.constant 0 : index
    %451 = vector.load %arg9[%c32_66, %c0_67] : memref<64x32xf32, #tpu.memory_space<vmem>>, vector<8x32xf32>
    tpu.vector_store %arg9[%c32_66, %c0_67], %450 {strides = array<i32>} : memref<64x32xf32, #tpu.memory_space<vmem>>, vector<8x32xf32>,
    %452 = vector.extract_strided_slice %349 {offsets = [40, 0], sizes = [8, 128], strides = [1, 1]} : vector<64x128xf32> to vector<8x128xf32>
    %453 = arith.truncf %450 : vector<8x32xf32> to vector<8x32xbf16>
    %cst_68 = arith.constant dense<0.000000e+00> : vector<8x128xf32>
    %454 = tpu.matmul %453, %343, %cst_68 {dimension_numbers = #tpu.dot_dimension_numbers<[1], [0], [0], [1], [0, 0, 1, 1], [], []>} : vector<8x32xbf16>, vector<32x128xbf16>, vector<8x128xf32> -> vector<8x128xf32>
    %455 = arith.addf %452, %454 : vector<8x128xf32>
    %456 = arith.negf %455 : vector<8x128xf32>
    %457 = math.exp %456 : vector<8x128xf32>
    %cst_69 = arith.constant 1.000000e+00 : f32
    %458 = vector.broadcast %cst_69 : f32 to vector<8x128xf32>
    %459 = arith.addf %458, %457 : vector<8x128xf32>
    %460 = arith.divf %458, %459 : vector<8x128xf32>
    %461 = vector.extract_strided_slice %460 {offsets = [0, 0], sizes = [8, 32], strides = [1, 1]} : vector<8x128xf32> to vector<8x32xf32>
    %462 = vector.extract_strided_slice %460 {offsets = [0, 32], sizes = [8, 32], strides = [1, 1]} : vector<8x128xf32> to vector<8x32xf32>
    %463 = vector.extract_strided_slice %460 {offsets = [0, 96], sizes = [8, 32], strides = [1, 1]} : vector<8x128xf32> to vector<8x32xf32>
    %464 = vector.extract_strided_slice %455 {offsets = [0, 64], sizes = [8, 32], strides = [1, 1]} : vector<8x128xf32> to vector<8x32xf32>
    %465 = math.tanh %464 : vector<8x32xf32>
    %466 = arith.mulf %462, %448 : vector<8x32xf32>
    %467 = arith.mulf %461, %465 : vector<8x32xf32>
    %468 = arith.addf %466, %467 : vector<8x32xf32>
    %469 = math.tanh %468 : vector<8x32xf32>
    %470 = arith.mulf %463, %469 : vector<8x32xf32>
    %c40_70 = arith.constant 40 : index
    %c0_71 = arith.constant 0 : index
    %471 = vector.load %arg9[%c40_70, %c0_71] : memref<64x32xf32, #tpu.memory_space<vmem>>, vector<8x32xf32>
    tpu.vector_store %arg9[%c40_70, %c0_71], %470 {strides = array<i32>} : memref<64x32xf32, #tpu.memory_space<vmem>>, vector<8x32xf32>,
    %472 = vector.extract_strided_slice %349 {offsets = [48, 0], sizes = [8, 128], strides = [1, 1]} : vector<64x128xf32> to vector<8x128xf32>
    %473 = arith.truncf %470 : vector<8x32xf32> to vector<8x32xbf16>
    %cst_72 = arith.constant dense<0.000000e+00> : vector<8x128xf32>
    %474 = tpu.matmul %473, %343, %cst_72 {dimension_numbers = #tpu.dot_dimension_numbers<[1], [0], [0], [1], [0, 0, 1, 1], [], []>} : vector<8x32xbf16>, vector<32x128xbf16>, vector<8x128xf32> -> vector<8x128xf32>
    %475 = arith.addf %472, %474 : vector<8x128xf32>
    %476 = arith.negf %475 : vector<8x128xf32>
    %477 = math.exp %476 : vector<8x128xf32>
    %cst_73 = arith.constant 1.000000e+00 : f32
    %478 = vector.broadcast %cst_73 : f32 to vector<8x128xf32>
    %479 = arith.addf %478, %477 : vector<8x128xf32>
    %480 = arith.divf %478, %479 : vector<8x128xf32>
    %481 = vector.extract_strided_slice %480 {offsets = [0, 0], sizes = [8, 32], strides = [1, 1]} : vector<8x128xf32> to vector<8x32xf32>
    %482 = vector.extract_strided_slice %480 {offsets = [0, 32], sizes = [8, 32], strides = [1, 1]} : vector<8x128xf32> to vector<8x32xf32>
    %483 = vector.extract_strided_slice %480 {offsets = [0, 96], sizes = [8, 32], strides = [1, 1]} : vector<8x128xf32> to vector<8x32xf32>
    %484 = vector.extract_strided_slice %475 {offsets = [0, 64], sizes = [8, 32], strides = [1, 1]} : vector<8x128xf32> to vector<8x32xf32>
    %485 = math.tanh %484 : vector<8x32xf32>
    %486 = arith.mulf %482, %468 : vector<8x32xf32>
    %487 = arith.mulf %481, %485 : vector<8x32xf32>
    %488 = arith.addf %486, %487 : vector<8x32xf32>
    %489 = math.tanh %488 : vector<8x32xf32>
    %490 = arith.mulf %483, %489 : vector<8x32xf32>
    %c48_74 = arith.constant 48 : index
    %c0_75 = arith.constant 0 : index
    %491 = vector.load %arg9[%c48_74, %c0_75] : memref<64x32xf32, #tpu.memory_space<vmem>>, vector<8x32xf32>
    tpu.vector_store %arg9[%c48_74, %c0_75], %490 {strides = array<i32>} : memref<64x32xf32, #tpu.memory_space<vmem>>, vector<8x32xf32>,
    %492 = vector.extract_strided_slice %349 {offsets = [56, 0], sizes = [8, 128], strides = [1, 1]} : vector<64x128xf32> to vector<8x128xf32>
    %493 = arith.truncf %490 : vector<8x32xf32> to vector<8x32xbf16>
    %cst_76 = arith.constant dense<0.000000e+00> : vector<8x128xf32>
    %494 = tpu.matmul %493, %343, %cst_76 {dimension_numbers = #tpu.dot_dimension_numbers<[1], [0], [0], [1], [0, 0, 1, 1], [], []>} : vector<8x32xbf16>, vector<32x128xbf16>, vector<8x128xf32> -> vector<8x128xf32>
    %495 = arith.addf %492, %494 : vector<8x128xf32>
    %496 = arith.negf %495 : vector<8x128xf32>
    %497 = math.exp %496 : vector<8x128xf32>
    %cst_77 = arith.constant 1.000000e+00 : f32
    %498 = vector.broadcast %cst_77 : f32 to vector<8x128xf32>
    %499 = arith.addf %498, %497 : vector<8x128xf32>
    %500 = arith.divf %498, %499 : vector<8x128xf32>
    %501 = vector.extract_strided_slice %500 {offsets = [0, 0], sizes = [8, 32], strides = [1, 1]} : vector<8x128xf32> to vector<8x32xf32>
    %502 = vector.extract_strided_slice %500 {offsets = [0, 32], sizes = [8, 32], strides = [1, 1]} : vector<8x128xf32> to vector<8x32xf32>
    %503 = vector.extract_strided_slice %500 {offsets = [0, 96], sizes = [8, 32], strides = [1, 1]} : vector<8x128xf32> to vector<8x32xf32>
    %504 = vector.extract_strided_slice %495 {offsets = [0, 64], sizes = [8, 32], strides = [1, 1]} : vector<8x128xf32> to vector<8x32xf32>
    %505 = math.tanh %504 : vector<8x32xf32>
    %506 = arith.mulf %502, %488 : vector<8x32xf32>
    %507 = arith.mulf %501, %505 : vector<8x32xf32>
    %508 = arith.addf %506, %507 : vector<8x32xf32>
    %509 = math.tanh %508 : vector<8x32xf32>
    %510 = arith.mulf %503, %509 : vector<8x32xf32>
    %c56_78 = arith.constant 56 : index
    %c0_79 = arith.constant 0 : index
    %511 = vector.load %arg9[%c56_78, %c0_79] : memref<64x32xf32, #tpu.memory_space<vmem>>, vector<8x32xf32>
    tpu.vector_store %arg9[%c56_78, %c0_79], %510 {strides = array<i32>} : memref<64x32xf32, #tpu.memory_space<vmem>>, vector<8x32xf32>,
    %c256 = arith.constant 256 : index
    %c0_80 = arith.constant 0 : index
    %512 = vector.load %arg3[%c256, %c0_80] : memref<320x128xbf16, #tpu.memory_space<vmem>>, vector<32x128xbf16>
    %c288 = arith.constant 288 : index
    %c0_81 = arith.constant 0 : index
    %513 = vector.load %arg3[%c288, %c0_81] : memref<320x128xbf16, #tpu.memory_space<vmem>>, vector<32x128xbf16>
    %c0_82 = arith.constant 0 : index
    %c0_83 = arith.constant 0 : index
    %514 = vector.load %arg9[%c0_82, %c0_83] : memref<64x32xf32, #tpu.memory_space<vmem>>, vector<64x32xf32>
    %515 = arith.truncf %514 : vector<64x32xf32> to vector<64x32xbf16>
    %cst_84 = arith.constant dense<0.000000e+00> : vector<64x128xf32>
    %516 = tpu.matmul %515, %512, %cst_84 {dimension_numbers = #tpu.dot_dimension_numbers<[1], [0], [0], [1], [0, 0, 1, 1], [], []>} : vector<64x32xbf16>, vector<32x128xbf16>, vector<64x128xf32> -> vector<64x128xf32>
    %c2 = arith.constant 2 : index
    %c0_85 = arith.constant 0 : index
    %517 = vector.load %arg4[%c2, %c0_85] : memref<8x128xf32, #tpu.memory_space<vmem>>, vector<1x128xf32>
    %518 = vector.broadcast %517 : vector<1x128xf32> to vector<64x128xf32>
    %519 = arith.addf %516, %518 : vector<64x128xf32>
    %cst_86 = arith.constant 0.000000e+00 : f32
    %520 = vector.broadcast %cst_86 : f32 to vector<8x32xf32>
    %cst_87 = arith.constant 0.000000e+00 : f32
    %521 = vector.broadcast %cst_87 : f32 to vector<8x32xf32>
    %522 = vector.extract_strided_slice %519 {offsets = [0, 0], sizes = [8, 128], strides = [1, 1]} : vector<64x128xf32> to vector<8x128xf32>
    %523 = arith.truncf %520 : vector<8x32xf32> to vector<8x32xbf16>
    %cst_88 = arith.constant dense<0.000000e+00> : vector<8x128xf32>
    %524 = tpu.matmul %523, %513, %cst_88 {dimension_numbers = #tpu.dot_dimension_numbers<[1], [0], [0], [1], [0, 0, 1, 1], [], []>} : vector<8x32xbf16>, vector<32x128xbf16>, vector<8x128xf32> -> vector<8x128xf32>
    %525 = arith.addf %522, %524 : vector<8x128xf32>
    %526 = arith.negf %525 : vector<8x128xf32>
    %527 = math.exp %526 : vector<8x128xf32>
    %cst_89 = arith.constant 1.000000e+00 : f32
    %528 = vector.broadcast %cst_89 : f32 to vector<8x128xf32>
    %529 = arith.addf %528, %527 : vector<8x128xf32>
    %530 = arith.divf %528, %529 : vector<8x128xf32>
    %531 = vector.extract_strided_slice %530 {offsets = [0, 0], sizes = [8, 32], strides = [1, 1]} : vector<8x128xf32> to vector<8x32xf32>
    %532 = vector.extract_strided_slice %530 {offsets = [0, 32], sizes = [8, 32], strides = [1, 1]} : vector<8x128xf32> to vector<8x32xf32>
    %533 = vector.extract_strided_slice %530 {offsets = [0, 96], sizes = [8, 32], strides = [1, 1]} : vector<8x128xf32> to vector<8x32xf32>
    %534 = vector.extract_strided_slice %525 {offsets = [0, 64], sizes = [8, 32], strides = [1, 1]} : vector<8x128xf32> to vector<8x32xf32>
    %535 = math.tanh %534 : vector<8x32xf32>
    %536 = arith.mulf %532, %521 : vector<8x32xf32>
    %537 = arith.mulf %531, %535 : vector<8x32xf32>
    %538 = arith.addf %536, %537 : vector<8x32xf32>
    %539 = math.tanh %538 : vector<8x32xf32>
    %540 = arith.mulf %533, %539 : vector<8x32xf32>
    %c0_90 = arith.constant 0 : index
    %c0_91 = arith.constant 0 : index
    %541 = vector.load %arg8[%c0_90, %c0_91] : memref<64x32xf32, #tpu.memory_space<vmem>>, vector<8x32xf32>
    tpu.vector_store %arg8[%c0_90, %c0_91], %540 {strides = array<i32>} : memref<64x32xf32, #tpu.memory_space<vmem>>, vector<8x32xf32>,
    %542 = vector.extract_strided_slice %519 {offsets = [8, 0], sizes = [8, 128], strides = [1, 1]} : vector<64x128xf32> to vector<8x128xf32>
    %543 = arith.truncf %540 : vector<8x32xf32> to vector<8x32xbf16>
    %cst_92 = arith.constant dense<0.000000e+00> : vector<8x128xf32>
    %544 = tpu.matmul %543, %513, %cst_92 {dimension_numbers = #tpu.dot_dimension_numbers<[1], [0], [0], [1], [0, 0, 1, 1], [], []>} : vector<8x32xbf16>, vector<32x128xbf16>, vector<8x128xf32> -> vector<8x128xf32>
    %545 = arith.addf %542, %544 : vector<8x128xf32>
    %546 = arith.negf %545 : vector<8x128xf32>
    %547 = math.exp %546 : vector<8x128xf32>
    %cst_93 = arith.constant 1.000000e+00 : f32
    %548 = vector.broadcast %cst_93 : f32 to vector<8x128xf32>
    %549 = arith.addf %548, %547 : vector<8x128xf32>
    %550 = arith.divf %548, %549 : vector<8x128xf32>
    %551 = vector.extract_strided_slice %550 {offsets = [0, 0], sizes = [8, 32], strides = [1, 1]} : vector<8x128xf32> to vector<8x32xf32>
    %552 = vector.extract_strided_slice %550 {offsets = [0, 32], sizes = [8, 32], strides = [1, 1]} : vector<8x128xf32> to vector<8x32xf32>
    %553 = vector.extract_strided_slice %550 {offsets = [0, 96], sizes = [8, 32], strides = [1, 1]} : vector<8x128xf32> to vector<8x32xf32>
    %554 = vector.extract_strided_slice %545 {offsets = [0, 64], sizes = [8, 32], strides = [1, 1]} : vector<8x128xf32> to vector<8x32xf32>
    %555 = math.tanh %554 : vector<8x32xf32>
    %556 = arith.mulf %552, %538 : vector<8x32xf32>
    %557 = arith.mulf %551, %555 : vector<8x32xf32>
    %558 = arith.addf %556, %557 : vector<8x32xf32>
    %559 = math.tanh %558 : vector<8x32xf32>
    %560 = arith.mulf %553, %559 : vector<8x32xf32>
    %c8_94 = arith.constant 8 : index
    %c0_95 = arith.constant 0 : index
    %561 = vector.load %arg8[%c8_94, %c0_95] : memref<64x32xf32, #tpu.memory_space<vmem>>, vector<8x32xf32>
    tpu.vector_store %arg8[%c8_94, %c0_95], %560 {strides = array<i32>} : memref<64x32xf32, #tpu.memory_space<vmem>>, vector<8x32xf32>,
    %562 = vector.extract_strided_slice %519 {offsets = [16, 0], sizes = [8, 128], strides = [1, 1]} : vector<64x128xf32> to vector<8x128xf32>
    %563 = arith.truncf %560 : vector<8x32xf32> to vector<8x32xbf16>
    %cst_96 = arith.constant dense<0.000000e+00> : vector<8x128xf32>
    %564 = tpu.matmul %563, %513, %cst_96 {dimension_numbers = #tpu.dot_dimension_numbers<[1], [0], [0], [1], [0, 0, 1, 1], [], []>} : vector<8x32xbf16>, vector<32x128xbf16>, vector<8x128xf32> -> vector<8x128xf32>
    %565 = arith.addf %562, %564 : vector<8x128xf32>
    %566 = arith.negf %565 : vector<8x128xf32>
    %567 = math.exp %566 : vector<8x128xf32>
    %cst_97 = arith.constant 1.000000e+00 : f32
    %568 = vector.broadcast %cst_97 : f32 to vector<8x128xf32>
    %569 = arith.addf %568, %567 : vector<8x128xf32>
    %570 = arith.divf %568, %569 : vector<8x128xf32>
    %571 = vector.extract_strided_slice %570 {offsets = [0, 0], sizes = [8, 32], strides = [1, 1]} : vector<8x128xf32> to vector<8x32xf32>
    %572 = vector.extract_strided_slice %570 {offsets = [0, 32], sizes = [8, 32], strides = [1, 1]} : vector<8x128xf32> to vector<8x32xf32>
    %573 = vector.extract_strided_slice %570 {offsets = [0, 96], sizes = [8, 32], strides = [1, 1]} : vector<8x128xf32> to vector<8x32xf32>
    %574 = vector.extract_strided_slice %565 {offsets = [0, 64], sizes = [8, 32], strides = [1, 1]} : vector<8x128xf32> to vector<8x32xf32>
    %575 = math.tanh %574 : vector<8x32xf32>
    %576 = arith.mulf %572, %558 : vector<8x32xf32>
    %577 = arith.mulf %571, %575 : vector<8x32xf32>
    %578 = arith.addf %576, %577 : vector<8x32xf32>
    %579 = math.tanh %578 : vector<8x32xf32>
    %580 = arith.mulf %573, %579 : vector<8x32xf32>
    %c16_98 = arith.constant 16 : index
    %c0_99 = arith.constant 0 : index
    %581 = vector.load %arg8[%c16_98, %c0_99] : memref<64x32xf32, #tpu.memory_space<vmem>>, vector<8x32xf32>
    tpu.vector_store %arg8[%c16_98, %c0_99], %580 {strides = array<i32>} : memref<64x32xf32, #tpu.memory_space<vmem>>, vector<8x32xf32>,
    %582 = vector.extract_strided_slice %519 {offsets = [24, 0], sizes = [8, 128], strides = [1, 1]} : vector<64x128xf32> to vector<8x128xf32>
    %583 = arith.truncf %580 : vector<8x32xf32> to vector<8x32xbf16>
    %cst_100 = arith.constant dense<0.000000e+00> : vector<8x128xf32>
    %584 = tpu.matmul %583, %513, %cst_100 {dimension_numbers = #tpu.dot_dimension_numbers<[1], [0], [0], [1], [0, 0, 1, 1], [], []>} : vector<8x32xbf16>, vector<32x128xbf16>, vector<8x128xf32> -> vector<8x128xf32>
    %585 = arith.addf %582, %584 : vector<8x128xf32>
    %586 = arith.negf %585 : vector<8x128xf32>
    %587 = math.exp %586 : vector<8x128xf32>
    %cst_101 = arith.constant 1.000000e+00 : f32
    %588 = vector.broadcast %cst_101 : f32 to vector<8x128xf32>
    %589 = arith.addf %588, %587 : vector<8x128xf32>
    %590 = arith.divf %588, %589 : vector<8x128xf32>
    %591 = vector.extract_strided_slice %590 {offsets = [0, 0], sizes = [8, 32], strides = [1, 1]} : vector<8x128xf32> to vector<8x32xf32>
    %592 = vector.extract_strided_slice %590 {offsets = [0, 32], sizes = [8, 32], strides = [1, 1]} : vector<8x128xf32> to vector<8x32xf32>
    %593 = vector.extract_strided_slice %590 {offsets = [0, 96], sizes = [8, 32], strides = [1, 1]} : vector<8x128xf32> to vector<8x32xf32>
    %594 = vector.extract_strided_slice %585 {offsets = [0, 64], sizes = [8, 32], strides = [1, 1]} : vector<8x128xf32> to vector<8x32xf32>
    %595 = math.tanh %594 : vector<8x32xf32>
    %596 = arith.mulf %592, %578 : vector<8x32xf32>
    %597 = arith.mulf %591, %595 : vector<8x32xf32>
    %598 = arith.addf %596, %597 : vector<8x32xf32>
    %599 = math.tanh %598 : vector<8x32xf32>
    %600 = arith.mulf %593, %599 : vector<8x32xf32>
    %c24_102 = arith.constant 24 : index
    %c0_103 = arith.constant 0 : index
    %601 = vector.load %arg8[%c24_102, %c0_103] : memref<64x32xf32, #tpu.memory_space<vmem>>, vector<8x32xf32>
    tpu.vector_store %arg8[%c24_102, %c0_103], %600 {strides = array<i32>} : memref<64x32xf32, #tpu.memory_space<vmem>>, vector<8x32xf32>,
    %602 = vector.extract_strided_slice %519 {offsets = [32, 0], sizes = [8, 128], strides = [1, 1]} : vector<64x128xf32> to vector<8x128xf32>
    %603 = arith.truncf %600 : vector<8x32xf32> to vector<8x32xbf16>
    %cst_104 = arith.constant dense<0.000000e+00> : vector<8x128xf32>
    %604 = tpu.matmul %603, %513, %cst_104 {dimension_numbers = #tpu.dot_dimension_numbers<[1], [0], [0], [1], [0, 0, 1, 1], [], []>} : vector<8x32xbf16>, vector<32x128xbf16>, vector<8x128xf32> -> vector<8x128xf32>
    %605 = arith.addf %602, %604 : vector<8x128xf32>
    %606 = arith.negf %605 : vector<8x128xf32>
    %607 = math.exp %606 : vector<8x128xf32>
    %cst_105 = arith.constant 1.000000e+00 : f32
    %608 = vector.broadcast %cst_105 : f32 to vector<8x128xf32>
    %609 = arith.addf %608, %607 : vector<8x128xf32>
    %610 = arith.divf %608, %609 : vector<8x128xf32>
    %611 = vector.extract_strided_slice %610 {offsets = [0, 0], sizes = [8, 32], strides = [1, 1]} : vector<8x128xf32> to vector<8x32xf32>
    %612 = vector.extract_strided_slice %610 {offsets = [0, 32], sizes = [8, 32], strides = [1, 1]} : vector<8x128xf32> to vector<8x32xf32>
    %613 = vector.extract_strided_slice %610 {offsets = [0, 96], sizes = [8, 32], strides = [1, 1]} : vector<8x128xf32> to vector<8x32xf32>
    %614 = vector.extract_strided_slice %605 {offsets = [0, 64], sizes = [8, 32], strides = [1, 1]} : vector<8x128xf32> to vector<8x32xf32>
    %615 = math.tanh %614 : vector<8x32xf32>
    %616 = arith.mulf %612, %598 : vector<8x32xf32>
    %617 = arith.mulf %611, %615 : vector<8x32xf32>
    %618 = arith.addf %616, %617 : vector<8x32xf32>
    %619 = math.tanh %618 : vector<8x32xf32>
    %620 = arith.mulf %613, %619 : vector<8x32xf32>
    %c32_106 = arith.constant 32 : index
    %c0_107 = arith.constant 0 : index
    %621 = vector.load %arg8[%c32_106, %c0_107] : memref<64x32xf32, #tpu.memory_space<vmem>>, vector<8x32xf32>
    tpu.vector_store %arg8[%c32_106, %c0_107], %620 {strides = array<i32>} : memref<64x32xf32, #tpu.memory_space<vmem>>, vector<8x32xf32>,
    %622 = vector.extract_strided_slice %519 {offsets = [40, 0], sizes = [8, 128], strides = [1, 1]} : vector<64x128xf32> to vector<8x128xf32>
    %623 = arith.truncf %620 : vector<8x32xf32> to vector<8x32xbf16>
    %cst_108 = arith.constant dense<0.000000e+00> : vector<8x128xf32>
    %624 = tpu.matmul %623, %513, %cst_108 {dimension_numbers = #tpu.dot_dimension_numbers<[1], [0], [0], [1], [0, 0, 1, 1], [], []>} : vector<8x32xbf16>, vector<32x128xbf16>, vector<8x128xf32> -> vector<8x128xf32>
    %625 = arith.addf %622, %624 : vector<8x128xf32>
    %626 = arith.negf %625 : vector<8x128xf32>
    %627 = math.exp %626 : vector<8x128xf32>
    %cst_109 = arith.constant 1.000000e+00 : f32
    %628 = vector.broadcast %cst_109 : f32 to vector<8x128xf32>
    %629 = arith.addf %628, %627 : vector<8x128xf32>
    %630 = arith.divf %628, %629 : vector<8x128xf32>
    %631 = vector.extract_strided_slice %630 {offsets = [0, 0], sizes = [8, 32], strides = [1, 1]} : vector<8x128xf32> to vector<8x32xf32>
    %632 = vector.extract_strided_slice %630 {offsets = [0, 32], sizes = [8, 32], strides = [1, 1]} : vector<8x128xf32> to vector<8x32xf32>
    %633 = vector.extract_strided_slice %630 {offsets = [0, 96], sizes = [8, 32], strides = [1, 1]} : vector<8x128xf32> to vector<8x32xf32>
    %634 = vector.extract_strided_slice %625 {offsets = [0, 64], sizes = [8, 32], strides = [1, 1]} : vector<8x128xf32> to vector<8x32xf32>
    %635 = math.tanh %634 : vector<8x32xf32>
    %636 = arith.mulf %632, %618 : vector<8x32xf32>
    %637 = arith.mulf %631, %635 : vector<8x32xf32>
    %638 = arith.addf %636, %637 : vector<8x32xf32>
    %639 = math.tanh %638 : vector<8x32xf32>
    %640 = arith.mulf %633, %639 : vector<8x32xf32>
    %c40_110 = arith.constant 40 : index
    %c0_111 = arith.constant 0 : index
    %641 = vector.load %arg8[%c40_110, %c0_111] : memref<64x32xf32, #tpu.memory_space<vmem>>, vector<8x32xf32>
    tpu.vector_store %arg8[%c40_110, %c0_111], %640 {strides = array<i32>} : memref<64x32xf32, #tpu.memory_space<vmem>>, vector<8x32xf32>,
    %642 = vector.extract_strided_slice %519 {offsets = [48, 0], sizes = [8, 128], strides = [1, 1]} : vector<64x128xf32> to vector<8x128xf32>
    %643 = arith.truncf %640 : vector<8x32xf32> to vector<8x32xbf16>
    %cst_112 = arith.constant dense<0.000000e+00> : vector<8x128xf32>
    %644 = tpu.matmul %643, %513, %cst_112 {dimension_numbers = #tpu.dot_dimension_numbers<[1], [0], [0], [1], [0, 0, 1, 1], [], []>} : vector<8x32xbf16>, vector<32x128xbf16>, vector<8x128xf32> -> vector<8x128xf32>
    %645 = arith.addf %642, %644 : vector<8x128xf32>
    %646 = arith.negf %645 : vector<8x128xf32>
    %647 = math.exp %646 : vector<8x128xf32>
    %cst_113 = arith.constant 1.000000e+00 : f32
    %648 = vector.broadcast %cst_113 : f32 to vector<8x128xf32>
    %649 = arith.addf %648, %647 : vector<8x128xf32>
    %650 = arith.divf %648, %649 : vector<8x128xf32>
    %651 = vector.extract_strided_slice %650 {offsets = [0, 0], sizes = [8, 32], strides = [1, 1]} : vector<8x128xf32> to vector<8x32xf32>
    %652 = vector.extract_strided_slice %650 {offsets = [0, 32], sizes = [8, 32], strides = [1, 1]} : vector<8x128xf32> to vector<8x32xf32>
    %653 = vector.extract_strided_slice %650 {offsets = [0, 96], sizes = [8, 32], strides = [1, 1]} : vector<8x128xf32> to vector<8x32xf32>
    %654 = vector.extract_strided_slice %645 {offsets = [0, 64], sizes = [8, 32], strides = [1, 1]} : vector<8x128xf32> to vector<8x32xf32>
    %655 = math.tanh %654 : vector<8x32xf32>
    %656 = arith.mulf %652, %638 : vector<8x32xf32>
    %657 = arith.mulf %651, %655 : vector<8x32xf32>
    %658 = arith.addf %656, %657 : vector<8x32xf32>
    %659 = math.tanh %658 : vector<8x32xf32>
    %660 = arith.mulf %653, %659 : vector<8x32xf32>
    %c48_114 = arith.constant 48 : index
    %c0_115 = arith.constant 0 : index
    %661 = vector.load %arg8[%c48_114, %c0_115] : memref<64x32xf32, #tpu.memory_space<vmem>>, vector<8x32xf32>
    tpu.vector_store %arg8[%c48_114, %c0_115], %660 {strides = array<i32>} : memref<64x32xf32, #tpu.memory_space<vmem>>, vector<8x32xf32>,
    %662 = vector.extract_strided_slice %519 {offsets = [56, 0], sizes = [8, 128], strides = [1, 1]} : vector<64x128xf32> to vector<8x128xf32>
    %663 = arith.truncf %660 : vector<8x32xf32> to vector<8x32xbf16>
    %cst_116 = arith.constant dense<0.000000e+00> : vector<8x128xf32>
    %664 = tpu.matmul %663, %513, %cst_116 {dimension_numbers = #tpu.dot_dimension_numbers<[1], [0], [0], [1], [0, 0, 1, 1], [], []>} : vector<8x32xbf16>, vector<32x128xbf16>, vector<8x128xf32> -> vector<8x128xf32>
    %665 = arith.addf %662, %664 : vector<8x128xf32>
    %666 = arith.negf %665 : vector<8x128xf32>
    %667 = math.exp %666 : vector<8x128xf32>
    %cst_117 = arith.constant 1.000000e+00 : f32
    %668 = vector.broadcast %cst_117 : f32 to vector<8x128xf32>
    %669 = arith.addf %668, %667 : vector<8x128xf32>
    %670 = arith.divf %668, %669 : vector<8x128xf32>
    %671 = vector.extract_strided_slice %670 {offsets = [0, 0], sizes = [8, 32], strides = [1, 1]} : vector<8x128xf32> to vector<8x32xf32>
    %672 = vector.extract_strided_slice %670 {offsets = [0, 32], sizes = [8, 32], strides = [1, 1]} : vector<8x128xf32> to vector<8x32xf32>
    %673 = vector.extract_strided_slice %670 {offsets = [0, 96], sizes = [8, 32], strides = [1, 1]} : vector<8x128xf32> to vector<8x32xf32>
    %674 = vector.extract_strided_slice %665 {offsets = [0, 64], sizes = [8, 32], strides = [1, 1]} : vector<8x128xf32> to vector<8x32xf32>
    %675 = math.tanh %674 : vector<8x32xf32>
    %676 = arith.mulf %672, %658 : vector<8x32xf32>
    %677 = arith.mulf %671, %675 : vector<8x32xf32>
    %678 = arith.addf %676, %677 : vector<8x32xf32>
    %679 = math.tanh %678 : vector<8x32xf32>
    %680 = arith.mulf %673, %679 : vector<8x32xf32>
    %c56_118 = arith.constant 56 : index
    %c0_119 = arith.constant 0 : index
    %681 = vector.load %arg8[%c56_118, %c0_119] : memref<64x32xf32, #tpu.memory_space<vmem>>, vector<8x32xf32>
    tpu.vector_store %arg8[%c56_118, %c0_119], %680 {strides = array<i32>} : memref<64x32xf32, #tpu.memory_space<vmem>>, vector<8x32xf32>,
    %c0_120 = arith.constant 0 : index
    %c0_121 = arith.constant 0 : index
    %682 = vector.load %arg8[%c0_120, %c0_121] : memref<64x32xf32, #tpu.memory_space<vmem>>, vector<64x32xf32>
    %c0_i32_122 = arith.constant 0 : i32
    %683 = tpu.memref_slice %arg12[%c0_i32_122] : memref<2x!tpu.dma_semaphore, #tpu.memory_space<semaphore_mem>> -> memref<1x!tpu.dma_semaphore, #tpu.memory_space<semaphore_mem>>
    %684 = tpu.memref_squeeze %683 : memref<1x!tpu.dma_semaphore, #tpu.memory_space<semaphore_mem>> -> memref<!tpu.dma_semaphore, #tpu.memory_space<semaphore_mem>>
    tpu.wait_dma2 semaphore(%684 : memref<!tpu.dma_semaphore, #tpu.memory_space<semaphore_mem>>) src(%arg5 : memref<200x160xf32, #tpu.memory_space<any>>) dst(%arg10 : memref<200x160xf32, #tpu.memory_space<vmem>>)
    %c1_i32_123 = arith.constant 1 : i32
    %685 = tpu.memref_slice %arg12[%c1_i32_123] : memref<2x!tpu.dma_semaphore, #tpu.memory_space<semaphore_mem>> -> memref<1x!tpu.dma_semaphore, #tpu.memory_space<semaphore_mem>>
    %686 = tpu.memref_squeeze %685 : memref<1x!tpu.dma_semaphore, #tpu.memory_space<semaphore_mem>> -> memref<!tpu.dma_semaphore, #tpu.memory_space<semaphore_mem>>
    tpu.wait_dma2 semaphore(%686 : memref<!tpu.dma_semaphore, #tpu.memory_space<semaphore_mem>>) src(%arg6 : memref<168x32xf32, #tpu.memory_space<any>>) dst(%arg11 : memref<168x32xf32, #tpu.memory_space<vmem>>)
    %c0_124 = arith.constant 0 : index
    %c0_125 = arith.constant 0 : index
    %687 = vector.load %arg10[%c0_124, %c0_125] : memref<200x160xf32, #tpu.memory_space<vmem>>, vector<32x160xf32>
    %c32_126 = arith.constant 32 : index
    %c0_127 = arith.constant 0 : index
    %688 = vector.load %arg10[%c32_126, %c0_127] : memref<200x160xf32, #tpu.memory_space<vmem>>, vector<128x160xf32>
    %c160_128 = arith.constant 160 : index
    %c0_129 = arith.constant 0 : index
    %689 = vector.load %arg10[%c160_128, %c0_129] : memref<200x160xf32, #tpu.memory_space<vmem>>, vector<32x160xf32>
    %c192_130 = arith.constant 192 : index
    %c0_131 = arith.constant 0 : index
    %690 = vector.load %arg10[%c192_130, %c0_131] : memref<200x160xf32, #tpu.memory_space<vmem>>, vector<1x160xf32>
    %c0_132 = arith.constant 0 : index
    %c0_133 = arith.constant 0 : index
    %691 = vector.load %arg11[%c0_132, %c0_133] : memref<168x32xf32, #tpu.memory_space<vmem>>, vector<160x32xf32>
    %c160_134 = arith.constant 160 : index
    %c0_135 = arith.constant 0 : index
    %692 = vector.load %arg11[%c160_134, %c0_135] : memref<168x32xf32, #tpu.memory_space<vmem>>, vector<1x32xf32>
    %cst_136 = arith.constant dense<0.000000e+00> : vector<64x160xf32>
    %693 = tpu.matmul %4, %687, %cst_136 {dimension_numbers = #tpu.dot_dimension_numbers<[1], [0], [0], [1], [0, 0, 1, 1], [], []>} : vector<64x32xf32>, vector<32x160xf32>, vector<64x160xf32> -> vector<64x160xf32>
    %cst_137 = arith.constant dense<0.000000e+00> : vector<64x160xf32>
    %694 = tpu.matmul %169, %688, %cst_137 {dimension_numbers = #tpu.dot_dimension_numbers<[1], [0], [0], [1], [0, 0, 1, 1], [], []>} : vector<64x128xf32>, vector<128x160xf32>, vector<64x160xf32> -> vector<64x160xf32>
    %695 = arith.addf %693, %694 : vector<64x160xf32>
    %cst_138 = arith.constant dense<0.000000e+00> : vector<64x160xf32>
    %696 = tpu.matmul %682, %689, %cst_138 {dimension_numbers = #tpu.dot_dimension_numbers<[1], [0], [0], [1], [0, 0, 1, 1], [], []>} : vector<64x32xf32>, vector<32x160xf32>, vector<64x160xf32> -> vector<64x160xf32>
    %697 = arith.addf %695, %696 : vector<64x160xf32>
    %698 = vector.broadcast %690 : vector<1x160xf32> to vector<64x160xf32>
    %699 = arith.addf %697, %698 : vector<64x160xf32>
    %cst_139 = arith.constant dense<0.000000e+00> : vector<64x32xf32>
    %700 = tpu.matmul %699, %691, %cst_139 {dimension_numbers = #tpu.dot_dimension_numbers<[1], [0], [0], [1], [0, 0, 1, 1], [], []>} : vector<64x160xf32>, vector<160x32xf32>, vector<64x32xf32> -> vector<64x32xf32>
    %701 = vector.broadcast %692 : vector<1x32xf32> to vector<64x32xf32>
    %702 = arith.addf %700, %701 : vector<64x32xf32>
    %c0_140 = arith.constant 0 : index
    %c0_141 = arith.constant 0 : index
    %703 = vector.load %arg7[%c0_140, %c0_141] : memref<64x32xf32, #tpu.memory_space<vmem>>, vector<64x32xf32>
    tpu.vector_store %arg7[%c0_140, %c0_141], %702 {strides = array<i32>} : memref<64x32xf32, #tpu.memory_space<vmem>>, vector<64x32xf32>,
    return
  }
  func.func @transform_0(%arg0: i32) -> (i32, i32) {
    %c0_i32 = arith.constant 0 : i32
    %c0_i32_0 = arith.constant 0 : i32
    %c0_i32_1 = arith.constant 0 : i32
    return %c0_i32, %c0_i32_0 : i32, i32
  }
  func.func @transform_1(%arg0: i32) -> (i32, i32) {
    %c0_i32 = arith.constant 0 : i32
    %c0_i32_0 = arith.constant 0 : i32
    %c0_i32_1 = arith.constant 0 : i32
    return %c0_i32, %c0_i32_0 : i32, i32
  }
  func.func @transform_2(%arg0: i32) -> (i32, i32) {
    %c0_i32 = arith.constant 0 : i32
    %c0_i32_0 = arith.constant 0 : i32
    %c0_i32_1 = arith.constant 0 : i32
    return %c0_i32, %c0_i32_0 : i32, i32
  }
  func.func @transform_3(%arg0: i32) -> (i32, i32) {
    %c0_i32 = arith.constant 0 : i32
    %c0_i32_0 = arith.constant 0 : i32
    %c0_i32_1 = arith.constant 0 : i32
    return %c0_i32, %c0_i32_0 : i32, i32
  }
  func.func @transform_6(%arg0: i32) -> (i32, i32) {
    %c0_i32 = arith.constant 0 : i32
    %c0_i32_0 = arith.constant 0 : i32
    %c0_i32_1 = arith.constant 0 : i32
    return %c0_i32, %c0_i32_0 : i32, i32
  }
}

</mosaic_0001>

<bundles_post_ra>
// kernel: tpu_custom_call.1
= control target key start
LH: loop header
LB: loop body
LE: loop exit
PB: predicated region body
PF: predicated region fallthrough
CT: control target
= control target key end

     0   :  { %s10700_s0 = inlined_call_operand.vmem [shape: f32[64,32], index: 0, kind: input, shape index: {}]   ;;  %s10701_s1 = inlined_call_operand.vmem [shape: bf16[32,4096], index: 1, kind: input, shape index: {}]   ;;  %s10702_s2 = inlined_call_operand.vmem [shape: bf16[320,128], index: 2, kind: input, shape index: {}]   ;;  %s10703_s3 = inlined_call_operand.vmem [shape: f32[8,128], index: 3, kind: input, shape index: {}]   ;;  %s10704_s4 = inlined_call_operand.vmem [shape: f32[200,160], index: 4, kind: input, shape index: {}]   ;;  %s10705_s5 = inlined_call_operand.vmem [shape: f32[168,32], index: 5, kind: input, shape index: {}]   ;;  %s10706_s6 = inlined_call_operand.vmem [shape: f32[64,32], index: 6, kind: output, shape index: {}]  }
   0x1   :  { %v52_v0 = vld [vmem:[%s10704_s4] sm:$0xff]  ;;  %v54_v1 = vld [vmem:[%s10704_s4 + $0x8] sm:$0xff]  ;;  %v56_v2 = vld [vmem:[%s10704_s4 + $0x10] sm:$0xff] }
   0x2   :  { %53 = vst [vmem:[#allocation4] sm:$0xff] %v52_v0  ;;  %55 = vst [vmem:[#allocation4 + $0x8] sm:$0xff] %v54_v1  ;;  %v58_v3 = vld [vmem:[%s10704_s4 + $0x18] sm:$0xff]  ;;  %v60_v4 = vld [vmem:[%s10704_s4 + $0x20] sm:$0xff] }
   0x3   :  { %57 = vst [vmem:[#allocation4 + $0x10] sm:$0xff] %v56_v2  ;;  %v62_v5 = vld [vmem:[%s10704_s4 + $0x28] sm:$0xff]  ;;  %59 = vst [vmem:[#allocation4 + $0x18] sm:$0xff] %v58_v3  ;;  %v64_v6 = vld [vmem:[%s10704_s4 + $0x30] sm:$0xff] }
   0x4   :  { %61 = vst [vmem:[#allocation4 + $0x20] sm:$0xff] %v60_v4  ;;  %63 = vst [vmem:[#allocation4 + $0x28] sm:$0xff] %v62_v5  ;;  %v66_v7 = vld [vmem:[%s10704_s4 + $0x38] sm:$0xff]  ;;  %v68_v8 = vld [vmem:[%s10704_s4 + $0x40] sm:$0xff] }
   0x5   :  { %65 = vst [vmem:[#allocation4 + $0x30] sm:$0xff] %v64_v6  ;;  %67 = vst [vmem:[#allocation4 + $0x38] sm:$0xff] %v66_v7  ;;  %v70_v9 = vld [vmem:[%s10704_s4 + $0x48] sm:$0xff]  ;;  %v72_v10 = vld [vmem:[%s10704_s4 + $0x50] sm:$0xff] }
   0x6   :  { %69 = vst [vmem:[#allocation4 + $0x40] sm:$0xff] %v68_v8  ;;  %v74_v11 = vld [vmem:[%s10704_s4 + $0x58] sm:$0xff]  ;;  %71 = vst [vmem:[#allocation4 + $0x48] sm:$0xff] %v70_v9  ;;  %v76_v12 = vld [vmem:[%s10704_s4 + $0x60] sm:$0xff] }
   0x7   :  { %73 = vst [vmem:[#allocation4 + $0x50] sm:$0xff] %v72_v10  ;;  %75 = vst [vmem:[#allocation4 + $0x58] sm:$0xff] %v74_v11  ;;  %v78_v13 = vld [vmem:[%s10704_s4 + $0x68] sm:$0xff]  ;;  %v80_v14 = vld [vmem:[%s10704_s4 + $0x70] sm:$0xff] }
   0x8   :  { %77 = vst [vmem:[#allocation4 + $0x60] sm:$0xff] %v76_v12  ;;  %79 = vst [vmem:[#allocation4 + $0x68] sm:$0xff] %v78_v13  ;;  %v82_v15 = vld [vmem:[%s10704_s4 + $0x78] sm:$0xff]  ;;  %v84_v16 = vld [vmem:[%s10704_s4 + $0x80] sm:$0xff] }
   0x9   :  { %81 = vst [vmem:[#allocation4 + $0x70] sm:$0xff] %v80_v14  ;;  %v86_v17 = vld [vmem:[%s10704_s4 + $0x88] sm:$0xff]  ;;  %83 = vst [vmem:[#allocation4 + $0x78] sm:$0xff] %v82_v15  ;;  %v88_v18 = vld [vmem:[%s10704_s4 + $0x90] sm:$0xff] }
   0xa   :  { %85 = vst [vmem:[#allocation4 + $0x80] sm:$0xff] %v84_v16  ;;  %87 = vst [vmem:[#allocation4 + $0x88] sm:$0xff] %v86_v17  ;;  %v90_v19 = vld [vmem:[%s10704_s4 + $0x98] sm:$0xff]  ;;  %v92_v20 = vld [vmem:[%s10704_s4 + $0xa0] sm:$0xff] }
   0xb   :  { %89 = vst [vmem:[#allocation4 + $0x90] sm:$0xff] %v88_v18  ;;  %91 = vst [vmem:[#allocation4 + $0x98] sm:$0xff] %v90_v19  ;;  %v94_v21 = vld [vmem:[%s10704_s4 + $0xa8] sm:$0xff]  ;;  %v96_v22 = vld [vmem:[%s10704_s4 + $0xb0] sm:$0xff] }
   0xc   :  { %93 = vst [vmem:[#allocation4 + $0xa0] sm:$0xff] %v92_v20  ;;  %v98_v23 = vld [vmem:[%s10704_s4 + $0xb8] sm:$0xff]  ;;  %95 = vst [vmem:[#allocation4 + $0xa8] sm:$0xff] %v94_v21  ;;  %v100_v24 = vld [vmem:[%s10704_s4 + $0xc0] sm:$0xff] }
   0xd   :  { %97 = vst [vmem:[#allocation4 + $0xb0] sm:$0xff] %v96_v22  ;;  %99 = vst [vmem:[#allocation4 + $0xb8] sm:$0xff] %v98_v23  ;;  %v102_v25 = vld [vmem:[%s10704_s4 + $0xc8] sm:$0xff]  ;;  %v104_v26 = vld [vmem:[%s10704_s4 + $0xd0] sm:$0xff] }
   0xe   :  { %101 = vst [vmem:[#allocation4 + $0xc0] sm:$0xff] %v100_v24  ;;  %103 = vst [vmem:[#allocation4 + $0xc8] sm:$0xff] %v102_v25  ;;  %v106_v27 = vld [vmem:[%s10704_s4 + $0xd8] sm:$0xff]  ;;  %v108_v28 = vld [vmem:[%s10704_s4 + $0xe0] sm:$0xff] }
   0xf   :  { %105 = vst [vmem:[#allocation4 + $0xd0] sm:$0xff] %v104_v26  ;;  %v110_v29 = vld [vmem:[%s10704_s4 + $0xe8] sm:$0xff]  ;;  %107 = vst [vmem:[#allocation4 + $0xd8] sm:$0xff] %v106_v27  ;;  %v112_v30 = vld [vmem:[%s10704_s4 + $0xf0] sm:$0xff] }
  0x10   :  { %109 = vst [vmem:[#allocation4 + $0xe0] sm:$0xff] %v108_v28  ;;  %111 = vst [vmem:[#allocation4 + $0xe8] sm:$0xff] %v110_v29  ;;  %v114_v31 = vld [vmem:[%s10704_s4 + $0xf8] sm:$0xff]  ;;  %v116_v32 = vld [vmem:[%s10704_s4 + $0x100] sm:$0xff] }
  0x11   :  { %113 = vst [vmem:[#allocation4 + $0xf0] sm:$0xff] %v112_v30  ;;  %115 = vst [vmem:[#allocation4 + $0xf8] sm:$0xff] %v114_v31  ;;  %v118_v33 = vld [vmem:[%s10704_s4 + $0x108] sm:$0xff]  ;;  %v120_v34 = vld [vmem:[%s10704_s4 + $0x110] sm:$0xff] }
  0x12   :  { %117 = vst [vmem:[#allocation4 + $0x100] sm:$0xff] %v116_v32  ;;  %v122_v35 = vld [vmem:[%s10704_s4 + $0x118] sm:$0xff]  ;;  %119 = vst [vmem:[#allocation4 + $0x108] sm:$0xff] %v118_v33  ;;  %v124_v36 = vld [vmem:[%s10704_s4 + $0x120] sm:$0xff] }
  0x13   :  { %121 = vst [vmem:[#allocation4 + $0x110] sm:$0xff] %v120_v34  ;;  %123 = vst [vmem:[#allocation4 + $0x118] sm:$0xff] %v122_v35  ;;  %v126_v37 = vld [vmem:[%s10704_s4 + $0x128] sm:$0xff]  ;;  %v128_v38 = vld [vmem:[%s10704_s4 + $0x130] sm:$0xff] }
  0x14   :  { %125 = vst [vmem:[#allocation4 + $0x120] sm:$0xff] %v124_v36  ;;  %127 = vst [vmem:[#allocation4 + $0x128] sm:$0xff] %v126_v37  ;;  %v130_v39 = vld [vmem:[%s10704_s4 + $0x138] sm:$0xff]  ;;  %v132_v40 = vld [vmem:[%s10704_s4 + $0x140] sm:$0xff] }
  0x15   :  { %129 = vst [vmem:[#allocation4 + $0x130] sm:$0xff] %v128_v38  ;;  %v134_v41 = vld [vmem:[%s10704_s4 + $0x148] sm:$0xff]  ;;  %131 = vst [vmem:[#allocation4 + $0x138] sm:$0xff] %v130_v39  ;;  %v136_v42 = vld [vmem:[%s10704_s4 + $0x150] sm:$0xff] }
  0x16   :  { %133 = vst [vmem:[#allocation4 + $0x140] sm:$0xff] %v132_v40  ;;  %135 = vst [vmem:[#allocation4 + $0x148] sm:$0xff] %v134_v41  ;;  %v138_v43 = vld [vmem:[%s10704_s4 + $0x158] sm:$0xff]  ;;  %v140_v44 = vld [vmem:[%s10704_s4 + $0x160] sm:$0xff] }
  0x17   :  { %137 = vst [vmem:[#allocation4 + $0x150] sm:$0xff] %v136_v42  ;;  %139 = vst [vmem:[#allocation4 + $0x158] sm:$0xff] %v138_v43  ;;  %v142_v45 = vld [vmem:[%s10704_s4 + $0x168] sm:$0xff]  ;;  %v144_v46 = vld [vmem:[%s10704_s4 + $0x170] sm:$0xff] }
  0x18   :  { %141 = vst [vmem:[#allocation4 + $0x160] sm:$0xff] %v140_v44  ;;  %v146_v47 = vld [vmem:[%s10704_s4 + $0x178] sm:$0xff]  ;;  %143 = vst [vmem:[#allocation4 + $0x168] sm:$0xff] %v142_v45  ;;  %v148_v48 = vld [vmem:[%s10704_s4 + $0x180] sm:$0xff] }
  0x19   :  { %145 = vst [vmem:[#allocation4 + $0x170] sm:$0xff] %v144_v46  ;;  %147 = vst [vmem:[#allocation4 + $0x178] sm:$0xff] %v146_v47  ;;  %v150_v49 = vld [vmem:[%s10704_s4 + $0x188] sm:$0xff] }
  0x1a   :  { %149 = vst [vmem:[#allocation4 + $0x180] sm:$0xff] %v148_v48  ;;  %151 = vst [vmem:[#allocation4 + $0x188] sm:$0xff] %v150_v49 }
  0x1b   :  { %159 = vsyncadd [#allocation6], 6400  ;;  %v193_v50 = vld [vmem:[%s10705_s5] sm:$0xff]  ;;  %v195_v51 = vld [vmem:[%s10705_s5 + $0x8] sm:$0xff] }
  0x1c   :  { %194 = vst [vmem:[#allocation5] sm:$0xff] %v193_v50  ;;  %196 = vst [vmem:[#allocation5 + $0x8] sm:$0xff] %v195_v51  ;;  %v197_v52 = vld [vmem:[%s10705_s5 + $0x10] sm:$0xff]  ;;  %v199_v53 = vld [vmem:[%s10705_s5 + $0x18] sm:$0xff] }
  0x1d   :  { %v201_v54 = vld [vmem:[%s10705_s5 + $0x20] sm:$0xff]  ;;  %198 = vst [vmem:[#allocation5 + $0x10] sm:$0xff] %v197_v52  ;;  %200 = vst [vmem:[#allocation5 + $0x18] sm:$0xff] %v199_v53  ;;  %v203_v55 = vld [vmem:[%s10705_s5 + $0x28] sm:$0xff] }
  0x1e   :  { %202 = vst [vmem:[#allocation5 + $0x20] sm:$0xff] %v201_v54  ;;  %v205_v56 = vld [vmem:[%s10705_s5 + $0x30] sm:$0xff]  ;;  %v207_v57 = vld [vmem:[%s10705_s5 + $0x38] sm:$0xff]  ;;  %204 = vst [vmem:[#allocation5 + $0x28] sm:$0xff] %v203_v55 }
  0x1f   :  { %206 = vst [vmem:[#allocation5 + $0x30] sm:$0xff] %v205_v56  ;;  %208 = vst [vmem:[#allocation5 + $0x38] sm:$0xff] %v207_v57  ;;  %v209_v58 = vld [vmem:[%s10705_s5 + $0x40] sm:$0xff]  ;;  %v211_v59 = vld [vmem:[%s10705_s5 + $0x48] sm:$0xff] }
  0x20   :  { %v213_v60 = vld [vmem:[%s10705_s5 + $0x50] sm:$0xff]  ;;  %210 = vst [vmem:[#allocation5 + $0x40] sm:$0xff] %v209_v58  ;;  %212 = vst [vmem:[#allocation5 + $0x48] sm:$0xff] %v211_v59  ;;  %v215_v61 = vld [vmem:[%s10705_s5 + $0x58] sm:$0xff] }
  0x21   :  { %214 = vst [vmem:[#allocation5 + $0x50] sm:$0xff] %v213_v60  ;;  %v217_v62 = vld [vmem:[%s10705_s5 + $0x60] sm:$0xff]  ;;  %v219_v63 = vld [vmem:[%s10705_s5 + $0x68] sm:$0xff]  ;;  %216 = vst [vmem:[#allocation5 + $0x58] sm:$0xff] %v215_v61 }
  0x22   :  { %218 = vst [vmem:[#allocation5 + $0x60] sm:$0xff] %v217_v62  ;;  %220 = vst [vmem:[#allocation5 + $0x68] sm:$0xff] %v219_v63  ;;  %v221_v0 = vld [vmem:[%s10705_s5 + $0x70] sm:$0xff]  ;;  %v223_v1 = vld [vmem:[%s10705_s5 + $0x78] sm:$0xff] }
  0x23   :  { %v225_v2 = vld [vmem:[%s10705_s5 + $0x80] sm:$0xff]  ;;  %222 = vst [vmem:[#allocation5 + $0x70] sm:$0xff] %v221_v0  ;;  %224 = vst [vmem:[#allocation5 + $0x78] sm:$0xff] %v223_v1  ;;  %v227_v3 = vld [vmem:[%s10705_s5 + $0x88] sm:$0xff] }
  0x24   :  { %226 = vst [vmem:[#allocation5 + $0x80] sm:$0xff] %v225_v2  ;;  %v229_v4 = vld [vmem:[%s10705_s5 + $0x90] sm:$0xff]  ;;  %v231_v5 = vld [vmem:[%s10705_s5 + $0x98] sm:$0xff]  ;;  %228 = vst [vmem:[#allocation5 + $0x88] sm:$0xff] %v227_v3 }
  0x25   :  { %230 = vst [vmem:[#allocation5 + $0x90] sm:$0xff] %v229_v4  ;;  %232 = vst [vmem:[#allocation5 + $0x98] sm:$0xff] %v231_v5  ;;  %v233_v6 = vld [vmem:[%s10705_s5 + $0xa0] sm:$0xff]  ;;  %v7803_v7 = vld [vmem:[%s10700_s0 + $0x8] sm:$0xff] }
  0x26   :  { %234 = vst [vmem:[#allocation5 + $0xa0] sm:$0xff] %v233_v6  ;;  %10795 = vst [vmem:[#allocation11_spill] sm:$0xff] %v7803_v7  ;;  %v7808_v8 = vld [vmem:[%s10700_s0] sm:$0xff] }
  0x27   :  { %10796 = vst [vmem:[#allocation12_spill] sm:$0xff] %v7808_v8 }
  0x28   :  { %242 = vsyncadd [#allocation6 + $0x1], 2688  ;;  %v10739_v9 = vmov 30   ;;  %v10759_v10 = vmov 1   ;;  %v255_v11 = vld [vmem:[%s10701_s1] sm:$0xff]  ;;  %v7829_v17 = vld [vmem:[%s10700_s0 + $0x10] sm:$0xff]  ;;  %v7868_v31 = vpack.c.bf16 %v7803_v7, %v7808_v8 }
  0x29   :  { %7155 = vset.pattern.permute.xlu0 %v10739_v9  ;;  %7125 = vset.pattern.permute.xlu1 %v10759_v10  ;;  %v271_v12 = vld [vmem:[%s10701_s1 + $0x80] sm:$0xff]  ;;  %10797 = vst [vmem:[#allocation13_spill] sm:$0xff] %v7829_v17  ;;  %v10769_v19 = vmov 0   ;;  %v256_v20 = vld [vmem:[%s10701_s1 + $0x8] sm:$0xff]  ;;  %v7842_v23 = vld [vmem:[%s10700_s0 + $0x30] sm:$0xff]  ;;  %vm639_vm0 = vcmask 261120  }
  0x2a   :  { %3033 = vperm.xlu0 %7155, %v7803_v7   ;;  %1869 = vperm.xlu1 %7125, %v7808_v8   ;;  %v6377_v13 = vcombine.high %v255_v11, %v271_v12  ;;  %v6376_v14 = vcombine.low %v255_v11, %v271_v12  ;;  %v287_v15 = vld [vmem:[%s10701_s1 + $0x100] sm:$0xff]  ;;  %v272_v21 = vld [vmem:[%s10701_s1 + $0x88] sm:$0xff]  ;;  %10798 = vst [vmem:[#allocation14_spill] sm:$0xff] %v7842_v23  ;;  %v7847_v24 = vld [vmem:[%s10700_s0 + $0x38] sm:$0xff]  ;;  %v10765_v34 = vmov 2   ;;  %v10763_v46 = vmov 3  }
  0x2b   :  { %v303_v16 = vld [vmem:[%s10701_s1 + $0x180] sm:$0xff]  ;;  %684 = vmatprep.mubr.bf16.mxu0 %v10769_v19  ;;  %714 = vmatprep.mubr.bf16.mxu1 %v10769_v19  ;;  %10799 = vst [vmem:[#allocation15_spill] sm:$0xff] %v7847_v24  ;;  %v6379_v25 = vcombine.high %v256_v20, %v272_v21  ;;  %v288_v26 = vld [vmem:[%s10701_s1 + $0x108] sm:$0xff]  ;;  %v7859_v28 = vpack.c.bf16 %v7847_v24, %v7842_v23  ;;  %v7864_v29 = vld [vmem:[%s10700_s0 + $0x18] sm:$0xff]  ;;  %v10757_v52 = vmov 4   ;;  %v10747_v61 = vmov 7  }
  0x2c   :  { %v6409_v18 = vcombine.high %v287_v15, %v303_v16  ;;  %652 = vmatprep.subr.bf16.mxu0 %v6377_v13  ;;  %7044 = vmatprep.subr.bf16.mxu1 %v6377_v13  ;;  %v6408_v22 = vcombine.low %v287_v15, %v303_v16  ;;  %v304_v27 = vld [vmem:[%s10701_s1 + $0x188] sm:$0xff]  ;;  %10801 = vst [vmem:[#allocation17_spill] sm:$0xff] %v7864_v29  ;;  %10802 = vst [vmem:[#allocation18_spill] sm:$0xff] %v7868_v31  ;;  %v257_v32 = vld [vmem:[%s10701_s1 + $0x10] sm:$0xff]  ;;  %v10755_v0 = vmov 5   ;;  %v10751_v3 = vmov 6  }
  0x2d   :  { %653 = vmatpush1.bf16.msra.mxu0 %v6376_v14  ;;  %7046 = vmatpush1.bf16.msra.mxu1 %v6376_v14  ;;  %10800 = vst [vmem:[#allocation16_spill] sm:$0xff] %v7859_v28  ;;  %v6378_v30 = vcombine.low %v256_v20, %v272_v21  ;;  %v273_v33 = vld [vmem:[%s10701_s1 + $0x90] sm:$0xff]  ;;  %v6411_v35 = vcombine.high %v288_v26, %v304_v27  ;;  %v258_v36 = vld [vmem:[%s10701_s1 + $0x18] sm:$0xff]  ;;  %v7891_v38 = vld [vmem:[%s10700_s0 + $0x20] sm:$0xff]  ;;  %v10733_v6 = vmov 10   ;;  %v10725_v15 = vmov 13  }
  0x2e   :  { %3037 = vperm.xlu0 %7155, %v7829_v17   ;;  %1873 = vperm.xlu1 %7125, %v7803_v7   ;;  %v274_v37 = vld [vmem:[%s10701_s1 + $0x98] sm:$0xff]  ;;  %10803 = vst [vmem:[#allocation19_spill] sm:$0xff] %v7891_v38  ;;  %v6381_v39 = vcombine.high %v257_v32, %v273_v33  ;;  %v289_v40 = vld [vmem:[%s10701_s1 + $0x110] sm:$0xff]  ;;  %v6410_v42 = vcombine.low %v288_v26, %v304_v27  ;;  %v259_v50 = vld [vmem:[%s10701_s1 + $0x20] sm:$0xff]  ;;  %v10745_v16 = vmov 8   ;;  %v10719_v26 = vmov 16  }
  0x2f   :  { %654 = vmatprep.subr.bf16.mxu0 %v6409_v18  ;;  %7045 = vmatprep.subr.bf16.mxu1 %v6409_v18  ;;  %v305_v41 = vld [vmem:[%s10701_s1 + $0x190] sm:$0xff]  ;;  %v6380_v43 = vcombine.low %v257_v32, %v273_v33  ;;  %v6383_v44 = vcombine.high %v258_v36, %v274_v37  ;;  %v290_v47 = vld [vmem:[%s10701_s1 + $0x118] sm:$0xff]  ;;  %v7914_v49 = vpack.c.bf16 %v7864_v29, %v7829_v17  ;;  %v275_v51 = vld [vmem:[%s10701_s1 + $0xa0] sm:$0xff]  ;;  %vm7548_vm1 = vmmov 0   ;;  %s7549_s29 = smov 64   ;;  %s7550_s30 = smov 32  }
  0x30   :  { %v6413_v45 = vcombine.high %v289_v40, %v305_v41  ;;  %v306_v48 = vld [vmem:[%s10701_s1 + $0x198] sm:$0xff]  ;;  %v6412_v53 = vcombine.low %v289_v40, %v305_v41  ;;  %v6382_v54 = vcombine.low %v258_v36, %v274_v37  ;;  %v6385_v56 = vcombine.high %v259_v50, %v275_v51  ;;  %v7934_v57 = vld [vmem:[%s10700_s0 + $0x28] sm:$0xff]  ;;  %v291_v1 = vld [vmem:[%s10701_s1 + $0x120] sm:$0xff] }
  0x31   :  { %655 = vmatpush1.bf16.msra.mxu0 %v6408_v22  ;;  %7047 = vmatpush1.bf16.msra.mxu1 %v6408_v22  ;;  %10804 = vst [vmem:[#allocation20_spill] sm:$0xff] %v7914_v49  ;;  %v6415_v55 = vcombine.high %v290_v47, %v306_v48  ;;  %10805 = vst [vmem:[#allocation21_spill] sm:$0xff] %v7934_v57  ;;  %v7941_v58 = vld [vmem:[%s10701_s1 + $0x28] sm:$0xff]  ;;  %v7950_v60 = vpack.c.bf16 %v7934_v57, %v7891_v38  ;;  %v307_v2 = vld [vmem:[%s10701_s1 + $0x1a0] sm:$0xff]  ;;  %v10761_v40 = vmov 11  }
  0x32   :  { %7187 = vset.pattern.permute.xlu0 %v10759_v10  ;;  %7126 = vset.pattern.permute.xlu1 %v10765_v34  ;;  %v7946_v59 = vld [vmem:[%s10701_s1 + $0xa8] sm:$0xff]  ;;  %v6414_v62 = vcombine.low %v290_v47, %v306_v48  ;;  %v6384_v4 = vcombine.low %v259_v50, %v275_v51  ;;  %v6417_v5 = vcombine.high %v291_v1, %v307_v2  ;;  %v7982_v11 = vld [vmem:[%s10701_s1 + $0x30] sm:$0xff]  ;;  %v8030_v27 = vld [vmem:[%s10701_s1 + $0x38] sm:$0xff]  ;;  %v10771_v47 = vmov 12  }
  0x33   :  { %725 = vmatprep.subr.bf16.mxu1 %v6379_v25  ;;  %1881 = vperm.xlu0 %7187, %v7864_v29   ;;  %10806 = vst [vmem:[#allocation22_spill] sm:$0xff] %v7950_v60  ;;  %v6387_v63 = vcombine.high %v7941_v58, %v7946_v59  ;;  %v7987_v12 = vld [vmem:[%s10701_s1 + $0xb0] sm:$0xff]  ;;  %v6416_v13 = vcombine.low %v291_v1, %v307_v2  ;;  %v292_v18 = vld [vmem:[%s10701_s1 + $0x128] sm:$0xff]  ;;  %v10743_v25 = vmov 9   ;;  %v10709_v48 = vmov 22   ;;  %v294_v50 = vld [vmem:[%s10701_s1 + $0x138] sm:$0xff] }
  0x34   :  { %6443 = vmatmul.mubr.msk.bf16.vlgmr.msra.gmra.mrb[0].mxu1 %vm639_vm0, %v7859_v28  ;;  %1913 = vperm.xlu1 %7126, %v7803_v7   ;;  %v6389_v14 = vcombine.high %v7982_v11, %v7987_v12  ;;  %v308_v20 = vld [vmem:[%s10701_s1 + $0x1a8] sm:$0xff]  ;;  %v6386_v21 = vcombine.low %v7941_v58, %v7946_v59  ;;  %v293_v36 = vld [vmem:[%s10701_s1 + $0x130] sm:$0xff]  ;;  %v310_v51 = vld [vmem:[%s10701_s1 + $0x1b8] sm:$0xff]  ;;  %v10727_v1 = vmov 28   ;;  %v10749_v2 = vmov 15  }
  0x35   :  { %6440 = vmatmul.mubr.msk.bf16.vlgmr.msra.gmra.mrb[0].mxu0 %vm639_vm0, %v7868_v31  ;;  %726 = vmatpush1.bf16.msra.mxu1 %v6378_v30  ;;  %v6419_v22 = vcombine.high %v292_v18, %v308_v20  ;;  %v8035_v30 = vld [vmem:[%s10701_s1 + $0xb8] sm:$0xff]  ;;  %v6418_v32 = vcombine.low %v292_v18, %v308_v20  ;;  %v309_v37 = vld [vmem:[%s10701_s1 + $0x1b0] sm:$0xff]  ;;  %v8114_v58 = vld [vmem:[%s10701_s1 + $0xc8] sm:$0xff]  ;;  %v6422_v59 = vcombine.low %v294_v50, %v310_v51 }
  0x36   :  { %727 = vmatprep.subr.bf16.mxu1 %v6411_v35  ;;  %694 = vmatprep.mubr.bf16.mxu0 %v10769_v19  ;;  %v6391_v33 = vcombine.high %v8030_v27, %v8035_v30  ;;  %v10715_v35 = vmov 19   ;;  %v6421_v41 = vcombine.high %v293_v36, %v309_v37  ;;  %v8158_v18 = vld [vmem:[%s10701_s1 + $0x50] sm:$0xff] }
  0x37   :  { %1885 = vperm.xlu0 %7187, %v7891_v38   ;;  %757 = vmatprep.mubr.bf16.mxu1 %v10769_v19  ;;  %v8163_v20 = vld [vmem:[%s10701_s1 + $0xd0] sm:$0xff] }
  0x38   :  { %7127 = vset.pattern.permute.xlu1 %v10763_v46  ;;  %798 = vmatprep.subr.bf16.mxu0 %v6381_v39  ;;  %v6388_v39 = vcombine.low %v7982_v11, %v7987_v12 }
  0x39   :  { %728 = vmatpush1.bf16.msra.mxu1 %v6410_v42  ;;  %1949 = vperm.xlu1 %7127, %v7808_v8   ;;  %v8068_v42 = vld [vmem:[%s10701_s1 + $0x40] sm:$0xff] }
  0x3a   :  { %799 = vmatpush1.bf16.msra.mxu0 %v6380_v43  ;;  %871 = vmatprep.subr.bf16.mxu1 %v6383_v44  ;;  %v8073_v43 = vld [vmem:[%s10701_s1 + $0xc0] sm:$0xff]  ;;  %v6420_v44 = vcombine.low %v293_v36, %v309_v37  ;;  %v8198_v37 = vld [vmem:[%s10701_s1 + $0x58] sm:$0xff] }
  0x3b   :  { %7191 = vset.pattern.permute.xlu0 %v10757_v52  ;;  %800 = vmatprep.subr.bf16.mxu0 %v6413_v45  ;;  %v6393_v45 = vcombine.high %v8068_v42, %v8073_v43  ;;  %v6392_v11 = vcombine.low %v8068_v42, %v8073_v43  ;;  %v10723_v43 = vmov 20  }
  0x3c   :  { %6444 = vmatmul.mubr.msk.bf16.vlgmr.msra.gmra.mrb[4].mxu1 %vm639_vm0, %v7868_v31  ;;  %2001 = vperm.xlu0 %7191, %v7864_v29  }
  0x3d   :  { %6441 = vmatmul.mubr.msk.bf16.gmra.mrb[4].mxu0 %vm639_vm0, %v7914_v49  ;;  %7128 = vset.pattern.permute.xlu1 %v10757_v52 }
  0x3e   :  { %1989 = vperm.xlu1 %7128, %v7808_v8   ;;  %704 = vmatprep.mubr.bf16.mxu0 %v10769_v19 }
  0x3f   :  { %767 = vmatprep.mubr.bf16.mxu1 %v10769_v19  ;;  %801 = vmatpush1.bf16.msra.mxu0 %v6412_v53  ;;  %v6390_v53 = vcombine.low %v8030_v27, %v8035_v30  ;;  %v10731_v27 = vmov 18   ;;  %v296_v30 = vld [vmem:[%s10701_s1 + $0x148] sm:$0xff] }
  0x40   :  { %2005 = vperm.xlu0 %7191, %v7891_v38   ;;  %872 = vmatpush1.bf16.msra.mxu1 %v6382_v54  ;;  %v10707_v54 = vmov 25  }
  0x41   :  { %873 = vmatprep.subr.bf16.mxu1 %v6415_v55  ;;  %944 = vmatprep.subr.bf16.mxu0 %v6385_v56  ;;  %v6423_v55 = vcombine.high %v294_v50, %v310_v51  ;;  %v8109_v56 = vld [vmem:[%s10701_s1 + $0x48] sm:$0xff]  ;;  %v297_v50 = vld [vmem:[%s10701_s1 + $0x150] sm:$0xff] }
  0x42   :  { %1993 = vperm.xlu1 %7128, %v7803_v7   ;;  %v313_v51 = vld [vmem:[%s10701_s1 + $0x1d0] sm:$0xff] }
  0x44   :  { %6445 = vmatmul.mubr.msk.bf16.gmra.mrb[8].mxu1 %vm639_vm0, %v7914_v49  ;;  %7195 = vset.pattern.permute.xlu0 %v10747_v61 }
  0x45   :  { %6442 = vmatmul.mubr.msk.bf16.gmra.mrb[8].mxu0 %vm639_vm0, %v7950_v60  ;;  %2121 = vperm.xlu0 %7195, %v7864_v29  }
  0x46   :  { %7129 = vset.pattern.permute.xlu1 %v10755_v0  ;;  %777 = vmatprep.mubr.bf16.mxu1 %v10769_v19 }
  0x47   :  { %2033 = vperm.xlu1 %7129, %v7803_v7   ;;  %830 = vmatprep.mubr.bf16.mxu0 %v10769_v19 }
  0x48   :  { %874 = vmatpush1.bf16.msra.mxu1 %v6414_v62  ;;  %v10753_v62 = vmov 14  }
  0x49   :  { %2125 = vperm.xlu0 %7195, %v7891_v38   ;;  %1017 = vmatprep.subr.bf16.mxu1 %v6387_v63  ;;  %v6395_v63 = vcombine.high %v8109_v56, %v8114_v58 }
  0x4b   :  { %7130 = vset.pattern.permute.xlu1 %v10751_v3 }
  0x4c   :  { %2069 = vperm.xlu1 %7130, %v7808_v8   ;;  %6446 = vmatmul.mubr.msk.bf16.gmra.mrb[12].mxu1 %vm639_vm0, %v7950_v60 }
  0x4d   :  { %6448 = vmatmul.mubr.msk.bf16.vlgmr.msra.gmra.mrb[12].mxu0 %vm639_vm0, %v7868_v31  ;;  %7199 = vset.pattern.permute.xlu0 %v10733_v6 }
  0x4e   :  { %2241 = vperm.xlu0 %7199, %v7864_v29   ;;  %787 = vmatprep.mubr.bf16.mxu1 %v10769_v19 }
  0x4f   :  { %840 = vmatprep.mubr.bf16.mxu0 %v10769_v19  ;;  %945 = vmatpush1.bf16.msra.mxu0 %v6384_v4  ;;  %v295_v4 = vld [vmem:[%s10701_s1 + $0x140] sm:$0xff] }
  0x50   :  { %7131 = vset.pattern.permute.xlu1 %v10747_v61  ;;  %946 = vmatprep.subr.bf16.mxu0 %v6417_v5  ;;  %v311_v5 = vld [vmem:[%s10701_s1 + $0x1c0] sm:$0xff] }
  0x51   :  { %2109 = vperm.xlu1 %7131, %v7808_v8   ;;  %v6425_v12 = vcombine.high %v295_v4, %v311_v5 }
  0x52   :  { %2245 = vperm.xlu0 %7199, %v7891_v38  }
  0x53   :  { %947 = vmatpush1.bf16.msra.mxu0 %v6416_v13  ;;  %v10741_v13 = vmov 31  }
  0x54   :  { %6447 = vmatmul.mubr.msk.bf16.gmra.mrb[16].mxu1 %vm639_vm0, %v7859_v28  ;;  %1090 = vmatprep.subr.bf16.mxu0 %v6389_v14  ;;  %v6424_v14 = vcombine.low %v295_v4, %v311_v5  ;;  %v8251_v4 = vld [vmem:[%s10701_s1 + $0xe0] sm:$0xff]  ;;  %v6428_v5 = vcombine.low %v297_v50, %v313_v51 }
  0x55   :  { %6449 = vmatmul.mubr.msk.bf16.gmra.mrb[16].mxu0 %vm639_vm0, %v7914_v49  ;;  %2113 = vperm.xlu1 %7131, %v7803_v7  }
  0x56   :  { %7203 = vset.pattern.permute.xlu0 %v10725_v15  ;;  %850 = vmatprep.mubr.bf16.mxu0 %v10769_v19 }
  0x57   :  { %2361 = vperm.xlu0 %7203, %v7864_v29   ;;  %903 = vmatprep.mubr.bf16.mxu1 %v10769_v19 }
  0x59   :  { %7132 = vset.pattern.permute.xlu1 %v10745_v16 }
  0x5a   :  { %2153 = vperm.xlu1 %7132, %v7803_v7  }
  0x5b   :  { %2365 = vperm.xlu0 %7203, %v7891_v38  }
  0x5c   :  { %6452 = vmatmul.mubr.msk.bf16.vlgmr.msra.gmra.mrb[20].mxu1 %vm639_vm0, %v7868_v31 }
  0x5d   :  { %6450 = vmatmul.mubr.msk.bf16.gmra.mrb[20].mxu0 %vm639_vm0, %v7950_v60  ;;  %913 = vmatprep.mubr.bf16.mxu1 %v10769_v19 }
  0x5e   :  { %7133 = vset.pattern.permute.xlu1 %v10743_v25  ;;  %860 = vmatprep.mubr.bf16.mxu0 %v10769_v19 }
  0x5f   :  { %2189 = vperm.xlu1 %7133, %v7808_v8   ;;  %7207 = vset.pattern.permute.xlu0 %v10719_v26 }
  0x60   :  { %2481 = vperm.xlu0 %7207, %v7864_v29   ;;  %1018 = vmatpush1.bf16.msra.mxu1 %v6386_v21  ;;  %v10737_v21 = vmov 17  }
  0x61   :  { %1019 = vmatprep.subr.bf16.mxu1 %v6419_v22  ;;  %v6397_v22 = vcombine.high %v8158_v18, %v8163_v20 }
  0x63   :  { %7134 = vset.pattern.permute.xlu1 %v10733_v6  ;;  %v8428_v6 = vld [vmem:[%s10701_s1 + $0xf8] sm:$0xff] }
  0x64   :  { %2229 = vperm.xlu1 %7134, %v7808_v8   ;;  %6453 = vmatmul.mubr.msk.bf16.gmra.mrb[24].mxu1 %vm639_vm0, %v7914_v49 }
  0x65   :  { %6451 = vmatmul.mubr.msk.bf16.gmra.mrb[24].mxu0 %vm639_vm0, %v7859_v28  ;;  %2485 = vperm.xlu0 %7207, %v7891_v38  }
  0x66   :  { %923 = vmatprep.mubr.bf16.mxu1 %v10769_v19  ;;  %976 = vmatprep.mubr.bf16.mxu0 %v10769_v19 }
  0x67   :  { %1020 = vmatpush1.bf16.msra.mxu1 %v6418_v32  ;;  %v312_v32 = vld [vmem:[%s10701_s1 + $0x1c8] sm:$0xff] }
  0x68   :  { %2233 = vperm.xlu1 %7134, %v7803_v7   ;;  %1163 = vmatprep.subr.bf16.mxu1 %v6391_v33  ;;  %v6394_v33 = vcombine.low %v8109_v56, %v8114_v58  ;;  %v6427_v36 = vcombine.high %v296_v30, %v312_v32  ;;  %v6429_v56 = vcombine.high %v297_v50, %v313_v51  ;;  %v10711_v50 = vmov 24  }
  0x69   :  { %7211 = vset.pattern.permute.xlu0 %v10715_v35 }
  0x6a   :  { %2601 = vperm.xlu0 %7211, %v7864_v29  }
  0x6c   :  { %7135 = vset.pattern.permute.xlu1 %v10761_v40  ;;  %6454 = vmatmul.mubr.msk.bf16.gmra.mrb[28].mxu1 %vm639_vm0, %v7950_v60 }
  0x6d   :  { %6456 = vmatmul.mubr.msk.bf16.vlgmr.msra.gmra.mrb[28].mxu0 %vm639_vm0, %v7868_v31  ;;  %2273 = vperm.xlu1 %7135, %v7803_v7  }
  0x6e   :  { %2605 = vperm.xlu0 %7211, %v7891_v38   ;;  %933 = vmatprep.mubr.bf16.mxu1 %v10769_v19 }
  0x6f   :  { %986 = vmatprep.mubr.bf16.mxu0 %v10769_v19  ;;  %1091 = vmatpush1.bf16.msra.mxu0 %v6388_v39  ;;  %v8203_v39 = vld [vmem:[%s10701_s1 + $0xd8] sm:$0xff] }
  0x70   :  { %1092 = vmatprep.subr.bf16.mxu0 %v6421_v41  ;;  %v6426_v41 = vcombine.low %v296_v30, %v312_v32  ;;  %v6399_v42 = vcombine.high %v8198_v37, %v8203_v39  ;;  %v298_v32 = vld [vmem:[%s10701_s1 + $0x158] sm:$0xff] }
  0x71   :  { %7136 = vset.pattern.permute.xlu1 %v10771_v47 }
  0x72   :  { %7215 = vset.pattern.permute.xlu0 %v10709_v48  ;;  %2309 = vperm.xlu1 %7136, %v7808_v8  }
  0x73   :  { %2721 = vperm.xlu0 %7215, %v7864_v29   ;;  %1093 = vmatpush1.bf16.msra.mxu0 %v6420_v44 }
  0x74   :  { %6455 = vmatmul.mubr.msk.bf16.gmra.mrb[32].mxu1 %vm639_vm0, %v7859_v28  ;;  %1236 = vmatprep.subr.bf16.mxu0 %v6393_v45 }
  0x75   :  { %6457 = vmatmul.mubr.msk.bf16.gmra.mrb[32].mxu0 %vm639_vm0, %v7914_v49  ;;  %1049 = vmatprep.mubr.bf16.mxu1 %v10769_v19 }
  0x76   :  { %7137 = vset.pattern.permute.xlu1 %v10725_v15  ;;  %996 = vmatprep.mubr.bf16.mxu0 %v10769_v19 }
  0x77   :  { %2725 = vperm.xlu0 %7215, %v7891_v38   ;;  %2349 = vperm.xlu1 %7137, %v7808_v8  }
  0x7b   :  { %7219 = vset.pattern.permute.xlu0 %v10707_v54  ;;  %2353 = vperm.xlu1 %7137, %v7803_v7  }
  0x7c   :  { %2841 = vperm.xlu0 %7219, %v7864_v29   ;;  %6460 = vmatmul.mubr.msk.bf16.vlgmr.msra.gmra.mrb[36].mxu1 %vm639_vm0, %v7868_v31 }
  0x7d   :  { %6458 = vmatmul.mubr.msk.bf16.gmra.mrb[36].mxu0 %vm639_vm0, %v7950_v60  ;;  %1059 = vmatprep.mubr.bf16.mxu1 %v10769_v19 }
  0x7e   :  { %1006 = vmatprep.mubr.bf16.mxu0 %v10769_v19  ;;  %1164 = vmatpush1.bf16.msra.mxu1 %v6390_v53  ;;  %v10721_v53 = vmov 21  }
  0x7f   :  { %7138 = vset.pattern.permute.xlu1 %v10753_v62  ;;  %1165 = vmatprep.subr.bf16.mxu1 %v6423_v55  ;;  %v6396_v55 = vcombine.low %v8158_v18, %v8163_v20  ;;  %v8495_v62 = vld [vmem:[%s10700_s0 + $0x38] sm:$0xff] }
  0x80   :  { %2845 = vperm.xlu0 %7219, %v7891_v38   ;;  %2393 = vperm.xlu1 %7138, %v7803_v7  }
  0x82   :  { %1166 = vmatpush1.bf16.msra.mxu1 %v6422_v59 }
  0x83   :  { %1309 = vmatprep.subr.bf16.mxu1 %v6395_v63  ;;  %v8246_v63 = vld [vmem:[%s10701_s1 + $0x60] sm:$0xff] }
  0x84   :  { %7223 = vset.pattern.permute.xlu0 %v10727_v1  ;;  %7139 = vset.pattern.permute.xlu1 %v10749_v2  ;;  %v8482_v2 = vld [vmem:[%s10700_s0 + $0x10] sm:$0xff] }
  0x85   :  { %6459 = vmatmul.mubr.msk.bf16.gmra.mrb[40].mxu0 %vm639_vm0, %v7859_v28  ;;  %6461 = vmatmul.mubr.msk.bf16.gmra.mrb[40].mxu1 %vm639_vm0, %v7914_v49 }
  0x86   :  { %2961 = vperm.xlu0 %7223, %v7864_v29   ;;  %2429 = vperm.xlu1 %7139, %v7808_v8  }
  0x87   :  { %1069 = vmatprep.mubr.bf16.mxu1 %v10769_v19  ;;  %1122 = vmatprep.mubr.bf16.mxu0 %v10769_v19 }
  0x8a   :  { %2965 = vperm.xlu0 %7223, %v7891_v38   ;;  %7140 = vset.pattern.permute.xlu1 %v10719_v26  ;;  %v10729_v26 = vmov 27  }
  0x8b   :  { %2469 = vperm.xlu1 %7140, %v7808_v8  }
  0x8d   :  { %6462 = vmatmul.mubr.msk.bf16.gmra.mrb[44].mxu1 %vm639_vm0, %v7950_v60  ;;  %6464 = vmatmul.mubr.msk.bf16.vlgmr.msra.gmra.mrb[44].mxu0 %vm639_vm0, %v7868_v31 }
  0x8e   :  { %7227 = vset.pattern.permute.xlu0 %v10741_v13  ;;  %1079 = vmatprep.mubr.bf16.mxu1 %v10769_v19 }
  0x8f   :  { %3081 = vperm.xlu0 %7227, %v7864_v29   ;;  %2473 = vperm.xlu1 %7140, %v7803_v7  }
  0x90   :  { %1132 = vmatprep.mubr.bf16.mxu0 %v10769_v19  ;;  %1237 = vmatpush1.bf16.msra.mxu0 %v6392_v11  ;;  %v6401_v11 = vcombine.high %v8246_v63, %v8251_v4 }
  0x91   :  { %1238 = vmatprep.subr.bf16.mxu0 %v6425_v12 }
  0x93   :  { %3085 = vperm.xlu0 %7227, %v7891_v38   ;;  %7141 = vset.pattern.permute.xlu1 %v10737_v21 }
  0x94   :  { %2513 = vperm.xlu1 %7141, %v7803_v7   ;;  %1239 = vmatpush1.bf16.msra.mxu0 %v6424_v14 }
  0x95   :  { %6463 = vmatmul.mubr.msk.bf16.gmra.mrb[48].mxu1 %vm639_vm0, %v7859_v28  ;;  %6465 = vmatmul.mubr.msk.bf16.gmra.mrb[48].mxu0 %vm639_vm0, %v7914_v49 }
  0x96   :  { %1142 = vmatprep.mubr.bf16.mxu0 %v10769_v19  ;;  %1195 = vmatprep.mubr.bf16.mxu1 %v10769_v19 }
  0x97   :  { %7231 = vset.pattern.permute.xlu0 %v10769_v19  ;;  %1382 = vmatprep.subr.bf16.mxu0 %v6397_v22  ;;  %v10717_v22 = vmov 23  }
  0x98   :  { %1822 = vperm.xlu0 %7231, %v7808_v8   ;;  %7142 = vset.pattern.permute.xlu1 %v10731_v27  ;;  %v10735_v27 = vmov 29  }
  0x99   :  { %2549 = vperm.xlu1 %7142, %v7808_v8  }
  0x9c   :  { %1827 = vperm.xlu0 %7231, %v7803_v7  }
  0x9d   :  { %7143 = vset.pattern.permute.xlu1 %v10715_v35  ;;  %6466 = vmatmul.mubr.msk.bf16.gmra.mrb[52].mxu0 %vm639_vm0, %v7950_v60 }
  0x9e   :  { %6468 = vmatmul.mubr.msk.bf16.vlgmr.msra.gmra.mrb[52].mxu1 %vm639_vm0, %v7868_v31  ;;  %2589 = vperm.xlu1 %7143, %v7808_v8  }
  0x9f   :  { %1152 = vmatprep.mubr.bf16.mxu0 %v10769_v19  ;;  %1205 = vmatprep.mubr.bf16.mxu1 %v10769_v19 }
  0xa0   :  { %1832 = vperm.xlu0 %7231, %v7829_v17   ;;  %1310 = vmatpush1.bf16.msra.mxu1 %v6394_v33  ;;  %v314_v33 = vld [vmem:[%s10701_s1 + $0x1d8] sm:$0xff] }
  0xa1   :  { %1311 = vmatprep.subr.bf16.mxu1 %v6427_v36 }
  0xa2   :  { %2593 = vperm.xlu1 %7143, %v7803_v7  }
  0xa4   :  { %1857 = vperm.xlu0 %7231, %v7847_v24   ;;  %1312 = vmatpush1.bf16.msra.mxu1 %v6426_v41  ;;  %v6398_v41 = vcombine.low %v8198_v37, %v8203_v39  ;;  %v6430_v37 = vcombine.low %v298_v32, %v314_v33  ;;  %v8310_v39 = vld [vmem:[%s10701_s1 + $0x68] sm:$0xff] }
  0xa5   :  { %6467 = vmatmul.mubr.msk.bf16.gmra.mrb[56].mxu0 %vm639_vm0, %v7859_v28  ;;  %1455 = vmatprep.subr.bf16.mxu1 %v6399_v42  ;;  %v6431_v42 = vcombine.high %v298_v32, %v314_v33 }
  0xa6   :  { %6469 = vmatmul.mubr.msk.bf16.gmra.mrb[56].mxu1 %vm639_vm0, %v7914_v49  ;;  %7144 = vset.pattern.permute.xlu1 %v10723_v43 }
  0xa7   :  { %2633 = vperm.xlu1 %7144, %v7803_v7   ;;  %1215 = vmatprep.mubr.bf16.mxu1 %v10769_v19 }
  0xa8   :  { %7234 = vset.pattern.permute.xlu0 %v10765_v34  ;;  %1268 = vmatprep.mubr.bf16.mxu0 %v10769_v19 }
  0xa9   :  { %1909 = vperm.xlu0 %7234, %v7808_v8   ;;  %v8222_v44 = vpop.permute.xlu1 %1869  ;;  %v8224_v45 = vpop.permute.xlu0 %3033 }
  0xaa   :  { %10807 = vst [vmem:[#allocation23_spill] sm:$0xff] %v8224_v45 }
  0xab   :  { %7145 = vset.pattern.permute.xlu1 %v10721_v53 }
  0xac   :  { %2669 = vperm.xlu1 %7145, %v7808_v8  }
  0xad   :  { %1929 = vperm.xlu0 %7234, %v7934_v57   ;;  %6472 = vmatmul.mubr.msk.bf16.vlgmr.msra.gmra.mrb[60].mxu0 %vm639_vm0, %v7868_v31  ;;  %v8239_v58 = vpop.permute.xlu1 %1873  ;;  %v8241_v59 = vpop.permute.xlu0 %3037 }
  0xae   :  { %10808 = vst [vmem:[#allocation24_spill] sm:$0xff] %v8241_v59  ;;  %6470 = vmatmul.mubr.msk.bf16.gmra.mrb[60].mxu1 %vm639_vm0, %v7950_v60  ;;  %1278 = vmatprep.mubr.bf16.mxu0 %v10769_v19  ;;  %v8619_v59 = vld [vmem:[%s10700_s0 + $0x28] sm:$0xff] }
  0xaf   :  { %1225 = vmatprep.mubr.bf16.mxu1 %v10769_v19  ;;  %1383 = vmatpush1.bf16.msra.mxu0 %v6396_v55 }
  0xb0   :  { %7146 = vset.pattern.permute.xlu1 %v10709_v48  ;;  %1384 = vmatprep.subr.bf16.mxu0 %v6429_v56  ;;  %v8315_v56 = vld [vmem:[%s10701_s1 + $0xe8] sm:$0xff] }
  0xb1   :  { %1933 = vperm.xlu0 %7234, %v7842_v23   ;;  %2709 = vperm.xlu1 %7146, %v7808_v8  }
  0xb2   :  { %v8262_v12 = vpop.permute.xlu0 %1881 }
  0xb3   :  { %v8264_v14 = vpop.permute.xlu1 %1913  ;;  %1385 = vmatpush1.bf16.msra.mxu0 %v6428_v5 }
  0xb4   :  { %1528 = vmatprep.subr.bf16.mxu0 %v6401_v11  ;;  %v6403_v11 = vcombine.high %v8310_v39, %v8315_v56 }
  0xb5   :  { %7236 = vset.pattern.permute.xlu0 %v10763_v46  ;;  %2713 = vperm.xlu1 %7146, %v7803_v7  }
  0xb6   :  { %6471 = vmatmul.mubr.msk.bf16.gmra.mrb[64].mxu1 %vm639_vm0, %v7859_v28  ;;  %6473 = vmatmul.mubr.msk.bf16.gmra.mrb[64].mxu0 %vm639_vm0, %v7914_v49  ;;  %v8272_v18 = vpop.permute.xlu0 %1885 }
  0xb7   :  { %10809 = vst [vmem:[#allocation25_spill] sm:$0xff] %v8272_v18  ;;  %1953 = vperm.xlu0 %7236, %v7803_v7   ;;  %1288 = vmatprep.mubr.bf16.mxu0 %v10769_v19 }
  0xb8   :  { %v8276_v20 = vpop.permute.xlu1 %1949  ;;  %1341 = vmatprep.mubr.bf16.mxu1 %v10769_v19 }
  0xb9   :  { %7147 = vset.pattern.permute.xlu1 %v10717_v22 }
  0xba   :  { %2753 = vperm.xlu1 %7147, %v7803_v7  }
  0xbb   :  { %1957 = vperm.xlu0 %7236, %v7829_v17   ;;  %v8282_v30 = vpop.permute.xlu0 %2001 }
  0xbd   :  { %v8290_v36 = vpop.permute.xlu1 %1989 }
  0xbe   :  { %6474 = vmatmul.mubr.msk.bf16.gmra.mrb[68].mxu0 %vm639_vm0, %v7950_v60  ;;  %6476 = vmatmul.mubr.msk.bf16.vlgmr.msra.gmra.mrb[68].mxu1 %vm639_vm0, %v7868_v31 }
  0xbf   :  { %1977 = vperm.xlu0 %7236, %v7847_v24   ;;  %7148 = vset.pattern.permute.xlu1 %v10711_v50  ;;  %v8300_v51 = vpop.permute.xlu0 %2005 }
  0xc0   :  { %10810 = vst [vmem:[#allocation26_spill] sm:$0xff] %v8300_v51  ;;  %2789 = vperm.xlu1 %7148, %v7808_v8   ;;  %1298 = vmatprep.mubr.bf16.mxu0 %v10769_v19 }
  0xc1   :  { %v8304_v55 = vpop.permute.xlu1 %1993  ;;  %1351 = vmatprep.mubr.bf16.mxu1 %v10769_v19  ;;  %1456 = vmatpush1.bf16.msra.mxu1 %v6398_v41 }
  0xc2   :  { %1457 = vmatprep.subr.bf16.mxu1 %v6431_v42  ;;  %v299_v42 = vld [vmem:[%s10701_s1 + $0x160] sm:$0xff] }
  0xc3   :  { %7239 = vset.pattern.permute.xlu0 %v10755_v0 }
  0xc4   :  { %2029 = vperm.xlu0 %7239, %v7808_v8   ;;  %7149 = vset.pattern.permute.xlu1 %v10707_v54  ;;  %v8320_v5 = vpop.permute.xlu0 %2121  ;;  %v10713_v54 = vmov 26  }
  0xc5   :  { %10811 = vst [vmem:[#allocation27_spill] sm:$0xff] %v8320_v5  ;;  %2829 = vperm.xlu1 %7149, %v7808_v8   ;;  %1458 = vmatpush1.bf16.msra.mxu1 %v6430_v37  ;;  %v315_v37 = vld [vmem:[%s10701_s1 + $0x1e0] sm:$0xff] }
  0xc6   :  { %6475 = vmatmul.mubr.msk.bf16.gmra.mrb[72].mxu0 %vm639_vm0, %v7859_v28  ;;  %6477 = vmatmul.mubr.msk.bf16.gmra.mrb[72].mxu1 %vm639_vm0, %v7914_v49  ;;  %v8329_v32 = vpop.permute.xlu1 %2033  ;;  %v6433_v50 = vcombine.high %v299_v42, %v315_v37  ;;  %v6432_v22 = vcombine.low %v299_v42, %v315_v37  ;;  %v316_v42 = vld [vmem:[%s10701_s1 + $0x1e8] sm:$0xff]  ;;  %v6402_v37 = vcombine.low %v8310_v39, %v8315_v56  ;;  %v8423_v56 = vld [vmem:[%s10701_s1 + $0x78] sm:$0xff] }
  0xc7   :  { %1361 = vmatprep.mubr.bf16.mxu1 %v10769_v19  ;;  %1414 = vmatprep.mubr.bf16.mxu0 %v10769_v19 }
  0xc8   :  { %2049 = vperm.xlu0 %7239, %v7934_v57   ;;  %v8334_v33 = vpop.permute.xlu0 %2125  ;;  %1601 = vmatprep.subr.bf16.mxu1 %v6403_v11  ;;  %v6400_v11 = vcombine.low %v8246_v63, %v8251_v4  ;;  %v8365_v63 = vld [vmem:[%s10701_s1 + $0xf0] sm:$0xff] }
  0xc9   :  { %10812 = vst [vmem:[#allocation28_spill] sm:$0xff] %v8334_v33  ;;  %2833 = vperm.xlu1 %7149, %v7803_v7  }
  0xcb   :  { %v8337_v41 = vpop.permute.xlu1 %2069 }
  0xcc   :  { %2053 = vperm.xlu0 %7239, %v7842_v23  }
  0xcd   :  { %7150 = vset.pattern.permute.xlu1 %v10713_v54  ;;  %v8347_v48 = vpop.permute.xlu0 %2241  ;;  %v8360_v54 = vld [vmem:[%s10701_s1 + $0x70] sm:$0xff] }
  0xce   :  { %10813 = vst [vmem:[#allocation29_spill] sm:$0xff] %v8347_v48  ;;  %2873 = vperm.xlu1 %7150, %v7803_v7   ;;  %6478 = vmatmul.mubr.msk.bf16.gmra.mrb[76].mxu1 %vm639_vm0, %v7950_v60  ;;  %v6405_v53 = vcombine.high %v8360_v54, %v8365_v63 }
  0xcf   :  { %6480 = vmatmul.mubr.msk.bf16.vlgmr.msra.gmra.mrb[76].mxu0 %vm639_vm0, %v7868_v31  ;;  %1371 = vmatprep.mubr.bf16.mxu1 %v10769_v19 }
  0xd0   :  { %7241 = vset.pattern.permute.xlu0 %v10751_v3  ;;  %v8368_v4 = vpop.permute.xlu1 %2109  ;;  %1424 = vmatprep.mubr.bf16.mxu0 %v10769_v19 }
  0xd1   :  { %2073 = vperm.xlu0 %7241, %v7803_v7   ;;  %v8372_v35 = vpop.permute.xlu0 %2245  ;;  %1529 = vmatpush1.bf16.msra.mxu0 %v6400_v11 }
  0xd2   :  { %10814 = vst [vmem:[#allocation30_spill] sm:$0xff] %v8372_v35  ;;  %7151 = vset.pattern.permute.xlu1 %v10729_v26  ;;  %1530 = vmatprep.subr.bf16.mxu0 %v6433_v50 }
  0xd3   :  { %2909 = vperm.xlu1 %7151, %v7808_v8  }
  0xd4   :  { %v8378_v43 = vpop.permute.xlu1 %2113 }
  0xd5   :  { %2077 = vperm.xlu0 %7241, %v7829_v17   ;;  %1531 = vmatpush1.bf16.msra.mxu0 %v6432_v22 }
  0xd6   :  { %6479 = vmatmul.mubr.msk.bf16.gmra.mrb[80].mxu1 %vm639_vm0, %v7859_v28  ;;  %v8383_v15 = vpop.permute.xlu0 %2361  ;;  %1674 = vmatprep.subr.bf16.mxu0 %v6405_v53  ;;  %v300_v53 = vld [vmem:[%s10701_s1 + $0x168] sm:$0xff] }
  0xd7   :  { %10815 = vst [vmem:[#allocation31_spill] sm:$0xff] %v8383_v15  ;;  %6481 = vmatmul.mubr.msk.bf16.gmra.mrb[80].mxu0 %vm639_vm0, %v7914_v49  ;;  %7152 = vset.pattern.permute.xlu1 %v10727_v1  ;;  %v6435_v1 = vcombine.high %v300_v53, %v316_v42  ;;  %v6434_v39 = vcombine.low %v300_v53, %v316_v42 }
  0xd8   :  { %2949 = vperm.xlu1 %7152, %v7808_v8   ;;  %1434 = vmatprep.mubr.bf16.mxu0 %v10769_v19 }
  0xd9   :  { %2097 = vperm.xlu0 %7241, %v7847_v24   ;;  %v8391_v50 = vpop.permute.xlu1 %2153  ;;  %1487 = vmatprep.mubr.bf16.mxu1 %v10769_v19 }
  0xda   :  { %v8394_v22 = vpop.permute.xlu0 %2365 }
  0xdb   :  { %10816 = vst [vmem:[#allocation32_spill] sm:$0xff] %v8394_v22 }
  0xdc   :  { %2953 = vperm.xlu1 %7152, %v7803_v7  }
  0xdd   :  { %7244 = vset.pattern.permute.xlu0 %v10745_v16  ;;  %v6404_v16 = vcombine.low %v8360_v54, %v8365_v63 }
  0xde   :  { %2149 = vperm.xlu0 %7244, %v7808_v8   ;;  %6484 = vmatmul.mubr.msk.bf16.vlgmr.msra.gmra.mrb[84].mxu1 %vm639_vm0, %v7868_v31  ;;  %v8409_v11 = vpop.permute.xlu1 %2189 }
  0xdf   :  { %6482 = vmatmul.mubr.msk.bf16.gmra.mrb[84].mxu0 %vm639_vm0, %v7950_v60  ;;  %1497 = vmatprep.mubr.bf16.mxu1 %v10769_v19  ;;  %v8414_v26 = vpop.permute.xlu0 %2481 }
  0xe0   :  { %10817 = vst [vmem:[#allocation33_spill] sm:$0xff] %v8414_v26  ;;  %7153 = vset.pattern.permute.xlu1 %v10735_v27  ;;  %1444 = vmatprep.mubr.bf16.mxu0 %v10769_v19 }
  0xe1   :  { %2993 = vperm.xlu1 %7153, %v7803_v7   ;;  %1602 = vmatpush1.bf16.msra.mxu1 %v6402_v37  ;;  %v8454_v37 = vld [vmem:[%s10700_s0 + $0x8] sm:$0xff]  ;;  %v10834_v7 = vmov 4  }
  0xe2   :  { %2169 = vperm.xlu0 %7244, %v7934_v57   ;;  %1603 = vmatprep.subr.bf16.mxu1 %v6435_v1  ;;  %v6407_v1 = vcombine.high %v8423_v56, %v8428_v6 }
  0xe3   :  { %v8430_v27 = vpop.permute.xlu1 %2229 }
  0xe4   :  { %v8432_v21 = vpop.permute.xlu0 %2485 }
  0xe5   :  { %10818 = vst [vmem:[#allocation34_spill] sm:$0xff] %v8432_v21  ;;  %7154 = vset.pattern.permute.xlu1 %v10739_v9  ;;  %1604 = vmatpush1.bf16.msra.mxu1 %v6434_v39  ;;  %v8460_v39 = vld [vmem:[%s10700_s0] sm:$0xff]  ;;  %v10838_v21 = vmov 14  }
  0xe6   :  { %2173 = vperm.xlu0 %7244, %v7842_v23   ;;  %3029 = vperm.xlu1 %7154, %v7808_v8  }
  0xe7   :  { %6483 = vmatmul.mubr.msk.bf16.gmra.mrb[88].mxu0 %vm639_vm0, %v7859_v28  ;;  %6485 = vmatmul.mubr.msk.bf16.gmra.mrb[88].mxu1 %vm639_vm0, %v7914_v49  ;;  %v8443_v53 = vpop.permute.xlu1 %2233 }
  0xe8   :  { %1507 = vmatprep.mubr.bf16.mxu1 %v10769_v19  ;;  %1560 = vmatprep.mubr.bf16.mxu0 %v10769_v19 }
  0xe9   :  { %v8447_v42 = vpop.permute.xlu0 %2601  ;;  %1747 = vmatprep.subr.bf16.mxu1 %v6407_v1  ;;  %v301_v1 = vld [vmem:[%s10701_s1 + $0x170] sm:$0xff] }
  0xea   :  { %10819 = vst [vmem:[#allocation35_spill] sm:$0xff] %v8447_v42  ;;  %7246 = vset.pattern.permute.xlu0 %v10743_v25  ;;  %7156 = vset.pattern.permute.xlu1 %v10741_v13  ;;  %v317_v13 = vld [vmem:[%s10701_s1 + $0x1f0] sm:$0xff] }
  0xeb   :  { %2193 = vperm.xlu0 %7246, %v8454_v37   ;;  %3069 = vperm.xlu1 %7156, %v8460_v39   ;;  %v6437_v61 = vcombine.high %v301_v1, %v317_v13  ;;  %v6436_v63 = vcombine.low %v301_v1, %v317_v13  ;;  %v302_v13 = vld [vmem:[%s10701_s1 + $0x178] sm:$0xff] }
  0xec   :  { %v8463_v9 = vpop.permute.xlu1 %2273  ;;  %v318_v1 = vld [vmem:[%s10701_s1 + $0x1f8] sm:$0xff] }
  0xed   :  { %v8471_v25 = vpop.permute.xlu0 %2605  ;;  %v6439_v46 = vcombine.high %v302_v13, %v318_v1 }
  0xee   :  { %10820 = vst [vmem:[#allocation36_spill] sm:$0xff] %v8471_v25 }
  0xef   :  { %6486 = vmatmul.mubr.msk.bf16.gmra.mrb[92].mxu1 %vm639_vm0, %v7950_v60  ;;  %6488 = vmatmul.mubr.msk.bf16.vlgmr.msra.gmra.mrb[92].mxu0 %vm639_vm0, %v7868_v31 }
  0xf0   :  { %2197 = vperm.xlu0 %7246, %v8482_v2   ;;  %3073 = vperm.xlu1 %7156, %v8454_v37  }
  0xf1   :  { %v8486_v3 = vpop.permute.xlu1 %2309  ;;  %1517 = vmatprep.mubr.bf16.mxu1 %v10769_v19  ;;  %1570 = vmatprep.mubr.bf16.mxu0 %v10769_v19 }
  0xf2   :  { %v8490_v54 = vpop.permute.xlu0 %2721  ;;  %1675 = vmatpush1.bf16.msra.mxu0 %v6404_v16 }
  0xf3   :  { %10821 = vst [vmem:[#allocation37_spill] sm:$0xff] %v8490_v54  ;;  %1676 = vmatprep.subr.bf16.mxu0 %v6437_v61 }
  0xf4   :  { %2217 = vperm.xlu0 %7246, %v8495_v62   ;;  %7157 = vset.pattern.permute.xlu1 %v10769_v19 }
  0xf5   :  { %1837 = vperm.xlu1 %7157, %v7864_v29  }
  0xf6   :  { %v8500_v0 = vpop.permute.xlu1 %2349  ;;  %v8502_v52 = vpop.permute.xlu0 %2725  ;;  %1677 = vmatpush1.bf16.msra.mxu0 %v6436_v63  ;;  %v6406_v63 = vcombine.low %v8423_v56, %v8428_v6  ;;  %v6438_v6 = vcombine.low %v302_v13, %v318_v1  ;;  %v8548_v56 = vld [vmem:[%s10700_s0 + $0x18] sm:$0xff] }
  0xf7   :  { %10822 = vst [vmem:[#allocation38_spill] sm:$0xff] %v8502_v52  ;;  %6487 = vmatmul.mubr.msk.bf16.gmra.mrb[96].mxu1 %vm639_vm0, %v7859_v28  ;;  %6489 = vmatmul.mubr.msk.bf16.gmra.mrb[96].mxu0 %vm639_vm0, %v7914_v49 }
  0xf8   :  { %7249 = vset.pattern.permute.xlu0 %v10761_v40  ;;  %1580 = vmatprep.mubr.bf16.mxu0 %v10769_v19 }
  0xf9   :  { %2269 = vperm.xlu0 %7249, %v8460_v39   ;;  %7158 = vset.pattern.permute.xlu1 %v10759_v10 }
  0xfa   :  { %1877 = vperm.xlu1 %7158, %v8482_v2   ;;  %v8513_v61 = vpop.permute.xlu1 %2353  ;;  %1633 = vmatprep.mubr.bf16.mxu1 %v10769_v19 }
  0xfb   :  { %v8516_v16 = vpop.permute.xlu0 %2841 }
  0xfc   :  { %10823 = vst [vmem:[#allocation39_spill] sm:$0xff] %v8516_v16 }
  0xfd   :  { %2289 = vperm.xlu0 %7249, %v7934_v57   ;;  %v10831_v57 = vmov 0  }
  0xfe   :  { %7159 = vset.pattern.permute.xlu1 %v10765_v34  ;;  %v8541_v34 = vld [vmem:[%s10700_s0 + $0x30] sm:$0xff] }
  0xff   :  { %1917 = vperm.xlu1 %7159, %v8482_v2   ;;  %6490 = vmatmul.mubr.msk.bf16.gmra.mrb[100].mxu0 %vm639_vm0, %v7950_v60  ;;  %v8531_v10 = vpop.permute.xlu1 %2393  ;;  %v8533_v40 = vpop.permute.xlu0 %2845 }
 0x100   :  { %10824 = vst [vmem:[#allocation40_spill] sm:$0xff] %v8531_v10  ;;  %10825 = vst [vmem:[#allocation41_spill] sm:$0xff] %v8533_v40  ;;  %6492 = vmatmul.mubr.msk.bf16.vlgmr.msra.gmra.mrb[100].mxu1 %vm639_vm0, %v7868_v31  ;;  %1590 = vmatprep.mubr.bf16.mxu0 %v10769_v19 }
 0x101   :  { %2293 = vperm.xlu0 %7249, %v8541_v34   ;;  %1643 = vmatprep.mubr.bf16.mxu1 %v10769_v19  ;;  %v10827_v19 = vmov 3  }
 0x102   :  { %1748 = vmatpush1.bf16.msra.mxu1 %v6406_v63 }
 0x103   :  { %1921 = vperm.xlu1 %7159, %v8548_v56   ;;  %1749 = vmatprep.subr.bf16.mxu1 %v6439_v46 }
 0x105   :  { %7251 = vset.pattern.permute.xlu0 %v10771_v47  ;;  %v8552_v24 = vpop.permute.xlu1 %2429  ;;  %v8554_v23 = vpop.permute.xlu0 %2961 }
 0x106   :  { %10826 = vst [vmem:[#allocation42_spill] sm:$0xff] %v8554_v23  ;;  %2313 = vperm.xlu0 %7251, %v8454_v37   ;;  %1750 = vmatpush1.bf16.msra.mxu1 %v6438_v6 }
 0x107   :  { %7160 = vset.pattern.permute.xlu1 %v10827_v19  ;;  %6491 = vmatmul.mubr.msk.bf16.gmra.mrb[104].mxu0 %vm639_vm0, %v7859_v28  ;;  %v8560_v13 = vpop.f32.mrb[0].mxu1 }
 0x108   :  { %10828 = vst [vmem:[#allocation43_spill] sm:$0xff] %v8560_v13  ;;  %6493 = vmatmul.mubr.msk.bf16.gmra.mrb[104].mxu1 %vm639_vm0, %v7914_v49  ;;  %1961 = vperm.xlu1 %7160, %v8548_v56   ;;  %v686_v46 = vpop.f32.mrb[0].mxu0  ;;  %v8565_v1 = vpop.f32.mrb[1].mxu1 }
 0x109   :  { %10829 = vst [vmem:[#allocation44_spill] sm:$0xff] %v8565_v1  ;;  %v688_v63 = vpop.f32.mrb[1].mxu0  ;;  %v8567_v47 = vpop.permute.xlu0 %2965  ;;  %1653 = vmatprep.mubr.bf16.mxu1 %v10831_v57  ;;  %1706 = vmatprep.mubr.bf16.mxu0 %v10831_v57 }
 0x10a   :  { %10830 = vst [vmem:[#allocation45_spill] sm:$0xff] %v8567_v47  ;;  %2317 = vperm.xlu0 %7251, %v8482_v2   ;;  %v8572_v6 = vpop.permute.xlu1 %2469  ;;  %v690_v38 = vpop.f32.mrb[2].mxu0  ;;  %v1900_v23 = vmul.f32 %v8222_v44, %v688_v63 }
 0x10b   :  { %10832 = vst [vmem:[#allocation46_spill] sm:$0xff] %v8572_v6  ;;  %v692_v29 = vpop.f32.mrb[3].mxu0  ;;  %v8574_v17 = vpop.f32.mrb[2].mxu1 }
 0x10c   :  { %10833 = vst [vmem:[#allocation47_spill] sm:$0xff] %v8574_v17  ;;  %7161 = vset.pattern.permute.xlu1 %v10834_v7  ;;  %v8577_v8 = vpop.f32.mrb[3].mxu1  ;;  %v10842_v7 = vmov 6  }
 0x10d   :  { %10835 = vst [vmem:[#allocation48_spill] sm:$0xff] %v8577_v8  ;;  %1997 = vperm.xlu1 %7161, %v8482_v2   ;;  %v10837_v8 = vmov 5  }
 0x10e   :  { %2337 = vperm.xlu0 %7251, %v8495_v62   ;;  %v8581_v1 = vpop.permute.xlu1 %2473  ;;  %v8583_v13 = vpop.permute.xlu0 %3081 }
 0x10f   :  { %10836 = vst [vmem:[#allocation49_spill] sm:$0xff] %v8583_v13  ;;  %6496 = vmatmul.mubr.msk.bf16.vlgmr.msra.gmra.mrb[108].mxu0 %vm639_vm0, %v7868_v31  ;;  %v8587_v47 = vpop.f32.mrb[4].mxu1 }
 0x110   :  { %6494 = vmatmul.mubr.msk.bf16.gmra.mrb[108].mxu1 %vm639_vm0, %v7950_v60  ;;  %v8591_v17 = vpop.f32.mrb[5].mxu1  ;;  %v8593_v40 = vpop.f32.mrb[4].mxu0  ;;  %1716 = vmatprep.mubr.bf16.mxu0 %v10831_v57 }
 0x111   :  { %7162 = vset.pattern.permute.xlu1 %v10837_v8  ;;  %v8597_v52 = vpop.f32.mrb[6].mxu1  ;;  %1663 = vmatprep.mubr.bf16.mxu1 %v10831_v57  ;;  %v8600_v25 = vpop.f32.mrb[5].mxu0 }
 0x112   :  { %7254 = vset.pattern.permute.xlu0 %v10838_v21  ;;  %2037 = vperm.xlu1 %7162, %v8482_v2   ;;  %v8604_v22 = vpop.permute.xlu0 %3085  ;;  %v8606_v35 = vpop.f32.mrb[6].mxu0 }
 0x113   :  { %10839 = vst [vmem:[#allocation50_spill] sm:$0xff] %v8604_v22  ;;  %2389 = vperm.xlu0 %7254, %v8460_v39   ;;  %v8609_v33 = vpop.permute.xlu1 %2513  ;;  %v8611_v51 = vpop.f32.mrb[7].mxu0 }
 0x114   :  { %v8613_v18 = vpop.f32.mrb[7].mxu1 }
 0x116   :  { %2041 = vperm.xlu1 %7162, %v8548_v56  }
 0x117   :  { %2409 = vperm.xlu0 %7254, %v8619_v59   ;;  %v1823_v22 = vpop.permute.xlu0 %1822  ;;  %v8622_v13 = vpop.f32.mrb[8].mxu1  ;;  %6497 = vmatmul.mubr.msk.bf16.gmra.mrb[112].mxu0 %vm639_vm0, %v7914_v49 }
 0x118   :  { %6495 = vmatmul.mubr.msk.bf16.gmra.mrb[112].mxu1 %vm639_vm0, %v7859_v28  ;;  %v1860_v16 = vmul.f32 %v1823_v22, %v686_v46  ;;  %v8629_v54 = vpop.permute.xlu1 %2549  ;;  %v8631_v45 = vpop.f32.mrb[8].mxu0  ;;  %1726 = vmatprep.mubr.bf16.mxu0 %v10831_v57 }
 0x119   :  { %10840 = vst [vmem:[#allocation51_spill] sm:$0xff] %v8631_v45  ;;  %1779 = vmatprep.mubr.bf16.mxu1 %v10831_v57  ;;  %v8635_v42 = vpop.f32.mrb[9].mxu0  ;;  %v8637_v26 = vpop.f32.mrb[9].mxu1  ;;  %v1901_v45 = vmul.f32 %v8239_v58, %v692_v29 }
 0x11a   :  { %10841 = vst [vmem:[#allocation52_spill] sm:$0xff] %v8635_v42  ;;  %v3108_v8 = vadd.f32 %v1900_v23, %v1860_v16  ;;  %7163 = vset.pattern.permute.xlu1 %v10842_v7  ;;  %v8640_v44 = vpop.f32.mrb[10].mxu0  ;;  %v8642_v63 = vpop.f32.mrb[10].mxu1  ;;  %v10845_v16 = vmov 15  }
 0x11b   :  { %10843 = vst [vmem:[#allocation53_spill] sm:$0xff] %v8640_v44  ;;  %2413 = vperm.xlu0 %7254, %v8541_v34   ;;  %2081 = vperm.xlu1 %7163, %v8548_v56   ;;  %v1828_v22 = vpop.permute.xlu0 %1827  ;;  %v8646_v46 = vpop.f32.mrb[11].mxu0  ;;  %v10846_v44 = vmov 7  }
 0x11c   :  { %10844 = vst [vmem:[#allocation54_spill] sm:$0xff] %v8646_v46  ;;  %v1861_v19 = vmul.f32 %v1828_v22, %v690_v38  ;;  %v8649_v42 = vpop.f32.mrb[11].mxu1 }
 0x11d   :  { %v8651_v15 = vpop.permute.xlu1 %2589 }
 0x11e   :  { %v8653_v23 = vadd.f32 %v1901_v45, %v1861_v19 }
 0x11f   :  { %7256 = vset.pattern.permute.xlu0 %v10845_v16  ;;  %7164 = vset.pattern.permute.xlu1 %v10846_v44  ;;  %v8657_v7 = vpop.permute.xlu0 %1832  ;;  %v8659_v48 = vpop.f32.mrb[12].mxu1 }
 0x120   :  { %10847 = vst [vmem:[#allocation55_spill] sm:$0xff] %v8659_v48  ;;  %6500 = vmatmul.mubr.msk.bf16.vlgmr.msra.gmra.mrb[116].mxu1 %vm639_vm0, %v7868_v31  ;;  %2433 = vperm.xlu0 %7256, %v8454_v37   ;;  %v8664_v29 = vpop.f32.mrb[12].mxu0  ;;  %v8666_v38 = vpop.f32.mrb[13].mxu1 }
 0x121   :  { %10848 = vst [vmem:[#allocation56_spill] sm:$0xff] %v8666_v38  ;;  %2117 = vperm.xlu1 %7164, %v8482_v2   ;;  %v8669_v19 = vpop.permute.xlu1 %2593  ;;  %v8671_v45 = vpop.f32.mrb[13].mxu0  ;;  %1789 = vmatprep.mubr.bf16.mxu1 %v10831_v57 }
 0x122   :  { %10849 = vst [vmem:[#allocation57_spill] sm:$0xff] %v8669_v19  ;;  %v836_v58 = vpop.f32.mrb[14].mxu0  ;;  %v8674_v22 = vpop.f32.mrb[14].mxu1  ;;  %6498 = vmatmul.mubr.msk.bf16.gmra.mrb[116].mxu0 %vm639_vm0, %v7950_v60  ;;  %v10853_v19 = vmov 8  }
 0x123   :  { %10850 = vst [vmem:[#allocation58_spill] sm:$0xff] %v8674_v22  ;;  %v2021_v31 = vmul.f32 %v8304_v55, %v836_v58  ;;  %v838_v48 = vpop.f32.mrb[15].mxu0  ;;  %v8679_v46 = vpop.permute.xlu0 %1857  ;;  %1736 = vmatprep.mubr.bf16.mxu0 %v10831_v57 }
 0x124   :  { %10851 = vst [vmem:[#allocation59_spill] sm:$0xff] %v8679_v46  ;;  %2437 = vperm.xlu0 %7256, %v8482_v2   ;;  %v2061_v38 = vmul.f32 %v8329_v32, %v838_v48  ;;  %v8684_v44 = vpop.f32.mrb[15].mxu1  ;;  %v1980_v48 = vmul.f32 %v8276_v20, %v8591_v17 }
 0x125   :  { %10852 = vst [vmem:[#allocation60_spill] sm:$0xff] %v8684_v44  ;;  %7165 = vset.pattern.permute.xlu1 %v10853_v19 }
 0x126   :  { %2157 = vperm.xlu1 %7165, %v8482_v2   ;;  %v8688_v22 = vadd.f32 %v2061_v38, %v2021_v31  ;;  %v8690_v6 = vpop.permute.xlu1 %2633 }
 0x127   :  { %10854 = vst [vmem:[#allocation61_spill] sm:$0xff] %v8690_v6  ;;  %v8692_v55 = vpop.f32.mrb[16].mxu1 }
 0x128   :  { %10855 = vst [vmem:[#allocation62_spill] sm:$0xff] %v8692_v55  ;;  %2457 = vperm.xlu0 %7256, %v8495_v62   ;;  %v1910_v58 = vpop.permute.xlu0 %1909  ;;  %v8695_v46 = vpop.f32.mrb[17].mxu1  ;;  %6501 = vmatmul.mubr.msk.bf16.gmra.mrb[120].mxu1 %vm639_vm0, %v7914_v49 }
 0x129   :  { %10856 = vst [vmem:[#allocation63_spill] sm:$0xff] %v8695_v46  ;;  %v1940_v32 = vmul.f32 %v1910_v58, %v8587_v47  ;;  %v8702_v44 = vpop.f32.mrb[18].mxu1  ;;  %v8704_v31 = vpop.f32.mrb[16].mxu0  ;;  %1799 = vmatprep.mubr.bf16.mxu1 %v10831_v57  ;;  %v10860_v47 = vmov 17  }
 0x12a   :  { %10857 = vst [vmem:[#allocation64_spill] sm:$0xff] %v8702_v44  ;;  %2161 = vperm.xlu1 %7165, %v8548_v56   ;;  %v8708_v38 = vpop.f32.mrb[19].mxu1  ;;  %v8710_v55 = vpop.f32.mrb[17].mxu0  ;;  %6499 = vmatmul.mubr.msk.bf16.gmra.mrb[120].mxu0 %vm639_vm0, %v7859_v28 }
 0x12b   :  { %10858 = vst [vmem:[#allocation65_spill] sm:$0xff] %v8708_v38  ;;  %v3116_v49 = vadd.f32 %v1980_v48, %v1940_v32  ;;  %v8714_v46 = vpop.permute.xlu1 %2669  ;;  %v8716_v17 = vpop.f32.mrb[18].mxu0  ;;  %v10863_v38 = vmov 9  }
 0x12c   :  { %10859 = vst [vmem:[#allocation66_spill] sm:$0xff] %v8714_v46  ;;  %7259 = vset.pattern.permute.xlu0 %v10860_v47  ;;  %v8719_v20 = vpop.permute.xlu0 %1929  ;;  %v8721_v58 = vpop.f32.mrb[19].mxu0 }
 0x12d   :  { %10861 = vst [vmem:[#allocation67_spill] sm:$0xff] %v8719_v20  ;;  %10862 = vst [vmem:[#allocation68_spill] sm:$0xff] %v8721_v58  ;;  %v8723_v44 = vadd.f32 %v3116_v49, %v3108_v8  ;;  %2509 = vperm.xlu0 %7259, %v8460_v39  }
 0x12e   :  { %7166 = vset.pattern.permute.xlu1 %v10863_v38 }
 0x12f   :  { %2201 = vperm.xlu1 %7166, %v8548_v56   ;;  %v905_v19 = vpop.f32.mrb[20].mxu1 }
 0x130   :  { %v8728_v48 = vpop.permute.xlu1 %2709  ;;  %v2100_v32 = vmul.f32 %v8337_v41, %v905_v19  ;;  %v8731_v6 = vpop.permute.xlu0 %1933  ;;  %6502 = vmatmul.mubr.msk.bf16.gmra.mrb[124].mxu1 %vm639_vm0, %v7950_v60 }
 0x131   :  { %10864 = vst [vmem:[#allocation69_spill] sm:$0xff] %v8728_v48  ;;  %10865 = vst [vmem:[#allocation70_spill] sm:$0xff] %v8731_v6  ;;  %2529 = vperm.xlu0 %7259, %v8619_v59   ;;  %v907_v8 = vpop.f32.mrb[21].mxu1  ;;  %v8736_v49 = vpop.f32.mrb[20].mxu0  ;;  %1809 = vmatprep.mubr.bf16.mxu1 %v10831_v57  ;;  %v10868_v48 = vmov 10   ;;  %v10873_v57 = vmov 11  }
 0x132   :  { %10866 = vst [vmem:[#allocation71_spill] sm:$0xff] %v8736_v49  ;;  %v2140_v20 = vmul.f32 %v8368_v4, %v907_v8  ;;  %v8740_v38 = vpop.f32.mrb[22].mxu1  ;;  %v8742_v46 = vpop.f32.mrb[21].mxu0  ;;  %v1941_v8 = vmul.f32 %v8264_v14, %v8597_v52 }
 0x133   :  { %10867 = vst [vmem:[#allocation72_spill] sm:$0xff] %v8742_v46  ;;  %7167 = vset.pattern.permute.xlu1 %v10868_v48  ;;  %v8745_v41 = vpop.f32.mrb[23].mxu1  ;;  %v8747_v19 = vpop.f32.mrb[22].mxu0 }
 0x134   :  { %10869 = vst [vmem:[#allocation73_spill] sm:$0xff] %v8747_v19  ;;  %2237 = vperm.xlu1 %7167, %v8482_v2   ;;  %v3132_v60 = vadd.f32 %v2140_v20, %v2100_v32  ;;  %v8750_v6 = vpop.permute.xlu1 %2713  ;;  %v8752_v49 = vpop.f32.mrb[23].mxu0  ;;  %v10876_v32 = vmov 18  }
 0x135   :  { %10870 = vst [vmem:[#allocation74_spill] sm:$0xff] %v8750_v6  ;;  %10871 = vst [vmem:[#allocation75_spill] sm:$0xff] %v8752_v49  ;;  %2533 = vperm.xlu0 %7259, %v8541_v34  }
 0x136   :  { %v1954_v4 = vpop.permute.xlu0 %1953 }
 0x137   :  { %v1981_v46 = vmul.f32 %v1954_v4, %v8613_v18  ;;  %v8758_v48 = vpop.f32.mrb[24].mxu1 }
 0x138   :  { %10872 = vst [vmem:[#allocation76_spill] sm:$0xff] %v8758_v48  ;;  %7168 = vset.pattern.permute.xlu1 %v10873_v57  ;;  %v8761_v19 = vpop.f32.mrb[24].mxu0  ;;  %v8763_v10 = vpop.f32.mrb[25].mxu1  ;;  %6503 = vmatmul.mubr.msk.bf16.gmra.mrb[128].mxu1 %vm639_vm0, %v7859_v28 }
 0x139   :  { %10874 = vst [vmem:[#allocation77_spill] sm:$0xff] %v8761_v19  ;;  %10875 = vst [vmem:[#allocation78_spill] sm:$0xff] %v8763_v10  ;;  %v3117_v20 = vadd.f32 %v1981_v46, %v1941_v8  ;;  %2277 = vperm.xlu1 %7168, %v8482_v2   ;;  %7261 = vset.pattern.permute.xlu0 %v10876_v32  ;;  %v8769_v49 = vpop.permute.xlu1 %2753  ;;  %v8771_v52 = vpop.f32.mrb[25].mxu0 }
 0x13a   :  { %10877 = vst [vmem:[#allocation79_spill] sm:$0xff] %v8769_v49  ;;  %10878 = vst [vmem:[#allocation80_spill] sm:$0xff] %v8771_v52  ;;  %2553 = vperm.xlu0 %7261, %v8454_v37   ;;  %v8774_v14 = vpop.permute.xlu0 %1957  ;;  %v8776_v18 = vpop.f32.mrb[26].mxu0 }
 0x13b   :  { %10879 = vst [vmem:[#allocation81_spill] sm:$0xff] %v8776_v18  ;;  %v8779_v4 = vadd.f32 %v3117_v20, %v8653_v23  ;;  %v8781_v19 = vpop.f32.mrb[27].mxu0  ;;  %v8783_v46 = vpop.f32.mrb[26].mxu1  ;;  %v10887_v20 = vmov 12  }
 0x13c   :  { %10880 = vst [vmem:[#allocation82_spill] sm:$0xff] %v8781_v19  ;;  %10881 = vst [vmem:[#allocation83_spill] sm:$0xff] %v8783_v46  ;;  %v8785_v8 = vpop.f32.mrb[27].mxu1  ;;  %v10892_v46 = vmov 20  }
 0x13d   :  { %10882 = vst [vmem:[#allocation84_spill] sm:$0xff] %v8785_v8  ;;  %2281 = vperm.xlu1 %7168, %v8548_v56  }
 0x13e   :  { %2557 = vperm.xlu0 %7261, %v8482_v2   ;;  %v8789_v28 = vpop.permute.xlu0 %1977 }
 0x13f   :  { %10883 = vst [vmem:[#allocation85_spill] sm:$0xff] %v8789_v28  ;;  %v8791_v52 = vpop.permute.xlu1 %2789  ;;  %v8793_v57 = vpop.f32.mrb[28].mxu1 }
 0x140   :  { %10884 = vst [vmem:[#allocation86_spill] sm:$0xff] %v8791_v52  ;;  %10885 = vst [vmem:[#allocation87_spill] sm:$0xff] %v8793_v57  ;;  %v8795_v18 = vpop.f32.mrb[28].mxu0  ;;  %v8797_v23 = vpop.f32.mrb[29].mxu1 }
 0x141   :  { %10886 = vst [vmem:[#allocation88_spill] sm:$0xff] %v8797_v23  ;;  %7169 = vset.pattern.permute.xlu1 %v10887_v20  ;;  %v8800_v19 = vpop.f32.mrb[29].mxu0  ;;  %v8802_v49 = vpop.f32.mrb[30].mxu1  ;;  %v2020_v23 = vmul.f32 %v8290_v36, %v8664_v29 }
 0x142   :  { %10888 = vst [vmem:[#allocation89_spill] sm:$0xff] %v8802_v49  ;;  %2321 = vperm.xlu1 %7169, %v8548_v56   ;;  %2577 = vperm.xlu0 %7261, %v8495_v62   ;;  %v8806_v6 = vpop.f32.mrb[30].mxu0  ;;  %v8808_v28 = vpop.f32.mrb[31].mxu1  ;;  %v10891_v49 = vmov 13  }
 0x143   :  { %10889 = vst [vmem:[#allocation90_spill] sm:$0xff] %v8808_v28  ;;  %v2030_v52 = vpop.permute.xlu0 %2029  ;;  %v8810_v57 = vpop.f32.mrb[31].mxu0 }
 0x144   :  { %v2060_v20 = vmul.f32 %v2030_v52, %v8671_v45  ;;  %v8815_v10 = vpop.permute.xlu1 %2829 }
 0x145   :  { %10890 = vst [vmem:[#allocation91_spill] sm:$0xff] %v8815_v10 }
 0x146   :  { %v3124_v48 = vadd.f32 %v2060_v20, %v2020_v23  ;;  %7170 = vset.pattern.permute.xlu1 %v10891_v49  ;;  %7264 = vset.pattern.permute.xlu0 %v10892_v46 }
 0x147   :  { %2357 = vperm.xlu1 %7170, %v8482_v2   ;;  %2629 = vperm.xlu0 %7264, %v8460_v39   ;;  %v8821_v28 = vpop.permute.xlu0 %2049  ;;  %v8823_v5 = vpop.f32.mrb[32].mxu1 }
 0x148   :  { %10893 = vst [vmem:[#allocation92_spill] sm:$0xff] %v8821_v28  ;;  %10894 = vst [vmem:[#allocation93_spill] sm:$0xff] %v8823_v5  ;;  %v3244_v8 = vadd.f32 %v3132_v60, %v3124_v48  ;;  %v8825_v58 = vpop.permute.xlu1 %2833  ;;  %v8827_v36 = vpop.f32.mrb[33].mxu1  ;;  %v2141_v5 = vmul.f32 %v8378_v43, %v8745_v41 }
 0x149   :  { %10895 = vst [vmem:[#allocation94_spill] sm:$0xff] %v8825_v58  ;;  %10896 = vst [vmem:[#allocation95_spill] sm:$0xff] %v8827_v36  ;;  %v8829_v29 = vpop.f32.mrb[34].mxu1  ;;  %v8831_v45 = vpop.f32.mrb[32].mxu0 }
 0x14a   :  { %10897 = vst [vmem:[#allocation96_spill] sm:$0xff] %v8829_v29  ;;  %10898 = vst [vmem:[#allocation97_spill] sm:$0xff] %v8831_v45  ;;  %v8834_v52 = vadd.f32 %v3244_v8, %v8723_v44  ;;  %v8836_v23 = vpop.f32.mrb[35].mxu1  ;;  %v8838_v20 = vpop.f32.mrb[33].mxu0 }
 0x14b   :  { %10899 = vst [vmem:[#allocation98_spill] sm:$0xff] %v8836_v23  ;;  %7171 = vset.pattern.permute.xlu1 %v10838_v21  ;;  %2649 = vperm.xlu0 %7264, %v8619_v59   ;;  %v8842_v60 = vpop.permute.xlu0 %2053  ;;  %v8844_v48 = vpop.f32.mrb[34].mxu0 }
 0x14c   :  { %10900 = vst [vmem:[#allocation99_spill] sm:$0xff] %v8842_v60  ;;  %10901 = vst [vmem:[#allocation100_spill] sm:$0xff] %v8844_v48  ;;  %2397 = vperm.xlu1 %7171, %v8482_v2   ;;  %v8847_v29 = vpop.f32.mrb[35].mxu0 }
 0x14d   :  { %10902 = vst [vmem:[#allocation101_spill] sm:$0xff] %v8847_v29  ;;  %v8849_v36 = vpop.permute.xlu1 %2873  ;;  %v10906_v29 = vmov 21  }
 0x14e   :  { %10903 = vst [vmem:[#allocation102_spill] sm:$0xff] %v8849_v36 }
 0x14f   :  { %2653 = vperm.xlu0 %7264, %v8541_v34   ;;  %v8852_v44 = vpop.f32.mrb[36].mxu1 }
 0x150   :  { %2401 = vperm.xlu1 %7171, %v8548_v56   ;;  %v2074_v8 = vpop.permute.xlu0 %2073  ;;  %v8855_v23 = vpop.f32.mrb[37].mxu1 }
 0x151   :  { %v2101_v60 = vmul.f32 %v2074_v8, %v8740_v38  ;;  %v1055_v28 = vpop.f32.mrb[38].mxu1  ;;  %v8860_v21 = vpop.f32.mrb[36].mxu0  ;;  %v10913_v8 = vmov 16  }
 0x152   :  { %10904 = vst [vmem:[#allocation103_spill] sm:$0xff] %v8860_v21  ;;  %v8862_v49 = vpop.permute.xlu1 %2909  ;;  %v2261_v36 = vmul.f32 %v8443_v53, %v1055_v28  ;;  %v1057_v58 = vpop.f32.mrb[39].mxu1 }
 0x153   :  { %10905 = vst [vmem:[#allocation104_spill] sm:$0xff] %v8862_v49  ;;  %v3133_v10 = vadd.f32 %v2141_v5, %v2101_v60  ;;  %7266 = vset.pattern.permute.xlu0 %v10906_v29  ;;  %v2301_v48 = vmul.f32 %v8463_v9, %v1057_v58  ;;  %v8867_v45 = vpop.f32.mrb[37].mxu0 }
 0x154   :  { %10907 = vst [vmem:[#allocation105_spill] sm:$0xff] %v8867_v45  ;;  %7172 = vset.pattern.permute.xlu1 %v10845_v16  ;;  %2673 = vperm.xlu0 %7266, %v8454_v37   ;;  %v8871_v43 = vpop.permute.xlu0 %2077  ;;  %v8873_v38 = vpop.f32.mrb[38].mxu0  ;;  %v10918_v45 = vmov 23  }
 0x155   :  { %10908 = vst [vmem:[#allocation106_spill] sm:$0xff] %v8873_v38  ;;  %v3245_v41 = vadd.f32 %v3133_v10, %v8688_v22  ;;  %2441 = vperm.xlu1 %7172, %v8548_v56   ;;  %v8877_v28 = vadd.f32 %v2301_v48, %v2261_v36  ;;  %v8879_v5 = vpop.f32.mrb[39].mxu0 }
 0x156   :  { %10909 = vst [vmem:[#allocation107_spill] sm:$0xff] %v8879_v5 }
 0x157   :  { %v8882_v9 = vadd.f32 %v3245_v41, %v8779_v4  ;;  %v8884_v53 = vpop.permute.xlu1 %2949 }
 0x158   :  { %10910 = vst [vmem:[#allocation108_spill] sm:$0xff] %v8884_v53  ;;  %2677 = vperm.xlu0 %7266, %v8482_v2   ;;  %v8887_v58 = vpop.permute.xlu0 %2097  ;;  %v8889_v60 = vpop.f32.mrb[40].mxu0 }
 0x159   :  { %10911 = vst [vmem:[#allocation109_spill] sm:$0xff] %v8887_v58  ;;  %10912 = vst [vmem:[#allocation110_spill] sm:$0xff] %v8889_v60  ;;  %7173 = vset.pattern.permute.xlu1 %v10913_v8  ;;  %v8892_v10 = vpop.f32.mrb[41].mxu0  ;;  %v8894_v22 = vpop.f32.mrb[40].mxu1 }
 0x15a   :  { %10914 = vst [vmem:[#allocation111_spill] sm:$0xff] %v8892_v10  ;;  %2477 = vperm.xlu1 %7173, %v8482_v2   ;;  %v8897_v36 = vpop.f32.mrb[42].mxu0  ;;  %v8899_v4 = vpop.f32.mrb[41].mxu1  ;;  %v2220_v10 = vmul.f32 %v8409_v11, %v8800_v19 }
 0x15b   :  { %10915 = vst [vmem:[#allocation112_spill] sm:$0xff] %v8897_v36  ;;  %v8901_v48 = vpop.permute.xlu1 %2953  ;;  %v8903_v41 = vpop.f32.mrb[43].mxu0 }
 0x15c   :  { %10916 = vst [vmem:[#allocation113_spill] sm:$0xff] %v8901_v48  ;;  %10917 = vst [vmem:[#allocation114_spill] sm:$0xff] %v8903_v41  ;;  %2697 = vperm.xlu0 %7266, %v8495_v62   ;;  %v8906_v58 = vpop.f32.mrb[42].mxu1 }
 0x15d   :  { %v2150_v60 = vpop.permute.xlu0 %2149  ;;  %v8908_v5 = vpop.f32.mrb[43].mxu1 }
 0x15e   :  { %7174 = vset.pattern.permute.xlu1 %v10860_v47  ;;  %v2180_v36 = vmul.f32 %v2150_v60, %v8795_v18 }
 0x15f   :  { %2517 = vperm.xlu1 %7174, %v8482_v2  }
 0x160   :  { %v8915_v38 = vadd.f32 %v2220_v10, %v2180_v36  ;;  %7269 = vset.pattern.permute.xlu0 %v10918_v45  ;;  %v8918_v41 = vpop.permute.xlu1 %2993  ;;  %v1124_v21 = vpop.f32.mrb[44].mxu0 }
 0x161   :  { %10919 = vst [vmem:[#allocation115_spill] sm:$0xff] %v8918_v41  ;;  %2749 = vperm.xlu0 %7269, %v8460_v39   ;;  %v2340_v8 = vmul.f32 %v8486_v3, %v1124_v21  ;;  %v8922_v16 = vpop.permute.xlu0 %2169  ;;  %v1126_v11 = vpop.f32.mrb[45].mxu0  ;;  %v10933_v41 = vmov 24  }
 0x162   :  { %10920 = vst [vmem:[#allocation116_spill] sm:$0xff] %v8922_v16  ;;  %v2380_v19 = vmul.f32 %v8500_v0, %v1126_v11  ;;  %v8925_v47 = vpop.f32.mrb[46].mxu0  ;;  %v8927_v18 = vpop.f32.mrb[44].mxu1 }
 0x163   :  { %10921 = vst [vmem:[#allocation117_spill] sm:$0xff] %v8927_v18  ;;  %2521 = vperm.xlu1 %7174, %v8548_v56   ;;  %v8930_v60 = vpop.f32.mrb[47].mxu0  ;;  %v8932_v10 = vpop.f32.mrb[45].mxu1 }
 0x164   :  { %10922 = vst [vmem:[#allocation118_spill] sm:$0xff] %v8932_v10  ;;  %v8934_v36 = vadd.f32 %v2380_v19, %v2340_v8  ;;  %v8936_v53 = vpop.f32.mrb[46].mxu1 }
 0x165   :  { %10923 = vst [vmem:[#allocation119_spill] sm:$0xff] %v8936_v53  ;;  %2769 = vperm.xlu0 %7269, %v8619_v59   ;;  %v8939_v3 = vpop.permute.xlu1 %3029  ;;  %v8941_v21 = vpop.permute.xlu0 %2173 }
 0x166   :  { %10924 = vst [vmem:[#allocation120_spill] sm:$0xff] %v8939_v3  ;;  %10925 = vst [vmem:[#allocation121_spill] sm:$0xff] %v8941_v21  ;;  %v8943_v0 = vpop.f32.mrb[47].mxu1  ;;  %v2181_v21 = vmul.f32 %v8391_v50, %v8806_v6 }
 0x167   :  { %10926 = vst [vmem:[#allocation122_spill] sm:$0xff] %v8943_v0  ;;  %7175 = vset.pattern.permute.xlu1 %v10876_v32 }
 0x168   :  { %2561 = vperm.xlu1 %7175, %v8548_v56   ;;  %v8947_v11 = vpop.f32.mrb[48].mxu1  ;;  %v8949_v18 = vpop.f32.mrb[48].mxu0 }
 0x169   :  { %10927 = vst [vmem:[#allocation123_spill] sm:$0xff] %v8947_v11  ;;  %2773 = vperm.xlu0 %7269, %v8541_v34   ;;  %v8952_v8 = vpop.f32.mrb[49].mxu1  ;;  %v8954_v19 = vpop.f32.mrb[49].mxu0  ;;  %v10931_v11 = vmov 19  }
 0x16a   :  { %10928 = vst [vmem:[#allocation124_spill] sm:$0xff] %v8952_v8  ;;  %v2194_v10 = vpop.permute.xlu0 %2193  ;;  %v8956_v53 = vpop.permute.xlu1 %3069 }
 0x16b   :  { %10929 = vst [vmem:[#allocation125_spill] sm:$0xff] %v8956_v53  ;;  %v2221_v0 = vmul.f32 %v2194_v10, %v8810_v57  ;;  %v8961_v16 = vpop.f32.mrb[50].mxu1  ;;  %v8963_v32 = vpop.f32.mrb[50].mxu0 }
 0x16c   :  { %10930 = vst [vmem:[#allocation126_spill] sm:$0xff] %v8961_v16  ;;  %7176 = vset.pattern.permute.xlu1 %v10931_v11  ;;  %v8966_v49 = vpop.f32.mrb[51].mxu1  ;;  %v8968_v3 = vpop.f32.mrb[51].mxu0 }
 0x16d   :  { %10932 = vst [vmem:[#allocation127_spill] sm:$0xff] %v8966_v49  ;;  %v3141_v8 = vadd.f32 %v2221_v0, %v2181_v21  ;;  %2597 = vperm.xlu1 %7176, %v8482_v2   ;;  %7271 = vset.pattern.permute.xlu0 %v10933_v41 }
 0x16e   :  { %2793 = vperm.xlu0 %7271, %v8454_v37  }
 0x16f   :  { %v8974_v50 = vadd.f32 %v8877_v28, %v3141_v8  ;;  %v8976_v57 = vpop.permute.xlu1 %3073  ;;  %v8978_v6 = vpop.permute.xlu0 %2197  ;;  %v1903_v8 = vmul.f32 %v8262_v12, %v8611_v51  ;;  %v1862_v12 = vmul.f32 %v8657_v7, %v8593_v40 }
 0x170   :  { %10934 = vst [vmem:[#allocation128_spill] sm:$0xff] %v8976_v57  ;;  %v8980_v10 = vpop.f32.mrb[52].mxu0 }
 0x171   :  { %10935 = vst [vmem:[#allocation129_spill] sm:$0xff] %v8980_v10  ;;  %7177 = vset.pattern.permute.xlu1 %v10892_v46  ;;  %v8983_v49 = vpop.f32.mrb[52].mxu1  ;;  %v8985_v21 = vpop.f32.mrb[53].mxu0 }
 0x172   :  { %10936 = vst [vmem:[#allocation130_spill] sm:$0xff] %v8985_v21  ;;  %2637 = vperm.xlu1 %7177, %v8482_v2   ;;  %2797 = vperm.xlu0 %7271, %v8482_v2   ;;  %v8989_v0 = vpop.f32.mrb[53].mxu1  ;;  %v8991_v28 = vpop.f32.mrb[54].mxu0 }
 0x173   :  { %10937 = vst [vmem:[#allocation131_spill] sm:$0xff] %v8991_v28  ;;  %v8995_v16 = vpop.permute.xlu0 %2217  ;;  %v8997_v10 = vpop.f32.mrb[54].mxu1  ;;  %v2260_v28 = vmul.f32 %v8430_v27, %v8852_v44 }
 0x174   :  { %10938 = vst [vmem:[#allocation132_spill] sm:$0xff] %v8995_v16  ;;  %v1838_v46 = vpop.permute.xlu1 %1837  ;;  %v8999_v11 = vpop.f32.mrb[55].mxu0 }
 0x175   :  { %10939 = vst [vmem:[#allocation133_spill] sm:$0xff] %v8999_v11  ;;  %v1863_v21 = vmul.f32 %v1838_v46, %v8606_v35  ;;  %v9002_v57 = vpop.f32.mrb[55].mxu1 }
 0x176   :  { %2641 = vperm.xlu1 %7177, %v8548_v56   ;;  %2817 = vperm.xlu0 %7271, %v8495_v62  }
 0x177   :  { %v9006_v53 = vadd.f32 %v1903_v8, %v1863_v21  ;;  %v10942_v21 = vmov 26  }
 0x178   :  { %v2270_v51 = vpop.permute.xlu0 %2269  ;;  %v9010_v16 = vpop.f32.mrb[56].mxu0 }
 0x179   :  { %10940 = vst [vmem:[#allocation134_spill] sm:$0xff] %v9010_v16  ;;  %v2300_v11 = vmul.f32 %v2270_v51, %v8855_v23  ;;  %v1878_v35 = vpop.permute.xlu1 %1877  ;;  %v9015_v46 = vpop.f32.mrb[57].mxu0 }
 0x17a   :  { %10941 = vst [vmem:[#allocation135_spill] sm:$0xff] %v9015_v46  ;;  %7178 = vset.pattern.permute.xlu1 %v10906_v29  ;;  %v1902_v48 = vmul.f32 %v1878_v35, %v8600_v25  ;;  %7274 = vset.pattern.permute.xlu0 %v10942_v21  ;;  %v9020_v8 = vpop.f32.mrb[58].mxu0  ;;  %v9022_v7 = vpop.f32.mrb[56].mxu1  ;;  %v1982_v25 = vmul.f32 %v8774_v14, %v8637_v26 }
 0x17b   :  { %10943 = vst [vmem:[#allocation136_spill] sm:$0xff] %v9020_v8  ;;  %v3148_v40 = vadd.f32 %v2300_v11, %v2260_v28  ;;  %2681 = vperm.xlu1 %7178, %v8548_v56   ;;  %2869 = vperm.xlu0 %7274, %v8460_v39   ;;  %v9026_v27 = vpop.f32.mrb[59].mxu0  ;;  %v9028_v23 = vpop.f32.mrb[57].mxu1  ;;  %v10946_v8 = vmov 22  }
 0x17c   :  { %10944 = vst [vmem:[#allocation137_spill] sm:$0xff] %v9026_v27  ;;  %v3110_v44 = vadd.f32 %v1902_v48, %v1862_v12  ;;  %v9030_v51 = vpop.permute.xlu0 %2289  ;;  %v9032_v46 = vpop.f32.mrb[58].mxu1 }
 0x17d   :  { %10945 = vst [vmem:[#allocation138_spill] sm:$0xff] %v9030_v51  ;;  %v9037_v35 = vadd.f32 %v3148_v40, %v8915_v38  ;;  %v9039_v11 = vpop.f32.mrb[59].mxu1 }
 0x17e   :  { %v1918_v28 = vpop.permute.xlu1 %1917 }
 0x17f   :  { %7179 = vset.pattern.permute.xlu1 %v10946_v8  ;;  %v1942_v27 = vmul.f32 %v1918_v28, %v8622_v13  ;;  %2889 = vperm.xlu0 %7274, %v8619_v59  }
 0x180   :  { %2717 = vperm.xlu1 %7179, %v8482_v2   ;;  %v9045_v48 = vpop.permute.xlu0 %2293  ;;  %v9047_v12 = vpop.f32.mrb[60].mxu0 }
 0x181   :  { %10947 = vst [vmem:[#allocation139_spill] sm:$0xff] %v9045_v48  ;;  %v3118_v16 = vadd.f32 %v1982_v25, %v1942_v27  ;;  %v9049_v26 = vpop.f32.mrb[61].mxu0  ;;  %v9051_v14 = vpop.f32.mrb[60].mxu1 }
 0x182   :  { %10948 = vst [vmem:[#allocation140_spill] sm:$0xff] %v9051_v14  ;;  %v1922_v38 = vpop.permute.xlu1 %1921  ;;  %v1274_v40 = vpop.f32.mrb[62].mxu0 }
 0x183   :  { %v9053_v51 = vadd.f32 %v3118_v16, %v3110_v44  ;;  %2893 = vperm.xlu0 %7274, %v8541_v34   ;;  %v2501_v13 = vmul.f32 %v8581_v1, %v1274_v40  ;;  %v1276_v28 = vpop.f32.mrb[63].mxu0  ;;  %v9057_v8 = vpop.f32.mrb[61].mxu1  ;;  %v2381_v16 = vmul.f32 %v8513_v61, %v8930_v60  ;;  %v10952_v40 = vmov 27  }
 0x184   :  { %10949 = vst [vmem:[#allocation141_spill] sm:$0xff] %v9057_v8  ;;  %7180 = vset.pattern.permute.xlu1 %v10918_v45  ;;  %v2541_v48 = vmul.f32 %v8609_v33, %v1276_v28  ;;  %v9061_v27 = vpop.f32.mrb[62].mxu1  ;;  %v1943_v45 = vmul.f32 %v1922_v38, %v8642_v63 }
 0x185   :  { %10950 = vst [vmem:[#allocation142_spill] sm:$0xff] %v9061_v27  ;;  %2757 = vperm.xlu1 %7180, %v8482_v2   ;;  %v2314_v25 = vpop.permute.xlu0 %2313  ;;  %v9064_v14 = vpop.f32.mrb[63].mxu1 }
 0x186   :  { %10951 = vst [vmem:[#allocation143_spill] sm:$0xff] %v9064_v14  ;;  %v2341_v44 = vmul.f32 %v2314_v25, %v8925_v47  ;;  %v9069_v1 = vadd.f32 %v2541_v48, %v2501_v13 }
 0x187   :  { %7276 = vset.pattern.permute.xlu0 %v10952_v40  ;;  %v1962_v8 = vpop.permute.xlu1 %1961 }
 0x188   :  { %v9073_v33 = vadd.f32 %v2381_v16, %v2341_v44  ;;  %v1983_v28 = vmul.f32 %v1962_v8, %v8649_v42  ;;  %2913 = vperm.xlu0 %7276, %v8454_v37  }
 0x189   :  { %2761 = vperm.xlu1 %7180, %v8548_v56   ;;  %v9078_v14 = vpop.permute.xlu0 %2317  ;;  %v9080_v61 = vpop.f32.mrb[64].mxu1 }
 0x18a   :  { %10953 = vst [vmem:[#allocation144_spill] sm:$0xff] %v9080_v61  ;;  %v3119_v47 = vadd.f32 %v1983_v28, %v1943_v45  ;;  %v9082_v60 = vpop.f32.mrb[65].mxu1  ;;  %v9084_v48 = vpop.f32.mrb[64].mxu0  ;;  %v10958_v28 = vmov 25  }
 0x18b   :  { %10954 = vst [vmem:[#allocation145_spill] sm:$0xff] %v9082_v60  ;;  %v9086_v13 = vpop.f32.mrb[66].mxu1  ;;  %v9088_v63 = vpop.f32.mrb[65].mxu0 }
 0x18c   :  { %10955 = vst [vmem:[#allocation146_spill] sm:$0xff] %v9086_v13  ;;  %v9091_v38 = vadd.f32 %v3119_v47, %v9006_v53  ;;  %2917 = vperm.xlu0 %7276, %v8482_v2   ;;  %v1998_v42 = vpop.permute.xlu1 %1997  ;;  %v9094_v37 = vpop.f32.mrb[67].mxu1 }
 0x18d   :  { %10956 = vst [vmem:[#allocation147_spill] sm:$0xff] %v9094_v37  ;;  %7181 = vset.pattern.permute.xlu1 %v10933_v41  ;;  %v9097_v8 = vpop.permute.xlu0 %2337  ;;  %v9099_v45 = vpop.f32.mrb[66].mxu0  ;;  %v2022_v44 = vmul.f32 %v1998_v42, %v8704_v31  ;;  %v2460_v37 = vmul.f32 %v8552_v24, %v8989_v0 }
 0x18e   :  { %10957 = vst [vmem:[#allocation148_spill] sm:$0xff] %v9097_v8  ;;  %2801 = vperm.xlu1 %7181, %v8548_v56   ;;  %v9102_v25 = vpop.f32.mrb[67].mxu0 }
 0x190   :  { %2937 = vperm.xlu0 %7276, %v8495_v62  }
 0x191   :  { %v2038_v16 = vpop.permute.xlu1 %2037  ;;  %v1343_v53 = vpop.f32.mrb[68].mxu1 }
 0x192   :  { %7182 = vset.pattern.permute.xlu1 %v10958_v28  ;;  %v2062_v47 = vmul.f32 %v2038_v16, %v8710_v55  ;;  %v2390_v60 = vpop.permute.xlu0 %2389  ;;  %v2580_v61 = vmul.f32 %v8629_v54, %v1343_v53  ;;  %v1345_v13 = vpop.f32.mrb[69].mxu1  ;;  %v2023_v55 = vmul.f32 %v8282_v30, %v8716_v17  ;;  %v10960_v16 = vmov 29  }
 0x193   :  { %v2420_v8 = vmul.f32 %v2390_v60, %v8983_v49  ;;  %2837 = vperm.xlu1 %7182, %v8482_v2   ;;  %v2620_v27 = vmul.f32 %v8651_v15, %v1345_v13  ;;  %v9114_v41 = vpop.f32.mrb[70].mxu1  ;;  %v9116_v31 = vpop.f32.mrb[68].mxu0  ;;  %v10963_v60 = vld [vmem:[#allocation68_spill] sm:$0xff] }
 0x194   :  { %10959 = vst [vmem:[#allocation149_spill] sm:$0xff] %v9116_v31  ;;  %v3126_v42 = vadd.f32 %v2062_v47, %v2022_v44  ;;  %7279 = vset.pattern.permute.xlu0 %v10960_v16  ;;  %v9121_v54 = vpop.f32.mrb[71].mxu1  ;;  %v9123_v53 = vpop.f32.mrb[69].mxu0 }
 0x195   :  { %10961 = vst [vmem:[#allocation150_spill] sm:$0xff] %v9123_v53  ;;  %v3164_v24 = vadd.f32 %v2460_v37, %v2420_v8  ;;  %v9125_v49 = vadd.f32 %v2620_v27, %v2580_v61  ;;  %2989 = vperm.xlu0 %7279, %v8460_v39   ;;  %v2042_v15 = vpop.permute.xlu1 %2041  ;;  %v9128_v0 = vpop.f32.mrb[70].mxu0  ;;  %v10966_v27 = vld [vmem:[#allocation84_spill] sm:$0xff]  ;;  %v10967_v61 = vld [vmem:[#allocation27_spill] sm:$0xff] }
 0x196   :  { %10962 = vst [vmem:[#allocation151_spill] sm:$0xff] %v9128_v0  ;;  %v2063_v13 = vmul.f32 %v2042_v15, %v10963_v60  ;;  %v9131_v31 = vpop.permute.xlu0 %2409  ;;  %v9133_v30 = vpop.f32.mrb[71].mxu0  ;;  %v2143_v37 = vmul.f32 %v10967_v61, %v10966_v27 }
 0x197   :  { %10964 = vst [vmem:[#allocation68_spill] sm:$0xff] %v9131_v31  ;;  %10965 = vst [vmem:[#allocation152_spill] sm:$0xff] %v9133_v30  ;;  %v3260_v17 = vadd.f32 %v3164_v24, %v8934_v36  ;;  %7183 = vset.pattern.permute.xlu1 %v10942_v21  ;;  %v10992_v31 = vld [vmem:[#allocation101_spill] sm:$0xff] }
 0x198   :  { %v3127_v44 = vadd.f32 %v2063_v13, %v2023_v55  ;;  %2877 = vperm.xlu1 %7183, %v8482_v2   ;;  %v10970_v55 = vld [vmem:[#allocation83_spill] sm:$0xff] }
 0x199   :  { %v3308_v39 = vadd.f32 %v3260_v17, %v9037_v35  ;;  %v9141_v8 = vpop.f32.mrb[72].mxu0  ;;  %v9143_v47 = vpop.f32.mrb[72].mxu1  ;;  %3009 = vperm.xlu0 %7279, %v8619_v59  }
 0x19a   :  { %10968 = vst [vmem:[#allocation84_spill] sm:$0xff] %v9141_v8  ;;  %v2082_v15 = vpop.permute.xlu1 %2081  ;;  %v9146_v60 = vpop.permute.xlu0 %2413 }
 0x19b   :  { %10969 = vst [vmem:[#allocation27_spill] sm:$0xff] %v9146_v60  ;;  %v9149_v36 = vadd.f32 %v3308_v39, %v8834_v52  ;;  %v2103_v24 = vmul.f32 %v2082_v15, %v10970_v55  ;;  %v9152_v13 = vpop.f32.mrb[73].mxu0  ;;  %v9154_v53 = vpop.f32.mrb[73].mxu1  ;;  %v10974_v52 = vld [vmem:[#allocation76_spill] sm:$0xff] }
 0x19c   :  { %10971 = vst [vmem:[#allocation83_spill] sm:$0xff] %v9152_v13  ;;  %2881 = vperm.xlu1 %7183, %v8548_v56   ;;  %v9157_v35 = vpop.f32.mrb[74].mxu0  ;;  %v9159_v17 = vpop.f32.mrb[74].mxu1  ;;  %v2102_v39 = vmul.f32 %v8871_v43, %v10974_v52  ;;  %v10975_v13 = vld [vmem:[#allocation40_spill] sm:$0xff]  ;;  %v10978_v43 = vmov 30  }
 0x19d   :  { %10972 = vst [vmem:[#allocation153_spill] sm:$0xff] %v9157_v35  ;;  %v3135_v27 = vadd.f32 %v2143_v37, %v2103_v24  ;;  %v9161_v61 = vpop.f32.mrb[75].mxu0  ;;  %v9163_v8 = vpop.f32.mrb[75].mxu1  ;;  %3013 = vperm.xlu0 %7279, %v8541_v34   ;;  %v2421_v60 = vmul.f32 %v10975_v13, %v8997_v10  ;;  %v10976_v24 = vld [vmem:[#allocation78_spill] sm:$0xff] }
 0x19e   :  { %10973 = vst [vmem:[#allocation154_spill] sm:$0xff] %v9161_v61 }
 0x19f   :  { %v3247_v15 = vadd.f32 %v3135_v27, %v3127_v44  ;;  %v2434_v55 = vpop.permute.xlu0 %2433 }
 0x1a0   :  { %v2461_v0 = vmul.f32 %v2434_v55, %v9002_v57  ;;  %7184 = vset.pattern.permute.xlu1 %v10952_v40  ;;  %v2118_v35 = vpop.permute.xlu1 %2117 }
 0x1a1   :  { %v9173_v37 = vadd.f32 %v3247_v15, %v9091_v38  ;;  %v2142_v61 = vmul.f32 %v2118_v35, %v10976_v24  ;;  %2921 = vperm.xlu1 %7184, %v8548_v56   ;;  %v9177_v34 = vpop.f32.mrb[76].mxu1  ;;  %7283 = vset.pattern.permute.xlu0 %v10978_v43  ;;  %v2222_v35 = vmul.f32 %v8978_v6, %v8838_v20  ;;  %v7286_v20 = vld [vmem:[%s10702_s2 + $0x10] sm:$0xff]   ;;  %v10984_v6 = vmov 31  }
 0x1a2   :  { %10977 = vst [vmem:[#allocation76_spill] sm:$0xff] %v9177_v34  ;;  %v3165_v44 = vadd.f32 %v2461_v0, %v2421_v60  ;;  %v9180_v27 = vpop.f32.mrb[76].mxu0  ;;  %v9182_v10 = vpop.f32.mrb[77].mxu1  ;;  %3057 = vperm.xlu0 %7283, %v8495_v62   ;;  %v10981_v60 = vmov 28   ;;  %6714 = vmatprep.subr.bf16.mxu0 %v7286_v20 }
 0x1a3   :  { %10979 = vst [vmem:[#allocation40_spill] sm:$0xff] %v9182_v10  ;;  %v3134_v57 = vadd.f32 %v2142_v61, %v2102_v39  ;;  %v9185_v13 = vpop.f32.mrb[77].mxu0  ;;  %v9187_v38 = vpop.permute.xlu0 %2437  ;;  %v10983_v61 = vld [vmem:[#allocation97_spill] sm:$0xff]  ;;  %6715 = vmatpush3.bf16.msra.mxu0 %v7286_v20 }
 0x1a4   :  { %v3261_v52 = vadd.f32 %v3165_v44, %v9073_v33  ;;  %v9192_v15 = vpop.f32.mrb[78].mxu0  ;;  %v9194_v55 = vpop.f32.mrb[78].mxu1 }
 0x1a5   :  { %10980 = vst [vmem:[#allocation78_spill] sm:$0xff] %v9194_v55  ;;  %v3246_v0 = vadd.f32 %v3134_v57, %v3126_v42  ;;  %7185 = vset.pattern.permute.xlu1 %v10981_v60  ;;  %v2158_v24 = vpop.permute.xlu1 %2157  ;;  %v9197_v34 = vpop.f32.mrb[79].mxu1 }
 0x1a6   :  { %10982 = vst [vmem:[#allocation155_spill] sm:$0xff] %v9197_v34  ;;  %v3309_v62 = vadd.f32 %v3261_v52, %v8974_v50  ;;  %v2182_v39 = vmul.f32 %v2158_v24, %v10983_v61  ;;  %2957 = vperm.xlu1 %7185, %v8482_v2   ;;  %v9202_v10 = vpop.f32.mrb[79].mxu0  ;;  %7285 = vset.pattern.permute.xlu0 %v10984_v6 }
 0x1a7   :  { %v9209_v33 = vadd.f32 %v3246_v0, %v9053_v51  ;;  %v9211_v42 = vpop.permute.xlu0 %2457  ;;  %v7505_v51 = vld [vmem:[%s10700_s0 + $0x10] sm:$0xff]  ;;  %v7287_v0 = vld [vmem:[%s10702_s2 + $0x18] sm:$0xff]  }
 0x1a8   :  { %10985 = vst [vmem:[#allocation97_spill] sm:$0xff] %v9211_v42  ;;  %v9214_v44 = vadd.f32 %v3309_v62, %v8882_v9  ;;  %v9216_v50 = vadd.f32 %v2222_v35, %v2182_v39  ;;  %v10990_v39 = vld [vmem:[#allocation46_spill] sm:$0xff]  ;;  %6716 = vmatprep.subr.bf16.mxu0 %v7287_v0 }
 0x1a9   :  { %v2162_v2 = vpop.permute.xlu1 %2161  ;;  %v9218_v57 = vpop.f32.mrb[80].mxu1  ;;  %v2500_v20 = vmul.f32 %v10990_v39, %v9047_v12  ;;  %6717 = vmatpush3.bf16.msra.mxu0 %v7287_v0  ;;  %v7288_v12 = vld [vmem:[%s10702_s2 + $0x20] sm:$0xff]  }
 0x1aa   :  { %10986 = vst [vmem:[#allocation156_spill] sm:$0xff] %v9218_v57  ;;  %7186 = vset.pattern.permute.xlu1 %v10960_v16  ;;  %v9221_v52 = vpop.f32.mrb[81].mxu1  ;;  %v9223_v24 = vpop.f32.mrb[80].mxu0  ;;  %6718 = vmatprep.subr.bf16.mxu0 %v7288_v12 }
 0x1ab   :  { %10987 = vst [vmem:[#allocation157_spill] sm:$0xff] %v9221_v52  ;;  %2997 = vperm.xlu1 %7186, %v7505_v51   ;;  %v9228_v9 = vpop.f32.mrb[82].mxu1  ;;  %v9230_v35 = vpop.f32.mrb[81].mxu0 }
 0x1ac   :  { %10988 = vst [vmem:[#allocation158_spill] sm:$0xff] %v9228_v9  ;;  %v2510_v62 = vpop.permute.xlu0 %2509  ;;  %v9235_v61 = vpop.f32.mrb[83].mxu1  ;;  %v10991_v9 = vld [vmem:[#allocation100_spill] sm:$0xff] }
 0x1ad   :  { %10989 = vst [vmem:[#allocation159_spill] sm:$0xff] %v9235_v61  ;;  %v2540_v52 = vmul.f32 %v2510_v62, %v9049_v26  ;;  %v9240_v57 = vpop.f32.mrb[82].mxu0  ;;  %v2183_v55 = vmul.f32 %v2162_v2, %v10991_v9  ;;  %6719 = vmatpush3.bf16.msra.mxu0 %v7288_v12  ;;  %v10997_v9 = vld [vmem:[#allocation79_spill] sm:$0xff] }
 0x1ae   :  { %v2202_v42 = vpop.permute.xlu1 %2201  ;;  %v9242_v34 = vpop.f32.mrb[83].mxu0 }
 0x1af   :  { %v3172_v30 = vadd.f32 %v2540_v52, %v2500_v20  ;;  %v2223_v16 = vmul.f32 %v2202_v42, %v10992_v31  ;;  %3001 = vperm.xlu1 %7186, %v8548_v56   ;;  %v7289_v52 = vld [vmem:[%s10702_s2 + $0x28] sm:$0xff]  }
 0x1b0   :  { %v9250_v39 = vpop.permute.xlu0 %2529  ;;  %6720 = vmatprep.subr.bf16.mxu0 %v7289_v52 }
 0x1b1   :  { %10993 = vst [vmem:[#allocation46_spill] sm:$0xff] %v9250_v39  ;;  %v9253_v26 = vadd.f32 %v9125_v49, %v3172_v30  ;;  %v3143_v62 = vadd.f32 %v2223_v16, %v2183_v55  ;;  %v9255_v61 = vpop.f32.mrb[84].mxu1  ;;  %v10995_v49 = vld [vmem:[#allocation74_spill] sm:$0xff]  ;;  %6721 = vmatpush3.bf16.msra.mxu0 %v7289_v52  ;;  %v11001_v52 = vld [vmem:[#allocation57_spill] sm:$0xff] }
 0x1b2   :  { %v9257_v0 = vpop.f32.mrb[85].mxu1  ;;  %v9259_v2 = vpop.f32.mrb[84].mxu0 }
 0x1b3   :  { %10994 = vst [vmem:[#allocation100_spill] sm:$0xff] %v9259_v2  ;;  %7188 = vset.pattern.permute.xlu1 %v10978_v43  ;;  %v2238_v31 = vpop.permute.xlu1 %2237  ;;  %v1493_v42 = vpop.f32.mrb[86].mxu1 }
 0x1b4   :  { %3041 = vperm.xlu1 %7188, %v8548_v56   ;;  %v2741_v16 = vmul.f32 %v10995_v49, %v1493_v42  ;;  %v9267_v30 = vpop.permute.xlu0 %2533  ;;  %v1495_v55 = vpop.f32.mrb[87].mxu1  ;;  %v7290_v56 = vld [vmem:[%s10702_s2 + $0x30] sm:$0xff]   ;;  %v2262_v49 = vmul.f32 %v2238_v31, %v8894_v22 }
 0x1b5   :  { %10996 = vst [vmem:[#allocation101_spill] sm:$0xff] %v9267_v30  ;;  %v2781_v20 = vmul.f32 %v10997_v9, %v1495_v55  ;;  %v9270_v39 = vpop.f32.mrb[85].mxu0  ;;  %6722 = vmatprep.subr.bf16.mxu0 %v7290_v56 }
 0x1b6   :  { %10998 = vst [vmem:[#allocation74_spill] sm:$0xff] %v9270_v39  ;;  %v9272_v12 = vpop.f32.mrb[86].mxu0  ;;  %6723 = vmatpush3.bf16.msra.mxu0 %v7290_v56 }
 0x1b7   :  { %10999 = vst [vmem:[#allocation79_spill] sm:$0xff] %v9272_v12  ;;  %v9274_v2 = vadd.f32 %v2781_v20, %v2741_v16  ;;  %v9276_v43 = vpop.f32.mrb[87].mxu0  ;;  %v2621_v16 = vmul.f32 %v11001_v52, %v9121_v54  ;;  %v11003_v12 = vld [vmem:[#allocation29_spill] sm:$0xff]  ;;  %v7292_v52 = vld [vmem:[%s10702_s2 + $0x40] sm:$0xff]  }
 0x1b8   :  { %11000 = vst [vmem:[#allocation160_spill] sm:$0xff] %v9276_v43  ;;  %7189 = vset.pattern.permute.xlu1 %v10984_v6  ;;  %v2278_v42 = vpop.permute.xlu1 %2277  ;;  %v2263_v39 = vmul.f32 %v11003_v12, %v8906_v58 }
 0x1b9   :  { %v2302_v55 = vmul.f32 %v2278_v42, %v8899_v4  ;;  %3077 = vperm.xlu1 %7189, %v7505_v51   ;;  %v2554_v9 = vpop.permute.xlu0 %2553  ;;  %v7291_v51 = vld [vmem:[%s10702_s2 + $0x38] sm:$0xff]  }
 0x1ba   :  { %v2581_v20 = vmul.f32 %v2554_v9, %v9114_v41  ;;  %v9287_v30 = vpop.f32.mrb[88].mxu0  ;;  %v9289_v43 = vpop.f32.mrb[88].mxu1  ;;  %v11006_v9 = vmov 0   ;;  %6724 = vmatprep.subr.bf16.mxu0 %v7291_v51 }
 0x1bb   :  { %11002 = vst [vmem:[#allocation57_spill] sm:$0xff] %v9287_v30  ;;  %v3150_v6 = vadd.f32 %v2302_v55, %v2262_v49  ;;  %v9293_v22 = vpop.f32.mrb[89].mxu0  ;;  %v9295_v4 = vpop.f32.mrb[89].mxu1  ;;  %v9317_v55 = vld [vmem:[%s10700_s0 + $0x20] sm:$0xff]  ;;  %6725 = vmatpush3.bf16.msra.mxu0 %v7291_v51 }
 0x1bc   :  { %11004 = vst [vmem:[#allocation29_spill] sm:$0xff] %v9293_v22  ;;  %v3181_v54 = vadd.f32 %v2621_v16, %v2581_v20  ;;  %v2282_v31 = vpop.permute.xlu1 %2281  ;;  %v9300_v41 = vpop.f32.mrb[90].mxu0  ;;  %6726 = vmatprep.subr.bf16.mxu0 %v7292_v52 }
 0x1bd   :  { %11005 = vst [vmem:[#allocation161_spill] sm:$0xff] %v9300_v41  ;;  %v9303_v42 = vadd.f32 %v3150_v6, %v9216_v50  ;;  %v2303_v56 = vmul.f32 %v2282_v31, %v8908_v5  ;;  %7190 = vset.pattern.permute.xlu1 %v11006_v9  ;;  %v9307_v58 = vpop.permute.xlu0 %2557  ;;  %v9309_v12 = vpop.f32.mrb[91].mxu0 }
 0x1be   :  { %11007 = vst [vmem:[#allocation162_spill] sm:$0xff] %v9309_v12  ;;  %v9312_v49 = vadd.f32 %v3181_v54, %v9069_v1  ;;  %1842 = vperm.xlu1 %7190, %v9317_v55   ;;  %v9320_v6 = vpop.f32.mrb[90].mxu1  ;;  %v11008_v1 = vld [vmem:[#allocation31_spill] sm:$0xff] }
 0x1bf   :  { %v3151_v5 = vadd.f32 %v2303_v56, %v2263_v39  ;;  %v9322_v50 = vpop.f32.mrb[91].mxu1  ;;  %v2383_v16 = vmul.f32 %v11008_v1, %v8968_v3  ;;  %6727 = vmatpush3.bf16.msra.mxu0 %v7292_v52  ;;  %v11011_v56 = vld [vmem:[#allocation86_spill] sm:$0xff]  ;;  %v7293_v3 = vld [vmem:[%s10702_s2 + $0x48] sm:$0xff]  }
 0x1c0   :  { %6728 = vmatprep.subr.bf16.mxu0 %v7293_v3 }
 0x1c1   :  { %v9329_v20 = vadd.f32 %v3151_v5, %v3143_v62  ;;  %v2322_v54 = vpop.permute.xlu1 %2321  ;;  %v9331_v31 = vpop.permute.xlu0 %2577  ;;  %v11013_v5 = vld [vmem:[#allocation91_spill] sm:$0xff] }
 0x1c2   :  { %11009 = vst [vmem:[#allocation31_spill] sm:$0xff] %v9331_v31  ;;  %v2343_v22 = vmul.f32 %v2322_v54, %v8963_v32  ;;  %1847 = vperm.xlu1 %7190, %v8619_v59   ;;  %v1562_v39 = vpop.f32.mrb[92].mxu0  ;;  %v9335_v51 = vpop.f32.mrb[92].mxu1  ;;  %v2342_v59 = vmul.f32 %v9078_v14, %v8949_v18  ;;  %v9364_v18 = vld [vmem:[%s10700_s0 + $0x28] sm:$0xff] }
 0x1c3   :  { %11010 = vst [vmem:[#allocation163_spill] sm:$0xff] %v9335_v51  ;;  %v2820_v30 = vmul.f32 %v11011_v56, %v1562_v39  ;;  %v1564_v41 = vpop.f32.mrb[93].mxu0  ;;  %v9338_v12 = vpop.f32.mrb[93].mxu1  ;;  %v11016_v56 = vmov 1   ;;  %6729 = vmatpush3.bf16.msra.mxu0 %v7293_v3  ;;  %v2462_v3 = vmul.f32 %v9187_v38, %v9028_v23 }
 0x1c4   :  { %11012 = vst [vmem:[#allocation86_spill] sm:$0xff] %v9338_v12  ;;  %v3159_v62 = vadd.f32 %v2383_v16, %v2343_v22  ;;  %v2860_v1 = vmul.f32 %v11013_v5, %v1564_v41  ;;  %v9344_v31 = vpop.f32.mrb[94].mxu0  ;;  %v9346_v32 = vpop.f32.mrb[94].mxu1  ;;  %v11017_v41 = vld [vmem:[#allocation66_spill] sm:$0xff] }
 0x1c5   :  { %11014 = vst [vmem:[#allocation91_spill] sm:$0xff] %v9346_v32  ;;  %v9350_v52 = vpop.f32.mrb[95].mxu0  ;;  %v9352_v54 = vpop.f32.mrb[95].mxu1  ;;  %v2700_v16 = vmul.f32 %v11017_v41, %v9185_v13 }
 0x1c6   :  { %11015 = vst [vmem:[#allocation164_spill] sm:$0xff] %v9352_v54  ;;  %v9354_v39 = vadd.f32 %v2860_v1, %v2820_v30  ;;  %7192 = vset.pattern.permute.xlu1 %v11016_v56  ;;  %v2358_v12 = vpop.permute.xlu1 %2357  ;;  %v2630_v22 = vpop.permute.xlu0 %2629 }
 0x1c7   :  { %v2382_v5 = vmul.f32 %v2358_v12, %v8954_v19  ;;  %v2660_v51 = vmul.f32 %v2630_v22, %v9180_v27  ;;  %1889 = vperm.xlu1 %7192, %v9364_v18   ;;  %v11020_v19 = vmov 2  }
 0x1c9   :  { %v3158_v14 = vadd.f32 %v2382_v5, %v2342_v59  ;;  %v9367_v30 = vadd.f32 %v2700_v16, %v2660_v51 }
 0x1ca   :  { %v9371_v1 = vpop.permute.xlu0 %2649  ;;  %v9373_v13 = vpop.f32.mrb[96].mxu1 }
 0x1cb   :  { %11018 = vst [vmem:[#allocation66_spill] sm:$0xff] %v9371_v1  ;;  %11019 = vst [vmem:[#allocation165_spill] sm:$0xff] %v9373_v13  ;;  %7193 = vset.pattern.permute.xlu1 %v11020_v19  ;;  %v2398_v27 = vpop.permute.xlu1 %2397  ;;  %v9376_v12 = vpop.f32.mrb[97].mxu1 }
 0x1cc   :  { %11021 = vst [vmem:[#allocation166_spill] sm:$0xff] %v9376_v12  ;;  %v2422_v22 = vmul.f32 %v2398_v27, %v9022_v7  ;;  %1925 = vperm.xlu1 %7193, %v9317_v55   ;;  %v9380_v41 = vpop.f32.mrb[98].mxu1  ;;  %v9382_v51 = vpop.f32.mrb[96].mxu0  ;;  %v11025_v7 = vmov 3  }
 0x1cd   :  { %11022 = vst [vmem:[#allocation167_spill] sm:$0xff] %v9380_v41  ;;  %v9384_v59 = vpop.f32.mrb[99].mxu1  ;;  %v9386_v23 = vpop.f32.mrb[97].mxu0 }
 0x1ce   :  { %11023 = vst [vmem:[#allocation168_spill] sm:$0xff] %v9384_v59  ;;  %v3166_v38 = vadd.f32 %v2462_v3, %v2422_v22  ;;  %v9388_v16 = vpop.permute.xlu0 %2653  ;;  %v9390_v5 = vpop.f32.mrb[98].mxu0  ;;  %v11027_v3 = vld [vmem:[#allocation61_spill] sm:$0xff] }
 0x1cf   :  { %11024 = vst [vmem:[#allocation169_spill] sm:$0xff] %v9388_v16  ;;  %v2402_v13 = vpop.permute.xlu1 %2401  ;;  %v9392_v32 = vpop.f32.mrb[99].mxu0  ;;  %v2661_v22 = vmul.f32 %v11027_v3, %v9192_v15 }
 0x1d0   :  { %v3262_v12 = vadd.f32 %v3166_v38, %v3158_v14  ;;  %7194 = vset.pattern.permute.xlu1 %v11025_v7  ;;  %v2423_v7 = vmul.f32 %v2402_v13, %v9032_v46 }
 0x1d1   :  { %1965 = vperm.xlu1 %7194, %v9317_v55  }
 0x1d2   :  { %v3310_v27 = vadd.f32 %v3262_v12, %v9303_v42  ;;  %v9397_v41 = vpop.f32.mrb[100].mxu0 }
 0x1d3   :  { %11026 = vst [vmem:[#allocation170_spill] sm:$0xff] %v9397_v41  ;;  %v9399_v59 = vpop.f32.mrb[100].mxu1  ;;  %v2674_v54 = vpop.permute.xlu0 %2673 }
 0x1d4   :  { %v9404_v16 = vadd.f32 %v3310_v27, %v9209_v33  ;;  %v2701_v1 = vmul.f32 %v2674_v54, %v9202_v10  ;;  %v2442_v14 = vpop.permute.xlu1 %2441  ;;  %v9407_v38 = vpop.f32.mrb[101].mxu1 }
 0x1d5   :  { %v2463_v42 = vmul.f32 %v2442_v14, %v9039_v11  ;;  %1969 = vperm.xlu1 %7194, %v9364_v18   ;;  %v9412_v12 = vpop.f32.mrb[102].mxu1  ;;  %v9414_v41 = vpop.f32.mrb[101].mxu0  ;;  %v11031_v11 = vmov 4  }
 0x1d6   :  { %11028 = vst [vmem:[#allocation61_spill] sm:$0xff] %v9414_v41  ;;  %v3189_v19 = vadd.f32 %v2701_v1, %v2661_v22  ;;  %v9416_v15 = vpop.f32.mrb[102].mxu0  ;;  %v9418_v33 = vpop.f32.mrb[103].mxu1 }
 0x1d7   :  { %11029 = vst [vmem:[#allocation171_spill] sm:$0xff] %v9416_v15  ;;  %v3167_v27 = vadd.f32 %v2463_v42, %v2423_v7  ;;  %v9420_v10 = vpop.permute.xlu0 %2677  ;;  %v9422_v54 = vpop.f32.mrb[103].mxu0 }
 0x1d8   :  { %11030 = vst [vmem:[#allocation172_spill] sm:$0xff] %v9422_v54  ;;  %v3277_v46 = vadd.f32 %v9274_v2, %v3189_v19 }
 0x1d9   :  { %v3263_v13 = vadd.f32 %v3167_v27, %v3159_v62  ;;  %7196 = vset.pattern.permute.xlu1 %v11031_v11  ;;  %v2478_v3 = vpop.permute.xlu1 %2477  ;;  %v11037_v27 = vmov 5  }
 0x1da   :  { %v9427_v14 = vadd.f32 %v3277_v46, %v9312_v49  ;;  %2009 = vperm.xlu1 %7196, %v9364_v18   ;;  %v9430_v1 = vpop.f32.mrb[104].mxu0 }
 0x1db   :  { %11032 = vst [vmem:[#allocation173_spill] sm:$0xff] %v9430_v1  ;;  %v3311_v22 = vadd.f32 %v3263_v13, %v9329_v20  ;;  %v9433_v7 = vpop.permute.xlu0 %2697  ;;  %v9435_v42 = vpop.f32.mrb[105].mxu0  ;;  %v2502_v20 = vmul.f32 %v2478_v3, %v9084_v48  ;;  %v11040_v3 = vmov 6  }
 0x1dc   :  { %11033 = vst [vmem:[#allocation174_spill] sm:$0xff] %v9433_v7  ;;  %11034 = vst [vmem:[#allocation175_spill] sm:$0xff] %v9435_v42  ;;  %v9437_v54 = vpop.f32.mrb[106].mxu0  ;;  %v9439_v2 = vpop.f32.mrb[104].mxu1 }
 0x1dd   :  { %11035 = vst [vmem:[#allocation176_spill] sm:$0xff] %v9437_v54  ;;  %v9442_v62 = vadd.f32 %v3311_v22, %v9173_v37  ;;  %v9444_v19 = vpop.f32.mrb[107].mxu0  ;;  %v9446_v49 = vpop.f32.mrb[105].mxu1  ;;  %v11038_v37 = vld [vmem:[#allocation33_spill] sm:$0xff] }
 0x1de   :  { %11036 = vst [vmem:[#allocation177_spill] sm:$0xff] %v9444_v19  ;;  %7197 = vset.pattern.permute.xlu1 %v11037_v27  ;;  %v2518_v46 = vpop.permute.xlu1 %2517  ;;  %v9449_v1 = vpop.f32.mrb[106].mxu1  ;;  %v2503_v22 = vmul.f32 %v11038_v37, %v9099_v45  ;;  %v11039_v19 = vld [vmem:[#allocation69_spill] sm:$0xff] }
 0x1df   :  { %v2542_v13 = vmul.f32 %v2518_v46, %v9088_v63  ;;  %2045 = vperm.xlu1 %7197, %v9317_v55   ;;  %v9454_v54 = vpop.f32.mrb[107].mxu1  ;;  %v2740_v7 = vmul.f32 %v11039_v19, %v9255_v61 }
 0x1e0   :  { %v2750_v42 = vpop.permute.xlu0 %2749 }
 0x1e1   :  { %v3174_v15 = vadd.f32 %v2542_v13, %v2502_v20  ;;  %v2780_v41 = vmul.f32 %v2750_v42, %v9257_v0  ;;  %v11043_v42 = vld [vmem:[#allocation113_spill] sm:$0xff] }
 0x1e2   :  { %v2522_v27 = vpop.permute.xlu1 %2521  ;;  %v9461_v11 = vpop.f32.mrb[108].mxu0 }
 0x1e3   :  { %v3196_v48 = vadd.f32 %v2780_v41, %v2740_v7  ;;  %v2543_v63 = vmul.f32 %v2522_v27, %v9102_v25  ;;  %7198 = vset.pattern.permute.xlu1 %v11040_v3  ;;  %v9465_v46 = vpop.f32.mrb[109].mxu0  ;;  %v9467_v56 = vpop.f32.mrb[108].mxu1  ;;  %v11045_v25 = vld [vmem:[#allocation35_spill] sm:$0xff] }
 0x1e4   :  { %11041 = vst [vmem:[#allocation33_spill] sm:$0xff] %v9467_v56  ;;  %2085 = vperm.xlu1 %7198, %v9317_v55   ;;  %v1712_v45 = vpop.f32.mrb[110].mxu0  ;;  %v9470_v37 = vpop.permute.xlu0 %2769  ;;  %v2623_v7 = vmul.f32 %v11045_v25, %v9163_v8  ;;  %v11046_v27 = vld [vmem:[#allocation115_spill] sm:$0xff]  ;;  %v2582_v8 = vmul.f32 %v9307_v58, %v9143_v47  ;;  %v11054_v47 = vld [vmem:[#allocation94_spill] sm:$0xff] }
 0x1e5   :  { %11042 = vst [vmem:[#allocation69_spill] sm:$0xff] %v9470_v37  ;;  %v3276_v61 = vadd.f32 %v3196_v48, %v9367_v30  ;;  %v3175_v0 = vadd.f32 %v2543_v63, %v2503_v22  ;;  %v2981_v19 = vmul.f32 %v11043_v42, %v1712_v45  ;;  %v1714_v20 = vpop.f32.mrb[111].mxu0  ;;  %v9474_v41 = vpop.f32.mrb[109].mxu1  ;;  %v2861_v58 = vmul.f32 %v11054_v47, %v9350_v52  ;;  %v11057_v47 = vld [vmem:[#allocation120_spill] sm:$0xff] }
 0x1e6   :  { %11044 = vst [vmem:[#allocation113_spill] sm:$0xff] %v9474_v41  ;;  %v3021_v13 = vmul.f32 %v11046_v27, %v1714_v20  ;;  %v9479_v3 = vpop.f32.mrb[110].mxu1  ;;  %v11051_v20 = vmov 7  }
 0x1e7   :  { %11047 = vst [vmem:[#allocation35_spill] sm:$0xff] %v9479_v3  ;;  %v9482_v56 = vadd.f32 %v3276_v61, %v9253_v26  ;;  %v2562_v9 = vpop.permute.xlu1 %2561  ;;  %v9484_v37 = vpop.f32.mrb[111].mxu1 }
 0x1e8   :  { %11048 = vst [vmem:[#allocation115_spill] sm:$0xff] %v9484_v37  ;;  %v3221_v30 = vadd.f32 %v3021_v13, %v2981_v19  ;;  %v2583_v22 = vmul.f32 %v2562_v9, %v9159_v17  ;;  %2089 = vperm.xlu1 %7198, %v9364_v18   ;;  %v9488_v48 = vpop.permute.xlu0 %2773 }
 0x1e9   :  { %11049 = vst [vmem:[#allocation178_spill] sm:$0xff] %v9488_v48 }
 0x1ea   :  { %v3183_v63 = vadd.f32 %v2623_v7, %v2583_v22  ;;  %v9490_v45 = vpop.f32.mrb[112].mxu0 }
 0x1eb   :  { %v9494_v42 = vpop.f32.mrb[112].mxu1  ;;  %v9496_v26 = vpop.f32.mrb[113].mxu0 }
 0x1ec   :  { %11050 = vst [vmem:[#allocation179_spill] sm:$0xff] %v9494_v42  ;;  %v9498_v61 = vadd.f32 %v3183_v63, %v3175_v0  ;;  %7200 = vset.pattern.permute.xlu1 %v11051_v20  ;;  %v2598_v19 = vpop.permute.xlu1 %2597  ;;  %v9501_v17 = vpop.f32.mrb[113].mxu1  ;;  %v11056_v42 = vmov 8  }
 0x1ed   :  { %11052 = vst [vmem:[#allocation180_spill] sm:$0xff] %v9501_v17  ;;  %v2622_v9 = vmul.f32 %v2598_v19, %v9154_v53  ;;  %2129 = vperm.xlu1 %7200, %v9364_v18   ;;  %v2794_v25 = vpop.permute.xlu0 %2793  ;;  %v9505_v7 = vpop.f32.mrb[114].mxu1  ;;  %v2702_v53 = vmul.f32 %v9420_v10, %v9230_v35  ;;  %v11059_v10 = vld [vmem:[#allocation23_spill] sm:$0xff] }
 0x1ee   :  { %11053 = vst [vmem:[#allocation181_spill] sm:$0xff] %v9505_v7  ;;  %v2821_v27 = vmul.f32 %v2794_v25, %v9344_v31  ;;  %v9510_v13 = vpop.f32.mrb[115].mxu1  ;;  %v9512_v0 = vpop.f32.mrb[114].mxu0 }
 0x1ef   :  { %11055 = vst [vmem:[#allocation94_spill] sm:$0xff] %v9510_v13  ;;  %v3182_v22 = vadd.f32 %v2622_v9, %v2582_v8  ;;  %v9514_v63 = vpop.f32.mrb[115].mxu0  ;;  %v11058_v13 = vld [vmem:[#allocation125_spill] sm:$0xff] }
 0x1f0   :  { %v3205_v19 = vadd.f32 %v2861_v58, %v2821_v27  ;;  %v11060_v58 = vmov 9  }
 0x1f1   :  { %v3270_v17 = vadd.f32 %v3182_v22, %v3174_v15  ;;  %7201 = vset.pattern.permute.xlu1 %v11056_v42  ;;  %v2638_v7 = vpop.permute.xlu1 %2637  ;;  %v9519_v48 = vpop.permute.xlu0 %2797 }
 0x1f2   :  { %v2662_v52 = vmul.f32 %v2638_v7, %v9223_v24  ;;  %2165 = vperm.xlu1 %7201, %v9317_v55   ;;  %v11062_v24 = vld [vmem:[#allocation128_spill] sm:$0xff] }
 0x1f3   :  { %v1781_v31 = vpop.f32.mrb[116].mxu1 }
 0x1f4   :  { %v3190_v25 = vadd.f32 %v2702_v53, %v2662_v52  ;;  %v3060_v8 = vmul.f32 %v11057_v47, %v1781_v31  ;;  %v1783_v9 = vpop.f32.mrb[117].mxu1  ;;  %v11063_v52 = vld [vmem:[#allocation104_spill] sm:$0xff] }
 0x1f5   :  { %v3100_v37 = vmul.f32 %v11058_v13, %v1783_v9  ;;  %v2642_v3 = vpop.permute.xlu1 %2641  ;;  %v1785_v35 = vpop.f32.mrb[118].mxu1  ;;  %v2940_v31 = vmul.f32 %v11063_v52, %v9407_v38 }
 0x1f6   :  { %v3061_v15 = vmul.f32 %v11059_v10, %v1785_v35  ;;  %7202 = vset.pattern.permute.xlu1 %v11060_v58  ;;  %v1787_v27 = vpop.f32.mrb[119].mxu1  ;;  %v9527_v22 = vpop.permute.xlu0 %2817  ;;  %v2663_v9 = vmul.f32 %v2642_v3, %v9240_v57  ;;  %v11065_v3 = vmov 10  }
 0x1f7   :  { %11061 = vst [vmem:[#allocation120_spill] sm:$0xff] %v9527_v22  ;;  %v9529_v41 = vadd.f32 %v3100_v37, %v3060_v8  ;;  %v3101_v7 = vmul.f32 %v11062_v24, %v1787_v27  ;;  %2205 = vperm.xlu1 %7202, %v9317_v55  }
 0x1f9   :  { %v3229_v53 = vadd.f32 %v3101_v7, %v3061_v15 }
 0x1fa   :  { %v2682_v13 = vpop.permute.xlu1 %2681  ;;  %v2870_v47 = vpop.permute.xlu0 %2869 }
 0x1fb   :  { %v3293_v35 = vadd.f32 %v3229_v53, %v3221_v30  ;;  %v2703_v10 = vmul.f32 %v2682_v13, %v9242_v34  ;;  %v2900_v58 = vmul.f32 %v2870_v47, %v9399_v59  ;;  %2209 = vperm.xlu1 %7202, %v9364_v18   ;;  %v9539_v37 = vpop.f32.mrb[120].mxu1  ;;  %v11067_v30 = vmov 11  }
 0x1fc   :  { %v9541_v8 = vpop.f32.mrb[121].mxu1 }
 0x1fd   :  { %v3191_v27 = vadd.f32 %v2703_v10, %v2663_v9  ;;  %v3212_v15 = vadd.f32 %v2940_v31, %v2900_v58  ;;  %v9543_v24 = vpop.f32.mrb[122].mxu1  ;;  %v11068_v31 = vld [vmem:[#allocation37_spill] sm:$0xff]  ;;  %v11069_v9 = vld [vmem:[#allocation102_spill] sm:$0xff] }
 0x1fe   :  { %v9545_v38 = vpop.permute.xlu0 %2889  ;;  %v9547_v7 = vpop.f32.mrb[123].mxu1  ;;  %v2743_v13 = vmul.f32 %v11068_v31, %v9320_v6  ;;  %v2901_v10 = vmul.f32 %v11069_v9, %v9412_v12 }
 0x1ff   :  { %11064 = vst [vmem:[#allocation125_spill] sm:$0xff] %v9545_v38  ;;  %v3284_v57 = vadd.f32 %v3212_v15, %v9354_v39  ;;  %7204 = vset.pattern.permute.xlu1 %v11065_v3  ;;  %v2718_v34 = vpop.permute.xlu1 %2717 }
 0x200   :  { %2249 = vperm.xlu1 %7204, %v9364_v18   ;;  %v2742_v58 = vmul.f32 %v2718_v34, %v9289_v43 }
 0x202   :  { %v9552_v59 = vpop.permute.xlu0 %2893 }
 0x203   :  { %11066 = vst [vmem:[#allocation23_spill] sm:$0xff] %v9552_v59 }
 0x204   :  { %7205 = vset.pattern.permute.xlu1 %v11067_v30  ;;  %v2758_v53 = vpop.permute.xlu1 %2757  ;;  %v11070_v30 = vmov 12  }
 0x205   :  { %v2782_v52 = vmul.f32 %v2758_v53, %v9295_v4  ;;  %2285 = vperm.xlu1 %7205, %v9317_v55   ;;  %v11071_v53 = vld [vmem:[#allocation39_spill] sm:$0xff] }
 0x207   :  { %v3198_v39 = vadd.f32 %v2782_v52, %v2742_v58  ;;  %v2914_v47 = vpop.permute.xlu0 %2913  ;;  %v2863_v58 = vmul.f32 %v11071_v53, %v9392_v32  ;;  %v11072_v32 = vmov 13  }
 0x208   :  { %v2941_v15 = vmul.f32 %v2914_v47, %v9418_v33  ;;  %v2762_v59 = vpop.permute.xlu1 %2761 }
 0x209   :  { %v3278_v22 = vadd.f32 %v3198_v39, %v3190_v25  ;;  %v2783_v38 = vmul.f32 %v2762_v59, %v9322_v50  ;;  %7206 = vset.pattern.permute.xlu1 %v11070_v30 }
 0x20a   :  { %v3213_v43 = vadd.f32 %v2941_v15, %v2901_v10  ;;  %2325 = vperm.xlu1 %7206, %v9317_v55  }
 0x20b   :  { %v9566_v4 = vadd.f32 %v3278_v22, %v3270_v17  ;;  %v3199_v34 = vadd.f32 %v2783_v38, %v2743_v13  ;;  %v2918_v6 = vpop.permute.xlu0 %2917  ;;  %v2822_v38 = vmul.f32 %v9519_v48, %v9382_v51  ;;  %v11074_v51 = vmov 14  }
 0x20c   :  { %v3285_v52 = vadd.f32 %v3213_v43, %v3205_v19  ;;  %v2942_v47 = vmul.f32 %v2918_v6, %v9446_v49  ;;  %v9598_v49 = vld [vmem:[%s10703_s3 + $0x3] ss:$0 sm:$0xff] }
 0x20d   :  { %v3279_v12 = vadd.f32 %v3199_v34, %v3191_v27  ;;  %v2802_v31 = vpop.permute.xlu1 %2801 }
 0x20e   :  { %v3325_v33 = vadd.f32 %v3293_v35, %v3285_v52  ;;  %v2823_v25 = vmul.f32 %v2802_v31, %v9390_v5  ;;  %2329 = vperm.xlu1 %7206, %v9364_v18   ;;  %v11076_v31 = vmov 16  }
 0x20f   :  { %v9573_v50 = vadd.f32 %v3279_v12, %v9498_v61  ;;  %v9575_v59 = vpop.permute.xlu0 %2937  ;;  %v11073_v61 = vld [vmem:[#allocation108_spill] sm:$0xff] }
 0x210   :  { %v3341_v17 = vadd.f32 %v3325_v33, %v9427_v14  ;;  %v3207_v22 = vadd.f32 %v2863_v58, %v2823_v25  ;;  %v2980_v13 = vmul.f32 %v11073_v61, %v9461_v11  ;;  %v11075_v11 = vmov 15   ;;  %v11080_v61 = vld [vmem:[#allocation49_spill] sm:$0xff] }
 0x212   :  { %7208 = vset.pattern.permute.xlu1 %v11072_v32  ;;  %v2838_v19 = vpop.permute.xlu1 %2837  ;;  %v3349_v35 = vadd.f32 %v3341_v17, %v9214_v44 }
 0x213   :  { %v2862_v5 = vmul.f32 %v2838_v19, %v9386_v23  ;;  %2369 = vperm.xlu1 %7208, %v9364_v18  }
 0x214   :  { %v2990_v27 = vpop.permute.xlu0 %2989 }
 0x215   :  { %v3206_v39 = vadd.f32 %v2862_v5, %v2822_v38  ;;  %v3020_v14 = vmul.f32 %v2990_v27, %v9465_v46  ;;  %v11078_v38 = vld [vmem:[#allocation42_spill] sm:$0xff]  ;;  %v11079_v5 = vmov 18  }
 0x216   :  { %v2983_v19 = vmul.f32 %v11078_v38, %v9512_v0  ;;  %v11081_v0 = vld [vmem:[#allocation24_spill] sm:$0xff]  ;;  %v11089_v38 = vld [vmem:[#allocation54_spill] sm:$0xff] }
 0x217   :  { %v3220_v9 = vadd.f32 %v3020_v14, %v2980_v13  ;;  %7209 = vset.pattern.permute.xlu1 %v11074_v51  ;;  %v2878_v48 = vpop.permute.xlu1 %2877  ;;  %v3103_v13 = vmul.f32 %v11080_v61, %v9547_v7 }
 0x218   :  { %v2902_v10 = vmul.f32 %v2878_v48, %v9439_v2  ;;  %2405 = vperm.xlu1 %7209, %v9317_v55  }
 0x219   :  { %v3292_v44 = vadd.f32 %v9529_v41, %v3220_v9  ;;  %v11082_v9 = vmov 19  }
 0x21a   :  { %v3214_v23 = vadd.f32 %v2942_v47, %v2902_v10  ;;  %v3062_v47 = vmul.f32 %v11081_v0, %v9539_v37  ;;  %v11094_v0 = vld [vmem:[#allocation58_spill] sm:$0xff] }
 0x21b   :  { %v3324_v15 = vadd.f32 %v3292_v44, %v3284_v57  ;;  %v2882_v43 = vpop.permute.xlu1 %2881 }
 0x21c   :  { %v3286_v34 = vadd.f32 %v3214_v23, %v3206_v39  ;;  %7210 = vset.pattern.permute.xlu1 %v11075_v11  ;;  %v2903_v41 = vmul.f32 %v2882_v43, %v9449_v1  ;;  %v9627_v39 = vpop.f32.mrb[116].mxu0  ;;  %v11083_v23 = vld [vmem:[#allocation52_spill] sm:$0xff] }
 0x21d   :  { %v3340_v46 = vadd.f32 %v3324_v15, %v9482_v56  ;;  %2445 = vperm.xlu1 %7210, %v9317_v55   ;;  %v9608_v56 = vadd.f32 %v9598_v49, %v3349_v35 }
 0x21f   :  { %v3348_v2 = vadd.f32 %v3340_v46, %v9149_v36 }
 0x220   :  { %v2922_v6 = vpop.permute.xlu1 %2921 }
 0x221   :  { %v2943_v57 = vmul.f32 %v2922_v6, %v9454_v54  ;;  %2449 = vperm.xlu1 %7210, %v9364_v18   ;;  %v9605_v53 = vadd.f32 %v9598_v49, %v3348_v2  ;;  %v11077_v54 = vmov 17   ;;  %v11085_v2 = vmov 20  }
 0x223   :  { %v3215_v58 = vadd.f32 %v2943_v57, %v2903_v41  ;;  %v3369_v52 = vpack.c.bf16 %v9608_v56, %v9605_v53  ;;  %v11086_v41 = vld [vmem:[#allocation51_spill] sm:$0xff] }
 0x225   :  { %v3287_v12 = vadd.f32 %v3215_v58, %v3207_v22  ;;  %7212 = vset.pattern.permute.xlu1 %v11076_v31  ;;  %v2958_v36 = vpop.permute.xlu1 %2957  ;;  %6730 = vmatprep.mubr.bf16.mxu0 %v3369_v52 }
 0x226   :  { %2489 = vperm.xlu1 %7212, %v9364_v18   ;;  %v2982_v33 = vmul.f32 %v2958_v36, %v9490_v45 }
 0x22a   :  { %7213 = vset.pattern.permute.xlu1 %v11077_v54  ;;  %v2998_v1 = vpop.permute.xlu1 %2997 }
 0x22b   :  { %v3022_v25 = vmul.f32 %v2998_v1, %v9496_v26  ;;  %2525 = vperm.xlu1 %7213, %v9317_v55  }
 0x22d   :  { %v3222_v17 = vadd.f32 %v3022_v25, %v2982_v33 }
 0x22e   :  { %v3002_v22 = vpop.permute.xlu1 %3001 }
 0x22f   :  { %v3023_v35 = vmul.f32 %v3002_v22, %v9514_v63  ;;  %7214 = vset.pattern.permute.xlu1 %v11079_v5 }
 0x230   :  { %2565 = vperm.xlu1 %7214, %v9317_v55  }
 0x231   :  { %v3223_v27 = vadd.f32 %v3023_v35, %v2983_v19 }
 0x233   :  { %v3042_v45 = vpop.permute.xlu1 %3041 }
 0x234   :  { %v3063_v26 = vmul.f32 %v3042_v45, %v9543_v24  ;;  %2569 = vperm.xlu1 %7214, %v9364_v18   ;;  %v11084_v24 = vld [vmem:[#allocation25_spill] sm:$0xff] }
 0x235   :  { %v1904_v15 = vmul.f32 %v11084_v24, %v11083_v23  ;;  %v11097_v24 = vmov 24  }
 0x236   :  { %v3231_v14 = vadd.f32 %v3103_v13, %v3063_v26  ;;  %v11092_v13 = vld [vmem:[#allocation55_spill] sm:$0xff]  ;;  %v11093_v26 = vld [vmem:[#allocation56_spill] sm:$0xff] }
 0x238   :  { %v3295_v63 = vadd.f32 %v3231_v14, %v3223_v27  ;;  %7216 = vset.pattern.permute.xlu1 %v11082_v9  ;;  %v3078_v48 = vpop.permute.xlu1 %3077  ;;  %v11091_v27 = vmov 23  }
 0x239   :  { %v3102_v10 = vmul.f32 %v3078_v48, %v9541_v8  ;;  %2609 = vperm.xlu1 %7216, %v9364_v18   ;;  %v9641_v8 = vpop.f32.mrb[124].mxu1 }
 0x23a   :  { %v3327_v7 = vadd.f32 %v3295_v63, %v3287_v12  ;;  %v9643_v52 = vpop.f32.mrb[125].mxu1 }
 0x23b   :  { %v3230_v44 = vadd.f32 %v3102_v10, %v3062_v47  ;;  %v11095_v47 = vld [vmem:[#allocation67_spill] sm:$0xff] }
 0x23c   :  { %v3343_v43 = vadd.f32 %v3327_v7, %v9573_v50  ;;  %v1945_v63 = vmul.f32 %v11095_v47, %v11094_v0 }
 0x23d   :  { %v3294_v46 = vadd.f32 %v3230_v44, %v3222_v17  ;;  %7217 = vset.pattern.permute.xlu1 %v11085_v2  ;;  %v1843_v6 = vpop.permute.xlu1 %1842  ;;  %v11096_v44 = vld [vmem:[#allocation60_spill] sm:$0xff] }
 0x23e   :  { %v3351_v37 = vadd.f32 %v3343_v43, %v9442_v62  ;;  %v1864_v57 = vmul.f32 %v1843_v6, %v11086_v41  ;;  %2645 = vperm.xlu1 %7217, %v9317_v55   ;;  %v11098_v43 = vld [vmem:[#allocation75_spill] sm:$0xff] }
 0x23f   :  { %v3326_v58 = vadd.f32 %v3294_v46, %v3286_v34  ;;  %v11088_v34 = vld [vmem:[#allocation53_spill] sm:$0xff]  ;;  %v11099_v46 = vld [vmem:[#allocation92_spill] sm:$0xff] }
 0x240   :  { %v3112_v12 = vadd.f32 %v1904_v15, %v1864_v57  ;;  %v9650_v62 = vadd.f32 %v9598_v49, %v3351_v37  ;;  %v2065_v6 = vmul.f32 %v11099_v46, %v11098_v43  ;;  %v11100_v57 = vld [vmem:[#allocation73_spill] sm:$0xff] }
 0x241   :  { %v3342_v36 = vadd.f32 %v3326_v58, %v9566_v4  ;;  %v1848_v1 = vpop.permute.xlu1 %1847 }
 0x242   :  { %7218 = vset.pattern.permute.xlu1 %v10906_v29  ;;  %11087 = vst [vmem:[#allocation128_spill] sm:$0xff] %v9650_v62  ;;  %v1865_v17 = vmul.f32 %v1848_v1, %v11088_v34  ;;  %v11101_v1 = vld [vmem:[#allocation71_spill] sm:$0xff]  ;;  %v11103_v34 = vld [vmem:[#allocation72_spill] sm:$0xff] }
 0x243   :  { %v3350_v50 = vadd.f32 %v3342_v36, %v9404_v16  ;;  %2685 = vperm.xlu1 %7218, %v9317_v55   ;;  %v11090_v16 = vmov 22  }
 0x245   :  { %v9653_v33 = vadd.f32 %v9598_v49, %v3350_v50  ;;  %v11102_v50 = vld [vmem:[#allocation26_spill] sm:$0xff] }
 0x246   :  { %v1890_v25 = vpop.permute.xlu1 %1889 }
 0x247   :  { %v1905_v19 = vmul.f32 %v1890_v25, %v11089_v38  ;;  %2689 = vperm.xlu1 %7218, %v9364_v18   ;;  %v3370_v4 = vpack.c.bf16 %v9650_v62, %v9653_v33 }
 0x249   :  { %v3113_v22 = vadd.f32 %v1905_v19, %v1865_v17  ;;  %6731 = vmatmul.mubr.bf16.vlgmr.msra.gmra.mrb[124].mxu0 %v3370_v4  ;;  %v11104_v19 = vld [vmem:[#allocation88_spill] sm:$0xff] }
 0x24a   :  { %v11105_v4 = vld [vmem:[#allocation28_spill] sm:$0xff] }
 0x24b   :  { %7220 = vset.pattern.permute.xlu1 %v11090_v16  ;;  %v1926_v35 = vpop.permute.xlu1 %1925 }
 0x24c   :  { %2729 = vperm.xlu1 %7220, %v9364_v18   ;;  %v1944_v45 = vmul.f32 %v1926_v35, %v11092_v13 }
 0x250   :  { %7221 = vset.pattern.permute.xlu1 %v11091_v27  ;;  %v1966_v61 = vpop.permute.xlu1 %1965 }
 0x251   :  { %v1984_v14 = vmul.f32 %v1966_v61, %v11093_v26  ;;  %2765 = vperm.xlu1 %7221, %v9317_v55   ;;  %v11106_v61 = vld [vmem:[#allocation87_spill] sm:$0xff] }
 0x253   :  { %v3120_v48 = vadd.f32 %v1984_v14, %v1944_v45 }
 0x254   :  { %v1970_v10 = vpop.permute.xlu1 %1969 }
 0x255   :  { %v3240_v7 = vadd.f32 %v3120_v48, %v3112_v12  ;;  %v1985_v23 = vmul.f32 %v1970_v10, %v11096_v44  ;;  %7222 = vset.pattern.permute.xlu1 %v11097_v24  ;;  %v2024_v12 = vmul.f32 %v11102_v50, %v11101_v1  ;;  %v11108_v10 = vld [vmem:[#allocation90_spill] sm:$0xff]  ;;  %v11110_v1 = vld [vmem:[#allocation103_spill] sm:$0xff] }
 0x256   :  { %2805 = vperm.xlu1 %7222, %v9317_v55  }
 0x257   :  { %v3121_v15 = vadd.f32 %v1985_v23, %v1945_v63  ;;  %v11107_v63 = vld [vmem:[#allocation89_spill] sm:$0xff] }
 0x259   :  { %v3241_v37 = vadd.f32 %v3121_v15, %v3113_v22  ;;  %v2010_v41 = vpop.permute.xlu1 %2009  ;;  %v2144_v22 = vmul.f32 %v11105_v4, %v11104_v19  ;;  %v9692_v15 = vpop.f32.mrb[117].mxu0  ;;  %v11114_v4 = vld [vmem:[#allocation107_spill] sm:$0xff] }
 0x25a   :  { %v2025_v58 = vmul.f32 %v2010_v41, %v11100_v57  ;;  %2809 = vperm.xlu1 %7222, %v9364_v18   ;;  %v9694_v43 = vpop.f32.mrb[118].mxu0  ;;  %v11109_v57 = vmov 29  }
 0x25c   :  { %v3129_v36 = vadd.f32 %v2065_v6, %v2025_v58 }
 0x25e   :  { %7224 = vset.pattern.permute.xlu1 %v10958_v28  ;;  %v2046_v25 = vpop.permute.xlu1 %2045 }
 0x25f   :  { %v2064_v17 = vmul.f32 %v2046_v25, %v11103_v34  ;;  %2849 = vperm.xlu1 %7224, %v9364_v18   ;;  %v11112_v34 = vld [vmem:[#allocation106_spill] sm:$0xff] }
 0x261   :  { %v3128_v38 = vadd.f32 %v2064_v17, %v2024_v12  ;;  %v11111_v12 = vld [vmem:[#allocation105_spill] sm:$0xff] }
 0x263   :  { %7225 = vset.pattern.permute.xlu1 %v10942_v21  ;;  %v2086_v35 = vpop.permute.xlu1 %2085 }
 0x264   :  { %v2104_v13 = vmul.f32 %v2086_v35, %v11106_v61  ;;  %2885 = vperm.xlu1 %7225, %v9317_v55   ;;  %v11115_v35 = vmov 30   ;;  %v11116_v61 = vld [vmem:[#allocation122_spill] sm:$0xff] }
 0x266   :  { %v3136_v45 = vadd.f32 %v2144_v22, %v2104_v13  ;;  %v11117_v13 = vld [vmem:[#allocation138_spill] sm:$0xff] }
 0x267   :  { %v2090_v26 = vpop.permute.xlu1 %2089 }
 0x268   :  { %v3248_v14 = vadd.f32 %v3136_v45, %v3128_v38  ;;  %7226 = vset.pattern.permute.xlu1 %v10952_v40  ;;  %v2105_v48 = vmul.f32 %v2090_v26, %v11107_v63  ;;  %v2305_v45 = vmul.f32 %v11117_v13, %v11116_v61  ;;  %v9731_v61 = vld [vmem:[%s10700_s0 + $0x30] sm:$0xff] }
 0x269   :  { %2925 = vperm.xlu1 %7226, %v9317_v55  }
 0x26a   :  { %v9687_v0 = vadd.f32 %v3248_v14, %v3240_v7  ;;  %v9698_v7 = vpop.f32.mrb[119].mxu0  ;;  %v9713_v14 = vpop.f32.mrb[126].mxu1 }
 0x26c   :  { %v2130_v47 = vpop.permute.xlu1 %2129 }
 0x26d   :  { %v2145_v44 = vmul.f32 %v2130_v47, %v11108_v10  ;;  %2929 = vperm.xlu1 %7226, %v9364_v18   ;;  %v11118_v47 = vld [vmem:[#allocation119_spill] sm:$0xff] }
 0x26f   :  { %v3137_v23 = vadd.f32 %v2145_v44, %v2105_v48  ;;  %v11119_v44 = vmov 31  }
 0x271   :  { %v3249_v46 = vadd.f32 %v3137_v23, %v3129_v36  ;;  %7228 = vset.pattern.permute.xlu1 %v10981_v60  ;;  %v2166_v6 = vpop.permute.xlu1 %2165  ;;  %v11113_v36 = vld [vmem:[#allocation116_spill] sm:$0xff] }
 0x272   :  { %2969 = vperm.xlu1 %7228, %v9364_v18   ;;  %v2184_v50 = vmul.f32 %v2166_v6, %v11110_v1  ;;  %v2185_v17 = vmul.f32 %v11113_v36, %v11112_v34  ;;  %v11120_v6 = vld [vmem:[#allocation117_spill] sm:$0xff]  ;;  %v11122_v1 = vld [vmem:[#allocation118_spill] sm:$0xff]  ;;  %v11124_v34 = vld [vmem:[#allocation32_spill] sm:$0xff] }
 0x273   :  { %v9700_v41 = vadd.f32 %v3249_v46, %v3241_v37  ;;  %v9718_v46 = vpop.f32.mrb[127].mxu1 }
 0x276   :  { %7229 = vset.pattern.permute.xlu1 %v11109_v57  ;;  %v2206_v58 = vpop.permute.xlu1 %2205 }
 0x277   :  { %v2224_v25 = vmul.f32 %v2206_v58, %v11111_v12  ;;  %3005 = vperm.xlu1 %7229, %v9317_v55  }
 0x279   :  { %v3144_v38 = vadd.f32 %v2224_v25, %v2184_v50  ;;  %v11123_v25 = vld [vmem:[#allocation130_spill] sm:$0xff] }
 0x27a   :  { %v2210_v19 = vpop.permute.xlu1 %2209  ;;  %v2384_v36 = vmul.f32 %v11124_v34, %v11123_v25  ;;  %v11133_v34 = vld [vmem:[#allocation141_spill] sm:$0xff] }
 0x27b   :  { %v2225_v22 = vmul.f32 %v2210_v19, %v11114_v4  ;;  %7230 = vset.pattern.permute.xlu1 %v11115_v35  ;;  %v11125_v19 = vmov 0  }
 0x27c   :  { %3045 = vperm.xlu1 %7230, %v9317_v55   ;;  %v11121_v55 = vld [vmem:[#allocation30_spill] sm:$0xff] }
 0x27d   :  { %v3145_v37 = vadd.f32 %v2225_v22, %v2185_v17  ;;  %v2264_v58 = vmul.f32 %v11121_v55, %v11120_v6  ;;  %v11126_v22 = vld [vmem:[#allocation129_spill] sm:$0xff]  ;;  %v11130_v55 = vmov 2  }
 0x27f   :  { %v2250_v26 = vpop.permute.xlu1 %2249 }
 0x280   :  { %v2265_v63 = vmul.f32 %v2250_v26, %v11118_v47  ;;  %3049 = vperm.xlu1 %7230, %v9364_v18  }
 0x282   :  { %v3153_v48 = vadd.f32 %v2305_v45, %v2265_v63  ;;  %v11129_v63 = vld [vmem:[#allocation133_spill] sm:$0xff] }
 0x284   :  { %v3257_v10 = vadd.f32 %v3153_v48, %v3145_v37  ;;  %7232 = vset.pattern.permute.xlu1 %v11119_v44  ;;  %v2286_v23 = vpop.permute.xlu1 %2285 }
 0x285   :  { %v2304_v50 = vmul.f32 %v2286_v23, %v11122_v1  ;;  %3089 = vperm.xlu1 %7232, %v9364_v18   ;;  %v11127_v18 = vmov 1   ;;  %v9741_v23 = vld [vmem:[%s10700_s0 + $0x38] sm:$0xff]  ;;  %v11131_v1 = vmov 3  }
 0x287   :  { %v3152_v12 = vadd.f32 %v2304_v50, %v2264_v58 }
 0x289   :  { %v3256_v17 = vadd.f32 %v3152_v12, %v3144_v38  ;;  %7233 = vset.pattern.permute.xlu1 %v11125_v19  ;;  %v2326_v4 = vpop.permute.xlu1 %2325  ;;  %v11128_v38 = vld [vmem:[#allocation131_spill] sm:$0xff]  ;;  %v11132_v12 = vld [vmem:[#allocation140_spill] sm:$0xff] }
 0x28a   :  { %v2344_v37 = vmul.f32 %v2326_v4, %v11126_v22  ;;  %1852 = vperm.xlu1 %7233, %v9731_v61   ;;  %v11134_v4 = vld [vmem:[#allocation142_spill] sm:$0xff]  ;;  %v11135_v22 = vld [vmem:[#allocation68_spill] sm:$0xff] }
 0x28c   :  { %v3160_v13 = vadd.f32 %v2384_v36, %v2344_v37  ;;  %v2425_v37 = vmul.f32 %v11135_v22, %v11134_v4  ;;  %v11140_v4 = vld [vmem:[#allocation151_spill] sm:$0xff] }
 0x28d   :  { %v2330_v45 = vpop.permute.xlu1 %2329 }
 0x28e   :  { %7235 = vset.pattern.permute.xlu1 %v11127_v18  ;;  %v2345_v47 = vmul.f32 %v2330_v45, %v11128_v38  ;;  %v11136_v38 = vld [vmem:[#allocation143_spill] sm:$0xff] }
 0x28f   :  { %1893 = vperm.xlu1 %7235, %v9731_v61  }
 0x292   :  { %v2370_v26 = vpop.permute.xlu1 %2369 }
 0x293   :  { %v2385_v48 = vmul.f32 %v2370_v26, %v11129_v63  ;;  %1897 = vperm.xlu1 %7235, %v9741_v23   ;;  %v11137_v63 = vmov 4  }
 0x295   :  { %v3161_v6 = vadd.f32 %v2385_v48, %v2345_v47 }
 0x297   :  { %7237 = vset.pattern.permute.xlu1 %v11130_v55  ;;  %v2406_v58 = vpop.permute.xlu1 %2405 }
 0x298   :  { %1937 = vperm.xlu1 %7237, %v9741_v23   ;;  %v2424_v25 = vmul.f32 %v2406_v58, %v11132_v12  ;;  %v11139_v58 = vld [vmem:[#allocation46_spill] sm:$0xff] }
 0x29c   :  { %7238 = vset.pattern.permute.xlu1 %v11131_v1  ;;  %v2446_v50 = vpop.permute.xlu1 %2445  ;;  %v11138_v1 = vld [vmem:[#allocation152_spill] sm:$0xff] }
 0x29d   :  { %v2464_v36 = vmul.f32 %v2446_v50, %v11133_v34  ;;  %1973 = vperm.xlu1 %7238, %v9731_v61   ;;  %v2545_v12 = vmul.f32 %v11139_v58, %v11138_v1 }
 0x29f   :  { %v3168_v45 = vadd.f32 %v2464_v36, %v2424_v25 }
 0x2a0   :  { %v2450_v18 = vpop.permute.xlu1 %2449 }
 0x2a1   :  { %v3264_v26 = vadd.f32 %v3168_v45, %v3160_v13  ;;  %v2465_v47 = vmul.f32 %v2450_v18, %v11136_v38  ;;  %7240 = vset.pattern.permute.xlu1 %v11137_v63  ;;  %v11141_v45 = vmov 5   ;;  %v11143_v18 = vld [vmem:[#allocation34_spill] sm:$0xff]  ;;  %v11146_v63 = vld [vmem:[#allocation40_spill] sm:$0xff] }
 0x2a2   :  { %2013 = vperm.xlu1 %7240, %v9731_v61   ;;  %v11144_v38 = vld [vmem:[#allocation150_spill] sm:$0xff] }
 0x2a3   :  { %v3312_v48 = vadd.f32 %v3264_v26, %v3256_v17  ;;  %v3169_v55 = vadd.f32 %v2465_v47, %v2425_v37  ;;  %v11142_v37 = vld [vmem:[#allocation149_spill] sm:$0xff]  ;;  %v11145_v47 = vmov 6  }
 0x2a4   :  { %v2504_v26 = vmul.f32 %v11143_v18, %v11142_v37 }
 0x2a5   :  { %v9758_v50 = vadd.f32 %v3312_v48, %v9687_v0  ;;  %v3265_v34 = vadd.f32 %v3169_v55, %v3161_v6  ;;  %v2490_v62 = vpop.permute.xlu1 %2489  ;;  %v11148_v55 = vld [vmem:[#allocation76_spill] sm:$0xff] }
 0x2a6   :  { %v2505_v25 = vmul.f32 %v2490_v62, %v11140_v4  ;;  %2017 = vperm.xlu1 %7240, %v9741_v23   ;;  %v11149_v4 = vld [vmem:[#allocation78_spill] sm:$0xff] }
 0x2a7   :  { %v3313_v13 = vadd.f32 %v3265_v34, %v3257_v10  ;;  %v11147_v10 = vld [vmem:[#allocation36_spill] sm:$0xff] }
 0x2a8   :  { %v3177_v36 = vadd.f32 %v2545_v12, %v2505_v25  ;;  %v2624_v48 = vmul.f32 %v11147_v10, %v11146_v63  ;;  %v11155_v63 = vld [vmem:[#allocation66_spill] sm:$0xff] }
 0x2a9   :  { %v9763_v22 = vadd.f32 %v3313_v13, %v9700_v41  ;;  %v11150_v13 = vld [vmem:[#allocation155_spill] sm:$0xff] }
 0x2aa   :  { %7242 = vset.pattern.permute.xlu1 %v11141_v45  ;;  %v2526_v17 = vpop.permute.xlu1 %2525 }
 0x2ab   :  { %v2544_v0 = vmul.f32 %v2526_v17, %v11144_v38  ;;  %2057 = vperm.xlu1 %7242, %v9741_v23  }
 0x2ad   :  { %v3176_v6 = vadd.f32 %v2544_v0, %v2504_v26  ;;  %v11151_v26 = vmov 9  }
 0x2af   :  { %7243 = vset.pattern.permute.xlu1 %v11145_v47  ;;  %v2566_v62 = vpop.permute.xlu1 %2565 }
 0x2b0   :  { %v2584_v41 = vmul.f32 %v2566_v62, %v11148_v55  ;;  %2093 = vperm.xlu1 %7243, %v9731_v61   ;;  %v11154_v62 = vld [vmem:[#allocation79_spill] sm:$0xff] }
 0x2b1   :  { %v2665_v10 = vmul.f32 %v11155_v63, %v11154_v62 }
 0x2b2   :  { %v3184_v1 = vadd.f32 %v2624_v48, %v2584_v41 }
 0x2b3   :  { %v2570_v58 = vpop.permute.xlu1 %2569 }
 0x2b4   :  { %v3272_v12 = vadd.f32 %v3184_v1, %v3176_v6  ;;  %7245 = vset.pattern.permute.xlu1 %v11051_v20  ;;  %v2585_v25 = vmul.f32 %v2570_v58, %v11149_v4  ;;  %v11152_v20 = vld [vmem:[#allocation100_spill] sm:$0xff]  ;;  %v11153_v6 = vld [vmem:[#allocation74_spill] sm:$0xff]  ;;  %v11158_v58 = vld [vmem:[#allocation69_spill] sm:$0xff] }
 0x2b5   :  { %2133 = vperm.xlu1 %7245, %v9731_v61   ;;  %v11157_v1 = vld [vmem:[#allocation164_spill] sm:$0xff] }
 0x2b8   :  { %v2610_v34 = vpop.permute.xlu1 %2609 }
 0x2b9   :  { %v2625_v45 = vmul.f32 %v2610_v34, %v11150_v13  ;;  %2137 = vperm.xlu1 %7245, %v9741_v23   ;;  %v2785_v34 = vmul.f32 %v11158_v58, %v11157_v1 }
 0x2bb   :  { %v3185_v17 = vadd.f32 %v2625_v45, %v2585_v25  ;;  %v11159_v25 = vld [vmem:[#allocation91_spill] sm:$0xff] }
 0x2bd   :  { %v3273_v37 = vadd.f32 %v3185_v17, %v3177_v36  ;;  %7247 = vset.pattern.permute.xlu1 %v11056_v42  ;;  %v2646_v18 = vpop.permute.xlu1 %2645  ;;  %v11156_v36 = vld [vmem:[#allocation160_spill] sm:$0xff] }
 0x2be   :  { %2177 = vperm.xlu1 %7247, %v9741_v23   ;;  %v2664_v0 = vmul.f32 %v2646_v18, %v11152_v20  ;;  %v11160_v18 = vmov 11   ;;  %v11162_v20 = vld [vmem:[#allocation38_spill] sm:$0xff] }
 0x2c2   :  { %7248 = vset.pattern.permute.xlu1 %v11151_v26  ;;  %v2686_v38 = vpop.permute.xlu1 %2685 }
 0x2c3   :  { %v2704_v47 = vmul.f32 %v2686_v38, %v11153_v6  ;;  %2213 = vperm.xlu1 %7248, %v9731_v61   ;;  %v11161_v38 = vld [vmem:[#allocation163_spill] sm:$0xff] }
 0x2c5   :  { %v3192_v48 = vadd.f32 %v2704_v47, %v2664_v0  ;;  %v2744_v0 = vmul.f32 %v11162_v20, %v11161_v38  ;;  %v11171_v20 = vld [vmem:[#allocation35_spill] sm:$0xff] }
 0x2c6   :  { %v2690_v55 = vpop.permute.xlu1 %2689 }
 0x2c7   :  { %v2705_v41 = vmul.f32 %v2690_v55, %v11156_v36  ;;  %7250 = vset.pattern.permute.xlu1 %v11065_v3  ;;  %v11163_v3 = vld [vmem:[#allocation86_spill] sm:$0xff]  ;;  %v11164_v55 = vld [vmem:[#allocation61_spill] sm:$0xff] }
 0x2c8   :  { %2253 = vperm.xlu1 %7250, %v9731_v61   ;;  %v11165_v36 = vld [vmem:[#allocation41_spill] sm:$0xff] }
 0x2c9   :  { %v3193_v42 = vadd.f32 %v2705_v41, %v2665_v10  ;;  %v2864_v41 = vmul.f32 %v11165_v36, %v11164_v55  ;;  %v3010_v55 = vpop.permute.xlu0 %3009 }
 0x2ca   :  { %v3025_v36 = vmul.f32 %v3010_v55, %v9698_v7 }
 0x2cb   :  { %v2730_v4 = vpop.permute.xlu1 %2729 }
 0x2cc   :  { %v2745_v13 = vmul.f32 %v2730_v4, %v11159_v25  ;;  %2257 = vperm.xlu1 %7250, %v9741_v23   ;;  %v11167_v25 = vld [vmem:[#allocation171_spill] sm:$0xff] }
 0x2ce   :  { %v3201_v45 = vadd.f32 %v2785_v34, %v2745_v13  ;;  %v11168_v13 = vld [vmem:[#allocation172_spill] sm:$0xff] }
 0x2d0   :  { %v3281_v17 = vadd.f32 %v3201_v45, %v3193_v42  ;;  %7252 = vset.pattern.permute.xlu1 %v11160_v18  ;;  %v2766_v26 = vpop.permute.xlu1 %2765  ;;  %v11166_v42 = vld [vmem:[#allocation170_spill] sm:$0xff]  ;;  %v11169_v18 = vld [vmem:[#allocation33_spill] sm:$0xff] }
 0x2d1   :  { %v2784_v6 = vmul.f32 %v2766_v26, %v11163_v3  ;;  %2297 = vperm.xlu1 %7252, %v9741_v23   ;;  %v11170_v26 = vld [vmem:[#allocation113_spill] sm:$0xff] }
 0x2d2   :  { %v9800_v47 = vadd.f32 %v3281_v17, %v3273_v37 }
 0x2d3   :  { %v3200_v62 = vadd.f32 %v2784_v6, %v2744_v0  ;;  %v11172_v0 = vld [vmem:[#allocation125_spill] sm:$0xff] }
 0x2d4   :  { %v2905_v3 = vmul.f32 %v11172_v0, %v11171_v20 }
 0x2d5   :  { %v3280_v63 = vadd.f32 %v3200_v62, %v3192_v48  ;;  %7253 = vset.pattern.permute.xlu1 %v11070_v30  ;;  %v2806_v10 = vpop.permute.xlu1 %2805 }
 0x2d6   :  { %v2824_v1 = vmul.f32 %v2806_v10, %v11166_v42  ;;  %2333 = vperm.xlu1 %7253, %v9731_v61   ;;  %v11173_v10 = vld [vmem:[#allocation115_spill] sm:$0xff] }
 0x2d7   :  { %v3320_v58 = vadd.f32 %v3280_v63, %v3272_v12 }
 0x2d8   :  { %v3208_v34 = vadd.f32 %v2864_v41, %v2824_v1 }
 0x2d9   :  { %v2810_v4 = vpop.permute.xlu1 %2809 }
 0x2da   :  { %7255 = vset.pattern.permute.xlu1 %v11072_v32  ;;  %v2825_v48 = vmul.f32 %v2810_v4, %v11167_v25 }
 0x2db   :  { %2373 = vperm.xlu1 %7255, %v9731_v61  }
 0x2de   :  { %v2850_v37 = vpop.permute.xlu1 %2849 }
 0x2df   :  { %v2865_v30 = vmul.f32 %v2850_v37, %v11168_v13  ;;  %2377 = vperm.xlu1 %7255, %v9741_v23   ;;  %v11174_v37 = vld [vmem:[#allocation45_spill] sm:$0xff]  ;;  %v11175_v13 = vld [vmem:[#allocation50_spill] sm:$0xff] }
 0x2e0   :  { %v2984_v25 = vmul.f32 %v11174_v37, %v9627_v39  ;;  %v11184_v37 = vld [vmem:[#allocation62_spill] sm:$0xff] }
 0x2e1   :  { %v3209_v45 = vadd.f32 %v2865_v30, %v2825_v48 }
 0x2e3   :  { %7257 = vset.pattern.permute.xlu1 %v11074_v51  ;;  %v2886_v17 = vpop.permute.xlu1 %2885 }
 0x2e4   :  { %2417 = vperm.xlu1 %7257, %v9741_v23   ;;  %v2904_v32 = vmul.f32 %v2886_v17, %v11169_v18 }
 0x2e8   :  { %7258 = vset.pattern.permute.xlu1 %v11075_v11  ;;  %v2926_v12 = vpop.permute.xlu1 %2925 }
 0x2e9   :  { %v2944_v38 = vmul.f32 %v2926_v12, %v11170_v26  ;;  %2453 = vperm.xlu1 %7258, %v9731_v61  }
 0x2eb   :  { %v3216_v6 = vadd.f32 %v2944_v38, %v2904_v32 }
 0x2ec   :  { %v2930_v62 = vpop.permute.xlu1 %2929 }
 0x2ed   :  { %v3288_v63 = vadd.f32 %v3216_v6, %v3208_v34  ;;  %v2945_v51 = vmul.f32 %v2930_v62, %v11173_v10  ;;  %7260 = vset.pattern.permute.xlu1 %v11076_v31  ;;  %v11180_v10 = vld [vmem:[#allocation48_spill] sm:$0xff] }
 0x2ee   :  { %2493 = vperm.xlu1 %7260, %v9731_v61  }
 0x2ef   :  { %v3217_v11 = vadd.f32 %v2945_v51, %v2905_v3 }
 0x2f1   :  { %v3289_v41 = vadd.f32 %v3217_v11, %v3209_v45  ;;  %v2970_v42 = vpop.permute.xlu1 %2969 }
 0x2f2   :  { %v2985_v1 = vmul.f32 %v2970_v42, %v9694_v43  ;;  %2497 = vperm.xlu1 %7260, %v9741_v23   ;;  %v3104_v43 = vmul.f32 %v11175_v13, %v9643_v52  ;;  %v11183_v42 = vld [vmem:[#allocation64_spill] sm:$0xff] }
 0x2f4   :  { %v3225_v4 = vadd.f32 %v3025_v36, %v2985_v1  ;;  %v11181_v36 = vld [vmem:[#allocation65_spill] sm:$0xff] }
 0x2f6   :  { %7262 = vset.pattern.permute.xlu1 %v11077_v54  ;;  %v3006_v34 = vpop.permute.xlu1 %3005 }
 0x2f7   :  { %v3024_v31 = vmul.f32 %v3006_v34, %v9692_v15  ;;  %2537 = vperm.xlu1 %7262, %v9741_v23  }
 0x2f9   :  { %v3224_v48 = vadd.f32 %v3024_v31, %v2984_v25  ;;  %v11185_v25 = vld [vmem:[#allocation70_spill] sm:$0xff] }
 0x2fa   :  { %v1946_v31 = vmul.f32 %v11185_v25, %v11184_v37  ;;  %v11200_v37 = vld [vmem:[#allocation110_spill] sm:$0xff]  ;;  %v11201_v25 = vld [vmem:[#allocation121_spill] sm:$0xff] }
 0x2fb   :  { %7263 = vset.pattern.permute.xlu1 %v11079_v5  ;;  %v3046_v7 = vpop.permute.xlu1 %3045 }
 0x2fc   :  { %v3064_v30 = vmul.f32 %v3046_v7, %v9641_v8  ;;  %2573 = vperm.xlu1 %7263, %v9731_v61  }
 0x2fe   :  { %v3232_v54 = vadd.f32 %v3104_v43, %v3064_v30 }
 0x2ff   :  { %v3050_v45 = vpop.permute.xlu1 %3049 }
 0x300   :  { %v3296_v17 = vadd.f32 %v3232_v54, %v3224_v48  ;;  %7265 = vset.pattern.permute.xlu1 %v11082_v9  ;;  %v3065_v5 = vmul.f32 %v3050_v45, %v9713_v14  ;;  %v11176_v14 = vld [vmem:[#allocation43_spill] sm:$0xff]  ;;  %v11187_v54 = vld [vmem:[#allocation80_spill] sm:$0xff] }
 0x301   :  { %2613 = vperm.xlu1 %7265, %v9731_v61   ;;  %v11186_v48 = vld [vmem:[#allocation63_spill] sm:$0xff] }
 0x302   :  { %v3328_v39 = vadd.f32 %v3296_v17, %v3288_v63  ;;  %v11179_v63 = vld [vmem:[#allocation59_spill] sm:$0xff] }
 0x303   :  { %v11188_v45 = vld [vmem:[#allocation99_spill] sm:$0xff] }
 0x304   :  { %v3344_v15 = vadd.f32 %v3328_v39, %v3320_v58  ;;  %v3090_v12 = vpop.permute.xlu1 %3089  ;;  %v2066_v17 = vmul.f32 %v11188_v45, %v11187_v54  ;;  %v11189_v39 = vld [vmem:[#allocation77_spill] sm:$0xff]  ;;  %v11204_v54 = vld [vmem:[#allocation139_spill] sm:$0xff] }
 0x305   :  { %v3105_v18 = vmul.f32 %v3090_v12, %v9718_v46  ;;  %2617 = vperm.xlu1 %7265, %v9741_v23   ;;  %v11177_v46 = vld [vmem:[#allocation44_spill] sm:$0xff] }
 0x306   :  { %v3352_v8 = vadd.f32 %v3344_v15, %v9758_v50 }
 0x307   :  { %v3233_v52 = vadd.f32 %v3105_v18, %v3065_v5  ;;  %v11190_v18 = vld [vmem:[#allocation81_spill] sm:$0xff] }
 0x309   :  { %v3297_v32 = vadd.f32 %v3233_v52, %v3225_v4  ;;  %7267 = vset.pattern.permute.xlu1 %v11085_v2  ;;  %v1853_v26 = vpop.permute.xlu1 %1852  ;;  %v9851_v2 = vadd.f32 %v9598_v49, %v3352_v8  ;;  %v11191_v52 = vld [vmem:[#allocation82_spill] sm:$0xff] }
 0x30a   :  { %2657 = vperm.xlu1 %7267, %v9741_v23   ;;  %v1866_v20 = vmul.f32 %v1853_v26, %v11176_v14 }
 0x30b   :  { %v3329_v9 = vadd.f32 %v3297_v32, %v3289_v41  ;;  %v11182_v41 = vld [vmem:[#allocation85_spill] sm:$0xff] }
 0x30d   :  { %v3345_v38 = vadd.f32 %v3329_v9, %v9800_v47  ;;  %v11178_v47 = vld [vmem:[#allocation47_spill] sm:$0xff] }
 0x30e   :  { %7268 = vset.pattern.permute.xlu1 %v10906_v29  ;;  %v1894_v58 = vpop.permute.xlu1 %1893  ;;  %v1867_v29 = vmul.f32 %v11179_v63, %v11178_v47  ;;  %v11196_v47 = vld [vmem:[#allocation98_spill] sm:$0xff] }
 0x30f   :  { %v1906_v0 = vmul.f32 %v1894_v58, %v11177_v46  ;;  %2693 = vperm.xlu1 %7268, %v9731_v61   ;;  %v3353_v50 = vadd.f32 %v3345_v38, %v9763_v22  ;;  %v11192_v38 = vld [vmem:[#allocation93_spill] sm:$0xff]  ;;  %v11193_v58 = vld [vmem:[#allocation95_spill] sm:$0xff] }
 0x311   :  { %v3114_v3 = vadd.f32 %v1906_v0, %v1866_v20  ;;  %v9854_v6 = vadd.f32 %v9598_v49, %v3353_v50  ;;  %v1987_v49 = vmul.f32 %v11182_v41, %v11181_v36  ;;  %v9888_v0 = vpop.f32.mrb[120].mxu0  ;;  %v11194_v50 = vld [vmem:[#allocation96_spill] sm:$0xff] }
 0x312   :  { %v1898_v62 = vpop.permute.xlu1 %1897  ;;  %v11198_v36 = vld [vmem:[#allocation132_spill] sm:$0xff] }
 0x313   :  { %v1907_v51 = vmul.f32 %v1898_v62, %v11180_v10  ;;  %7270 = vset.pattern.permute.xlu1 %v11090_v16  ;;  %v3371_v55 = vpack.c.bf16 %v9854_v6, %v9851_v2 }
 0x314   :  { %2733 = vperm.xlu1 %7270, %v9731_v61  }
 0x315   :  { %v3115_v22 = vadd.f32 %v1907_v51, %v1867_v29  ;;  %6734 = vmatprep.mubr.bf16.mxu0 %v3371_v55 }
 0x317   :  { %v1938_v11 = vpop.permute.xlu1 %1937 }
 0x318   :  { %v1947_v1 = vmul.f32 %v1938_v11, %v11183_v42  ;;  %2737 = vperm.xlu1 %7270, %v9741_v23   ;;  %v11197_v11 = vld [vmem:[#allocation114_spill] sm:$0xff] }
 0x319   :  { %v2227_v41 = vmul.f32 %v11198_v36, %v11197_v11 }
 0x31a   :  { %v3123_v4 = vadd.f32 %v1987_v49, %v1947_v1  ;;  %v11199_v49 = vld [vmem:[#allocation112_spill] sm:$0xff] }
 0x31c   :  { %v3243_v34 = vadd.f32 %v3123_v4, %v3115_v22  ;;  %7272 = vset.pattern.permute.xlu1 %v11091_v27  ;;  %v1974_v16 = vpop.permute.xlu1 %1973 }
 0x31d   :  { %v1986_v7 = vmul.f32 %v1974_v16, %v11186_v48  ;;  %2777 = vperm.xlu1 %7272, %v9741_v23   ;;  %v11202_v48 = vld [vmem:[#allocation111_spill] sm:$0xff] }
 0x31f   :  { %v3122_v13 = vadd.f32 %v1986_v7, %v1946_v31  ;;  %v2186_v31 = vmul.f32 %v11201_v25, %v11200_v37 }
 0x321   :  { %v3242_v43 = vadd.f32 %v3122_v13, %v3114_v3  ;;  %7273 = vset.pattern.permute.xlu1 %v11097_v24  ;;  %v2014_v30 = vpop.permute.xlu1 %2013  ;;  %v11195_v3 = vld [vmem:[#allocation109_spill] sm:$0xff] }
 0x322   :  { %v2026_v15 = vmul.f32 %v2014_v30, %v11189_v39  ;;  %2813 = vperm.xlu1 %7273, %v9731_v61   ;;  %v2107_v62 = vmul.f32 %v11195_v3, %v11194_v50  ;;  %v9915_v30 = vpop.f32.mrb[128].mxu1  ;;  %v11209_v50 = vld [vmem:[#allocation135_spill] sm:$0xff] }
 0x323   :  { %v9921_v39 = vpop.f32.mrb[129].mxu1 }
 0x324   :  { %v3130_v27 = vadd.f32 %v2066_v17, %v2026_v15  ;;  %v7547_v15 = vmov 0.0  }
 0x325   :  { %v2018_v12 = vpop.permute.xlu1 %2017  ;;  %6750 = vmatprep.subr.bf16.mxu1 %v7547_v15  ;;  %6754 = vmatprep.mubr.msk.bf16.mxu1 %vm7548_vm1, %v7547_v15 }
 0x326   :  { %7275 = vset.pattern.permute.xlu1 %v10958_v28  ;;  %v2027_v8 = vmul.f32 %v2018_v12, %v11190_v18 }
 0x327   :  { %2853 = vperm.xlu1 %7275, %v9731_v61  }
 0x32a   :  { %v2058_v5 = vpop.permute.xlu1 %2057 }
 0x32b   :  { %v2067_v32 = vmul.f32 %v2058_v5, %v11191_v52  ;;  %2857 = vperm.xlu1 %7275, %v9741_v23   ;;  %v11206_v52 = vld [vmem:[#allocation126_spill] sm:$0xff] }
 0x32d   :  { %v3131_v24 = vadd.f32 %v2067_v32, %v2027_v8 }
 0x32f   :  { %7277 = vset.pattern.permute.xlu1 %v10942_v21  ;;  %v2094_v26 = vpop.permute.xlu1 %2093 }
 0x330   :  { %2897 = vperm.xlu1 %7277, %v9741_v23   ;;  %v2106_v28 = vmul.f32 %v2094_v26, %v11192_v38 }
 0x334   :  { %7278 = vset.pattern.permute.xlu1 %v10952_v40  ;;  %v2134_v9 = vpop.permute.xlu1 %2133  ;;  %v9894_v40 = vpop.f32.mrb[121].mxu0 }
 0x335   :  { %v2146_v14 = vmul.f32 %v2134_v9, %v11193_v58  ;;  %2933 = vperm.xlu1 %7278, %v9731_v61   ;;  %v9899_v22 = vpop.f32.mrb[122].mxu0  ;;  %v7297_v58 = vld [vmem:[%s10702_s2 + $0x8] sm:$0xff]  }
 0x336   :  { %v9908_v16 = vpop.f32.mrb[123].mxu0 }
 0x337   :  { %v3138_v20 = vadd.f32 %v2146_v14, %v2106_v28 }
 0x338   :  { %v2138_v46 = vpop.permute.xlu1 %2137 }
 0x339   :  { %v3250_v21 = vadd.f32 %v3138_v20, %v3130_v27  ;;  %v2147_v63 = vmul.f32 %v2138_v46, %v11196_v47  ;;  %7280 = vset.pattern.permute.xlu1 %v10981_v60  ;;  %v11208_v20 = vld [vmem:[#allocation134_spill] sm:$0xff]  ;;  %v11210_v47 = vld [vmem:[#allocation136_spill] sm:$0xff] }
 0x33a   :  { %2973 = vperm.xlu1 %7280, %v9731_v61  }
 0x33b   :  { %v9897_v29 = vadd.f32 %v3250_v21, %v3242_v43  ;;  %v3139_v10 = vadd.f32 %v2147_v63, %v2107_v62  ;;  %v11211_v63 = vld [vmem:[#allocation148_spill] sm:$0xff] }
 0x33d   :  { %v3251_v51 = vadd.f32 %v3139_v10, %v3131_v24  ;;  %v2178_v55 = vpop.permute.xlu1 %2177  ;;  %v11207_v24 = vld [vmem:[#allocation127_spill] sm:$0xff]  ;;  %v2347_v10 = vmul.f32 %v11211_v63, %v11210_v47  ;;  %v11225_v47 = vld [vmem:[#allocation157_spill] sm:$0xff] }
 0x33e   :  { %v2187_v42 = vmul.f32 %v2178_v55, %v11199_v49  ;;  %2977 = vperm.xlu1 %7280, %v9741_v23   ;;  %v11214_v49 = vld [vmem:[#allocation97_spill] sm:$0xff] }
 0x33f   :  { %v9905_v1 = vadd.f32 %v3251_v51, %v3243_v34  ;;  %v11203_v34 = vld [vmem:[#allocation124_spill] sm:$0xff]  ;;  %v11212_v51 = vld [vmem:[#allocation137_spill] sm:$0xff] }
 0x340   :  { %v3147_v60 = vadd.f32 %v2227_v41, %v2187_v42  ;;  %v2306_v45 = vmul.f32 %v11204_v54, %v11203_v34  ;;  %v11213_v41 = vld [vmem:[#allocation147_spill] sm:$0xff] }
 0x341   :  { %v2467_v42 = vmul.f32 %v11214_v49, %v11213_v41 }
 0x342   :  { %7281 = vset.pattern.permute.xlu1 %v11109_v57  ;;  %v2214_v4 = vpop.permute.xlu1 %2213  ;;  %v11205_v57 = vld [vmem:[#allocation123_spill] sm:$0xff] }
 0x343   :  { %v2226_v7 = vmul.f32 %v2214_v4, %v11202_v48  ;;  %3017 = vperm.xlu1 %7281, %v9741_v23   ;;  %v11216_v48 = vld [vmem:[#allocation144_spill] sm:$0xff] }
 0x345   :  { %v3146_v13 = vadd.f32 %v2226_v7, %v2186_v31  ;;  %v11217_v7 = vld [vmem:[#allocation27_spill] sm:$0xff] }
 0x347   :  { %7282 = vset.pattern.permute.xlu1 %v11115_v35  ;;  %v2254_v43 = vpop.permute.xlu1 %2253  ;;  %v9925_v35 = vpop.f32.mrb[130].mxu1 }
 0x348   :  { %v2266_v17 = vmul.f32 %v2254_v43, %v11205_v57  ;;  %3053 = vperm.xlu1 %7282, %v9731_v61   ;;  %v9928_v18 = vpop.f32.mrb[131].mxu1  ;;  %v11218_v43 = vld [vmem:[#allocation145_spill] sm:$0xff] }
 0x34a   :  { %v3154_v27 = vadd.f32 %v2306_v45, %v2266_v17 }
 0x34b   :  { %v2258_v12 = vpop.permute.xlu1 %2257 }
 0x34c   :  { %v3258_v5 = vadd.f32 %v3154_v27, %v3146_v13  ;;  %7284 = vset.pattern.permute.xlu1 %v11119_v44  ;;  %v2267_v32 = vmul.f32 %v2258_v12, %v11206_v52  ;;  %v9936_v44 = vld [vmem:[%s10702_s2 + $0x50] sm:$0xff]   ;;  %v2426_v13 = vmul.f32 %v11217_v7, %v11216_v48  ;;  %v11219_v12 = vld [vmem:[#allocation83_spill] sm:$0xff] }
 0x34d   :  { %3093 = vperm.xlu1 %7284, %v9731_v61   ;;  %6751 = vmatpush3.bf16.msra.mxu1 %v9936_v44  ;;  %v7295_v61 = vld [vmem:[%s10702_s2] sm:$0xff]  }
 0x34e   :  { %6752 = vmatprep.subr.bf16.mxu1 %v7547_v15  ;;  %6738 = vmatprep.subr.bf16.mxu0 %v7295_v61 }
 0x34f   :  { %6739 = vmatpush3.bf16.msra.mxu0 %v7295_v61 }
 0x350   :  { %v2298_v8 = vpop.permute.xlu1 %2297  ;;  %6740 = vmatprep.subr.bf16.mxu0 %v7297_v58 }
 0x351   :  { %v2307_v26 = vmul.f32 %v2298_v8, %v11207_v24  ;;  %3097 = vperm.xlu1 %7284, %v9741_v23   ;;  %v9946_v23 = vld [vmem:[%s10702_s2 + $0x58] sm:$0xff]   ;;  %v11220_v8 = vld [vmem:[#allocation101_spill] sm:$0xff] }
 0x352   :  { %6753 = vmatpush3.bf16.msra.mxu1 %v9946_v23  ;;  %v2546_v52 = vmul.f32 %v11220_v8, %v11219_v12  ;;  %v11235_v8 = vld [vmem:[#allocation166_spill] sm:$0xff] }
 0x353   :  { %v3155_v9 = vadd.f32 %v2307_v26, %v2267_v32  ;;  %6758 = vmatprep.subr.bf16.mxu1 %v7547_v15  ;;  %6741 = vmatpush3.bf16.msra.mxu0 %v7297_v58  ;;  %v11221_v32 = vld [vmem:[#allocation84_spill] sm:$0xff]  ;;  %v11222_v58 = vld [vmem:[#allocation153_spill] sm:$0xff] }
 0x354   :  { %6782 = vmatprep.subr.bf16.mxu0 %v7547_v15 }
 0x355   :  { %v3259_v38 = vadd.f32 %v3155_v9, %v3147_v60  ;;  %v2334_v28 = vpop.permute.xlu1 %2333  ;;  %v11215_v60 = vld [vmem:[#allocation146_spill] sm:$0xff]  ;;  %6755 = vmatmul.mubr.bf16.vlgmr.msra.gmra.mrb[132].mxu1 %v11125_v19 }
 0x356   :  { %v2346_v46 = vmul.f32 %v2334_v28, %v11208_v20  ;;  %6759 = vmatpush3.bf16.msra.mxu1 %v9936_v44  ;;  %6762 = vmatprep.mubr.msk.bf16.mxu1 %vm7548_vm1, %v7547_v15  ;;  %v11223_v20 = vld [vmem:[#allocation154_spill] sm:$0xff] }
 0x357   :  { %6760 = vmatprep.subr.bf16.mxu1 %v7547_v15 }
 0x35a   :  { %v2374_v14 = vpop.permute.xlu1 %2373  ;;  %6761 = vmatpush3.bf16.msra.mxu1 %v9946_v23 }
 0x35b   :  { %v2386_v3 = vmul.f32 %v2374_v14, %v11209_v50  ;;  %6766 = vmatprep.subr.bf16.mxu1 %v7547_v15 }
 0x35d   :  { %v3162_v62 = vadd.f32 %v2386_v3, %v2346_v46 }
 0x35e   :  { %v2378_v21 = vpop.permute.xlu1 %2377 }
 0x35f   :  { %v2387_v55 = vmul.f32 %v2378_v21, %v11212_v51 }
 0x361   :  { %v3163_v11 = vadd.f32 %v2387_v55, %v2347_v10  ;;  %v11227_v55 = vld [vmem:[#allocation31_spill] sm:$0xff] }
 0x363   :  { %v2418_v36 = vpop.permute.xlu1 %2417 }
 0x364   :  { %v2427_v4 = vmul.f32 %v2418_v36, %v11215_v60  ;;  %v11228_v36 = vld [vmem:[#allocation159_spill] sm:$0xff] }
 0x366   :  { %v3171_v37 = vadd.f32 %v2467_v42, %v2427_v4  ;;  %v11229_v4 = vld [vmem:[#allocation162_spill] sm:$0xff] }
 0x368   :  { %v3267_v25 = vadd.f32 %v3171_v37, %v3163_v11  ;;  %v2454_v31 = vpop.permute.xlu1 %2453  ;;  %v11230_v37 = vld [vmem:[#allocation174_spill] sm:$0xff] }
 0x369   :  { %v2466_v34 = vmul.f32 %v2454_v31, %v11218_v43  ;;  %v11231_v31 = vld [vmem:[#allocation161_spill] sm:$0xff] }
 0x36a   :  { %v3315_v54 = vadd.f32 %v3267_v25, %v3259_v38  ;;  %v2707_v25 = vmul.f32 %v11230_v37, %v11229_v4  ;;  %v11232_v43 = vld [vmem:[#allocation57_spill] sm:$0xff] }
 0x36b   :  { %v3170_v45 = vadd.f32 %v2466_v34, %v2426_v13  ;;  %v11233_v34 = vld [vmem:[#allocation169_spill] sm:$0xff] }
 0x36c   :  { %v9975_v57 = vadd.f32 %v3315_v54, %v9905_v1  ;;  %v2666_v54 = vmul.f32 %v11233_v34, %v11232_v43 }
 0x36d   :  { %v3266_v17 = vadd.f32 %v3170_v45, %v3162_v62  ;;  %v2494_v27 = vpop.permute.xlu1 %2493  ;;  %v11224_v62 = vld [vmem:[#allocation156_spill] sm:$0xff]  ;;  %v11234_v45 = vld [vmem:[#allocation29_spill] sm:$0xff] }
 0x36e   :  { %v2506_v24 = vmul.f32 %v2494_v27, %v11221_v32 }
 0x36f   :  { %v3314_v26 = vadd.f32 %v3266_v17, %v3258_v5  ;;  %v11226_v5 = vld [vmem:[#allocation158_spill] sm:$0xff] }
 0x370   :  { %v3178_v9 = vadd.f32 %v2546_v52, %v2506_v24  ;;  %v2587_v11 = vmul.f32 %v11227_v55, %v11226_v5  ;;  %v11236_v52 = vld [vmem:[#allocation178_spill] sm:$0xff]  ;;  %v11237_v24 = vld [vmem:[#allocation165_spill] sm:$0xff]  ;;  %v11241_v5 = vld [vmem:[#allocation175_spill] sm:$0xff] }
 0x371   :  { %v9981_v28 = vadd.f32 %v3314_v26, %v9897_v29  ;;  %v2498_v61 = vpop.permute.xlu1 %2497  ;;  %v2786_v32 = vmul.f32 %v11236_v52, %v11235_v8  ;;  %v3014_v8 = vpop.permute.xlu0 %3013 }
 0x372   :  { %v2507_v14 = vmul.f32 %v2498_v61, %v11222_v58 }
 0x376   :  { %v2538_v38 = vpop.permute.xlu1 %2537 }
 0x377   :  { %v2547_v46 = vmul.f32 %v2538_v38, %v11223_v20  ;;  %v11238_v20 = vld [vmem:[#allocation167_spill] sm:$0xff] }
 0x379   :  { %v3179_v1 = vadd.f32 %v2547_v46, %v2507_v14 }
 0x37b   :  { %v2574_v50 = vpop.permute.xlu1 %2573 }
 0x37c   :  { %v2586_v21 = vmul.f32 %v2574_v50, %v11224_v62 }
 0x380   :  { %v2614_v3 = vpop.permute.xlu1 %2613 }
 0x381   :  { %v2626_v63 = vmul.f32 %v2614_v3, %v11225_v47 }
 0x383   :  { %v3186_v10 = vadd.f32 %v2626_v63, %v2586_v21 }
 0x384   :  { %v2618_v51 = vpop.permute.xlu1 %2617 }
 0x385   :  { %v3274_v29 = vadd.f32 %v3186_v10, %v3178_v9  ;;  %v2627_v41 = vmul.f32 %v2618_v51, %v11228_v36  ;;  %v11240_v10 = vld [vmem:[#allocation173_spill] sm:$0xff] }
 0x387   :  { %v3187_v49 = vadd.f32 %v2627_v41, %v2587_v11  ;;  %v11242_v41 = vld [vmem:[#allocation176_spill] sm:$0xff] }
 0x389   :  { %v3275_v42 = vadd.f32 %v3187_v49, %v3179_v1  ;;  %v2658_v60 = vpop.permute.xlu1 %2657  ;;  %v11239_v1 = vld [vmem:[#allocation168_spill] sm:$0xff] }
 0x38a   :  { %v2667_v48 = vmul.f32 %v2658_v60, %v11231_v31  ;;  %v11243_v49 = vld [vmem:[#allocation120_spill] sm:$0xff]  ;;  %v11245_v31 = vld [vmem:[#allocation94_spill] sm:$0xff] }
 0x38b   :  { %v2827_v60 = vmul.f32 %v11243_v49, %v11242_v41 }
 0x38c   :  { %v3195_v7 = vadd.f32 %v2707_v25, %v2667_v48  ;;  %v2947_v48 = vmul.f32 %v9575_v59, %v11245_v31 }
 0x38e   :  { %v2694_v13 = vpop.permute.xlu1 %2693 }
 0x38f   :  { %v2706_v17 = vmul.f32 %v2694_v13, %v11234_v45  ;;  %v11248_v45 = vld [vmem:[#allocation23_spill] sm:$0xff] }
 0x391   :  { %v3194_v27 = vadd.f32 %v2706_v17, %v2666_v54  ;;  %v11247_v54 = vld [vmem:[#allocation179_spill] sm:$0xff] }
 0x392   :  { %v2906_v17 = vmul.f32 %v11248_v45, %v11247_v54 }
 0x393   :  { %v2734_v12 = vpop.permute.xlu1 %2733 }
 0x394   :  { %v2746_v26 = vmul.f32 %v2734_v12, %v11237_v24 }
 0x396   :  { %v3202_v9 = vadd.f32 %v2786_v32, %v2746_v26  ;;  %v3026_v32 = vmul.f32 %v3014_v8, %v9894_v40 }
 0x397   :  { %v2738_v61 = vpop.permute.xlu1 %2737 }
 0x398   :  { %v3282_v38 = vadd.f32 %v3202_v9, %v3194_v27  ;;  %v2747_v46 = vmul.f32 %v2738_v61, %v11238_v20  ;;  %v11249_v27 = vld [vmem:[#allocation180_spill] sm:$0xff] }
 0x39a   :  { %v3322_v58 = vadd.f32 %v3282_v38, %v3274_v29  ;;  %v11244_v29 = vld [vmem:[#allocation177_spill] sm:$0xff] }
 0x39c   :  { %v2778_v14 = vpop.permute.xlu1 %2777 }
 0x39d   :  { %v2787_v50 = vmul.f32 %v2778_v14, %v11239_v1 }
 0x39f   :  { %v3203_v3 = vadd.f32 %v2787_v50, %v2747_v46 }
 0x3a1   :  { %v3283_v62 = vadd.f32 %v3203_v3, %v3195_v7  ;;  %v2814_v21 = vpop.permute.xlu1 %2813  ;;  %v11246_v7 = vld [vmem:[#allocation181_spill] sm:$0xff] }
 0x3a2   :  { %v2826_v51 = vmul.f32 %v2814_v21, %v11240_v10  ;;  %v3058_v21 = vpop.permute.xlu0 %3057 }
 0x3a3   :  { %v3323_v47 = vadd.f32 %v3283_v62, %v3275_v42 }
 0x3a6   :  { %v2854_v63 = vpop.permute.xlu1 %2853 }
 0x3a7   :  { %v2866_v55 = vmul.f32 %v2854_v63, %v11241_v5 }
 0x3a9   :  { %v3210_v11 = vadd.f32 %v2866_v55, %v2826_v51 }
 0x3aa   :  { %v2858_v36 = vpop.permute.xlu1 %2857 }
 0x3ab   :  { %v2867_v4 = vmul.f32 %v2858_v36, %v11244_v29 }
 0x3ad   :  { %v3211_v37 = vadd.f32 %v2867_v4, %v2827_v60 }
 0x3af   :  { %v2898_v25 = vpop.permute.xlu1 %2897 }
 0x3b0   :  { %v2907_v13 = vmul.f32 %v2898_v25, %v11246_v7  ;;  %v6519_v25 = vld [vmem:[%s10703_s3] ss:$0 sm:$0xff] }
 0x3b2   :  { %v3219_v42 = vadd.f32 %v2947_v48, %v2907_v13 }
 0x3b4   :  { %v3291_v43 = vadd.f32 %v3219_v42, %v3211_v37  ;;  %v2934_v34 = vpop.permute.xlu1 %2933 }
 0x3b5   :  { %v2946_v12 = vmul.f32 %v2934_v34, %v11249_v27 }
 0x3b7   :  { %v3218_v52 = vadd.f32 %v2946_v12, %v2906_v17 }
 0x3b9   :  { %v3290_v24 = vadd.f32 %v3218_v52, %v3210_v11  ;;  %v2974_v26 = vpop.permute.xlu1 %2973 }
 0x3ba   :  { %v2986_v9 = vmul.f32 %v2974_v26, %v9888_v0  ;;  %v3067_v0 = vmul.f32 %v3058_v21, %v9925_v35 }
 0x3bc   :  { %v3226_v61 = vadd.f32 %v3026_v32, %v2986_v9 }
 0x3bd   :  { %v2978_v59 = vpop.permute.xlu1 %2977 }
 0x3be   :  { %v2987_v14 = vmul.f32 %v2978_v59, %v9899_v22 }
 0x3c2   :  { %v3018_v38 = vpop.permute.xlu1 %3017 }
 0x3c3   :  { %v3027_v20 = vmul.f32 %v3018_v38, %v9908_v16 }
 0x3c5   :  { %v3227_v46 = vadd.f32 %v3027_v20, %v2987_v14 }
 0x3c7   :  { %v3054_v1 = vpop.permute.xlu1 %3053 }
 0x3c8   :  { %v3066_v3 = vmul.f32 %v3054_v1, %v9915_v30 }
 0x3cc   :  { %v3094_v50 = vpop.permute.xlu1 %3093 }
 0x3cd   :  { %v3106_v62 = vmul.f32 %v3094_v50, %v9921_v39  ;;  %v7510_v39 = vld [vmem:[%s10703_s3 + $0x3] ss:$0 sm:$0xff] }
 0x3cf   :  { %v3234_v40 = vadd.f32 %v3106_v62, %v3066_v3 }
 0x3d0   :  { %v3098_v63 = vpop.permute.xlu1 %3097 }
 0x3d1   :  { %v3298_v10 = vadd.f32 %v3234_v40, %v3226_v61  ;;  %v3107_v51 = vmul.f32 %v3098_v63, %v9928_v18  ;;  %v11250_v18 = vld [vmem:[#allocation18_spill] sm:$0xff] }
 0x3d3   :  { %v3330_v5 = vadd.f32 %v3298_v10, %v3290_v24  ;;  %v3235_v55 = vadd.f32 %v3107_v51, %v3067_v0 }
 0x3d5   :  { %v3346_v22 = vadd.f32 %v3330_v5, %v3322_v58  ;;  %v3299_v11 = vadd.f32 %v3235_v55, %v3227_v46  ;;  %v11251_v58 = vld [vmem:[#allocation20_spill] sm:$0xff] }
 0x3d7   :  { %v3331_v16 = vadd.f32 %v3299_v11, %v3291_v43  ;;  %v3354_v36 = vadd.f32 %v3346_v22, %v9981_v28  ;;  %v11252_v28 = vld [vmem:[#allocation22_spill] sm:$0xff] }
 0x3d9   :  { %v3347_v41 = vadd.f32 %v3331_v16, %v3323_v47  ;;  %v10025_v49 = vadd.f32 %v7510_v39, %v3354_v36 }
 0x3db   :  { %v3355_v30 = vadd.f32 %v3347_v41, %v9975_v57  ;;  %v11253_v57 = vld [vmem:[#allocation16_spill] sm:$0xff] }
 0x3dd   :  { %v10027_v60 = vadd.f32 %v7510_v39, %v3355_v30 }
 0x3df   :  { %v3372_v35 = vpack.c.bf16 %v10027_v60, %v10025_v49 }
 0x3e1   :  { %6735 = vmatmul.mubr.bf16.gmra.mrb[128].mxu0 %v3372_v35 }
 0x3e2   :  { %6742 = vmatprep.mubr.msk.bf16.mxu0 %vm639_vm0, %v11250_v18 }
 0x3e9   :  { %6743 = vmatmul.mubr.msk.bf16.vlgmr.msra.gmra.mrb[124].mxu0 %vm639_vm0, %v11251_v58 }
 0x3ea   :  { %6746 = vmatprep.mubr.msk.bf16.mxu0 %vm639_vm0, %v11252_v28  ;;  %6783 = vmatpush3.bf16.msra.mxu0 %v9936_v44 }
 0x3eb   :  { %6784 = vmatprep.subr.bf16.mxu0 %v7547_v15 }
 0x3ee   :  { %6785 = vmatpush3.bf16.msra.mxu0 %v9946_v23 }
 0x3ef   :  { %6798 = vmatprep.subr.bf16.mxu0 %v7547_v15 }
 0x3f1   :  { %6747 = vmatmul.mubr.msk.bf16.gmra.mrb[128].mxu0 %vm639_vm0, %v11253_v57 }
 0x3f2   :  { %6786 = vmatprep.mubr.msk.bf16.mxu0 %vm7548_vm1, %v7547_v15 }
 0x428   :  { %v3649_v47 = vpop.f32.mrb[132].mxu1 }
 0x429   :  { %v6756_v29 = vpop.f32.mrb[133].mxu1 }
 0x42a   :  { %v3652_v4 = vpop.f32.mrb[134].mxu1 }
 0x42b   :  { %v6757_v37 = vpop.f32.mrb[135].mxu1 }
 0x4bc   :  { %v6744_v31 = vpop.f32.mrb[124].mxu0 }
 0x4bd   :  { %v10048_v48 = vadd.f32 %v6744_v31, %v6519_v25  ;;  %v3556_v7 = vpop.f32.mrb[125].mxu0 }
 0x4be   :  { %v3592_v13 = vadd.f32 %v6519_v25, %v3556_v7  ;;  %v6745_v42 = vpop.f32.mrb[126].mxu0 }
 0x4bf   :  { %v10050_v43 = vadd.f32 %v6745_v42, %v6519_v25  ;;  %v3559_v34 = vpop.f32.mrb[127].mxu0 }
 0x4c0   :  { %v3655_v54 = vadd.f32 %v3649_v47, %v3592_v13  ;;  %v3593_v45 = vadd.f32 %v6519_v25, %v3559_v34 }
 0x4c2   :  { %7306 = vtanh.f32 %v3655_v54  ;;  %v6522_v61 = vmul.f32 -1.442695, %v3655_v54 }
 0x4c4   :  { %v6748_v17 = vpop.f32.mrb[128].mxu0  ;;  %7308 = vpow2.f32 %v6522_v61 }
 0x4c5   :  { %v10052_v27 = vadd.f32 %v6748_v17, %v6519_v25  ;;  %v3572_v12 = vpop.f32.mrb[129].mxu0 }
 0x4c6   :  { %v10054_v8 = vadd.f32 %v6519_v25, %v3572_v12  ;;  %v6749_v52 = vpop.f32.mrb[130].mxu0 }
 0x4c7   :  { %v10056_v32 = vadd.f32 %v6749_v52, %v6519_v25  ;;  %v3575_v24 = vpop.f32.mrb[131].mxu0 }
 0x4c8   :  { %v10058_v26 = vadd.f32 %v6519_v25, %v3575_v24 }
 0x4cc   :  { %v7307_v9 = vpop.eup %7306 }
 0x4cd   :  { %3665 = vrot.lane.b32.xlu0 %v7307_v9, %s7549_s29 }
 0x4ce   :  { %v7309_v59 = vpop.eup %7308 }
 0x4cf   :  { %v3659_v38 = vadd.f32 1.0, %v7309_v59 }
 0x4d1   :  { %7310 = vrcp.f32 %v3659_v38 }
 0x4db   :  { %v7311_v14 = vpop.eup %7310 }
 0x4dc   :  { %v3663_v1 = vmul.f32 0.0, %v7311_v14 }
 0x53f   :  { %v3666_v20 = vpop.permute.xlu0 %3665 }
 0x540   :  { %v3668_v46 = vmul.f32 %v7311_v14, %v3666_v20 }
 0x542   :  { %3670 = vrot.lane.b32.xlu1 %v3668_v46, %s7550_s30 }
 0x5b4   :  { %v3671_v50 = vpop.permute.xlu1 %3670 }
 0x5b5   :  { %v3673_v3 = vadd.f32 %v3671_v50, %v3663_v1 }
 0x5b7   :  { %7312 = vtanh.f32 %v3673_v3 }
 0x5c1   :  { %v7313_v62 = vpop.eup %7312 }
 0x5c2   :  { %3676 = vrot.lane.b32.xlu0 %v7313_v62, %s7549_s29 }
 0x634   :  { %v3677_v21 = vpop.permute.xlu0 %3676 }
 0x635   :  { %v10063_v40 = vmul.f32 %v7311_v14, %v3677_v21 }
 0x637   :  { %v3685_v63 = vpack.c.bf16 %v10063_v40, %v10063_v40 }
 0x639   :  { %3687 = vrot.lane.b32.xlu1 %v3685_v63, %s7550_s30 }
 0x6ab   :  { %v3688_v10 = vpop.permute.xlu1 %3687 }
 0x6ac   :  { %6763 = vmatmul.mubr.msk.bf16.vlgmr.msra.gmra.mrb[136].mxu1 %vm639_vm0, %v3688_v10 }
 0x6ad   :  { %6767 = vmatpush3.bf16.msra.mxu1 %v9936_v44  ;;  %6770 = vmatprep.mubr.msk.bf16.mxu1 %vm7548_vm1, %v7547_v15 }
 0x6ae   :  { %6768 = vmatprep.subr.bf16.mxu1 %v7547_v15 }
 0x6b1   :  { %6769 = vmatpush3.bf16.msra.mxu1 %v9946_v23 }
 0x6b2   :  { %6774 = vmatprep.subr.bf16.mxu1 %v7547_v15 }
 0x77f   :  { %v3726_v0 = vpop.f32.mrb[136].mxu1 }
 0x780   :  { %v3732_v51 = vadd.f32 %v3726_v0, %v3593_v45  ;;  %v6764_v5 = vpop.f32.mrb[137].mxu1 }
 0x781   :  { %v3729_v55 = vpop.f32.mrb[138].mxu1 }
 0x782   :  { %7314 = vtanh.f32 %v3732_v51  ;;  %v6765_v22 = vpop.f32.mrb[139].mxu1  ;;  %v6524_v16 = vmul.f32 -1.442695, %v3732_v51 }
 0x784   :  { %7316 = vpow2.f32 %v6524_v16 }
 0x78c   :  { %v7315_v11 = vpop.eup %7314 }
 0x78d   :  { %3742 = vrot.lane.b32.xlu0 %v7315_v11, %s7549_s29 }
 0x78e   :  { %v7317_v36 = vpop.eup %7316 }
 0x78f   :  { %v3736_v41 = vadd.f32 1.0, %v7317_v36 }
 0x791   :  { %7318 = vrcp.f32 %v3736_v41 }
 0x79b   :  { %v7319_v30 = vpop.eup %7318 }
 0x79c   :  { %v3740_v18 = vmul.f32 %v7319_v30, %v3673_v3 }
 0x7ff   :  { %v3743_v39 = vpop.permute.xlu0 %3742 }
 0x800   :  { %v3745_v35 = vmul.f32 %v7319_v30, %v3743_v39 }
 0x802   :  { %3747 = vrot.lane.b32.xlu1 %v3745_v35, %s7550_s30 }
 0x874   :  { %v3748_v58 = vpop.permute.xlu1 %3747 }
 0x875   :  { %v3750_v28 = vadd.f32 %v3748_v58, %v3740_v18 }
 0x877   :  { %7320 = vtanh.f32 %v3750_v28 }
 0x881   :  { %v7321_v57 = vpop.eup %7320 }
 0x882   :  { %3753 = vrot.lane.b32.xlu0 %v7321_v57, %s7549_s29 }
 0x8f4   :  { %v3754_v47 = vpop.permute.xlu0 %3753 }
 0x8f5   :  { %v10078_v29 = vmul.f32 %v7319_v30, %v3754_v47 }
 0x8f7   :  { %v3762_v4 = vpack.c.bf16 %v10078_v29, %v10078_v29 }
 0x8f9   :  { %3764 = vrot.lane.b32.xlu1 %v3762_v4, %s7550_s30 }
 0x96b   :  { %v3765_v37 = vpop.permute.xlu1 %3764 }
 0x96c   :  { %6771 = vmatmul.mubr.msk.bf16.vlgmr.msra.gmra.mrb[140].mxu1 %vm639_vm0, %v3765_v37 }
 0x96d   :  { %6775 = vmatpush3.bf16.msra.mxu1 %v9936_v44  ;;  %6778 = vmatprep.mubr.msk.bf16.mxu1 %vm7548_vm1, %v7547_v15 }
 0x96e   :  { %6776 = vmatprep.subr.bf16.mxu1 %v7547_v15 }
 0x971   :  { %6777 = vmatpush3.bf16.msra.mxu1 %v9946_v23 }
 0x972   :  { %6790 = vmatprep.subr.bf16.mxu1 %v7547_v15 }
 0xa3f   :  { %v3803_v25 = vpop.f32.mrb[140].mxu1 }
 0xa40   :  { %v3809_v31 = vadd.f32 %v3803_v25, %v10048_v48  ;;  %v6772_v7 = vpop.f32.mrb[141].mxu1 }
 0xa41   :  { %v3806_v13 = vpop.f32.mrb[142].mxu1 }
 0xa42   :  { %7322 = vtanh.f32 %v3809_v31  ;;  %v6773_v42 = vpop.f32.mrb[143].mxu1  ;;  %v6526_v54 = vmul.f32 -1.442695, %v3809_v31 }
 0xa44   :  { %7324 = vpow2.f32 %v6526_v54 }
 0xa4c   :  { %v7323_v34 = vpop.eup %7322 }
 0xa4d   :  { %3819 = vrot.lane.b32.xlu0 %v7323_v34, %s7549_s29 }
 0xa4e   :  { %v7325_v45 = vpop.eup %7324 }
 0xa4f   :  { %v3813_v17 = vadd.f32 1.0, %v7325_v45 }
 0xa51   :  { %7326 = vrcp.f32 %v3813_v17 }
 0xa5b   :  { %v7327_v12 = vpop.eup %7326 }
 0xa5c   :  { %v3817_v9 = vmul.f32 %v7327_v12, %v3750_v28 }
 0xabf   :  { %v3820_v52 = vpop.permute.xlu0 %3819 }
 0xac0   :  { %v3822_v24 = vmul.f32 %v7327_v12, %v3820_v52 }
 0xac2   :  { %3824 = vrot.lane.b32.xlu1 %v3822_v24, %s7550_s30 }
 0xb34   :  { %v3825_v61 = vpop.permute.xlu1 %3824 }
 0xb35   :  { %v3827_v48 = vadd.f32 %v3825_v61, %v3817_v9 }
 0xb37   :  { %7328 = vtanh.f32 %v3827_v48 }
 0xb41   :  { %v7329_v59 = vpop.eup %7328 }
 0xb42   :  { %3830 = vrot.lane.b32.xlu0 %v7329_v59, %s7549_s29 }
 0xbb4   :  { %v3831_v38 = vpop.permute.xlu0 %3830 }
 0xbb5   :  { %v10094_v14 = vmul.f32 %v7327_v12, %v3831_v38 }
 0xbb7   :  { %v3839_v20 = vpack.c.bf16 %v10094_v14, %v10094_v14 }
 0xbb9   :  { %3841 = vrot.lane.b32.xlu1 %v3839_v20, %s7550_s30 }
 0xc2b   :  { %v3842_v46 = vpop.permute.xlu1 %3841 }
 0xc2c   :  { %6779 = vmatmul.mubr.msk.bf16.vlgmr.msra.gmra.mrb[144].mxu1 %vm639_vm0, %v3842_v46 }
 0xc2d   :  { %6791 = vmatpush3.bf16.msra.mxu1 %v9936_v44  ;;  %6794 = vmatprep.mubr.msk.bf16.mxu1 %vm7548_vm1, %v7547_v15 }
 0xc2e   :  { %6792 = vmatprep.subr.bf16.mxu1 %v7547_v15 }
 0xc31   :  { %6793 = vmatpush3.bf16.msra.mxu1 %v9946_v23 }
 0xc32   :  { %6806 = vmatprep.subr.bf16.mxu1 %v7547_v15 }
 0xcff   :  { %v3880_v1 = vpop.f32.mrb[144].mxu1 }
 0xd00   :  { %v3886_v50 = vadd.f32 %v3880_v1, %v10050_v43  ;;  %v6780_v3 = vpop.f32.mrb[145].mxu1 }
 0xd01   :  { %v3883_v62 = vpop.f32.mrb[146].mxu1 }
 0xd02   :  { %7330 = vtanh.f32 %v3886_v50  ;;  %v6781_v21 = vpop.f32.mrb[147].mxu1  ;;  %v6528_v10 = vmul.f32 -1.442695, %v3886_v50 }
 0xd04   :  { %7332 = vpow2.f32 %v6528_v10 }
 0xd0c   :  { %v7331_v63 = vpop.eup %7330 }
 0xd0d   :  { %3896 = vrot.lane.b32.xlu0 %v7331_v63, %s7549_s29 }
 0xd0e   :  { %v7333_v0 = vpop.eup %7332 }
 0xd0f   :  { %v3890_v51 = vadd.f32 1.0, %v7333_v0 }
 0xd11   :  { %7334 = vrcp.f32 %v3890_v51 }
 0xd1b   :  { %v7335_v5 = vpop.eup %7334 }
 0xd1c   :  { %v3894_v11 = vmul.f32 %v7335_v5, %v3827_v48 }
 0xd7f   :  { %v3897_v55 = vpop.permute.xlu0 %3896 }
 0xd80   :  { %v3899_v22 = vmul.f32 %v7335_v5, %v3897_v55 }
 0xd82   :  { %3901 = vrot.lane.b32.xlu1 %v3899_v22, %s7550_s30 }
 0xdf4   :  { %v3902_v16 = vpop.permute.xlu1 %3901 }
 0xdf5   :  { %v3904_v43 = vadd.f32 %v3902_v16, %v3894_v11 }
 0xdf7   :  { %7336 = vtanh.f32 %v3904_v43 }
 0xe01   :  { %v7337_v36 = vpop.eup %7336 }
 0xe02   :  { %3907 = vrot.lane.b32.xlu0 %v7337_v36, %s7549_s29 }
 0xe74   :  { %v3908_v41 = vpop.permute.xlu0 %3907 }
 0xe75   :  { %v10110_v30 = vmul.f32 %v7335_v5, %v3908_v41 }
 0xe77   :  { %v3916_v39 = vpack.c.bf16 %v10110_v30, %v10110_v30 }
 0xe79   :  { %3918 = vrot.lane.b32.xlu1 %v3916_v39, %s7550_s30 }
 0xeeb   :  { %v3919_v35 = vpop.permute.xlu1 %3918 }
 0xeec   :  { %6787 = vmatmul.mubr.msk.bf16.vlgmr.msra.gmra.mrb[132].mxu0 %vm639_vm0, %v3919_v35 }
 0xeed   :  { %6799 = vmatpush3.bf16.msra.mxu0 %v9936_v44  ;;  %6802 = vmatprep.mubr.msk.bf16.mxu0 %vm7548_vm1, %v7547_v15 }
 0xeee   :  { %6800 = vmatprep.subr.bf16.mxu0 %v7547_v15 }
 0xef1   :  { %6801 = vmatpush3.bf16.msra.mxu0 %v9946_v23 }
 0xfbf   :  { %v3957_v18 = vpop.f32.mrb[132].mxu0 }
 0xfc0   :  { %v3963_v58 = vadd.f32 %v3957_v18, %v10054_v8  ;;  %v6788_v28 = vpop.f32.mrb[133].mxu0 }
 0xfc1   :  { %v3960_v57 = vpop.f32.mrb[134].mxu0 }
 0xfc2   :  { %7338 = vtanh.f32 %v3963_v58  ;;  %v6789_v47 = vpop.f32.mrb[135].mxu0  ;;  %v6530_v37 = vmul.f32 -1.442695, %v3963_v58 }
 0xfc4   :  { %7340 = vpow2.f32 %v6530_v37 }
 0xfcc   :  { %v7339_v4 = vpop.eup %7338 }
 0xfcd   :  { %3973 = vrot.lane.b32.xlu0 %v7339_v4, %s7549_s29 }
 0xfce   :  { %v7341_v25 = vpop.eup %7340 }
 0xfcf   :  { %v3967_v31 = vadd.f32 1.0, %v7341_v25  ;;  %v7298_v25 = vld [vmem:[%s10702_s2 + $0x60] sm:$0xff]  }
 0xfd0   :  { %6814 = vmatprep.subr.bf16.mxu0 %v7298_v25 }
 0xfd1   :  { %7342 = vrcp.f32 %v3967_v31 }
 0xfdb   :  { %v7343_v7 = vpop.eup %7342 }
 0xfdc   :  { %v3971_v34 = vmul.f32 %v7343_v7, %v3904_v43 }
0x103f   :  { %v3974_v13 = vpop.permute.xlu0 %3973 }
0x1040   :  { %v3976_v42 = vmul.f32 %v7343_v7, %v3974_v13 }
0x1042   :  { %3978 = vrot.lane.b32.xlu1 %v3976_v42, %s7550_s30 }
0x10b4   :  { %v3979_v54 = vpop.permute.xlu1 %3978 }
0x10b5   :  { %v3981_v8 = vadd.f32 %v3979_v54, %v3971_v34 }
0x10b7   :  { %7344 = vtanh.f32 %v3981_v8 }
0x10c1   :  { %v7345_v45 = vpop.eup %7344 }
0x10c2   :  { %3984 = vrot.lane.b32.xlu0 %v7345_v45, %s7549_s29 }
0x1134   :  { %v3985_v17 = vpop.permute.xlu0 %3984 }
0x1135   :  { %v10125_v12 = vmul.f32 %v7343_v7, %v3985_v17 }
0x1137   :  { %v3993_v52 = vpack.c.bf16 %v10125_v12, %v10125_v12 }
0x1139   :  { %3995 = vrot.lane.b32.xlu1 %v3993_v52, %s7550_s30  ;;  %v10182_v52 = vld [vmem:[%s10702_s2 + $0x70] sm:$0xff]  }
0x11ab   :  { %v3996_v24 = vpop.permute.xlu1 %3995 }
0x11ac   :  { %6795 = vmatmul.mubr.msk.bf16.vlgmr.msra.gmra.mrb[148].mxu1 %vm639_vm0, %v3996_v24  ;;  %v10190_v24 = vld [vmem:[%s10702_s2 + $0x78] sm:$0xff]  }
0x11ad   :  { %6807 = vmatpush3.bf16.msra.mxu1 %v9936_v44  ;;  %6810 = vmatprep.mubr.msk.bf16.mxu1 %vm7548_vm1, %v7547_v15 }
0x11ae   :  { %6808 = vmatprep.subr.bf16.mxu1 %v7547_v15 }
0x11b1   :  { %6809 = vmatpush3.bf16.msra.mxu1 %v9946_v23 }
0x11b2   :  { %6826 = vmatprep.subr.bf16.mxu1 %v7547_v15 }
0x127f   :  { %v4034_v9 = vpop.f32.mrb[148].mxu1 }
0x1280   :  { %v4040_v61 = vadd.f32 %v4034_v9, %v10058_v26  ;;  %v6796_v48 = vpop.f32.mrb[149].mxu1 }
0x1281   :  { %v4037_v59 = vpop.f32.mrb[150].mxu1 }
0x1282   :  { %7346 = vtanh.f32 %v4040_v61  ;;  %v6797_v38 = vpop.f32.mrb[151].mxu1  ;;  %v6532_v44 = vmul.f32 -1.442695, %v4040_v61 }
0x1284   :  { %7348 = vpow2.f32 %v6532_v44 }
0x128c   :  { %v7347_v20 = vpop.eup %7346 }
0x128d   :  { %4050 = vrot.lane.b32.xlu0 %v7347_v20, %s7549_s29 }
0x128e   :  { %v7349_v46 = vpop.eup %7348 }
0x128f   :  { %v4044_v1 = vadd.f32 1.0, %v7349_v46 }
0x1291   :  { %7350 = vrcp.f32 %v4044_v1 }
0x129b   :  { %v7351_v50 = vpop.eup %7350 }
0x129c   :  { %v4048_v62 = vmul.f32 %v7351_v50, %v3981_v8 }
0x12ff   :  { %v4051_v3 = vpop.permute.xlu0 %4050 }
0x1300   :  { %v4053_v23 = vmul.f32 %v7351_v50, %v4051_v3  ;;  %v10218_v3 = vld [vmem:[%s10703_s3 + $0x1] ss:$0 sm:$0xff] }
0x1302   :  { %4055 = vrot.lane.b32.xlu1 %v4053_v23, %s7550_s30 }
0x1374   :  { %v4056_v21 = vpop.permute.xlu1 %4055 }
0x1375   :  { %v4058_v26 = vadd.f32 %v4056_v21, %v4048_v62 }
0x1377   :  { %7352 = vtanh.f32 %v4058_v26 }
0x1381   :  { %v7353_v63 = vpop.eup %7352 }
0x1382   :  { %4061 = vrot.lane.b32.xlu0 %v7353_v63, %s7549_s29 }
0x13f4   :  { %v4062_v10 = vpop.permute.xlu0 %4061 }
0x13f5   :  { %v10141_v0 = vmul.f32 %v7351_v50, %v4062_v10 }
0x13f7   :  { %v4070_v51 = vpack.c.bf16 %v10141_v0, %v10141_v0 }
0x13f9   :  { %4072 = vrot.lane.b32.xlu1 %v4070_v51, %s7550_s30 }
0x146b   :  { %v4073_v5 = vpop.permute.xlu1 %4072 }
0x146c   :  { %6803 = vmatmul.mubr.msk.bf16.vlgmr.msra.gmra.mrb[136].mxu0 %vm639_vm0, %v4073_v5 }
0x146d   :  { %6815 = vmatpush3.bf16.msra.mxu0 %v7298_v25 }
0x153f   :  { %v4111_v55 = vpop.f32.mrb[136].mxu0 }
0x1540   :  { %v4117_v22 = vadd.f32 %v4111_v55, %v10052_v27  ;;  %v6804_v11 = vpop.f32.mrb[137].mxu0 }
0x1541   :  { %v4114_v16 = vpop.f32.mrb[138].mxu0 }
0x1542   :  { %7354 = vtanh.f32 %v4117_v22  ;;  %v6805_v43 = vpop.f32.mrb[139].mxu0  ;;  %v6534_v41 = vmul.f32 -1.442695, %v4117_v22 }
0x1544   :  { %7356 = vpow2.f32 %v6534_v41 }
0x154c   :  { %v7355_v36 = vpop.eup %7354 }
0x154d   :  { %4127 = vrot.lane.b32.xlu0 %v7355_v36, %s7549_s29 }
0x154e   :  { %v7357_v39 = vpop.eup %7356 }
0x154f   :  { %v4121_v35 = vadd.f32 1.0, %v7357_v39 }
0x1551   :  { %7358 = vrcp.f32 %v4121_v35 }
0x155b   :  { %v7359_v18 = vpop.eup %7358 }
0x155c   :  { %v4125_v27 = vmul.f32 %v7359_v18, %v4058_v26 }
0x15bf   :  { %v4128_v58 = vpop.permute.xlu0 %4127 }
0x15c0   :  { %v4130_v28 = vmul.f32 %v7359_v18, %v4128_v58 }
0x15c2   :  { %4132 = vrot.lane.b32.xlu1 %v4130_v28, %s7550_s30 }
0x15c6   :  { %3681 = vrot.lane.b32.xlu1 %v10063_v40, %s7550_s30  ;;  %v7299_v40 = vld [vmem:[%s10702_s2 + $0x68] sm:$0xff]  }
0x15c7   :  { %6816 = vmatprep.subr.bf16.mxu0 %v7299_v40 }
0x15c8   :  { %6817 = vmatpush3.bf16.msra.mxu0 %v7299_v40 }
0x15c9   :  { %6842 = vmatprep.subr.bf16.mxu0 %v7547_v15 }
0x15ca   :  { %3835 = vrot.lane.b32.xlu1 %v10094_v14, %s7550_s30 }
0x1634   :  { %v4133_v57 = vpop.permute.xlu1 %4132 }
0x1635   :  { %v10154_v47 = vadd.f32 %v4133_v57, %v4125_v27 }
0x1637   :  { %7360 = vtanh.f32 %v10154_v47 }
0x1638   :  { %v3682_v4 = vpop.permute.xlu1 %3681 }
0x1639   :  { %3684 = vst.msk [vmem:[#allocation2] sm:$0xff] %vm639_vm0, %v3682_v4 }
0x163c   :  { %v3836_v37 = vpop.permute.xlu1 %3835 }
0x163d   :  { %3838 = vst.msk [vmem:[#allocation2 + $0x10] sm:$0xff] %vm639_vm0, %v3836_v37 }
0x1640   :  { %v4232_v54 = vld [vmem:[#allocation2] sm:$0xff] }
0x1641   :  { %v7361_v14 = vpop.eup %7360 }
0x1642   :  { %4138 = vrot.lane.b32.xlu0 %v7361_v14, %s7549_s29 }
0x1646   :  { %3758 = vrot.lane.b32.xlu0 %v10078_v29, %s7550_s30 }
0x164a   :  { %3912 = vrot.lane.b32.xlu0 %v10110_v30, %s7550_s30  ;;  %v4234_v30 = vld [vmem:[#allocation2 + $0x10] sm:$0xff] }
0x16b4   :  { %v4139_v31 = vpop.permute.xlu0 %4138 }
0x16b5   :  { %v10171_v7 = vmul.f32 %v7359_v18, %v4139_v31 }
0x16b7   :  { %v4147_v13 = vpack.c.bf16 %v10171_v7, %v10171_v7 }
0x16b8   :  { %v3759_v42 = vpop.permute.xlu0 %3758 }
0x16b9   :  { %3761 = vst.msk [vmem:[#allocation2 + $0x8] sm:$0xff] %vm639_vm0, %v3759_v42  ;;  %4149 = vrot.lane.b32.xlu1 %v4147_v13, %s7550_s30 }
0x16bc   :  { %v3913_v34 = vpop.permute.xlu0 %3912 }
0x16bd   :  { %3915 = vst.msk [vmem:[#allocation2 + $0x18] sm:$0xff] %vm639_vm0, %v3913_v34 }
0x16c0   :  { %v4233_v8 = vld [vmem:[#allocation2 + $0x8] sm:$0xff] }
0x16c1   :  { %v4240_v29 = vpack.c.bf16 %v4233_v8, %v4232_v54 }
0x16c3   :  { %6818 = vmatprep.mubr.msk.bf16.mxu0 %vm639_vm0, %v4240_v29 }
0x16c4   :  { %v4235_v45 = vld [vmem:[#allocation2 + $0x18] sm:$0xff] }
0x16c5   :  { %v4241_v17 = vpack.c.bf16 %v4235_v45, %v4234_v30 }
0x16c7   :  { %6819 = vmatmul.mubr.msk.bf16.vlgmr.msra.gmra.mrb[140].mxu0 %vm639_vm0, %v4241_v17 }
0x16c8   :  { %6843 = vmatpush3.bf16.msra.mxu0 %v10182_v52 }
0x16c9   :  { %6844 = vmatprep.subr.bf16.mxu0 %v7547_v15 }
0x16cc   :  { %6845 = vmatpush3.bf16.msra.mxu0 %v10190_v24 }
0x16cd   :  { %6858 = vmatprep.subr.bf16.mxu0 %v7547_v15 }
0x172b   :  { %v4150_v9 = vpop.permute.xlu1 %4149 }
0x172c   :  { %6811 = vmatmul.mubr.msk.bf16.vlgmr.msra.gmra.mrb[152].mxu1 %vm639_vm0, %v4150_v9 }
0x172d   :  { %6827 = vmatpush3.bf16.msra.mxu1 %v10182_v52  ;;  %6830 = vmatprep.mubr.msk.bf16.mxu1 %vm7548_vm1, %v7547_v15 }
0x172e   :  { %6828 = vmatprep.subr.bf16.mxu1 %v7547_v15 }
0x1731   :  { %6829 = vmatpush3.bf16.msra.mxu1 %v10190_v24 }
0x1732   :  { %6834 = vmatprep.subr.bf16.mxu1 %v7547_v15 }
0x1734   :  { %6831 = vmatmul.mubr.bf16.vlgmr.msra.gmra.mrb[156].mxu1 %v11125_v19 }
0x1735   :  { %6835 = vmatpush3.bf16.msra.mxu1 %v10182_v52  ;;  %6838 = vmatprep.mubr.msk.bf16.mxu1 %vm7548_vm1, %v7547_v15 }
0x1736   :  { %6836 = vmatprep.subr.bf16.mxu1 %v7547_v15 }
0x1739   :  { %6837 = vmatpush3.bf16.msra.mxu1 %v10190_v24 }
0x173a   :  { %6850 = vmatprep.subr.bf16.mxu1 %v7547_v15 }
0x179a   :  { %v10208_v61 = vpop.f32.mrb[140].mxu0 }
0x179b   :  { %v4307_v48 = vpop.f32.mrb[141].mxu0 }
0x179c   :  { %v10210_v59 = vpop.f32.mrb[142].mxu0  ;;  %v4308_v23 = vadd.f32 %v10218_v3, %v4307_v48 }
0x179d   :  { %v10212_v38 = vpop.f32.mrb[143].mxu0 }
0x179e   :  { %v4311_v29 = vadd.f32 %v10218_v3, %v10212_v38 }
0x17ff   :  { %v4188_v20 = vpop.f32.mrb[152].mxu1 }
0x1800   :  { %v4194_v44 = vadd.f32 %v4188_v20, %v10056_v32  ;;  %v6812_v46 = vpop.f32.mrb[153].mxu1 }
0x1801   :  { %v4191_v1 = vpop.f32.mrb[154].mxu1 }
0x1802   :  { %v6813_v50 = vpop.f32.mrb[155].mxu1  ;;  %v6536_v18 = vmul.f32 -1.442695, %v4194_v44 }
0x1807   :  { %v4384_v62 = vpop.f32.mrb[156].mxu1 }
0x1808   :  { %v4390_v21 = vadd.f32 %v4384_v62, %v4308_v23  ;;  %v6832_v26 = vpop.f32.mrb[157].mxu1 }
0x1809   :  { %v4387_v63 = vpop.f32.mrb[158].mxu1 }
0x180a   :  { %7362 = vtanh.f32 %v4390_v21  ;;  %v6833_v10 = vpop.f32.mrb[159].mxu1  ;;  %v6546_v32 = vmul.f32 -1.442695, %v4390_v21 }
0x180c   :  { %7364 = vpow2.f32 %v6546_v32 }
0x1814   :  { %v7363_v51 = vpop.eup %7362 }
0x1815   :  { %4400 = vrot.lane.b32.xlu0 %v7363_v51, %s7549_s29 }
0x1816   :  { %v7365_v5 = vpop.eup %7364 }
0x1817   :  { %v4394_v55 = vadd.f32 1.0, %v7365_v5 }
0x1819   :  { %7366 = vrcp.f32 %v4394_v55 }
0x1823   :  { %v7367_v22 = vpop.eup %7366 }
0x1824   :  { %v4398_v43 = vmul.f32 0.0, %v7367_v22 }
0x1887   :  { %v4401_v11 = vpop.permute.xlu0 %4400 }
0x1888   :  { %v4403_v16 = vmul.f32 %v7367_v22, %v4401_v11 }
0x188a   :  { %4405 = vrot.lane.b32.xlu1 %v4403_v16, %s7550_s30 }
0x18fc   :  { %v4406_v36 = vpop.permute.xlu1 %4405 }
0x18fd   :  { %v4408_v41 = vadd.f32 %v4406_v36, %v4398_v43 }
0x18ff   :  { %7368 = vtanh.f32 %v4408_v41 }
0x1900   :  { %7370 = vtanh.f32 %v4194_v44 }
0x1901   :  { %7372 = vpow2.f32 %v6536_v18 }
0x1909   :  { %v7369_v39 = vpop.eup %7368 }
0x190a   :  { %4411 = vrot.lane.b32.xlu0 %v7369_v39, %s7549_s29  ;;  %v7371_v35 = vpop.eup %7370 }
0x190b   :  { %v7373_v58 = vpop.eup %7372 }
0x190c   :  { %v4198_v28 = vadd.f32 1.0, %v7373_v58  ;;  %v4316_v58 = vadd.f32 %v10208_v61, %v10218_v3 }
0x190e   :  { %4204 = vrot.lane.b32.xlu0 %v7371_v35, %s7549_s29  ;;  %7374 = vrcp.f32 %v4198_v28 }
0x1918   :  { %v7375_v37 = vpop.eup %7374 }
0x1919   :  { %v4202_v31 = vmul.f32 %v7375_v37, %v10154_v47 }
0x197c   :  { %v4412_v27 = vpop.permute.xlu0 %4411 }
0x197d   :  { %v10225_v57 = vmul.f32 %v7367_v22, %v4412_v27 }
0x197f   :  { %v4420_v4 = vpack.c.bf16 %v10225_v57, %v10225_v57 }
0x1980   :  { %v4205_v25 = vpop.permute.xlu0 %4204 }
0x1981   :  { %v4207_v40 = vmul.f32 %v7375_v37, %v4205_v25  ;;  %4422 = vrot.lane.b32.xlu1 %v4420_v4, %s7550_s30 }
0x1983   :  { %4209 = vrot.lane.b32.xlu0 %v4207_v40, %s7550_s30 }
0x19f3   :  { %v4423_v14 = vpop.permute.xlu1 %4422 }
0x19f4   :  { %6839 = vmatmul.mubr.msk.bf16.vlgmr.msra.gmra.mrb[160].mxu1 %vm639_vm0, %v4423_v14 }
0x19f5   :  { %v4210_v13 = vpop.permute.xlu0 %4209  ;;  %6851 = vmatpush3.bf16.msra.mxu1 %v10182_v52  ;;  %6854 = vmatprep.mubr.msk.bf16.mxu1 %vm7548_vm1, %v7547_v15 }
0x19f6   :  { %v4212_v42 = vadd.f32 %v4210_v13, %v4202_v31  ;;  %6852 = vmatprep.subr.bf16.mxu1 %v7547_v15 }
0x19f8   :  { %7376 = vtanh.f32 %v4212_v42 }
0x19f9   :  { %6853 = vmatpush3.bf16.msra.mxu1 %v10190_v24 }
0x19fa   :  { %6866 = vmatprep.subr.bf16.mxu1 %v7547_v15 }
0x1a02   :  { %v7377_v34 = vpop.eup %7376 }
0x1a03   :  { %4215 = vrot.lane.b32.xlu0 %v7377_v34, %s7549_s29 }
0x1a07   :  { %3989 = vrot.lane.b32.xlu0 %v10125_v12, %s7550_s30 }
0x1a0b   :  { %4143 = vrot.lane.b32.xlu0 %v10171_v7, %s7550_s30 }
0x1a75   :  { %v4216_v47 = vpop.permute.xlu0 %4215 }
0x1a76   :  { %v4218_v26 = vmul.f32 %v7375_v37, %v4216_v47 }
0x1a79   :  { %v3990_v54 = vpop.permute.xlu0 %3989 }
0x1a7a   :  { %3992 = vst.msk [vmem:[#allocation2 + $0x20] sm:$0xff] %vm639_vm0, %v3990_v54 }
0x1a7d   :  { %v4144_v8 = vpop.permute.xlu0 %4143 }
0x1a7e   :  { %4146 = vst.msk [vmem:[#allocation2 + $0x30] sm:$0xff] %vm639_vm0, %v4144_v8 }
0x1a81   :  { %v4236_v55 = vld [vmem:[#allocation2 + $0x20] sm:$0xff] }
0x1a85   :  { %v4238_v11 = vld [vmem:[#allocation2 + $0x30] sm:$0xff] }
0x1ac7   :  { %v4461_v30 = vpop.f32.mrb[160].mxu1 }
0x1ac8   :  { %v4467_v45 = vadd.f32 %v4461_v30, %v4311_v29  ;;  %v6840_v17 = vpop.f32.mrb[161].mxu1 }
0x1ac9   :  { %v4464_v9 = vpop.f32.mrb[162].mxu1 }
0x1aca   :  { %7378 = vtanh.f32 %v4467_v45  ;;  %v6841_v48 = vpop.f32.mrb[163].mxu1  ;;  %v6548_v7 = vmul.f32 -1.442695, %v4467_v45 }
0x1acb   :  { %v4319_v48 = vadd.f32 %v10210_v59, %v10218_v3 }
0x1acc   :  { %7380 = vpow2.f32 %v6548_v7 }
0x1ad4   :  { %v7379_v12 = vpop.eup %7378 }
0x1ad5   :  { %4477 = vrot.lane.b32.xlu1 %v7379_v12, %s7549_s29 }
0x1ad6   :  { %v7381_v20 = vpop.eup %7380 }
0x1ad7   :  { %v4471_v44 = vadd.f32 1.0, %v7381_v20 }
0x1ad9   :  { %7382 = vrcp.f32 %v4471_v44 }
0x1ae3   :  { %v7383_v46 = vpop.eup %7382 }
0x1ae4   :  { %v4475_v38 = vmul.f32 %v7383_v46, %v4408_v41 }
0x1b47   :  { %v4478_v1 = vpop.permute.xlu1 %4477 }
0x1b48   :  { %v4480_v50 = vmul.f32 %v7383_v46, %v4478_v1 }
0x1b4a   :  { %4482 = vrot.lane.b32.xlu1 %v4480_v50, %s7550_s30 }
0x1bbc   :  { %v4483_v23 = vpop.permute.xlu1 %4482 }
0x1bbd   :  { %v4485_v62 = vadd.f32 %v4483_v23, %v4475_v38 }
0x1bbf   :  { %7384 = vtanh.f32 %v4485_v62 }
0x1bc9   :  { %v7385_v21 = vpop.eup %7384 }
0x1bca   :  { %4488 = vrot.lane.b32.xlu1 %v7385_v21, %s7549_s29 }
0x1bce   :  { %4066 = vrot.lane.b32.xlu1 %v10141_v0, %s7550_s30 }
0x1bd2   :  { %4220 = vrot.lane.b32.xlu1 %v4218_v26, %s7550_s30 }
0x1c3c   :  { %v4489_v63 = vpop.permute.xlu1 %4488 }
0x1c3d   :  { %v10254_v10 = vmul.f32 %v7383_v46, %v4489_v63 }
0x1c3f   :  { %v4497_v51 = vpack.c.bf16 %v10254_v10, %v10254_v10 }
0x1c40   :  { %v4067_v32 = vpop.permute.xlu1 %4066 }
0x1c41   :  { %4069 = vst.msk [vmem:[#allocation2 + $0x28] sm:$0xff] %vm639_vm0, %v4067_v32  ;;  %4499 = vrot.lane.b32.xlu0 %v4497_v51, %s7550_s30 }
0x1c44   :  { %v4221_v5 = vpop.permute.xlu1 %4220 }
0x1c45   :  { %4223 = vst.msk [vmem:[#allocation2 + $0x38] sm:$0xff] %vm639_vm0, %v4221_v5 }
0x1c48   :  { %v4237_v22 = vld [vmem:[#allocation2 + $0x28] sm:$0xff] }
0x1c49   :  { %v4242_v0 = vpack.c.bf16 %v4237_v22, %v4236_v55 }
0x1c4b   :  { %6822 = vmatprep.mubr.msk.bf16.mxu0 %vm639_vm0, %v4242_v0 }
0x1c4c   :  { %v4239_v16 = vld [vmem:[#allocation2 + $0x38] sm:$0xff] }
0x1c4d   :  { %v4243_v43 = vpack.c.bf16 %v4239_v16, %v4238_v11 }
0x1c4f   :  { %6823 = vmatmul.mubr.msk.bf16.gmra.mrb[144].mxu0 %vm639_vm0, %v4243_v43 }
0x1c50   :  { %6846 = vmatprep.mubr.msk.bf16.mxu0 %vm7548_vm1, %v7547_v15 }
0x1cb3   :  { %v4500_v36 = vpop.permute.xlu0 %4499 }
0x1cb4   :  { %6847 = vmatmul.mubr.msk.bf16.vlgmr.msra.gmra.mrb[148].mxu0 %vm639_vm0, %v4500_v36 }
0x1cb5   :  { %6859 = vmatpush3.bf16.msra.mxu0 %v10182_v52  ;;  %6862 = vmatprep.mubr.msk.bf16.mxu0 %vm7548_vm1, %v7547_v15 }
0x1cb6   :  { %6860 = vmatprep.subr.bf16.mxu0 %v7547_v15 }
0x1cb9   :  { %6861 = vmatpush3.bf16.msra.mxu0 %v10190_v24 }
0x1cba   :  { %6874 = vmatprep.subr.bf16.mxu0 %v7547_v15 }
0x1d22   :  { %v10272_v41 = vpop.f32.mrb[144].mxu0 }
0x1d23   :  { %v10274_v39 = vpop.f32.mrb[145].mxu0 }
0x1d24   :  { %v10276_v35 = vpop.f32.mrb[146].mxu0  ;;  %v4324_v11 = vadd.f32 %v10218_v3, %v10274_v39 }
0x1d25   :  { %v10278_v18 = vpop.f32.mrb[147].mxu0 }
0x1d87   :  { %v4538_v28 = vpop.f32.mrb[148].mxu0 }
0x1d88   :  { %v4544_v27 = vadd.f32 %v4538_v28, %v4316_v58  ;;  %v6848_v4 = vpop.f32.mrb[149].mxu0 }
0x1d89   :  { %v4541_v37 = vpop.f32.mrb[150].mxu0 }
0x1d8a   :  { %7386 = vtanh.f32 %v4544_v27  ;;  %v6849_v25 = vpop.f32.mrb[151].mxu0  ;;  %v6550_v14 = vmul.f32 -1.442695, %v4544_v27 }
0x1d8c   :  { %7388 = vpow2.f32 %v6550_v14 }
0x1d94   :  { %v7387_v40 = vpop.eup %7386 }
0x1d95   :  { %4554 = vrot.lane.b32.xlu1 %v7387_v40, %s7549_s29 }
0x1d96   :  { %v7389_v31 = vpop.eup %7388 }
0x1d97   :  { %v4548_v13 = vadd.f32 1.0, %v7389_v31 }
0x1d99   :  { %7390 = vrcp.f32 %v4548_v13 }
0x1da3   :  { %v7391_v42 = vpop.eup %7390 }
0x1da4   :  { %v4552_v61 = vmul.f32 %v7391_v42, %v4485_v62 }
0x1e07   :  { %v4555_v34 = vpop.permute.xlu1 %4554 }
0x1e08   :  { %v4557_v47 = vmul.f32 %v7391_v42, %v4555_v34 }
0x1e0a   :  { %4559 = vrot.lane.b32.xlu0 %v4557_v47, %s7550_s30 }
0x1e7c   :  { %v4560_v54 = vpop.permute.xlu0 %4559 }
0x1e7d   :  { %v4562_v8 = vadd.f32 %v4560_v54, %v4552_v61 }
0x1e7f   :  { %7392 = vtanh.f32 %v4562_v8 }
0x1e89   :  { %v7393_v29 = vpop.eup %7392 }
0x1e8a   :  { %4565 = vrot.lane.b32.xlu1 %v7393_v29, %s7549_s29  ;;  %v4327_v29 = vadd.f32 %v10218_v3, %v10278_v18 }
0x1efc   :  { %v4566_v30 = vpop.permute.xlu1 %4565 }
0x1efd   :  { %v10285_v45 = vmul.f32 %v7391_v42, %v4566_v30 }
0x1eff   :  { %v4574_v17 = vpack.c.bf16 %v10285_v45, %v10285_v45 }
0x1f01   :  { %4576 = vrot.lane.b32.xlu0 %v4574_v17, %s7550_s30 }
0x1f73   :  { %v4577_v9 = vpop.permute.xlu0 %4576 }
0x1f74   :  { %6855 = vmatmul.mubr.msk.bf16.vlgmr.msra.gmra.mrb[164].mxu1 %vm639_vm0, %v4577_v9 }
0x1f75   :  { %6867 = vmatpush3.bf16.msra.mxu1 %v10182_v52  ;;  %6870 = vmatprep.mubr.msk.bf16.mxu1 %vm7548_vm1, %v7547_v15 }
0x1f76   :  { %6868 = vmatprep.subr.bf16.mxu1 %v7547_v15 }
0x1f79   :  { %6869 = vmatpush3.bf16.msra.mxu1 %v10190_v24 }
0x1f7a   :  { %6882 = vmatprep.subr.bf16.mxu1 %v7547_v15 }
0x2047   :  { %v4615_v12 = vpop.f32.mrb[164].mxu1 }
0x2048   :  { %v4621_v7 = vadd.f32 %v4615_v12, %v4319_v48  ;;  %v6856_v20 = vpop.f32.mrb[165].mxu1 }
0x2049   :  { %v4618_v44 = vpop.f32.mrb[166].mxu1 }
0x204a   :  { %7394 = vtanh.f32 %v4621_v7  ;;  %v6857_v46 = vpop.f32.mrb[167].mxu1  ;;  %v6552_v50 = vmul.f32 -1.442695, %v4621_v7 }
0x204c   :  { %7396 = vpow2.f32 %v6552_v50 }
0x2054   :  { %v7395_v1 = vpop.eup %7394 }
0x2055   :  { %4631 = vrot.lane.b32.xlu1 %v7395_v1, %s7549_s29 }
0x2056   :  { %v7397_v38 = vpop.eup %7396 }
0x2057   :  { %v4625_v23 = vadd.f32 1.0, %v7397_v38 }
0x2059   :  { %7398 = vrcp.f32 %v4625_v23 }
0x2063   :  { %v7399_v62 = vpop.eup %7398 }
0x2064   :  { %v4629_v59 = vmul.f32 %v7399_v62, %v4562_v8 }
0x20c7   :  { %v4632_v21 = vpop.permute.xlu1 %4631 }
0x20c8   :  { %v4634_v26 = vmul.f32 %v7399_v62, %v4632_v21 }
0x20ca   :  { %4636 = vrot.lane.b32.xlu0 %v4634_v26, %s7550_s30 }
0x213c   :  { %v4637_v63 = vpop.permute.xlu0 %4636 }
0x213d   :  { %v4639_v51 = vadd.f32 %v4637_v63, %v4629_v59  ;;  %v4332_v63 = vadd.f32 %v10272_v41, %v10218_v3 }
0x213f   :  { %7400 = vtanh.f32 %v4639_v51 }
0x2149   :  { %v7401_v32 = vpop.eup %7400 }
0x214a   :  { %4642 = vrot.lane.b32.xlu1 %v7401_v32, %s7549_s29 }
0x21bc   :  { %v4643_v5 = vpop.permute.xlu1 %4642 }
0x21bd   :  { %v10302_v55 = vmul.f32 %v7399_v62, %v4643_v5 }
0x21bf   :  { %v4651_v22 = vpack.c.bf16 %v10302_v55, %v10302_v55 }
0x21c1   :  { %4653 = vrot.lane.b32.xlu0 %v4651_v22, %s7550_s30 }
0x2233   :  { %v4654_v0 = vpop.permute.xlu0 %4653 }
0x2234   :  { %6863 = vmatmul.mubr.msk.bf16.vlgmr.msra.gmra.mrb[152].mxu0 %vm639_vm0, %v4654_v0 }
0x2235   :  { %6875 = vmatpush3.bf16.msra.mxu0 %v10182_v52  ;;  %6878 = vmatprep.mubr.msk.bf16.mxu0 %vm7548_vm1, %v7547_v15 }
0x2236   :  { %6876 = vmatprep.subr.bf16.mxu0 %v7547_v15 }
0x2239   :  { %6877 = vmatpush3.bf16.msra.mxu0 %v10190_v24 }
0x2307   :  { %v4692_v16 = vpop.f32.mrb[152].mxu0 }
0x2308   :  { %v4698_v43 = vadd.f32 %v4692_v16, %v4324_v11  ;;  %v6864_v36 = vpop.f32.mrb[153].mxu0 }
0x2309   :  { %v4695_v58 = vpop.f32.mrb[154].mxu0 }
0x230a   :  { %7402 = vtanh.f32 %v4698_v43  ;;  %v6865_v28 = vpop.f32.mrb[155].mxu0  ;;  %v6554_v4 = vmul.f32 -1.442695, %v4698_v43 }
0x230c   :  { %7404 = vpow2.f32 %v6554_v4 }
0x2314   :  { %v7403_v27 = vpop.eup %7402 }
0x2315   :  { %4708 = vrot.lane.b32.xlu1 %v7403_v27, %s7549_s29 }
0x2316   :  { %v7405_v37 = vpop.eup %7404 }
0x2317   :  { %v4702_v25 = vadd.f32 1.0, %v7405_v37 }
0x2319   :  { %7406 = vrcp.f32 %v4702_v25 }
0x2323   :  { %v7407_v40 = vpop.eup %7406 }
0x2324   :  { %v4706_v39 = vmul.f32 %v7407_v40, %v4639_v51 }
0x2387   :  { %v4709_v14 = vpop.permute.xlu1 %4708 }
0x2388   :  { %v4711_v31 = vmul.f32 %v7407_v40, %v4709_v14  ;;  %v7302_v14 = vld [vmem:[%s10702_s2 + $0x80] sm:$0xff]  }
0x2389   :  { %6890 = vmatprep.subr.bf16.mxu0 %v7302_v14 }
0x238a   :  { %4713 = vrot.lane.b32.xlu0 %v4711_v31, %s7550_s30 }
0x23fc   :  { %v4714_v13 = vpop.permute.xlu0 %4713 }
0x23fd   :  { %v4716_v42 = vadd.f32 %v4714_v13, %v4706_v39 }
0x23ff   :  { %7408 = vtanh.f32 %v4716_v42 }
0x2409   :  { %v7409_v34 = vpop.eup %7408 }
0x240a   :  { %4719 = vrot.lane.b32.xlu1 %v7409_v34, %s7549_s29 }
0x247c   :  { %v4720_v47 = vpop.permute.xlu1 %4719 }
0x247d   :  { %v10318_v61 = vmul.f32 %v7407_v40, %v4720_v47 }
0x247f   :  { %v4728_v54 = vpack.c.bf16 %v10318_v61, %v10318_v61 }
0x2481   :  { %4730 = vrot.lane.b32.xlu0 %v4728_v54, %s7550_s30 }
0x24f3   :  { %v4731_v8 = vpop.permute.xlu0 %4730 }
0x24f4   :  { %6871 = vmatmul.mubr.msk.bf16.vlgmr.msra.gmra.mrb[168].mxu1 %vm639_vm0, %v4731_v8 }
0x24f5   :  { %6883 = vmatpush3.bf16.msra.mxu1 %v10182_v52  ;;  %6886 = vmatprep.mubr.msk.bf16.mxu1 %vm7548_vm1, %v7547_v15 }
0x24f6   :  { %6884 = vmatprep.subr.bf16.mxu1 %v7547_v15 }
0x24f9   :  { %6885 = vmatpush3.bf16.msra.mxu1 %v10190_v24 }
0x24fa   :  { %6902 = vmatprep.subr.bf16.mxu1 %v7547_v15 }
0x25c7   :  { %v4769_v30 = vpop.f32.mrb[168].mxu1 }
0x25c8   :  { %v4775_v17 = vadd.f32 %v4769_v30, %v4327_v29  ;;  %v6872_v9 = vpop.f32.mrb[169].mxu1  ;;  %v10377_v30 = vld [vmem:[%s10702_s2 + $0x90] sm:$0xff]  }
0x25c9   :  { %v4772_v48 = vpop.f32.mrb[170].mxu1 }
0x25ca   :  { %7410 = vtanh.f32 %v4775_v17  ;;  %v6873_v12 = vpop.f32.mrb[171].mxu1  ;;  %v6556_v52 = vmul.f32 -1.442695, %v4775_v17  ;;  %v10385_v17 = vld [vmem:[%s10702_s2 + $0x98] sm:$0xff]  }
0x25cc   :  { %7412 = vpow2.f32 %v6556_v52 }
0x25d4   :  { %v7411_v7 = vpop.eup %7410 }
0x25d5   :  { %4785 = vrot.lane.b32.xlu1 %v7411_v7, %s7549_s29 }
0x25d6   :  { %v7413_v20 = vpop.eup %7412 }
0x25d7   :  { %v4779_v44 = vadd.f32 1.0, %v7413_v20 }
0x25d9   :  { %7414 = vrcp.f32 %v4779_v44 }
0x25e3   :  { %v7415_v24 = vpop.eup %7414 }
0x25e4   :  { %v4783_v18 = vmul.f32 %v7415_v24, %v4716_v42 }
0x2647   :  { %v4786_v46 = vpop.permute.xlu1 %4785 }
0x2648   :  { %v4788_v1 = vmul.f32 %v7415_v24, %v4786_v46 }
0x264a   :  { %4790 = vrot.lane.b32.xlu0 %v4788_v1, %s7550_s30 }
0x26bc   :  { %v4791_v50 = vpop.permute.xlu0 %4790 }
0x26bd   :  { %v4793_v38 = vadd.f32 %v4791_v50, %v4783_v18  ;;  %v10414_v18 = vld [vmem:[%s10703_s3 + $0x2] ss:$0 sm:$0xff] }
0x26bf   :  { %7416 = vtanh.f32 %v4793_v38 }
0x26c9   :  { %v7417_v23 = vpop.eup %7416 }
0x26ca   :  { %4796 = vrot.lane.b32.xlu1 %v7417_v23, %s7549_s29 }
0x273c   :  { %v4797_v62 = vpop.permute.xlu1 %4796 }
0x273d   :  { %v10335_v21 = vmul.f32 %v7415_v24, %v4797_v62 }
0x273f   :  { %v4805_v26 = vpack.c.bf16 %v10335_v21, %v10335_v21 }
0x2741   :  { %4807 = vrot.lane.b32.xlu0 %v4805_v26, %s7550_s30 }
0x27b3   :  { %v4808_v59 = vpop.permute.xlu0 %4807 }
0x27b4   :  { %6879 = vmatmul.mubr.msk.bf16.vlgmr.msra.gmra.mrb[156].mxu0 %vm639_vm0, %v4808_v59 }
0x27b5   :  { %6891 = vmatpush3.bf16.msra.mxu0 %v7302_v14 }
0x2887   :  { %v4846_v51 = vpop.f32.mrb[156].mxu0 }
0x2888   :  { %v4852_v32 = vadd.f32 %v4846_v51, %v4332_v63  ;;  %v6880_v5 = vpop.f32.mrb[157].mxu0 }
0x2889   :  { %v4849_v22 = vpop.f32.mrb[158].mxu0 }
0x288a   :  { %7418 = vtanh.f32 %v4852_v32  ;;  %v6881_v0 = vpop.f32.mrb[159].mxu0  ;;  %v6558_v16 = vmul.f32 -1.442695, %v4852_v32 }
0x288c   :  { %7420 = vpow2.f32 %v6558_v16 }
0x2894   :  { %v7419_v11 = vpop.eup %7418 }
0x2895   :  { %4862 = vrot.lane.b32.xlu1 %v7419_v11, %s7549_s29 }
0x2896   :  { %v7421_v43 = vpop.eup %7420 }
0x2897   :  { %v4856_v36 = vadd.f32 1.0, %v7421_v43 }
0x2899   :  { %7422 = vrcp.f32 %v4856_v36 }
0x28a3   :  { %v7423_v58 = vpop.eup %7422 }
0x28a4   :  { %v4860_v41 = vmul.f32 %v7423_v58, %v4793_v38 }
0x2907   :  { %v4863_v28 = vpop.permute.xlu1 %4862 }
0x2908   :  { %v4865_v27 = vmul.f32 %v7423_v58, %v4863_v28 }
0x290a   :  { %4867 = vrot.lane.b32.xlu0 %v4865_v27, %s7550_s30 }
0x290e   :  { %4416 = vrot.lane.b32.xlu0 %v10225_v57, %s7550_s30  ;;  %v7303_v57 = vld [vmem:[%s10702_s2 + $0x88] sm:$0xff]  }
0x290f   :  { %6892 = vmatprep.subr.bf16.mxu0 %v7303_v57 }
0x2910   :  { %6893 = vmatpush3.bf16.msra.mxu0 %v7303_v57 }
0x2911   :  { %6918 = vmatprep.subr.bf16.mxu0 %v7547_v15 }
0x2912   :  { %4570 = vrot.lane.b32.xlu0 %v10285_v45, %s7550_s30 }
0x297c   :  { %v4868_v4 = vpop.permute.xlu0 %4867 }
0x297d   :  { %v10349_v37 = vadd.f32 %v4868_v4, %v4860_v41 }
0x297f   :  { %7424 = vtanh.f32 %v10349_v37 }
0x2980   :  { %v4417_v25 = vpop.permute.xlu0 %4416 }
0x2981   :  { %4419 = vst.msk [vmem:[#allocation3] sm:$0xff] %vm639_vm0, %v4417_v25 }
0x2984   :  { %v4571_v40 = vpop.permute.xlu0 %4570 }
0x2985   :  { %4573 = vst.msk [vmem:[#allocation3 + $0x10] sm:$0xff] %vm639_vm0, %v4571_v40 }
0x2988   :  { %v4967_v47 = vld [vmem:[#allocation3] sm:$0xff] }
0x2989   :  { %v7425_v45 = vpop.eup %7424 }
0x298a   :  { %4873 = vrot.lane.b32.xlu1 %v7425_v45, %s7549_s29 }
0x298e   :  { %4493 = vrot.lane.b32.xlu1 %v10254_v10, %s7550_s30 }
0x2992   :  { %4647 = vrot.lane.b32.xlu1 %v10302_v55, %s7550_s30  ;;  %v4969_v55 = vld [vmem:[#allocation3 + $0x10] sm:$0xff] }
0x29fc   :  { %v4874_v31 = vpop.permute.xlu1 %4873 }
0x29fd   :  { %v10366_v39 = vmul.f32 %v7423_v58, %v4874_v31 }
0x29ff   :  { %v4882_v13 = vpack.c.bf16 %v10366_v39, %v10366_v39 }
0x2a00   :  { %v4494_v42 = vpop.permute.xlu1 %4493 }
0x2a01   :  { %4496 = vst.msk [vmem:[#allocation3 + $0x8] sm:$0xff] %vm639_vm0, %v4494_v42  ;;  %4884 = vrot.lane.b32.xlu0 %v4882_v13, %s7550_s30 }
0x2a04   :  { %v4648_v34 = vpop.permute.xlu1 %4647 }
0x2a05   :  { %4650 = vst.msk [vmem:[#allocation3 + $0x18] sm:$0xff] %vm639_vm0, %v4648_v34 }
0x2a08   :  { %v4968_v54 = vld [vmem:[#allocation3 + $0x8] sm:$0xff] }
0x2a09   :  { %v4975_v10 = vpack.c.bf16 %v4968_v54, %v4967_v47 }
0x2a0b   :  { %6894 = vmatprep.mubr.msk.bf16.mxu0 %vm639_vm0, %v4975_v10 }
0x2a0c   :  { %v4970_v8 = vld [vmem:[#allocation3 + $0x18] sm:$0xff] }
0x2a0d   :  { %v4976_v29 = vpack.c.bf16 %v4970_v8, %v4969_v55 }
0x2a0f   :  { %6895 = vmatmul.mubr.msk.bf16.vlgmr.msra.gmra.mrb[160].mxu0 %vm639_vm0, %v4976_v29 }
0x2a10   :  { %6919 = vmatpush3.bf16.msra.mxu0 %v10377_v30 }
0x2a11   :  { %6920 = vmatprep.subr.bf16.mxu0 %v7547_v15 }
0x2a14   :  { %6921 = vmatpush3.bf16.msra.mxu0 %v10385_v17 }
0x2a15   :  { %6934 = vmatprep.subr.bf16.mxu0 %v7547_v15 }
0x2a73   :  { %v4885_v9 = vpop.permute.xlu0 %4884 }
0x2a74   :  { %6887 = vmatmul.mubr.msk.bf16.vlgmr.msra.gmra.mrb[172].mxu1 %vm639_vm0, %v4885_v9 }
0x2a75   :  { %6903 = vmatpush3.bf16.msra.mxu1 %v10377_v30  ;;  %6906 = vmatprep.mubr.msk.bf16.mxu1 %vm7548_vm1, %v7547_v15 }
0x2a76   :  { %6904 = vmatprep.subr.bf16.mxu1 %v7547_v15 }
0x2a79   :  { %6905 = vmatpush3.bf16.msra.mxu1 %v10385_v17 }
0x2a7a   :  { %6910 = vmatprep.subr.bf16.mxu1 %v7547_v15 }
0x2a7c   :  { %6907 = vmatmul.mubr.bf16.vlgmr.msra.gmra.mrb[176].mxu1 %v11125_v19  ;;  %v4335_v19 = vadd.f32 %v10276_v35, %v10218_v3 }
0x2a7d   :  { %6911 = vmatpush3.bf16.msra.mxu1 %v10377_v30  ;;  %6914 = vmatprep.mubr.msk.bf16.mxu1 %vm7548_vm1, %v7547_v15 }
0x2a7e   :  { %6912 = vmatprep.subr.bf16.mxu1 %v7547_v15 }
0x2a81   :  { %6913 = vmatpush3.bf16.msra.mxu1 %v10385_v17 }
0x2a82   :  { %6926 = vmatprep.subr.bf16.mxu1 %v7547_v15 }
0x2ae2   :  { %v10403_v48 = vpop.f32.mrb[160].mxu0 }
0x2ae3   :  { %v5042_v12 = vpop.f32.mrb[161].mxu0 }
0x2ae4   :  { %v10405_v7 = vpop.f32.mrb[162].mxu0  ;;  %v5043_v50 = vadd.f32 %v10414_v18, %v5042_v12 }
0x2ae5   :  { %v10407_v52 = vpop.f32.mrb[163].mxu0 }
0x2ae6   :  { %v5046_v10 = vadd.f32 %v10414_v18, %v10407_v52 }
0x2b47   :  { %v4923_v20 = vpop.f32.mrb[172].mxu1 }
0x2b48   :  { %v4929_v44 = vadd.f32 %v4923_v20, %v4335_v19  ;;  %v6888_v24 = vpop.f32.mrb[173].mxu1 }
0x2b49   :  { %v4926_v46 = vpop.f32.mrb[174].mxu1 }
0x2b4a   :  { %v6889_v1 = vpop.f32.mrb[175].mxu1  ;;  %v6560_v58 = vmul.f32 -1.442695, %v4929_v44 }
0x2b4f   :  { %v5119_v38 = vpop.f32.mrb[176].mxu1 }
0x2b50   :  { %v5125_v23 = vadd.f32 %v5119_v38, %v5043_v50  ;;  %v6908_v62 = vpop.f32.mrb[177].mxu1 }
0x2b51   :  { %v5122_v26 = vpop.f32.mrb[178].mxu1 }
0x2b52   :  { %7426 = vtanh.f32 %v5125_v23  ;;  %v6909_v59 = vpop.f32.mrb[179].mxu1  ;;  %v6570_v3 = vmul.f32 -1.442695, %v5125_v23 }
0x2b54   :  { %7428 = vpow2.f32 %v6570_v3 }
0x2b5c   :  { %v7427_v63 = vpop.eup %7426 }
0x2b5d   :  { %5135 = vrot.lane.b32.xlu1 %v7427_v63, %s7549_s29 }
0x2b5e   :  { %v7429_v35 = vpop.eup %7428 }
0x2b5f   :  { %v5129_v51 = vadd.f32 1.0, %v7429_v35 }
0x2b61   :  { %7430 = vrcp.f32 %v5129_v51 }
0x2b6b   :  { %v7431_v32 = vpop.eup %7430 }
0x2b6c   :  { %v5133_v0 = vmul.f32 0.0, %v7431_v32 }
0x2bcf   :  { %v5136_v5 = vpop.permute.xlu1 %5135 }
0x2bd0   :  { %v5138_v22 = vmul.f32 %v7431_v32, %v5136_v5 }
0x2bd2   :  { %5140 = vrot.lane.b32.xlu0 %v5138_v22, %s7550_s30 }
0x2c44   :  { %v5141_v11 = vpop.permute.xlu0 %5140 }
0x2c45   :  { %v5143_v16 = vadd.f32 %v5141_v11, %v5133_v0 }
0x2c47   :  { %7432 = vtanh.f32 %v5143_v16 }
0x2c48   :  { %7434 = vtanh.f32 %v4929_v44 }
0x2c49   :  { %7436 = vpow2.f32 %v6560_v58  ;;  %v5051_v58 = vadd.f32 %v10403_v48, %v10414_v18 }
0x2c51   :  { %v7433_v43 = vpop.eup %7432 }
0x2c52   :  { %5146 = vrot.lane.b32.xlu1 %v7433_v43, %s7549_s29  ;;  %v7435_v36 = vpop.eup %7434 }
0x2c53   :  { %v7437_v28 = vpop.eup %7436 }
0x2c54   :  { %v4933_v27 = vadd.f32 1.0, %v7437_v28 }
0x2c56   :  { %4939 = vrot.lane.b32.xlu1 %v7435_v36, %s7549_s29  ;;  %7438 = vrcp.f32 %v4933_v27 }
0x2c60   :  { %v7439_v40 = vpop.eup %7438 }
0x2c61   :  { %v4937_v31 = vmul.f32 %v7439_v40, %v10349_v37 }
0x2cc4   :  { %v5147_v41 = vpop.permute.xlu1 %5146 }
0x2cc5   :  { %v10421_v4 = vmul.f32 %v7431_v32, %v5147_v41 }
0x2cc7   :  { %v5155_v25 = vpack.c.bf16 %v10421_v4, %v10421_v4 }
0x2cc8   :  { %v4940_v14 = vpop.permute.xlu1 %4939 }
0x2cc9   :  { %v4942_v57 = vmul.f32 %v7439_v40, %v4940_v14  ;;  %5157 = vrot.lane.b32.xlu0 %v5155_v25, %s7550_s30 }
0x2ccb   :  { %4944 = vrot.lane.b32.xlu1 %v4942_v57, %s7550_s30 }
0x2d3b   :  { %v5158_v45 = vpop.permute.xlu0 %5157 }
0x2d3c   :  { %6915 = vmatmul.mubr.msk.bf16.vlgmr.msra.gmra.mrb[180].mxu1 %vm639_vm0, %v5158_v45 }
0x2d3d   :  { %v4945_v13 = vpop.permute.xlu1 %4944  ;;  %6927 = vmatpush3.bf16.msra.mxu1 %v10377_v30  ;;  %6930 = vmatprep.mubr.msk.bf16.mxu1 %vm7548_vm1, %v7547_v15 }
0x2d3e   :  { %v4947_v42 = vadd.f32 %v4945_v13, %v4937_v31  ;;  %6928 = vmatprep.subr.bf16.mxu1 %v7547_v15 }
0x2d40   :  { %7440 = vtanh.f32 %v4947_v42 }
0x2d41   :  { %6929 = vmatpush3.bf16.msra.mxu1 %v10385_v17 }
0x2d42   :  { %6942 = vmatprep.subr.bf16.mxu1 %v7547_v15 }
0x2d4a   :  { %v7441_v34 = vpop.eup %7440 }
0x2d4b   :  { %4950 = vrot.lane.b32.xlu1 %v7441_v34, %s7549_s29 }
0x2d4f   :  { %4724 = vrot.lane.b32.xlu1 %v10318_v61, %s7550_s30 }
0x2d53   :  { %4878 = vrot.lane.b32.xlu1 %v10366_v39, %s7550_s30 }
0x2dbd   :  { %v4951_v37 = vpop.permute.xlu1 %4950 }
0x2dbe   :  { %v4953_v23 = vmul.f32 %v7439_v40, %v4951_v37 }
0x2dc1   :  { %v4725_v47 = vpop.permute.xlu1 %4724 }
0x2dc2   :  { %4727 = vst.msk [vmem:[#allocation3 + $0x20] sm:$0xff] %vm639_vm0, %v4725_v47 }
0x2dc5   :  { %v4879_v54 = vpop.permute.xlu1 %4878 }
0x2dc6   :  { %4881 = vst.msk [vmem:[#allocation3 + $0x30] sm:$0xff] %vm639_vm0, %v4879_v54 }
0x2dc9   :  { %v4971_v35 = vld [vmem:[#allocation3 + $0x20] sm:$0xff] }
0x2dcd   :  { %v4973_v32 = vld [vmem:[#allocation3 + $0x30] sm:$0xff] }
0x2e0f   :  { %v5196_v55 = vpop.f32.mrb[180].mxu1 }
0x2e10   :  { %v5202_v8 = vadd.f32 %v5196_v55, %v5046_v10  ;;  %v6916_v29 = vpop.f32.mrb[181].mxu1 }
0x2e11   :  { %v5199_v9 = vpop.f32.mrb[182].mxu1 }
0x2e12   :  { %7442 = vtanh.f32 %v5202_v8  ;;  %v6917_v12 = vpop.f32.mrb[183].mxu1  ;;  %v6572_v39 = vmul.f32 -1.442695, %v5202_v8  ;;  %v5054_v9 = vadd.f32 %v10405_v7, %v10414_v18 }
0x2e14   :  { %7444 = vpow2.f32 %v6572_v39 }
0x2e1c   :  { %v7443_v61 = vpop.eup %7442 }
0x2e1d   :  { %5212 = vrot.lane.b32.xlu0 %v7443_v61, %s7549_s29 }
0x2e1e   :  { %v7445_v19 = vpop.eup %7444 }
0x2e1f   :  { %v5206_v20 = vadd.f32 1.0, %v7445_v19 }
0x2e21   :  { %7446 = vrcp.f32 %v5206_v20 }
0x2e2b   :  { %v7447_v44 = vpop.eup %7446 }
0x2e2c   :  { %v5210_v52 = vmul.f32 %v7447_v44, %v5143_v16 }
0x2e8f   :  { %v5213_v24 = vpop.permute.xlu0 %5212 }
0x2e90   :  { %v5215_v46 = vmul.f32 %v7447_v44, %v5213_v24 }
0x2e92   :  { %5217 = vrot.lane.b32.xlu0 %v5215_v46, %s7550_s30 }
0x2f04   :  { %v5218_v1 = vpop.permute.xlu0 %5217 }
0x2f05   :  { %v5220_v50 = vadd.f32 %v5218_v1, %v5210_v52 }
0x2f07   :  { %7448 = vtanh.f32 %v5220_v50 }
0x2f11   :  { %v7449_v38 = vpop.eup %7448 }
0x2f12   :  { %5223 = vrot.lane.b32.xlu0 %v7449_v38, %s7549_s29 }
0x2f16   :  { %4801 = vrot.lane.b32.xlu0 %v10335_v21, %s7550_s30 }
0x2f1a   :  { %4955 = vrot.lane.b32.xlu0 %v4953_v23, %s7550_s30 }
0x2f84   :  { %v5224_v62 = vpop.permute.xlu0 %5223 }
0x2f85   :  { %v10450_v26 = vmul.f32 %v7447_v44, %v5224_v62 }
0x2f87   :  { %v5232_v59 = vpack.c.bf16 %v10450_v26, %v10450_v26 }
0x2f88   :  { %v4802_v63 = vpop.permute.xlu0 %4801 }
0x2f89   :  { %4804 = vst.msk [vmem:[#allocation3 + $0x28] sm:$0xff] %vm639_vm0, %v4802_v63  ;;  %5234 = vrot.lane.b32.xlu1 %v5232_v59, %s7550_s30 }
0x2f8c   :  { %v4956_v3 = vpop.permute.xlu0 %4955 }
0x2f8d   :  { %4958 = vst.msk [vmem:[#allocation3 + $0x38] sm:$0xff] %vm639_vm0, %v4956_v3 }
0x2f90   :  { %v4972_v51 = vld [vmem:[#allocation3 + $0x28] sm:$0xff] }
0x2f91   :  { %v4977_v21 = vpack.c.bf16 %v4972_v51, %v4971_v35 }
0x2f93   :  { %6898 = vmatprep.mubr.msk.bf16.mxu0 %vm639_vm0, %v4977_v21 }
0x2f94   :  { %v4974_v5 = vld [vmem:[#allocation3 + $0x38] sm:$0xff] }
0x2f95   :  { %v4978_v22 = vpack.c.bf16 %v4974_v5, %v4973_v32 }
0x2f97   :  { %6899 = vmatmul.mubr.msk.bf16.gmra.mrb[164].mxu0 %vm639_vm0, %v4978_v22 }
0x2f98   :  { %6922 = vmatprep.mubr.msk.bf16.mxu0 %vm7548_vm1, %v7547_v15 }
0x2ffb   :  { %v5235_v0 = vpop.permute.xlu1 %5234 }
0x2ffc   :  { %6923 = vmatmul.mubr.msk.bf16.vlgmr.msra.gmra.mrb[168].mxu0 %vm639_vm0, %v5235_v0 }
0x2ffd   :  { %6935 = vmatpush3.bf16.msra.mxu0 %v10377_v30  ;;  %6938 = vmatprep.mubr.msk.bf16.mxu0 %vm7548_vm1, %v7547_v15 }
0x2ffe   :  { %6936 = vmatprep.subr.bf16.mxu0 %v7547_v15 }
0x3001   :  { %6937 = vmatpush3.bf16.msra.mxu0 %v10385_v17 }
0x3002   :  { %6950 = vmatprep.subr.bf16.mxu0 %v7547_v15 }
0x306a   :  { %v10468_v11 = vpop.f32.mrb[164].mxu0 }
0x306b   :  { %v10470_v16 = vpop.f32.mrb[165].mxu0 }
0x306c   :  { %v10472_v43 = vpop.f32.mrb[166].mxu0  ;;  %v5059_v21 = vadd.f32 %v10414_v18, %v10470_v16 }
0x306d   :  { %v10474_v36 = vpop.f32.mrb[167].mxu0 }
0x30cf   :  { %v5273_v28 = vpop.f32.mrb[168].mxu0 }
0x30d0   :  { %v5279_v27 = vadd.f32 %v5273_v28, %v5051_v58  ;;  %v6924_v41 = vpop.f32.mrb[169].mxu0 }
0x30d1   :  { %v5276_v25 = vpop.f32.mrb[170].mxu0 }
0x30d2   :  { %7450 = vtanh.f32 %v5279_v27  ;;  %v6925_v40 = vpop.f32.mrb[171].mxu0  ;;  %v6574_v57 = vmul.f32 -1.442695, %v5279_v27 }
0x30d4   :  { %7452 = vpow2.f32 %v6574_v57 }
0x30dc   :  { %v7451_v14 = vpop.eup %7450 }
0x30dd   :  { %5289 = vrot.lane.b32.xlu0 %v7451_v14, %s7549_s29 }
0x30de   :  { %v7453_v45 = vpop.eup %7452 }
0x30df   :  { %v5283_v31 = vadd.f32 1.0, %v7453_v45 }
0x30e1   :  { %7454 = vrcp.f32 %v5283_v31 }
0x30eb   :  { %v7455_v13 = vpop.eup %7454 }
0x30ec   :  { %v5287_v48 = vmul.f32 %v7455_v13, %v5220_v50 }
0x314f   :  { %v5290_v42 = vpop.permute.xlu0 %5289 }
0x3150   :  { %v5292_v34 = vmul.f32 %v7455_v13, %v5290_v42 }
0x3152   :  { %5294 = vrot.lane.b32.xlu1 %v5292_v34, %s7550_s30 }
0x31c4   :  { %v5295_v37 = vpop.permute.xlu1 %5294 }
0x31c5   :  { %v5297_v47 = vadd.f32 %v5295_v37, %v5287_v48 }
0x31c7   :  { %7456 = vtanh.f32 %v5297_v47 }
0x31d1   :  { %v7457_v54 = vpop.eup %7456 }
0x31d2   :  { %5300 = vrot.lane.b32.xlu0 %v7457_v54, %s7549_s29 }
0x3244   :  { %v5301_v10 = vpop.permute.xlu0 %5300 }
0x3245   :  { %v10481_v55 = vmul.f32 %v7455_v13, %v5301_v10 }
0x3247   :  { %v5309_v8 = vpack.c.bf16 %v10481_v55, %v10481_v55 }
0x3249   :  { %5311 = vrot.lane.b32.xlu1 %v5309_v8, %s7550_s30 }
0x32bb   :  { %v5312_v29 = vpop.permute.xlu1 %5311 }
0x32bc   :  { %6931 = vmatmul.mubr.msk.bf16.vlgmr.msra.gmra.mrb[184].mxu1 %vm639_vm0, %v5312_v29 }
0x32bd   :  { %6943 = vmatpush3.bf16.msra.mxu1 %v10377_v30  ;;  %6946 = vmatprep.mubr.msk.bf16.mxu1 %vm7548_vm1, %v7547_v15 }
0x32be   :  { %6944 = vmatprep.subr.bf16.mxu1 %v7547_v15 }
0x32c1   :  { %6945 = vmatpush3.bf16.msra.mxu1 %v10385_v17 }
0x32c2   :  { %6958 = vmatprep.subr.bf16.mxu1 %v7547_v15 }
0x338f   :  { %v5350_v12 = vpop.f32.mrb[184].mxu1 }
0x3390   :  { %v5356_v61 = vadd.f32 %v5350_v12, %v5054_v9  ;;  %v6932_v39 = vpop.f32.mrb[185].mxu1 }
0x3391   :  { %v5353_v19 = vpop.f32.mrb[186].mxu1 }
0x3392   :  { %7458 = vtanh.f32 %v5356_v61  ;;  %v6933_v20 = vpop.f32.mrb[187].mxu1  ;;  %v6576_v24 = vmul.f32 -1.442695, %v5356_v61 }
0x3394   :  { %7460 = vpow2.f32 %v6576_v24 }
0x339c   :  { %v7459_v44 = vpop.eup %7458 }
0x339d   :  { %5366 = vrot.lane.b32.xlu0 %v7459_v44, %s7549_s29 }
0x339e   :  { %v7461_v46 = vpop.eup %7460 }
0x339f   :  { %v5360_v52 = vadd.f32 1.0, %v7461_v46 }
0x33a1   :  { %7462 = vrcp.f32 %v5360_v52 }
0x33ab   :  { %v7463_v1 = vpop.eup %7462 }
0x33ac   :  { %v5364_v7 = vmul.f32 %v7463_v1, %v5297_v47  ;;  %v5062_v47 = vadd.f32 %v10414_v18, %v10474_v36 }
0x340f   :  { %v5367_v50 = vpop.permute.xlu0 %5366 }
0x3410   :  { %v5369_v38 = vmul.f32 %v7463_v1, %v5367_v50 }
0x3412   :  { %5371 = vrot.lane.b32.xlu1 %v5369_v38, %s7550_s30 }
0x3484   :  { %v5372_v23 = vpop.permute.xlu1 %5371 }
0x3485   :  { %v5374_v62 = vadd.f32 %v5372_v23, %v5364_v7  ;;  %v5067_v7 = vadd.f32 %v10468_v11, %v10414_v18 }
0x3487   :  { %7464 = vtanh.f32 %v5374_v62 }
0x3491   :  { %v7465_v59 = vpop.eup %7464 }
0x3492   :  { %5377 = vrot.lane.b32.xlu0 %v7465_v59, %s7549_s29 }
0x3504   :  { %v5378_v63 = vpop.permute.xlu0 %5377 }
0x3505   :  { %v10498_v3 = vmul.f32 %v7463_v1, %v5378_v63 }
0x3507   :  { %v5386_v35 = vpack.c.bf16 %v10498_v3, %v10498_v3 }
0x3509   :  { %5388 = vrot.lane.b32.xlu1 %v5386_v35, %s7550_s30 }
0x357b   :  { %v5389_v51 = vpop.permute.xlu1 %5388 }
0x357c   :  { %6939 = vmatmul.mubr.msk.bf16.vlgmr.msra.gmra.mrb[172].mxu0 %vm639_vm0, %v5389_v51 }
0x357d   :  { %6951 = vmatpush3.bf16.msra.mxu0 %v10377_v30  ;;  %6954 = vmatprep.mubr.msk.bf16.mxu0 %vm7548_vm1, %v7547_v15 }
0x357e   :  { %6952 = vmatprep.subr.bf16.mxu0 %v7547_v15 }
0x3581   :  { %6953 = vmatpush3.bf16.msra.mxu0 %v10385_v17 }
0x364f   :  { %v5427_v32 = vpop.f32.mrb[172].mxu0 }
0x3650   :  { %v5433_v5 = vadd.f32 %v5427_v32, %v5059_v21  ;;  %v6940_v22 = vpop.f32.mrb[173].mxu0 }
0x3651   :  { %v5430_v0 = vpop.f32.mrb[174].mxu0 }
0x3652   :  { %7466 = vtanh.f32 %v5433_v5  ;;  %v6941_v58 = vpop.f32.mrb[175].mxu0  ;;  %v6578_v27 = vmul.f32 -1.442695, %v5433_v5 }
0x3654   :  { %7468 = vpow2.f32 %v6578_v27 }
0x365c   :  { %v7467_v28 = vpop.eup %7466 }
0x365d   :  { %5443 = vrot.lane.b32.xlu0 %v7467_v28, %s7549_s29 }
0x365e   :  { %v7469_v41 = vpop.eup %7468 }
0x365f   :  { %v5437_v25 = vadd.f32 1.0, %v7469_v41 }
0x3661   :  { %7470 = vrcp.f32 %v5437_v25 }
0x366b   :  { %v7471_v40 = vpop.eup %7470 }
0x366c   :  { %v5441_v16 = vmul.f32 %v7471_v40, %v5374_v62 }
0x36cf   :  { %v5444_v14 = vpop.permute.xlu0 %5443 }
0x36d0   :  { %v5446_v57 = vmul.f32 %v7471_v40, %v5444_v14 }
0x36d2   :  { %5448 = vrot.lane.b32.xlu1 %v5446_v57, %s7550_s30 }
0x3744   :  { %v5449_v45 = vpop.permute.xlu1 %5448 }
0x3745   :  { %v5451_v31 = vadd.f32 %v5449_v45, %v5441_v16  ;;  %v5070_v16 = vadd.f32 %v10472_v43, %v10414_v18 }
0x3747   :  { %7472 = vtanh.f32 %v5451_v31 }
0x3751   :  { %v7473_v13 = vpop.eup %7472 }
0x3752   :  { %5454 = vrot.lane.b32.xlu0 %v7473_v13, %s7549_s29 }
0x37c4   :  { %v5455_v42 = vpop.permute.xlu0 %5454 }
0x37c5   :  { %v10514_v34 = vmul.f32 %v7471_v40, %v5455_v42 }
0x37c7   :  { %v5463_v48 = vpack.c.bf16 %v10514_v34, %v10514_v34 }
0x37c9   :  { %5465 = vrot.lane.b32.xlu1 %v5463_v48, %s7550_s30 }
0x383b   :  { %v5466_v37 = vpop.permute.xlu1 %5465 }
0x383c   :  { %6947 = vmatmul.mubr.msk.bf16.vlgmr.msra.gmra.mrb[188].mxu1 %vm639_vm0, %v5466_v37 }
0x383d   :  { %6959 = vmatpush3.bf16.msra.mxu1 %v10377_v30  ;;  %6962 = vmatprep.mubr.msk.bf16.mxu1 %vm7548_vm1, %v7547_v15 }
0x383e   :  { %6960 = vmatprep.subr.bf16.mxu1 %v7547_v15 }
0x3841   :  { %6961 = vmatpush3.bf16.msra.mxu1 %v10385_v17 }
0x390f   :  { %v5504_v54 = vpop.f32.mrb[188].mxu1 }
0x3910   :  { %v5510_v10 = vadd.f32 %v5504_v54, %v5062_v47  ;;  %v6948_v8 = vpop.f32.mrb[189].mxu1 }
0x3911   :  { %v5507_v29 = vpop.f32.mrb[190].mxu1 }
0x3912   :  { %7474 = vtanh.f32 %v5510_v10  ;;  %v6949_v9 = vpop.f32.mrb[191].mxu1  ;;  %v6580_v30 = vmul.f32 -1.442695, %v5510_v10 }
0x3914   :  { %7476 = vpow2.f32 %v6580_v30 }
0x391c   :  { %v7475_v12 = vpop.eup %7474 }
0x391d   :  { %5520 = vrot.lane.b32.xlu0 %v7475_v12, %s7549_s29 }
0x391e   :  { %v7477_v61 = vpop.eup %7476 }
0x391f   :  { %v5514_v39 = vadd.f32 1.0, %v7477_v61 }
0x3921   :  { %7478 = vrcp.f32 %v5514_v39 }
0x392b   :  { %v7479_v19 = vpop.eup %7478 }
0x392c   :  { %v5518_v36 = vmul.f32 %v7479_v19, %v5451_v31 }
0x398f   :  { %v5521_v20 = vpop.permute.xlu0 %5520 }
0x3990   :  { %v5523_v17 = vmul.f32 %v7479_v19, %v5521_v20 }
0x3992   :  { %5525 = vrot.lane.b32.xlu1 %v5523_v17, %s7550_s30 }
0x3a04   :  { %v5526_v44 = vpop.permute.xlu1 %5525 }
0x3a05   :  { %v5528_v24 = vadd.f32 %v5526_v44, %v5518_v36 }
0x3a07   :  { %7480 = vtanh.f32 %v5528_v24 }
0x3a11   :  { %v7481_v46 = vpop.eup %7480 }
0x3a12   :  { %5531 = vrot.lane.b32.xlu0 %v7481_v46, %s7549_s29 }
0x3a84   :  { %v5532_v52 = vpop.permute.xlu0 %5531 }
0x3a85   :  { %v10530_v1 = vmul.f32 %v7479_v19, %v5532_v52 }
0x3a87   :  { %v5540_v50 = vpack.c.bf16 %v10530_v1, %v10530_v1 }
0x3a89   :  { %5542 = vrot.lane.b32.xlu1 %v5540_v50, %s7550_s30 }
0x3afb   :  { %v5543_v38 = vpop.permute.xlu1 %5542 }
0x3afc   :  { %6955 = vmatmul.mubr.msk.bf16.vlgmr.msra.gmra.mrb[176].mxu0 %vm639_vm0, %v5543_v38 }
0x3bcf   :  { %v5581_v23 = vpop.f32.mrb[176].mxu0 }
0x3bd0   :  { %v5587_v62 = vadd.f32 %v5581_v23, %v5067_v7  ;;  %v6956_v59 = vpop.f32.mrb[177].mxu0 }
0x3bd1   :  { %v5584_v63 = vpop.f32.mrb[178].mxu0 }
0x3bd2   :  { %7482 = vtanh.f32 %v5587_v62  ;;  %v6957_v35 = vpop.f32.mrb[179].mxu0  ;;  %v6582_v21 = vmul.f32 -1.442695, %v5587_v62 }
0x3bd4   :  { %7484 = vpow2.f32 %v6582_v21 }
0x3bdc   :  { %v7483_v51 = vpop.eup %7482 }
0x3bdd   :  { %5597 = vrot.lane.b32.xlu0 %v7483_v51, %s7549_s29 }
0x3bde   :  { %v7485_v32 = vpop.eup %7484 }
0x3bdf   :  { %v5591_v5 = vadd.f32 1.0, %v7485_v32 }
0x3be1   :  { %7486 = vrcp.f32 %v5591_v5 }
0x3beb   :  { %v7487_v22 = vpop.eup %7486 }
0x3bec   :  { %v5595_v11 = vmul.f32 %v7487_v22, %v5528_v24 }
0x3c4f   :  { %v5598_v0 = vpop.permute.xlu0 %5597 }
0x3c50   :  { %v5600_v58 = vmul.f32 %v7487_v22, %v5598_v0 }
0x3c52   :  { %5602 = vrot.lane.b32.xlu1 %v5600_v58, %s7550_s30 }
0x3cc4   :  { %v5603_v28 = vpop.permute.xlu1 %5602 }
0x3cc5   :  { %v5605_v27 = vadd.f32 %v5603_v28, %v5595_v11 }
0x3cc7   :  { %7488 = vtanh.f32 %v5605_v27 }
0x3cd1   :  { %v7489_v41 = vpop.eup %7488 }
0x3cd2   :  { %5608 = vrot.lane.b32.xlu0 %v7489_v41, %s7549_s29 }
0x3d44   :  { %v5609_v25 = vpop.permute.xlu0 %5608 }
0x3d45   :  { %v5611_v40 = vmul.f32 %v7487_v22, %v5609_v25 }
0x3d47   :  { %v5617_v14 = vpack.c.bf16 %v5611_v40, %v5611_v40 }
0x3d49   :  { %5619 = vrot.lane.b32.xlu1 %v5617_v14, %s7550_s30 }
0x3dbb   :  { %v5620_v57 = vpop.permute.xlu1 %5619 }
0x3dbc   :  { %6963 = vmatmul.mubr.msk.bf16.vlgmr.msra.gmra.mrb[192].mxu1 %vm639_vm0, %v5620_v57 }
0x3e8f   :  { %v5658_v45 = vpop.f32.mrb[192].mxu1 }
0x3e90   :  { %v5664_v31 = vadd.f32 %v5658_v45, %v5070_v16  ;;  %v6964_v13 = vpop.f32.mrb[193].mxu1 }
0x3e91   :  { %v5661_v42 = vpop.f32.mrb[194].mxu1 }
0x3e92   :  { %7490 = vtanh.f32 %v5664_v31  ;;  %v6965_v48 = vpop.f32.mrb[195].mxu1  ;;  %v6584_v47 = vmul.f32 -1.442695, %v5664_v31 }
0x3e94   :  { %7492 = vpow2.f32 %v6584_v47 }
0x3e9c   :  { %v7491_v37 = vpop.eup %7490 }
0x3e9d   :  { %5674 = vrot.lane.b32.xlu0 %v7491_v37, %s7549_s29 }
0x3e9e   :  { %v7493_v54 = vpop.eup %7492 }
0x3e9f   :  { %v5668_v10 = vadd.f32 1.0, %v7493_v54 }
0x3ea1   :  { %7494 = vrcp.f32 %v5668_v10 }
0x3eab   :  { %v7495_v8 = vpop.eup %7494 }
0x3eac   :  { %v5672_v18 = vmul.f32 %v7495_v8, %v5605_v27 }
0x3f0f   :  { %v5675_v29 = vpop.permute.xlu0 %5674 }
0x3f10   :  { %v5677_v9 = vmul.f32 %v7495_v8, %v5675_v29 }
0x3f12   :  { %5679 = vrot.lane.b32.xlu1 %v5677_v9, %s7550_s30 }
0x3f16   :  { %5151 = vrot.lane.b32.xlu1 %v10421_v4, %s7550_s30 }
0x3f1a   :  { %5305 = vrot.lane.b32.xlu1 %v10481_v55, %s7550_s30 }
0x3f1e   :  { %5459 = vrot.lane.b32.xlu1 %v10514_v34, %s7550_s30 }
0x3f22   :  { %5613 = vrot.lane.b32.xlu1 %v5611_v40, %s7550_s30 }
0x3f84   :  { %v5680_v43 = vpop.permute.xlu1 %5679 }
0x3f85   :  { %v5682_v12 = vadd.f32 %v5680_v43, %v5672_v18 }
0x3f87   :  { %7496 = vtanh.f32 %v5682_v12 }
0x3f88   :  { %v5152_v30 = vpop.permute.xlu1 %5151 }
0x3f89   :  { %5154 = vst.msk [vmem:[#allocation2] sm:$0xff] %vm639_vm0, %v5152_v30 }
0x3f8c   :  { %v5306_v61 = vpop.permute.xlu1 %5305 }
0x3f8d   :  { %5308 = vst.msk [vmem:[#allocation2 + $0x10] sm:$0xff] %vm639_vm0, %v5306_v61 }
0x3f90   :  { %v10556_v39 = vld [vmem:[#allocation2] sm:$0xff]  ;;  %v5460_v4 = vpop.permute.xlu1 %5459 }
0x3f91   :  { %v7497_v19 = vpop.eup %7496  ;;  %5462 = vst.msk [vmem:[#allocation2 + $0x20] sm:$0xff] %vm639_vm0, %v5460_v4 }
0x3f92   :  { %5685 = vrot.lane.b32.xlu0 %v7497_v19, %s7549_s29 }
0x3f94   :  { %v10560_v55 = vld [vmem:[#allocation2 + $0x10] sm:$0xff]  ;;  %v5614_v34 = vpop.permute.xlu1 %5613 }
0x3f95   :  { %5616 = vst.msk [vmem:[#allocation2 + $0x30] sm:$0xff] %vm639_vm0, %v5614_v34 }
0x3f96   :  { %5228 = vrot.lane.b32.xlu0 %v10450_v26, %s7550_s30 }
0x3f98   :  { %v10565_v20 = vld [vmem:[#allocation2 + $0x20] sm:$0xff] }
0x3f9a   :  { %5382 = vrot.lane.b32.xlu0 %v10498_v3, %s7550_s30 }
0x3f9c   :  { %v10569_v17 = vld [vmem:[#allocation2 + $0x30] sm:$0xff] }
0x3f9e   :  { %5536 = vrot.lane.b32.xlu0 %v10530_v1, %s7550_s30 }
0x4004   :  { %v5686_v36 = vpop.permute.xlu0 %5685 }
0x4005   :  { %v5688_v44 = vmul.f32 %v7495_v8, %v5686_v36 }
0x4007   :  { %5690 = vrot.lane.b32.xlu0 %v5688_v44, %s7550_s30 }
0x4008   :  { %v5229_v24 = vpop.permute.xlu0 %5228 }
0x4009   :  { %5231 = vst.msk [vmem:[#allocation2 + $0x8] sm:$0xff] %vm639_vm0, %v5229_v24 }
0x400c   :  { %v5383_v46 = vpop.permute.xlu0 %5382 }
0x400d   :  { %5385 = vst.msk [vmem:[#allocation2 + $0x18] sm:$0xff] %vm639_vm0, %v5383_v46 }
0x4010   :  { %v10576_v26 = vld [vmem:[#allocation2 + $0x8] sm:$0xff]  ;;  %v5537_v52 = vpop.permute.xlu0 %5536 }
0x4011   :  { %5539 = vst.msk [vmem:[#allocation2 + $0x28] sm:$0xff] %vm639_vm0, %v5537_v52 }
0x4014   :  { %v10579_v3 = vld [vmem:[#allocation2 + $0x18] sm:$0xff] }
0x4018   :  { %v10581_v50 = vld [vmem:[#allocation2 + $0x28] sm:$0xff] }
0x4079   :  { %v5691_v1 = vpop.permute.xlu0 %5690 }
0x407a   :  { %5693 = vst.msk [vmem:[#allocation2 + $0x38] sm:$0xff] %vm639_vm0, %v5691_v1 }
0x4081   :  { %v10584_v38 = vld [vmem:[#allocation2 + $0x38] sm:$0xff] }
0x4082   :  { %7511 = dma.done.wait [#allocation6], 6400 }
0x4083   :  { %7512 = vsyncadd [#allocation6], 4294960896 }
0x4084   :  { %7513 = dma.done.wait [#allocation6 + $0x1], 2688 }
0x4085   :  { %7514 = vsyncadd [#allocation6 + $0x1], 4294964608  ;;  %5844 = vmatprep.mubr.f32.mxu0 %v7547_v15  ;;  %5973 = vmatprep.mubr.f32.mxu1 %v7547_v15  ;;  %v5718_v7 = vld [vmem:[#allocation4 + $0x48] sm:$0xff]  ;;  %v5720_v23 = vld [vmem:[#allocation4 + $0x58] sm:$0xff] }
0x4086   :  { %v5717_v62 = vld [vmem:[#allocation4 + $0x40] sm:$0xff]  ;;  %v6966_v59 = vpack.c.bf16 %v5720_v23, %v5718_v7  ;;  %v5719_v63 = vld [vmem:[#allocation4 + $0x50] sm:$0xff]  ;;  %v5722_v35 = vld [vmem:[#allocation4 + $0x68] sm:$0xff]  ;;  %v7551_v23 = vmov 0.0|0.0  }
0x4087   :  { %v5724_v51 = vld [vmem:[#allocation4 + $0x78] sm:$0xff]  ;;  %v6968_v21 = vpack.c.bf16 %v5719_v63, %v5717_v62  ;;  %v5721_v5 = vld [vmem:[#allocation4 + $0x60] sm:$0xff]  ;;  %v5723_v22 = vld [vmem:[#allocation4 + $0x70] sm:$0xff] }
0x4088   :  { %v6970_v32 = vpack.c.bf16 %v5724_v51, %v5722_v35  ;;  %v5726_v0 = vld [vmem:[#allocation4 + $0x88] sm:$0xff]  ;;  %6967 = vmatprep.subr.bf16.mxu0 %v6966_v59  ;;  %v5728_v58 = vld [vmem:[#allocation4 + $0x98] sm:$0xff]  ;;  %v6972_v11 = vpack.c.bf16 %v5723_v22, %v5721_v5  ;;  %v5725_v27 = vld [vmem:[#allocation4 + $0x80] sm:$0xff] }
0x4089   :  { %6969 = vmatpush1.bf16.msra.mxu0 %v6968_v21  ;;  %v6974_v28 = vpack.c.bf16 %v5728_v58, %v5726_v0  ;;  %v5727_v41 = vld [vmem:[#allocation4 + $0x90] sm:$0xff]  ;;  %v5730_v25 = vld [vmem:[#allocation4 + $0xa8] sm:$0xff]  ;;  %v5732_v40 = vld [vmem:[#allocation4 + $0xb8] sm:$0xff] }
0x408a   :  { %6971 = vmatprep.subr.bf16.mxu0 %v6970_v32  ;;  %v6976_v14 = vpack.c.bf16 %v5727_v41, %v5725_v27  ;;  %v5729_v57 = vld [vmem:[#allocation4 + $0xa0] sm:$0xff]  ;;  %v5710_v16 = vld [vmem:[#allocation4 + $0x8] sm:$0xff]  ;;  %v6978_v45 = vpack.c.bf16 %v5732_v40, %v5730_v25  ;;  %v5731_v31 = vld [vmem:[#allocation4 + $0xb0] sm:$0xff] }
0x408b   :  { %v5734_v13 = vld [vmem:[#allocation4 + $0xc8] sm:$0xff]  ;;  %v5712_v42 = vld [vmem:[#allocation4 + $0x18] sm:$0xff]  ;;  %v5709_v47 = vld [vmem:[#allocation4] sm:$0xff]  ;;  %v6980_v9 = vpack.c.bf16 %v5731_v31, %v5729_v57 }
0x408c   :  { %v5736_v48 = vld [vmem:[#allocation4 + $0xd8] sm:$0xff]  ;;  %v6998_v37 = vpack.c.bf16 %v5712_v42, %v5710_v16  ;;  %v5711_v54 = vld [vmem:[#allocation4 + $0x10] sm:$0xff]  ;;  %v5714_v8 = vld [vmem:[#allocation4 + $0x28] sm:$0xff] }
0x408d   :  { %6973 = vmatpush1.bf16.msra.mxu0 %v6972_v11  ;;  %v7000_v10 = vpack.c.bf16 %v5711_v54, %v5709_v47  ;;  %v5716_v29 = vld [vmem:[#allocation4 + $0x38] sm:$0xff]  ;;  %v5713_v43 = vld [vmem:[#allocation4 + $0x20] sm:$0xff]  ;;  %v6982_v12 = vpack.c.bf16 %v5736_v48, %v5734_v13  ;;  %v5735_v61 = vld [vmem:[#allocation4 + $0xd0] sm:$0xff] }
0x408e   :  { %6975 = vmatprep.subr.bf16.mxu0 %v6974_v28  ;;  %6999 = vmatprep.subr.bf16.mxu1 %v6998_v37  ;;  %v7002_v18 = vpack.c.bf16 %v5716_v29, %v5714_v8  ;;  %v5733_v30 = vld [vmem:[#allocation4 + $0xc0] sm:$0xff]  ;;  %v5715_v4 = vld [vmem:[#allocation4 + $0x30] sm:$0xff]  ;;  %v5738_v19 = vld [vmem:[#allocation4 + $0xe8] sm:$0xff] }
0x408f   :  { %7001 = vmatpush1.bf16.msra.mxu1 %v7000_v10  ;;  %v5740_v34 = vld [vmem:[#allocation4 + $0xf8] sm:$0xff]  ;;  %v7004_v36 = vpack.c.bf16 %v5715_v4, %v5713_v43  ;;  %v6984_v44 = vpack.c.bf16 %v5735_v61, %v5733_v30  ;;  %v5737_v46 = vld [vmem:[#allocation4 + $0xe0] sm:$0xff]  ;;  %v5739_v52 = vld [vmem:[#allocation4 + $0xf0] sm:$0xff] }
0x4090   :  { %7003 = vmatprep.subr.bf16.mxu1 %v7002_v18  ;;  %v6986_v24 = vpack.c.bf16 %v5740_v34, %v5738_v19  ;;  %v5742_v1 = vld [vmem:[#allocation4 + $0x108] sm:$0xff]  ;;  %v5744_v7 = vld [vmem:[#allocation4 + $0x118] sm:$0xff]  ;;  %v6988_v62 = vpack.c.bf16 %v5739_v52, %v5737_v46  ;;  %v11254_v59 = vld [vmem:[#allocation12_spill] sm:$0xff] }
0x4091   :  { %6977 = vmatpush1.bf16.msra.mxu0 %v6976_v14  ;;  %v6990_v63 = vpack.c.bf16 %v5744_v7, %v5742_v1  ;;  %v5741_v35 = vld [vmem:[#allocation4 + $0x100] sm:$0xff]  ;;  %v5743_v51 = vld [vmem:[#allocation4 + $0x110] sm:$0xff]  ;;  %v5746_v21 = vld [vmem:[#allocation4 + $0x128] sm:$0xff] }
0x4092   :  { %6979 = vmatprep.subr.bf16.mxu0 %v6978_v45  ;;  %v5748_v32 = vld [vmem:[#allocation4 + $0x138] sm:$0xff]  ;;  %v6992_v5 = vpack.c.bf16 %v5743_v51, %v5741_v35  ;;  %v5745_v58 = vld [vmem:[#allocation4 + $0x120] sm:$0xff]  ;;  %v5747_v11 = vld [vmem:[#allocation4 + $0x130] sm:$0xff] }
0x4093   :  { %7005 = vmatpush1.bf16.msra.mxu1 %v7004_v36  ;;  %v11255_v22 = vld [vmem:[#allocation11_spill] sm:$0xff]  ;;  %v6994_v0 = vpack.c.bf16 %v5748_v32, %v5746_v21  ;;  %v5750_v28 = vld [vmem:[#allocation4 + $0x148] sm:$0xff]  ;;  %v6996_v41 = vpack.c.bf16 %v5747_v11, %v5745_v58  ;;  %v5749_v14 = vld [vmem:[#allocation4 + $0x140] sm:$0xff] }
0x4094   :  { %7014 = vmatprep.subr.bf16.mxu1 %v7551_v23  ;;  %v5752_v27 = vld [vmem:[#allocation4 + $0x158] sm:$0xff]  ;;  %v11256_v25 = vld [vmem:[#allocation13_spill] sm:$0xff]  ;;  %v5751_v57 = vld [vmem:[#allocation4 + $0x150] sm:$0xff] }
0x4095   :  { %6981 = vmatpush1.bf16.msra.mxu0 %v6980_v9  ;;  %v7006_v40 = vpack.c.bf16 %v5752_v27, %v5750_v28  ;;  %v5754_v16 = vld [vmem:[#allocation4 + $0x168] sm:$0xff]  ;;  %v5756_v45 = vld [vmem:[#allocation4 + $0x178] sm:$0xff]  ;;  %v7008_v31 = vpack.c.bf16 %v5751_v57, %v5749_v14  ;;  %v5753_v48 = vld [vmem:[#allocation4 + $0x160] sm:$0xff] }
0x4096   :  { %6983 = vmatprep.subr.bf16.mxu0 %v6982_v12  ;;  %6585 = vmatmul.mubr.msk.f32.vlgmr.msra.gmra.mrb[196].mxu1 %vm639_vm0, %v11254_v59  ;;  %v11257_v13 = vld [vmem:[#allocation17_spill] sm:$0xff]  ;;  %v7010_v42 = vpack.c.bf16 %v5756_v45, %v5754_v16  ;;  %v5755_v37 = vld [vmem:[#allocation4 + $0x170] sm:$0xff]  ;;  %v11258_v54 = vld [vmem:[#allocation19_spill] sm:$0xff] }
0x4097   :  { %5979 = vmatprep.mubr.f32.mxu1 %v7547_v15  ;;  %v7012_v47 = vpack.c.bf16 %v5755_v37, %v5753_v48  ;;  %v11259_v10 = vld [vmem:[#allocation21_spill] sm:$0xff]  ;;  %v11261_v8 = vld [vmem:[#allocation128_spill] sm:$0xff]  ;;  %v5771_v12 = vld [vmem:[#allocation5 + $0x60] sm:$0xff] }
0x4098   :  { %v5769_v9 = vld [vmem:[#allocation5 + $0x50] sm:$0xff]  ;;  %v5770_v18 = vld [vmem:[#allocation5 + $0x58] sm:$0xff]  ;;  %v5772_v30 = vld [vmem:[#allocation5 + $0x68] sm:$0xff] }
0x4099   :  { %6985 = vmatpush1.bf16.msra.mxu0 %v6984_v44  ;;  %v7030_v43 = vpack.c.bf16 %v5770_v18, %v5769_v9  ;;  %v7033_v61 = vpack.c.bf16 %v5772_v30, %v5771_v12  ;;  %v5773_v4 = vld [vmem:[#allocation5 + $0x70] sm:$0xff]  ;;  %v5774_v19 = vld [vmem:[#allocation5 + $0x78] sm:$0xff]  ;;  %v5775_v36 = vld [vmem:[#allocation5 + $0x80] sm:$0xff] }
0x409a   :  { %6987 = vmatprep.subr.bf16.mxu0 %v6986_v24  ;;  %6586 = vmatmul.mubr.msk.f32.gmra.mrb[198].mxu1 %vm639_vm0, %v11255_v22  ;;  %v7036_v34 = vpack.c.bf16 %v5774_v19, %v5773_v4  ;;  %v5776_v44 = vld [vmem:[#allocation5 + $0x88] sm:$0xff]  ;;  %v5777_v46 = vld [vmem:[#allocation5 + $0x90] sm:$0xff]  ;;  %v5778_v52 = vld [vmem:[#allocation5 + $0x98] sm:$0xff] }
0x409b   :  { %5985 = vmatprep.mubr.f32.mxu1 %v7547_v15  ;;  %v7039_v24 = vpack.c.bf16 %v5776_v44, %v5775_v36  ;;  %v7042_v1 = vpack.c.bf16 %v5778_v52, %v5777_v46  ;;  %v5758_v18 = vld [vmem:[#allocation4 + $0x180] ss:$8 sm:$0x3] }
0x409d   :  { %6989 = vmatpush1.bf16.msra.mxu0 %v6988_v62 }
0x409e   :  { %6991 = vmatprep.subr.bf16.mxu0 %v6990_v63  ;;  %6587 = vmatmul.mubr.msk.f32.gmra.mrb[200].mxu1 %vm639_vm0, %v11256_v25 }
0x409f   :  { %5991 = vmatprep.mubr.f32.mxu1 %v7547_v15 }
0x40a1   :  { %6993 = vmatpush1.bf16.msra.mxu0 %v6992_v5 }
0x40a2   :  { %6995 = vmatprep.subr.bf16.mxu0 %v6994_v0  ;;  %6588 = vmatmul.mubr.msk.f32.gmra.mrb[202].mxu1 %vm639_vm0, %v11257_v13 }
0x40a3   :  { %5997 = vmatprep.mubr.f32.mxu1 %v7547_v15 }
0x40a5   :  { %6997 = vmatpush1.bf16.msra.mxu0 %v6996_v41 }
0x40a6   :  { %7007 = vmatprep.subr.bf16.mxu0 %v7006_v40  ;;  %6589 = vmatmul.mubr.msk.f32.gmra.mrb[204].mxu1 %vm639_vm0, %v11258_v54 }
0x40a7   :  { %6003 = vmatprep.mubr.f32.mxu1 %v7547_v15 }
0x40a8   :  { %5845 = vmatmul.mubr.f32.vlgmr.msra.gmra.mrb[180].mxu0 %v9605_v53  ;;  %v11260_v53 = vld [vmem:[#allocation14_spill] sm:$0xff] }
0x40a9   :  { %7009 = vmatpush1.bf16.msra.mxu0 %v7008_v31  ;;  %5850 = vmatprep.mubr.f32.mxu0 %v7547_v15 }
0x40aa   :  { %7011 = vmatprep.subr.bf16.mxu0 %v7010_v42  ;;  %6590 = vmatmul.mubr.msk.f32.gmra.mrb[206].mxu1 %vm639_vm0, %v11259_v10 }
0x40ab   :  { %6009 = vmatprep.mubr.f32.mxu1 %v7547_v15 }
0x40ac   :  { %5851 = vmatmul.mubr.f32.gmra.mrb[182].mxu0 %v9608_v56  ;;  %v11262_v56 = vld [vmem:[#allocation15_spill] sm:$0xff] }
0x40ad   :  { %5856 = vmatprep.mubr.f32.mxu0 %v7547_v15  ;;  %7013 = vmatpush1.bf16.msra.mxu0 %v7012_v47 }
0x40ae   :  { %6591 = vmatmul.mubr.msk.f32.gmra.mrb[208].mxu1 %vm639_vm0, %v11260_v53 }
0x40af   :  { %6015 = vmatprep.mubr.f32.mxu1 %v7547_v15 }
0x40b0   :  { %5857 = vmatmul.mubr.f32.gmra.mrb[184].mxu0 %v9653_v33  ;;  %v5759_v33 = vld [vmem:[#allocation5] sm:$0xff] }
0x40b1   :  { %5862 = vmatprep.mubr.f32.mxu0 %v7547_v15 }
0x40b2   :  { %6592 = vmatmul.mubr.msk.f32.gmra.mrb[210].mxu1 %vm639_vm0, %v11262_v56 }
0x40b4   :  { %5863 = vmatmul.mubr.f32.gmra.mrb[186].mxu0 %v11261_v8 }
0x40b5   :  { %5868 = vmatprep.mubr.f32.mxu0 %v7547_v15 }
0x40b8   :  { %5869 = vmatmul.mubr.f32.gmra.mrb[188].mxu0 %v9851_v2  ;;  %v5760_v2 = vld [vmem:[#allocation5 + $0x8] sm:$0xff] }
0x40b9   :  { %5874 = vmatprep.mubr.f32.mxu0 %v7547_v15 }
0x40bc   :  { %5875 = vmatmul.mubr.f32.gmra.mrb[190].mxu0 %v9854_v6  ;;  %v7015_v6 = vpack.c.bf16 %v5760_v2, %v5759_v33 }
0x40bd   :  { %5880 = vmatprep.mubr.f32.mxu0 %v7547_v15 }
0x40be   :  { %7016 = vmatpush1.bf16.msra.mxu1 %v7015_v6 }
0x40bf   :  { %7017 = vmatprep.subr.bf16.mxu1 %v7551_v23 }
0x40c0   :  { %5881 = vmatmul.mubr.f32.gmra.mrb[192].mxu0 %v10025_v49  ;;  %v5761_v49 = vld [vmem:[#allocation5 + $0x10] sm:$0xff] }
0x40c1   :  { %5886 = vmatprep.mubr.f32.mxu0 %v7547_v15 }
0x40c4   :  { %5887 = vmatmul.mubr.f32.gmra.mrb[194].mxu0 %v10027_v60  ;;  %v5762_v60 = vld [vmem:[#allocation5 + $0x18] sm:$0xff] }
0x40c5   :  { %6110 = vmatprep.mubr.f32.mxu0 %v7547_v15 }
0x40c8   :  { %6593 = vmatmul.mubr.msk.f32.vlgmr.msra.gmra.mrb[196].mxu0 %vm639_vm0, %v10556_v39  ;;  %v7018_v39 = vpack.c.bf16 %v5762_v60, %v5761_v49  ;;  %v6176_v49 = vlaneseq }
0x40c9   :  { %6116 = vmatprep.mubr.f32.mxu0 %v7547_v15 }
0x40ca   :  { %7019 = vmatpush1.bf16.msra.mxu1 %v7018_v39 }
0x40cb   :  { %7020 = vmatprep.subr.bf16.mxu1 %v7551_v23 }
0x40cc   :  { %6594 = vmatmul.mubr.msk.f32.gmra.mrb[198].mxu0 %vm639_vm0, %v10576_v26  ;;  %v5766_v26 = vld [vmem:[#allocation5 + $0x38] sm:$0xff] }
0x40cd   :  { %6122 = vmatprep.mubr.f32.mxu0 %v7547_v15 }
0x40d0   :  { %6595 = vmatmul.mubr.msk.f32.gmra.mrb[200].mxu0 %vm639_vm0, %v10560_v55  ;;  %v5763_v55 = vld [vmem:[#allocation5 + $0x20] sm:$0xff] }
0x40d1   :  { %6128 = vmatprep.mubr.f32.mxu0 %v7547_v15 }
0x40d4   :  { %6596 = vmatmul.mubr.msk.f32.gmra.mrb[202].mxu0 %vm639_vm0, %v10579_v3 }
0x40d5   :  { %6134 = vmatprep.mubr.f32.mxu0 %v7547_v15 }
0x40d8   :  { %6597 = vmatmul.mubr.msk.f32.gmra.mrb[204].mxu0 %vm639_vm0, %v10565_v20  ;;  %v5764_v20 = vld [vmem:[#allocation5 + $0x28] sm:$0xff] }
0x40d9   :  { %6140 = vmatprep.mubr.f32.mxu0 %v7547_v15 }
0x40dc   :  { %6598 = vmatmul.mubr.msk.f32.gmra.mrb[206].mxu0 %vm639_vm0, %v10581_v50  ;;  %v5767_v50 = vld [vmem:[#allocation5 + $0x40] sm:$0xff] }
0x40dd   :  { %6146 = vmatprep.mubr.f32.mxu0 %v7547_v15 }
0x40e0   :  { %6599 = vmatmul.mubr.msk.f32.gmra.mrb[208].mxu0 %vm639_vm0, %v10569_v17  ;;  %v7021_v17 = vpack.c.bf16 %v5764_v20, %v5763_v55 }
0x40e1   :  { %6152 = vmatprep.mubr.f32.mxu0 %v7547_v15  ;;  %v5765_v15 = vld [vmem:[#allocation5 + $0x30] sm:$0xff] }
0x40e2   :  { %7022 = vmatpush1.bf16.msra.mxu1 %v7021_v17  ;;  %v7024_v3 = vpack.c.bf16 %v5766_v26, %v5765_v15  ;;  %v6177_v17 = vshrl.u32 %v6176_v49, 7 }
0x40e3   :  { %7023 = vmatprep.subr.bf16.mxu1 %v7551_v23 }
0x40e4   :  { %6600 = vmatmul.mubr.msk.f32.gmra.mrb[210].mxu0 %vm639_vm0, %v10584_v38  ;;  %v5768_v38 = vld [vmem:[#allocation5 + $0x48] sm:$0xff] }
0x40e5   :  { %v7027_v29 = vpack.c.bf16 %v5768_v38, %v5767_v50  ;;  %v6182_v38 = vsub.s32 1, %v6177_v17 }
0x40e6   :  { %7025 = vmatpush1.bf16.msra.mxu1 %v7024_v3 }
0x40e7   :  { %7026 = vmatprep.subr.bf16.mxu1 %v7551_v23 }
0x40ea   :  { %7028 = vmatpush1.bf16.msra.mxu1 %v7027_v29 }
0x40eb   :  { %7029 = vmatprep.subr.bf16.mxu1 %v7551_v23 }
0x40ee   :  { %7031 = vmatpush1.bf16.msra.mxu1 %v7030_v43  ;;  %v6178_v43 = vsub.s32 0, %v6177_v17 }
0x40ef   :  { %7032 = vmatprep.subr.bf16.mxu1 %v7551_v23 }
0x40f0   :  { %v6179_v19 = vrot.slane %v5758_v18, %v6178_v43 }
0x40f2   :  { %7034 = vmatpush1.bf16.msra.mxu1 %v7033_v61  ;;  %v6183_v61 = vrot.slane %v5758_v18, %v6182_v38 }
0x40f3   :  { %7035 = vmatprep.subr.bf16.mxu1 %v7551_v23 }
0x40f6   :  { %7037 = vmatpush1.bf16.msra.mxu1 %v7036_v34 }
0x40f7   :  { %7038 = vmatprep.subr.bf16.mxu1 %v7551_v23 }
0x40fa   :  { %7040 = vmatpush1.bf16.msra.mxu1 %v7039_v24 }
0x40fb   :  { %7041 = vmatprep.subr.bf16.mxu1 %v7551_v23 }
0x40fe   :  { %7043 = vmatpush1.bf16.msra.mxu1 %v7042_v1 }
0x4169   :  { %v5975_v7 = vpop.f32.mrb[196].mxu1 }
0x416a   :  { %v5977_v62 = vpop.f32.mrb[197].mxu1 }
0x416d   :  { %v5981_v59 = vpop.f32.mrb[198].mxu1 }
0x416e   :  { %v5983_v63 = vpop.f32.mrb[199].mxu1 }
0x4171   :  { %v5987_v35 = vpop.f32.mrb[200].mxu1 }
0x4172   :  { %v5989_v51 = vpop.f32.mrb[201].mxu1 }
0x4175   :  { %v5993_v21 = vpop.f32.mrb[202].mxu1 }
0x4176   :  { %v5995_v32 = vpop.f32.mrb[203].mxu1 }
0x4179   :  { %v5999_v11 = vpop.f32.mrb[204].mxu1 }
0x417a   :  { %v6001_v28 = vpop.f32.mrb[205].mxu1 }
0x417b   :  { %v5846_v5 = vpop.f32.mrb[180].mxu0 }
0x417c   :  { %v5976_v22 = vadd.f32 %v5975_v7, %v5846_v5  ;;  %v5848_v0 = vpop.f32.mrb[181].mxu0 }
0x417d   :  { %v5978_v58 = vadd.f32 %v5977_v62, %v5848_v0  ;;  %v6005_v40 = vpop.f32.mrb[206].mxu1 }
0x417e   :  { %v6007_v14 = vpop.f32.mrb[207].mxu1 }
0x417f   :  { %v5852_v27 = vpop.f32.mrb[182].mxu0 }
0x4180   :  { %v5982_v23 = vadd.f32 %v5981_v59, %v5852_v27  ;;  %v5854_v41 = vpop.f32.mrb[183].mxu0 }
0x4181   :  { %v5984_v25 = vadd.f32 %v5983_v63, %v5854_v41  ;;  %v6011_v13 = vpop.f32.mrb[208].mxu1 }
0x4182   :  { %v6013_v42 = vpop.f32.mrb[209].mxu1 }
0x4183   :  { %v5858_v57 = vpop.f32.mrb[184].mxu0 }
0x4184   :  { %v5988_v16 = vadd.f32 %v5987_v35, %v5858_v57  ;;  %v5860_v45 = vpop.f32.mrb[185].mxu0 }
0x4185   :  { %v5990_v31 = vadd.f32 %v5989_v51, %v5860_v45  ;;  %v6017_v10 = vpop.f32.mrb[210].mxu1 }
0x4186   :  { %v6019_v53 = vpop.f32.mrb[211].mxu1 }
0x4187   :  { %v5864_v48 = vpop.f32.mrb[186].mxu0 }
0x4188   :  { %v5994_v37 = vadd.f32 %v5993_v21, %v5864_v48  ;;  %v5866_v47 = vpop.f32.mrb[187].mxu0 }
0x4189   :  { %v5996_v54 = vadd.f32 %v5995_v32, %v5866_v47 }
0x418b   :  { %v5870_v8 = vpop.f32.mrb[188].mxu0 }
0x418c   :  { %v6000_v56 = vadd.f32 %v5999_v11, %v5870_v8  ;;  %v5872_v33 = vpop.f32.mrb[189].mxu0 }
0x418d   :  { %v6002_v2 = vadd.f32 %v6001_v28, %v5872_v33 }
0x418f   :  { %v5876_v6 = vpop.f32.mrb[190].mxu0 }
0x4190   :  { %v6006_v60 = vadd.f32 %v6005_v40, %v5876_v6  ;;  %v5878_v39 = vpop.f32.mrb[191].mxu0 }
0x4191   :  { %v6008_v55 = vadd.f32 %v6007_v14, %v5878_v39  ;;  %v6601_v39 = vld [vmem:[#allocation5 + $0xa0] ss:$0 sm:$0xff] }
0x4193   :  { %v5882_v20 = vpop.f32.mrb[192].mxu0 }
0x4194   :  { %v6012_v15 = vadd.f32 %v6011_v13, %v5882_v20  ;;  %v5884_v26 = vpop.f32.mrb[193].mxu0 }
0x4195   :  { %v6014_v3 = vadd.f32 %v6013_v42, %v5884_v26 }
0x4197   :  { %v5888_v50 = vpop.f32.mrb[194].mxu0 }
0x4198   :  { %v6018_v29 = vadd.f32 %v6017_v10, %v5888_v50  ;;  %v5890_v9 = vpop.f32.mrb[195].mxu0 }
0x4199   :  { %v6020_v12 = vadd.f32 %v6019_v53, %v5890_v9 }
0x419b   :  { %v6112_v30 = vpop.f32.mrb[196].mxu0 }
0x419c   :  { %v6159_v4 = vadd.f32 %v6112_v30, %v5976_v22  ;;  %v6114_v34 = vpop.f32.mrb[197].mxu0 }
0x419d   :  { %v6160_v36 = vadd.f32 %v6114_v34, %v5978_v58 }
0x419e   :  { %v6186_v46 = vadd.f32 %v6179_v19, %v6159_v4 }
0x419f   :  { %v6187_v44 = vadd.f32 %v6183_v61, %v6160_v36  ;;  %v6118_v24 = vpop.f32.mrb[198].mxu0 }
0x41a0   :  { %v6161_v52 = vadd.f32 %v6118_v24, %v5982_v23  ;;  %v6120_v1 = vpop.f32.mrb[199].mxu0 }
0x41a1   :  { %v6162_v7 = vadd.f32 %v6120_v1, %v5984_v25  ;;  %6602 = vmatprep.mubr.msk.f32.mxu1 %vm639_vm0, %v6187_v44 }
0x41a2   :  { %6295 = vmatmul.mubr.f32.vlgmr.msra.gmra.mrb[212].mxu1 %v6186_v46  ;;  %v6188_v63 = vadd.f32 %v6179_v19, %v6161_v52 }
0x41a3   :  { %v6189_v62 = vadd.f32 %v6183_v61, %v6162_v7  ;;  %v6124_v59 = vpop.f32.mrb[200].mxu0 }
0x41a4   :  { %v6163_v35 = vadd.f32 %v6124_v59, %v5988_v16  ;;  %v6126_v51 = vpop.f32.mrb[201].mxu0 }
0x41a5   :  { %v6164_v21 = vadd.f32 %v6126_v51, %v5990_v31  ;;  %6603 = vmatprep.mubr.msk.f32.mxu1 %vm639_vm0, %v6189_v62 }
0x41a6   :  { %6300 = vmatmul.mubr.f32.gmra.mrb[214].mxu1 %v6188_v63  ;;  %v6190_v22 = vadd.f32 %v6179_v19, %v6163_v35 }
0x41a7   :  { %v6191_v32 = vadd.f32 %v6183_v61, %v6164_v21  ;;  %v6130_v5 = vpop.f32.mrb[202].mxu0 }
0x41a8   :  { %v6165_v0 = vadd.f32 %v6130_v5, %v5994_v37  ;;  %v6132_v58 = vpop.f32.mrb[203].mxu0 }
0x41a9   :  { %v6166_v11 = vadd.f32 %v6132_v58, %v5996_v54  ;;  %6604 = vmatprep.mubr.msk.f32.mxu1 %vm639_vm0, %v6191_v32 }
0x41aa   :  { %6305 = vmatmul.mubr.f32.gmra.mrb[216].mxu1 %v6190_v22  ;;  %v6192_v23 = vadd.f32 %v6179_v19, %v6165_v0 }
0x41ab   :  { %v6193_v28 = vadd.f32 %v6183_v61, %v6166_v11  ;;  %v6136_v27 = vpop.f32.mrb[204].mxu0 }
0x41ac   :  { %v6167_v41 = vadd.f32 %v6136_v27, %v6000_v56  ;;  %v6138_v25 = vpop.f32.mrb[205].mxu0 }
0x41ad   :  { %v6168_v40 = vadd.f32 %v6138_v25, %v6002_v2  ;;  %6605 = vmatprep.mubr.msk.f32.mxu1 %vm639_vm0, %v6193_v28 }
0x41ae   :  { %6310 = vmatmul.mubr.f32.gmra.mrb[218].mxu1 %v6192_v23  ;;  %v6194_v16 = vadd.f32 %v6179_v19, %v6167_v41 }
0x41af   :  { %v6195_v14 = vadd.f32 %v6183_v61, %v6168_v40  ;;  %v6142_v57 = vpop.f32.mrb[206].mxu0 }
0x41b0   :  { %v6169_v45 = vadd.f32 %v6142_v57, %v6006_v60  ;;  %v6144_v31 = vpop.f32.mrb[207].mxu0 }
0x41b1   :  { %v6170_v13 = vadd.f32 %v6144_v31, %v6008_v55  ;;  %6606 = vmatprep.mubr.msk.f32.mxu1 %vm639_vm0, %v6195_v14 }
0x41b2   :  { %6315 = vmatmul.mubr.f32.gmra.mrb[220].mxu1 %v6194_v16  ;;  %v6196_v37 = vadd.f32 %v6179_v19, %v6169_v45 }
0x41b3   :  { %v6197_v42 = vadd.f32 %v6183_v61, %v6170_v13  ;;  %v6148_v48 = vpop.f32.mrb[208].mxu0 }
0x41b4   :  { %v6171_v47 = vadd.f32 %v6148_v48, %v6012_v15  ;;  %v6150_v54 = vpop.f32.mrb[209].mxu0 }
0x41b5   :  { %v6172_v10 = vadd.f32 %v6150_v54, %v6014_v3  ;;  %6607 = vmatprep.mubr.msk.f32.mxu1 %vm639_vm0, %v6197_v42 }
0x41b6   :  { %6320 = vmatmul.mubr.f32.gmra.mrb[222].mxu1 %v6196_v37  ;;  %v6198_v56 = vadd.f32 %v6179_v19, %v6171_v47 }
0x41b7   :  { %v6199_v53 = vadd.f32 %v6183_v61, %v6172_v10  ;;  %v6154_v8 = vpop.f32.mrb[210].mxu0 }
0x41b8   :  { %v6173_v33 = vadd.f32 %v6154_v8, %v6018_v29  ;;  %v6156_v2 = vpop.f32.mrb[211].mxu0 }
0x41b9   :  { %v6174_v6 = vadd.f32 %v6156_v2, %v6020_v12  ;;  %6608 = vmatprep.mubr.msk.f32.mxu1 %vm639_vm0, %v6199_v53 }
0x41ba   :  { %6325 = vmatmul.mubr.f32.gmra.mrb[224].mxu1 %v6198_v56  ;;  %v6200_v60 = vadd.f32 %v6179_v19, %v6173_v33 }
0x41bb   :  { %v6201_v49 = vadd.f32 %v6183_v61, %v6174_v6 }
0x41bd   :  { %6609 = vmatprep.mubr.msk.f32.mxu1 %vm639_vm0, %v6201_v49 }
0x41be   :  { %6330 = vmatmul.mubr.f32.gmra.mrb[226].mxu1 %v6200_v60 }
0x4275   :  { %v6296_v55 = vpop.f32.mrb[212].mxu1 }
0x4276   :  { %v6297_v20 = vadd.f32 %v6601_v39, %v6296_v55  ;;  %v6298_v17 = vpop.f32.mrb[213].mxu1 }
0x4278   :  { %6335 = vst.msk [vmem:[%s10706_s6] sm:$0xff] %vm639_vm0, %v6297_v20 }
0x4279   :  { %v6301_v15 = vpop.f32.mrb[214].mxu1 }
0x427a   :  { %v6302_v26 = vadd.f32 %v6601_v39, %v6301_v15  ;;  %v6303_v3 = vpop.f32.mrb[215].mxu1 }
0x427c   :  { %6336 = vst.msk [vmem:[%s10706_s6 + $0x8] sm:$0xff] %vm639_vm0, %v6302_v26 }
0x427d   :  { %v6306_v50 = vpop.f32.mrb[216].mxu1 }
0x427e   :  { %v6307_v38 = vadd.f32 %v6601_v39, %v6306_v50  ;;  %v6308_v29 = vpop.f32.mrb[217].mxu1 }
0x4280   :  { %6337 = vst.msk [vmem:[%s10706_s6 + $0x10] sm:$0xff] %vm639_vm0, %v6307_v38 }
0x4281   :  { %v6311_v9 = vpop.f32.mrb[218].mxu1 }
0x4282   :  { %v6312_v18 = vadd.f32 %v6601_v39, %v6311_v9  ;;  %v6313_v43 = vpop.f32.mrb[219].mxu1 }
0x4284   :  { %6338 = vst.msk [vmem:[%s10706_s6 + $0x18] sm:$0xff] %vm639_vm0, %v6312_v18 }
0x4285   :  { %v6316_v12 = vpop.f32.mrb[220].mxu1 }
0x4286   :  { %v6317_v30 = vadd.f32 %v6601_v39, %v6316_v12  ;;  %v6318_v61 = vpop.f32.mrb[221].mxu1 }
0x4288   :  { %6339 = vst.msk [vmem:[%s10706_s6 + $0x20] sm:$0xff] %vm639_vm0, %v6317_v30 }
0x4289   :  { %v6321_v4 = vpop.f32.mrb[222].mxu1 }
0x428a   :  { %v6322_v19 = vadd.f32 %v6601_v39, %v6321_v4  ;;  %v6323_v34 = vpop.f32.mrb[223].mxu1 }
0x428c   :  { %6340 = vst.msk [vmem:[%s10706_s6 + $0x28] sm:$0xff] %vm639_vm0, %v6322_v19 }
0x428d   :  { %v6326_v36 = vpop.f32.mrb[224].mxu1 }
0x428e   :  { %v6327_v44 = vadd.f32 %v6601_v39, %v6326_v36  ;;  %v6328_v24 = vpop.f32.mrb[225].mxu1 }
0x4290   :  { %6341 = vst.msk [vmem:[%s10706_s6 + $0x30] sm:$0xff] %vm639_vm0, %v6327_v44 }
0x4291   :  { %v6331_v46 = vpop.f32.mrb[226].mxu1 }
0x4292   :  { %v6332_v52 = vadd.f32 %v6601_v39, %v6331_v46  ;;  %v6333_v1 = vpop.f32.mrb[227].mxu1 }
0x4294   :  { %6342 = vst.msk [vmem:[%s10706_s6 + $0x38] sm:$0xff] %vm639_vm0, %v6332_v52 }
0x4295   :  { %6347 = vsyncmov [#allocation6] }
0x4298   :  { %s6348_s12 = vpop.sfrf %6347 }
0x4299   :  { %p6610_p0 = scmp.ne.s32.totalorder %s6348_s12, 0 }
0x429b   :  { %6352 = shalt.err (%p6610_p0)  }
0x429c   :  { %6354 = vsyncmov [#allocation6 + $0x1] }
0x429f   :  { %s6355_s1 = vpop.sfrf %6354 }
0x42a0   :  { %p6611_p1 = scmp.ne.s32.totalorder %s6355_s1, 0 }
0x42a2   :  { %6359 = shalt.err (%p6611_p1)  }

</bundles_post_ra>
